<compile_context>
chip_gen: v5e
topology: v5e:2x2
jax: 0.10.0
libtpu: 0.0.40
codegen_flags: <defaults>
</compile_context>

<pallas_src>
import functools
import math

import jax
import jax.numpy as jnp
from jax.experimental import pallas as pl
from jax.experimental.pallas import tpu as pltpu


# ----------------------------- shared math helpers -----------------------------

def _layernorm(x, g, b, eps=1e-5):
    mu = jnp.mean(x, axis=-1, keepdims=True)
    xc = x - mu
    var = jnp.mean(xc * xc, axis=-1, keepdims=True)
    return xc * jax.lax.rsqrt(var + eps) * g + b


def _gelu_exact(x):
    # PyTorch nn.GELU() default is the exact (erf) form.
    return 0.5 * x * (1.0 + jax.lax.erf(x * (1.0 / math.sqrt(2.0))))


# ------------------------------- in-kernel layer --------------------------------

def _enc_layer(x_q, x_kv, keep_col, bias_row, wqkv, wo, w1, w2, vec,
               *, num_heads, batch, seq, is_self):
    """One MaskSelf/CoAttenLayer on flattened (B*S, D) f32 activations.

    wqkv: (D, 3D)   fused [Wq | Wk | Wv]
    wo:   (D, D)    output projection (x @ Wo orientation)
    w1:   (D, F), w2: (F, D)
    vec:  (8, 3D)   rows = [bqkv | bo.. | g1.. | be1.. | g2.. | be2.. | 0 | 0]
    keep_col: (B*S, 1)   (1 - mask)
    bias_row: (B, 1, S)  additive key-padding bias (mask * -1e30)
    """
    BS, D = x_kv.shape
    H = num_heads
    hd = D // H
    scale = 1.0 / math.sqrt(hd)

    # --- QKV projection: single lane-dense (BS, 3D) matmul for self-attention ---
    if is_self:
        qkv = jnp.dot(x_q, wqkv, preferred_element_type=jnp.float32) + vec[0:1, :]
        q = qkv[:, :D]
        k = qkv[:, D:2 * D]
        v = qkv[:, 2 * D:]
    else:
        q = jnp.dot(x_q, wqkv[:, :D], preferred_element_type=jnp.float32) + vec[0:1, :D]
        kv = jnp.dot(x_kv, wqkv[:, D:], preferred_element_type=jnp.float32) + vec[0:1, D:]
        k = kv[:, :D]
        v = kv[:, D:]

    bo = vec[1:2, :D]
    g1, be1 = vec[2:3, :D], vec[3:4, :D]
    g2, be2 = vec[4:5, :D], vec[5:6, :D]

    # --- multi-head attention, batched over B, per-head accumulation into Wo ---
    attn = None
    for h in range(H):                                    # static, H small
        lo = h * hd
        qh = q[:, lo:lo + hd].reshape(batch, seq, hd)
        kh = k[:, lo:lo + hd].reshape(batch, seq, hd)
        vh = v[:, lo:lo + hd].reshape(batch, seq, hd)
        s = jnp.einsum("bqd,bkd->bqk", qh, kh,
                       preferred_element_type=jnp.float32) * scale
        s = s + bias_row                                  # additive key_padding_mask
        s = s - jnp.max(s, axis=-1, keepdims=True)
        e = jnp.exp(s)
        p = e * pl.reciprocal(jnp.sum(e, axis=-1, keepdims=True), approx=True)
        oh = jnp.einsum("bqk,bkd->bqd", p, vh,
                        preferred_element_type=jnp.float32).reshape(BS, hd)
        part = jnp.dot(oh, wo[lo:lo + hd, :], preferred_element_type=jnp.float32)
        attn = part if attn is None else attn + part
    attn = attn + bo

    # --- mask multiply, residual + norm1, FFN, residual + norm2 ---
    x_h1 = attn * keep_col
    x_h1 = _layernorm(x_kv + x_h1, g1, be1)
    x_h1 = x_h1 * keep_col
    hidden = _gelu_exact(jnp.dot(x_h1, w1, preferred_element_type=jnp.float32))
    x_h2 = jnp.dot(hidden, w2, preferred_element_type=jnp.float32)
    return _layernorm(x_h1 + x_h2, g2, be2)


# --------------------------------- kernels --------------------------------------

def _self_stack_kernel(x_ref, keep_ref, bias_ref, wqkv_ref, wo_ref, w1_ref, w2_ref,
                       vec_ref, out_ref, *, num_heads, batch, seq, n_layers):
    """3-layer self-attention stack for one stream (grid axis = stream)."""
    B, S = batch, seq
    D = wo_ref.shape[-1]
    BS = B * S

    x = x_ref[0].astype(jnp.float32).reshape(BS, D)
    keep = keep_ref[0].astype(jnp.float32)        # (BS, 1)
    bias = bias_ref[0].astype(jnp.float32)        # (B, 1, S)

    for lj in range(n_layers):                    # statically unrolled, weights resident
        x = _enc_layer(x, x, keep, bias,
                       wqkv_ref[0, lj], wo_ref[0, lj], w1_ref[0, lj], w2_ref[0, lj],
                       vec_ref[0, lj],
                       num_heads=num_heads, batch=B, seq=S, is_self=True)

    out_ref[0] = x.reshape(B, S, D).astype(out_ref.dtype)


def _co_stack_kernel(x_ref, keep_ref, bias_ref, wqkv_ref, wo_ref, w1_ref, w2_ref,
                     vec_ref, out_ref, *, num_heads, batch, seq):
    """The four co-attention layers; both streams resident in VMEM."""
    B, S = batch, seq
    D = wo_ref.shape[-1]
    BS = B * S

    xs = x_ref[0].astype(jnp.float32).reshape(BS, D)
    xt = x_ref[1].astype(jnp.float32).reshape(BS, D)
    keep_s = keep_ref[0].astype(jnp.float32)
    keep_t = keep_ref[1].astype(jnp.float32)
    bias_s = bias_ref[0].astype(jnp.float32)
    bias_t = bias_ref[1].astype(jnp.float32)

    def co(li, x_q, x_kv, keep, bias):
        return _enc_layer(x_q, x_kv, keep, bias,
                          wqkv_ref[li], wo_ref[li], w1_ref[li], w2_ref[li], vec_ref[li],
                          num_heads=num_heads, batch=B, seq=S, is_self=False)

    # MaskCoAttenLayer(x1, x2, x1_mask): query = x2, key/value/residual = x1.
    xs_co1 = co(0, xt, xs, keep_s, bias_s)            # l4_sph_txt(xs, xt, xs_mask)
    xt_co1 = co(1, xs, xt, keep_t, bias_t)            # l4_txt_sph(xt, xs, xt_mask)
    xs_co2 = co(2, xt_co1, xs_co1, keep_s, bias_s)    # l5_sph_txt
    xt_co2 = co(3, xs_co1, xt_co1, keep_t, bias_t)    # l5_txt_sph

    # lane-dense (B, S, 2D) output slab; the wrapper splits the two streams.
    out = jnp.concatenate([xs_co2, xt_co2], axis=-1)
    out_ref[...] = out.reshape(B, S, 2 * D).astype(out_ref.dtype)


# ------------------------- parameter packing / wrapper ---------------------------

LAYER_NAMES = ["l1_sph_sph", "l2_sph_sph", "l3_sph_sph", "l4_sph_txt", "l5_sph_txt",
               "l1_txt_txt", "l2_txt_txt", "l3_txt_txt", "l4_txt_sph", "l5_txt_sph"]

_SELF_GROUPS = [["l1_sph_sph", "l2_sph_sph", "l3_sph_sph"],
                ["l1_txt_txt", "l2_txt_txt", "l3_txt_txt"]]
_CO_NAMES = ["l4_sph_txt", "l4_txt_sph", "l5_sph_txt", "l5_txt_sph"]


def pack_params(params, d_model):
    """One-time repack: fused QKV weights + stacked per-layer slabs."""
    D = d_model

    def fuse_wqkv(p):
        return jnp.concatenate([p["wq"], p["wk"], p["wv"]], axis=1)        # (D, 3D)

    def pack_vec(p):
        pad = jnp.zeros((1, 2 * D), jnp.float32)
        rows = [
            jnp.concatenate([p["bq"], p["bk"], p["bv"]], axis=1),          # bqkv (1, 3D)
            jnp.concatenate([p["bo"], pad], axis=1),
            jnp.concatenate([p["g1"], pad], axis=1),
            jnp.concatenate([p["be1"], pad], axis=1),
            jnp.concatenate([p["g2"], pad], axis=1),
            jnp.concatenate([p["be2"], pad], axis=1),
            jnp.zeros((2, 3 * D), jnp.float32),
        ]
        return jnp.concatenate(rows, axis=0)                               # (8, 3D)

    def stack_self(fn):
        return jnp.stack([jnp.stack([fn(params[n]) for n in grp]) for grp in _SELF_GROUPS])

    def stack_co(fn):
        return jnp.stack([fn(params[n]) for n in _CO_NAMES])

    return dict(
        wqkv_self=stack_self(fuse_wqkv), wo_self=stack_self(lambda p: p["wo"]),
        w1_self=stack_self(lambda p: p["w1"]), w2_self=stack_self(lambda p: p["w2"]),
        vec_self=stack_self(pack_vec),
        wqkv_co=stack_co(fuse_wqkv), wo_co=stack_co(lambda p: p["wo"]),
        w1_co=stack_co(lambda p: p["w1"]), w2_co=stack_co(lambda p: p["w2"]),
        vec_co=stack_co(pack_vec),
    )


def stacked_enc_layers_pallas(xs, xt, xs_mask, xt_mask, packed, num_heads):
    B, S, D = xs.shape
    BS = B * S

    ms = xs_mask.astype(jnp.float32)                 # (B, S), 1.0 == padded
    mt = xt_mask.astype(jnp.float32)
    keep_all = jnp.stack([(1.0 - ms).reshape(BS, 1),
                          (1.0 - mt).reshape(BS, 1)])                       # (2, BS, 1)
    bias_all = jnp.stack([(ms * -1e30)[:, None, :],
                          (mt * -1e30)[:, None, :]])                        # (2, B, 1, S)
    x_streams = jnp.stack([xs, xt]).astype(jnp.float32)                     # (2, B, S, D)

    def stream_spec(shape):
        nd = len(shape)
        return pl.BlockSpec((1,) + tuple(shape[1:]),
                            lambda i, _nd=nd: (i,) + (0,) * (_nd - 1))

    # --- call A: both 3-layer self-attention stacks; grid over the two streams ---
    self_inputs = (x_streams, keep_all, bias_all,
                   packed["wqkv_self"], packed["wo_self"], packed["w1_self"],
                   packed["w2_self"], packed["vec_self"])
    self_kernel = functools.partial(_self_stack_kernel, num_heads=num_heads,
                                    batch=B, seq=S, n_layers=len(_SELF_GROUPS[0]))
    x_self = pl.pallas_call(
        self_kernel,
        out_shape=jax.ShapeDtypeStruct((2, B, S, D), jnp.float32),
        grid=(2,),
        in_specs=[stream_spec(a.shape) for a in self_inputs],
        out_specs=stream_spec((2, B, S, D)),
        compiler_params=pltpu.CompilerParams(dimension_semantics=("parallel",)),
    )(*self_inputs)

    # --- call B: the four co-attention layers, whole arrays resident in VMEM ---
    co_kernel = functools.partial(_co_stack_kernel, num_heads=num_heads, batch=B, seq=S)
    out = pl.pallas_call(
        co_kernel,
        out_shape=jax.ShapeDtypeStruct((B, S, 2 * D), jnp.float32),
    )(x_self, keep_all, bias_all,
      packed["wqkv_co"], packed["wo_co"], packed["w1_co"], packed["w2_co"],
      packed["vec_co"])

    return out[:, :, :D], out[:, :, D:]


# ------------------------- parameter init (deterministic) ------------------------

def init_layer_params(key, d_model, dff):
    ks = jax.random.split(key, 6)

    def w(k, shape, scale=0.05):
        return jax.random.normal(k, shape, jnp.float32) * scale

    # PyTorch layout: Linear weight (out, in), y = x @ W.T + b ; pre-transpose here.
    in_proj_w = w(ks[0], (3 * d_model, d_model))
    in_proj_b = w(ks[1], (3 * d_model,))
    out_w = w(ks[2], (d_model, d_model))
    out_b = w(ks[3], (d_model,))
    lin1_w = w(ks[4], (dff, d_model))
    lin2_w = w(ks[5], (d_model, dff))
    return dict(
        wq=in_proj_w[0:d_model].T,
        wk=in_proj_w[d_model:2 * d_model].T,
        wv=in_proj_w[2 * d_model:].T,
        bq=in_proj_b[0:d_model].reshape(1, d_model),
        bk=in_proj_b[d_model:2 * d_model].reshape(1, d_model),
        bv=in_proj_b[2 * d_model:].reshape(1, d_model),
        wo=out_w.T, bo=out_b.reshape(1, d_model),
        g1=jnp.ones((1, d_model), jnp.float32), be1=jnp.zeros((1, d_model), jnp.float32),
        w1=lin1_w.T, w2=lin2_w.T,
        g2=jnp.ones((1, d_model), jnp.float32), be2=jnp.zeros((1, d_model), jnp.float32),
    )


# ------------------------------ plain-JAX reference -------------------------------

def ref_layer(q_in, kv_in, mask_bool, p, num_heads):
    B, S, D = q_in.shape
    hd = D // num_heads
    mask_f = mask_bool.astype(jnp.float32)
    q = q_in @ p["wq"] + p["bq"]
    k = kv_in @ p["wk"] + p["bk"]
    v = kv_in @ p["wv"] + p["bv"]
    qh = q.reshape(B, S, num_heads, hd).transpose(0, 2, 1, 3)
    kh = k.reshape(B, S, num_heads, hd).transpose(0, 2, 1, 3)
    vh = v.reshape(B, S, num_heads, hd).transpose(0, 2, 1, 3)
    s = jnp.einsum("bhqd,bhkd->bhqk", qh, kh) / math.sqrt(hd)
    s = jnp.where(mask_f[:, None, None, :] > 0.5, -1e30, s)
    pmat = jax.nn.softmax(s, axis=-1)
    attn = jnp.einsum("bhqk,bhkd->bhqd", pmat, vh).transpose(0, 2, 1, 3).reshape(B, S, D)
    attn = attn @ p["wo"] + p["bo"]
    keep = (1.0 - mask_f)[:, :, None]
    x_h1 = attn * keep
    x_h1 = _layernorm(kv_in + x_h1, p["g1"], p["be1"])
    x_h1 = x_h1 * keep
    hidden = _gelu_exact(x_h1 @ p["w1"])
    x_h2 = hidden @ p["w2"]
    return _layernorm(x_h1 + x_h2, p["g2"], p["be2"])


def stacked_enc_layers_ref(xs, xt, xs_mask, xt_mask, params, num_heads):
    xs = ref_layer(xs, xs, xs_mask, params["l1_sph_sph"], num_heads)
    xs = ref_layer(xs, xs, xs_mask, params["l2_sph_sph"], num_heads)
    xs = ref_layer(xs, xs, xs_mask, params["l3_sph_sph"], num_heads)
    xt = ref_layer(xt, xt, xt_mask, params["l1_txt_txt"], num_heads)
    xt = ref_layer(xt, xt, xt_mask, params["l2_txt_txt"], num_heads)
    xt = ref_layer(xt, xt, xt_mask, params["l3_txt_txt"], num_heads)
    # MaskCoAttenLayer(x1, x2, x1_mask): query = x2, key/value/residual = x1
    xs_co1 = ref_layer(xt, xs, xs_mask, params["l4_sph_txt"], num_heads)
    xt_co1 = ref_layer(xs, xt, xt_mask, params["l4_txt_sph"], num_heads)
    xs_co2 = ref_layer(xt_co1, xs_co1, xs_mask, params["l5_sph_txt"], num_heads)
    xt_co2 = ref_layer(xs_co1, xt_co1, xt_mask, params["l5_txt_sph"], num_heads)
    return xs_co2, xt_co2


# --------------------------------------- main -------------------------------------

if __name__ == "__main__":
    B, S, D, H, F = 2, 16, 64, 4, 128   # batch, seq, d_model, num_heads, dim_feedforward

    key = jax.random.PRNGKey(0)
    k_xs, k_xt, k_params = jax.random.split(key, 3)
    xs = jax.random.normal(k_xs, (B, S, D), jnp.float32)
    xt = jax.random.normal(k_xt, (B, S, D), jnp.float32)

    # key_padding_mask: True == padded position
    xs_mask = jnp.zeros((B, S), jnp.bool_).at[0, 12:].set(True).at[1, 10:].set(True)
    xt_mask = jnp.zeros((B, S), jnp.bool_).at[0, 14:].set(True)

    pkeys = jax.random.split(k_params, len(LAYER_NAMES))
    params = {name: init_layer_params(k, D, F) for name, k in zip(LAYER_NAMES, pkeys)}
    packed = pack_params(params, D)

    out_s, out_t = stacked_enc_layers_pallas(xs, xt, xs_mask, xt_mask, packed, H)
    out_s = jax.block_until_ready(out_s)
    out_t = jax.block_until_ready(out_t)

    ref_s, ref_t = stacked_enc_layers_ref(xs, xt, xs_mask, xt_mask, params, H)
    assert out_s.shape == (B, S, D) and out_t.shape == (B, S, D)
    err_s = float(jnp.max(jnp.abs(out_s - ref_s)))
    err_t = float(jnp.max(jnp.abs(out_t - ref_t)))
    assert jnp.allclose(out_s, ref_s, atol=5e-3, rtol=5e-3), err_s
    assert jnp.allclose(out_t, ref_t, atol=5e-3, rtol=5e-3), err_t

    print("KERNEL_OK")
</pallas_src>

<mosaic_0001>
module attributes {stable_mosaic.version = 11 : i64} {
  func.func @_self_stack_kernel(%arg0: i32, %arg1: memref<1x2x16x64xf32, #tpu.memory_space<vmem>>, %arg2: memref<1x32x1xf32, #tpu.memory_space<vmem>>, %arg3: memref<1x2x1x16xf32, #tpu.memory_space<vmem>>, %arg4: memref<1x3x64x192xf32, #tpu.memory_space<vmem>>, %arg5: memref<1x3x64x64xf32, #tpu.memory_space<vmem>>, %arg6: memref<1x3x64x128xf32, #tpu.memory_space<vmem>>, %arg7: memref<1x3x128x64xf32, #tpu.memory_space<vmem>>, %arg8: memref<1x3x8x192xf32, #tpu.memory_space<vmem>>, %arg9: memref<1x2x16x64xf32, #tpu.memory_space<vmem>>) attributes {dimension_semantics = [#tpu.dimension_semantics<parallel>], iteration_bounds = array<i64: 2>, scalar_prefetch = 0 : i64, scratch_operands = 0 : i64, tpu.core_type = #tpu.core_type<tc>, window_params = [{transform_indices = @transform_0, window_bounds = array<i64: 1, 2, 16, 64>}, {transform_indices = @transform_1, window_bounds = array<i64: 1, 32, 1>}, {transform_indices = @transform_2, window_bounds = array<i64: 1, 2, 1, 16>}, {transform_indices = @transform_3, window_bounds = array<i64: 1, 3, 64, 192>}, {transform_indices = @transform_4, window_bounds = array<i64: 1, 3, 64, 64>}, {transform_indices = @transform_5, window_bounds = array<i64: 1, 3, 64, 128>}, {transform_indices = @transform_6, window_bounds = array<i64: 1, 3, 128, 64>}, {transform_indices = @transform_7, window_bounds = array<i64: 1, 3, 8, 192>}, {transform_indices = @transform_8, window_bounds = array<i64: 1, 2, 16, 64>}]} {
    %c0 = arith.constant 0 : index
    %c0_0 = arith.constant 0 : index
    %c0_1 = arith.constant 0 : index
    %c0_2 = arith.constant 0 : index
    %0 = vector.load %arg1[%c0, %c0_0, %c0_1, %c0_2] : memref<1x2x16x64xf32, #tpu.memory_space<vmem>>, vector<1x2x16x64xf32>
    %1 = vector.shape_cast %0 : vector<1x2x16x64xf32> to vector<2x16x64xf32>
    %2 = vector.shape_cast %1 : vector<2x16x64xf32> to vector<32x64xf32>
    %c0_3 = arith.constant 0 : index
    %c0_4 = arith.constant 0 : index
    %c0_5 = arith.constant 0 : index
    %3 = vector.load %arg2[%c0_3, %c0_4, %c0_5] : memref<1x32x1xf32, #tpu.memory_space<vmem>>, vector<1x32x1xf32>
    %4 = vector.shape_cast %3 : vector<1x32x1xf32> to vector<32x1xf32>
    %c0_6 = arith.constant 0 : index
    %c0_7 = arith.constant 0 : index
    %c0_8 = arith.constant 0 : index
    %c0_9 = arith.constant 0 : index
    %5 = vector.load %arg3[%c0_6, %c0_7, %c0_8, %c0_9] : memref<1x2x1x16xf32, #tpu.memory_space<vmem>>, vector<1x2x1x16xf32>
    %6 = vector.shape_cast %5 : vector<1x2x1x16xf32> to vector<2x1x16xf32>
    %c0_10 = arith.constant 0 : index
    %c0_11 = arith.constant 0 : index
    %c0_12 = arith.constant 0 : index
    %c0_13 = arith.constant 0 : index
    %7 = vector.load %arg4[%c0_10, %c0_11, %c0_12, %c0_13] : memref<1x3x64x192xf32, #tpu.memory_space<vmem>>, vector<1x1x64x192xf32>
    %8 = vector.shape_cast %7 : vector<1x1x64x192xf32> to vector<64x192xf32>
    %c0_14 = arith.constant 0 : index
    %c0_15 = arith.constant 0 : index
    %c0_16 = arith.constant 0 : index
    %c0_17 = arith.constant 0 : index
    %9 = vector.load %arg5[%c0_14, %c0_15, %c0_16, %c0_17] : memref<1x3x64x64xf32, #tpu.memory_space<vmem>>, vector<1x1x64x64xf32>
    %10 = vector.shape_cast %9 : vector<1x1x64x64xf32> to vector<64x64xf32>
    %c0_18 = arith.constant 0 : index
    %c0_19 = arith.constant 0 : index
    %c0_20 = arith.constant 0 : index
    %c0_21 = arith.constant 0 : index
    %11 = vector.load %arg6[%c0_18, %c0_19, %c0_20, %c0_21] : memref<1x3x64x128xf32, #tpu.memory_space<vmem>>, vector<1x1x64x128xf32>
    %12 = vector.shape_cast %11 : vector<1x1x64x128xf32> to vector<64x128xf32>
    %c0_22 = arith.constant 0 : index
    %c0_23 = arith.constant 0 : index
    %c0_24 = arith.constant 0 : index
    %c0_25 = arith.constant 0 : index
    %13 = vector.load %arg7[%c0_22, %c0_23, %c0_24, %c0_25] : memref<1x3x128x64xf32, #tpu.memory_space<vmem>>, vector<1x1x128x64xf32>
    %14 = vector.shape_cast %13 : vector<1x1x128x64xf32> to vector<128x64xf32>
    %c0_26 = arith.constant 0 : index
    %c0_27 = arith.constant 0 : index
    %c0_28 = arith.constant 0 : index
    %c0_29 = arith.constant 0 : index
    %15 = vector.load %arg8[%c0_26, %c0_27, %c0_28, %c0_29] : memref<1x3x8x192xf32, #tpu.memory_space<vmem>>, vector<1x1x8x192xf32>
    %16 = vector.shape_cast %15 : vector<1x1x8x192xf32> to vector<8x192xf32>
    %cst = arith.constant dense<0.000000e+00> : vector<32x192xf32>
    %17 = tpu.matmul %2, %8, %cst {dimension_numbers = #tpu.dot_dimension_numbers<[1], [0], [0], [1], [0, 0, 1, 1], [], []>} : vector<32x64xf32>, vector<64x192xf32>, vector<32x192xf32> -> vector<32x192xf32>
    %18 = vector.extract_strided_slice %16 {offsets = [0, 0], sizes = [1, 192], strides = [1, 1]} : vector<8x192xf32> to vector<1x192xf32>
    %19 = vector.broadcast %18 : vector<1x192xf32> to vector<32x192xf32>
    %20 = arith.addf %17, %19 : vector<32x192xf32>
    %21 = vector.extract_strided_slice %20 {offsets = [0, 0], sizes = [32, 64], strides = [1, 1]} : vector<32x192xf32> to vector<32x64xf32>
    %22 = vector.extract_strided_slice %20 {offsets = [0, 64], sizes = [32, 64], strides = [1, 1]} : vector<32x192xf32> to vector<32x64xf32>
    %23 = vector.extract_strided_slice %20 {offsets = [0, 128], sizes = [32, 64], strides = [1, 1]} : vector<32x192xf32> to vector<32x64xf32>
    %24 = vector.extract_strided_slice %16 {offsets = [1, 0], sizes = [1, 64], strides = [1, 1]} : vector<8x192xf32> to vector<1x64xf32>
    %25 = vector.extract_strided_slice %16 {offsets = [2, 0], sizes = [1, 64], strides = [1, 1]} : vector<8x192xf32> to vector<1x64xf32>
    %26 = vector.extract_strided_slice %16 {offsets = [3, 0], sizes = [1, 64], strides = [1, 1]} : vector<8x192xf32> to vector<1x64xf32>
    %27 = vector.extract_strided_slice %16 {offsets = [4, 0], sizes = [1, 64], strides = [1, 1]} : vector<8x192xf32> to vector<1x64xf32>
    %28 = vector.extract_strided_slice %16 {offsets = [5, 0], sizes = [1, 64], strides = [1, 1]} : vector<8x192xf32> to vector<1x64xf32>
    %29 = vector.extract_strided_slice %21 {offsets = [0, 0], sizes = [32, 16], strides = [1, 1]} : vector<32x64xf32> to vector<32x16xf32>
    %30 = vector.shape_cast %29 : vector<32x16xf32> to vector<2x16x16xf32>
    %31 = vector.extract_strided_slice %22 {offsets = [0, 0], sizes = [32, 16], strides = [1, 1]} : vector<32x64xf32> to vector<32x16xf32>
    %32 = vector.shape_cast %31 : vector<32x16xf32> to vector<2x16x16xf32>
    %33 = vector.extract_strided_slice %23 {offsets = [0, 0], sizes = [32, 16], strides = [1, 1]} : vector<32x64xf32> to vector<32x16xf32>
    %34 = vector.shape_cast %33 : vector<32x16xf32> to vector<2x16x16xf32>
    "tpu.trace_start"() <{level = 10 : i32, message = "bqd,bkd->bqk"}> : () -> ()
    %cst_30 = arith.constant dense<0.000000e+00> : vector<2x16x16xf32>
    %35 = tpu.matmul %30, %32, %cst_30 {dimension_numbers = #tpu.dot_dimension_numbers<[2], [2], [1], [1], [0, 0, 0, 1, 1, 1], [0], [0]>} : vector<2x16x16xf32>, vector<2x16x16xf32>, vector<2x16x16xf32> -> vector<2x16x16xf32>
    "tpu.trace_stop"() : () -> ()
    %cst_31 = arith.constant 2.500000e-01 : f32
    %36 = vector.broadcast %cst_31 : f32 to vector<2x16x16xf32>
    %37 = arith.mulf %35, %36 : vector<2x16x16xf32>
    %38 = vector.broadcast %6 : vector<2x1x16xf32> to vector<2x16x16xf32>
    %39 = arith.addf %37, %38 : vector<2x16x16xf32>
    %cst_32 = arith.constant dense<0xFF800000> : vector<2x16xf32>
    %40 = vector.multi_reduction <maximumf>, %39, %cst_32 [2] : vector<2x16x16xf32> to vector<2x16xf32>
    %41 = vector.shape_cast %40 : vector<2x16xf32> to vector<2x16x1xf32>
    %42 = vector.broadcast %41 : vector<2x16x1xf32> to vector<2x16x16xf32>
    %43 = arith.subf %39, %42 : vector<2x16x16xf32>
    %44 = math.exp %43 : vector<2x16x16xf32>
    %cst_33 = arith.constant dense<0.000000e+00> : vector<2x16xf32>
    %45 = vector.multi_reduction <add>, %44, %cst_33 [2] : vector<2x16x16xf32> to vector<2x16xf32>
    %46 = vector.shape_cast %45 : vector<2x16xf32> to vector<2x16x1xf32>
    %47 = tpu.reciprocal %46 {approx = true} : vector<2x16x1xf32> -> vector<2x16x1xf32>
    %48 = vector.broadcast %47 : vector<2x16x1xf32> to vector<2x16x16xf32>
    %49 = arith.mulf %44, %48 : vector<2x16x16xf32>
    "tpu.trace_start"() <{level = 10 : i32, message = "bqk,bkd->bqd"}> : () -> ()
    %cst_34 = arith.constant dense<0.000000e+00> : vector<2x16x16xf32>
    %50 = tpu.matmul %49, %34, %cst_34 {dimension_numbers = #tpu.dot_dimension_numbers<[2], [1], [1], [2], [0, 0, 0, 1, 1, 2], [0], [0]>} : vector<2x16x16xf32>, vector<2x16x16xf32>, vector<2x16x16xf32> -> vector<2x16x16xf32>
    "tpu.trace_stop"() : () -> ()
    %51 = vector.shape_cast %50 : vector<2x16x16xf32> to vector<32x16xf32>
    %52 = vector.extract_strided_slice %10 {offsets = [0, 0], sizes = [16, 64], strides = [1, 1]} : vector<64x64xf32> to vector<16x64xf32>
    %cst_35 = arith.constant dense<0.000000e+00> : vector<32x64xf32>
    %53 = tpu.matmul %51, %52, %cst_35 {dimension_numbers = #tpu.dot_dimension_numbers<[1], [0], [0], [1], [0, 0, 1, 1], [], []>} : vector<32x16xf32>, vector<16x64xf32>, vector<32x64xf32> -> vector<32x64xf32>
    %54 = vector.extract_strided_slice %21 {offsets = [0, 16], sizes = [32, 16], strides = [1, 1]} : vector<32x64xf32> to vector<32x16xf32>
    %55 = vector.shape_cast %54 : vector<32x16xf32> to vector<2x16x16xf32>
    %56 = vector.extract_strided_slice %22 {offsets = [0, 16], sizes = [32, 16], strides = [1, 1]} : vector<32x64xf32> to vector<32x16xf32>
    %57 = vector.shape_cast %56 : vector<32x16xf32> to vector<2x16x16xf32>
    %58 = vector.extract_strided_slice %23 {offsets = [0, 16], sizes = [32, 16], strides = [1, 1]} : vector<32x64xf32> to vector<32x16xf32>
    %59 = vector.shape_cast %58 : vector<32x16xf32> to vector<2x16x16xf32>
    "tpu.trace_start"() <{level = 10 : i32, message = "bqd,bkd->bqk"}> : () -> ()
    %cst_36 = arith.constant dense<0.000000e+00> : vector<2x16x16xf32>
    %60 = tpu.matmul %55, %57, %cst_36 {dimension_numbers = #tpu.dot_dimension_numbers<[2], [2], [1], [1], [0, 0, 0, 1, 1, 1], [0], [0]>} : vector<2x16x16xf32>, vector<2x16x16xf32>, vector<2x16x16xf32> -> vector<2x16x16xf32>
    "tpu.trace_stop"() : () -> ()
    %cst_37 = arith.constant 2.500000e-01 : f32
    %61 = vector.broadcast %cst_37 : f32 to vector<2x16x16xf32>
    %62 = arith.mulf %60, %61 : vector<2x16x16xf32>
    %63 = vector.broadcast %6 : vector<2x1x16xf32> to vector<2x16x16xf32>
    %64 = arith.addf %62, %63 : vector<2x16x16xf32>
    %cst_38 = arith.constant dense<0xFF800000> : vector<2x16xf32>
    %65 = vector.multi_reduction <maximumf>, %64, %cst_38 [2] : vector<2x16x16xf32> to vector<2x16xf32>
    %66 = vector.shape_cast %65 : vector<2x16xf32> to vector<2x16x1xf32>
    %67 = vector.broadcast %66 : vector<2x16x1xf32> to vector<2x16x16xf32>
    %68 = arith.subf %64, %67 : vector<2x16x16xf32>
    %69 = math.exp %68 : vector<2x16x16xf32>
    %cst_39 = arith.constant dense<0.000000e+00> : vector<2x16xf32>
    %70 = vector.multi_reduction <add>, %69, %cst_39 [2] : vector<2x16x16xf32> to vector<2x16xf32>
    %71 = vector.shape_cast %70 : vector<2x16xf32> to vector<2x16x1xf32>
    %72 = tpu.reciprocal %71 {approx = true} : vector<2x16x1xf32> -> vector<2x16x1xf32>
    %73 = vector.broadcast %72 : vector<2x16x1xf32> to vector<2x16x16xf32>
    %74 = arith.mulf %69, %73 : vector<2x16x16xf32>
    "tpu.trace_start"() <{level = 10 : i32, message = "bqk,bkd->bqd"}> : () -> ()
    %cst_40 = arith.constant dense<0.000000e+00> : vector<2x16x16xf32>
    %75 = tpu.matmul %74, %59, %cst_40 {dimension_numbers = #tpu.dot_dimension_numbers<[2], [1], [1], [2], [0, 0, 0, 1, 1, 2], [0], [0]>} : vector<2x16x16xf32>, vector<2x16x16xf32>, vector<2x16x16xf32> -> vector<2x16x16xf32>
    "tpu.trace_stop"() : () -> ()
    %76 = vector.shape_cast %75 : vector<2x16x16xf32> to vector<32x16xf32>
    %77 = vector.extract_strided_slice %10 {offsets = [16, 0], sizes = [16, 64], strides = [1, 1]} : vector<64x64xf32> to vector<16x64xf32>
    %cst_41 = arith.constant dense<0.000000e+00> : vector<32x64xf32>
    %78 = tpu.matmul %76, %77, %cst_41 {dimension_numbers = #tpu.dot_dimension_numbers<[1], [0], [0], [1], [0, 0, 1, 1], [], []>} : vector<32x16xf32>, vector<16x64xf32>, vector<32x64xf32> -> vector<32x64xf32>
    %79 = arith.addf %53, %78 : vector<32x64xf32>
    %80 = vector.extract_strided_slice %21 {offsets = [0, 32], sizes = [32, 16], strides = [1, 1]} : vector<32x64xf32> to vector<32x16xf32>
    %81 = vector.shape_cast %80 : vector<32x16xf32> to vector<2x16x16xf32>
    %82 = vector.extract_strided_slice %22 {offsets = [0, 32], sizes = [32, 16], strides = [1, 1]} : vector<32x64xf32> to vector<32x16xf32>
    %83 = vector.shape_cast %82 : vector<32x16xf32> to vector<2x16x16xf32>
    %84 = vector.extract_strided_slice %23 {offsets = [0, 32], sizes = [32, 16], strides = [1, 1]} : vector<32x64xf32> to vector<32x16xf32>
    %85 = vector.shape_cast %84 : vector<32x16xf32> to vector<2x16x16xf32>
    "tpu.trace_start"() <{level = 10 : i32, message = "bqd,bkd->bqk"}> : () -> ()
    %cst_42 = arith.constant dense<0.000000e+00> : vector<2x16x16xf32>
    %86 = tpu.matmul %81, %83, %cst_42 {dimension_numbers = #tpu.dot_dimension_numbers<[2], [2], [1], [1], [0, 0, 0, 1, 1, 1], [0], [0]>} : vector<2x16x16xf32>, vector<2x16x16xf32>, vector<2x16x16xf32> -> vector<2x16x16xf32>
    "tpu.trace_stop"() : () -> ()
    %cst_43 = arith.constant 2.500000e-01 : f32
    %87 = vector.broadcast %cst_43 : f32 to vector<2x16x16xf32>
    %88 = arith.mulf %86, %87 : vector<2x16x16xf32>
    %89 = vector.broadcast %6 : vector<2x1x16xf32> to vector<2x16x16xf32>
    %90 = arith.addf %88, %89 : vector<2x16x16xf32>
    %cst_44 = arith.constant dense<0xFF800000> : vector<2x16xf32>
    %91 = vector.multi_reduction <maximumf>, %90, %cst_44 [2] : vector<2x16x16xf32> to vector<2x16xf32>
    %92 = vector.shape_cast %91 : vector<2x16xf32> to vector<2x16x1xf32>
    %93 = vector.broadcast %92 : vector<2x16x1xf32> to vector<2x16x16xf32>
    %94 = arith.subf %90, %93 : vector<2x16x16xf32>
    %95 = math.exp %94 : vector<2x16x16xf32>
    %cst_45 = arith.constant dense<0.000000e+00> : vector<2x16xf32>
    %96 = vector.multi_reduction <add>, %95, %cst_45 [2] : vector<2x16x16xf32> to vector<2x16xf32>
    %97 = vector.shape_cast %96 : vector<2x16xf32> to vector<2x16x1xf32>
    %98 = tpu.reciprocal %97 {approx = true} : vector<2x16x1xf32> -> vector<2x16x1xf32>
    %99 = vector.broadcast %98 : vector<2x16x1xf32> to vector<2x16x16xf32>
    %100 = arith.mulf %95, %99 : vector<2x16x16xf32>
    "tpu.trace_start"() <{level = 10 : i32, message = "bqk,bkd->bqd"}> : () -> ()
    %cst_46 = arith.constant dense<0.000000e+00> : vector<2x16x16xf32>
    %101 = tpu.matmul %100, %85, %cst_46 {dimension_numbers = #tpu.dot_dimension_numbers<[2], [1], [1], [2], [0, 0, 0, 1, 1, 2], [0], [0]>} : vector<2x16x16xf32>, vector<2x16x16xf32>, vector<2x16x16xf32> -> vector<2x16x16xf32>
    "tpu.trace_stop"() : () -> ()
    %102 = vector.shape_cast %101 : vector<2x16x16xf32> to vector<32x16xf32>
    %103 = vector.extract_strided_slice %10 {offsets = [32, 0], sizes = [16, 64], strides = [1, 1]} : vector<64x64xf32> to vector<16x64xf32>
    %cst_47 = arith.constant dense<0.000000e+00> : vector<32x64xf32>
    %104 = tpu.matmul %102, %103, %cst_47 {dimension_numbers = #tpu.dot_dimension_numbers<[1], [0], [0], [1], [0, 0, 1, 1], [], []>} : vector<32x16xf32>, vector<16x64xf32>, vector<32x64xf32> -> vector<32x64xf32>
    %105 = arith.addf %79, %104 : vector<32x64xf32>
    %106 = vector.extract_strided_slice %21 {offsets = [0, 48], sizes = [32, 16], strides = [1, 1]} : vector<32x64xf32> to vector<32x16xf32>
    %107 = vector.shape_cast %106 : vector<32x16xf32> to vector<2x16x16xf32>
    %108 = vector.extract_strided_slice %22 {offsets = [0, 48], sizes = [32, 16], strides = [1, 1]} : vector<32x64xf32> to vector<32x16xf32>
    %109 = vector.shape_cast %108 : vector<32x16xf32> to vector<2x16x16xf32>
    %110 = vector.extract_strided_slice %23 {offsets = [0, 48], sizes = [32, 16], strides = [1, 1]} : vector<32x64xf32> to vector<32x16xf32>
    %111 = vector.shape_cast %110 : vector<32x16xf32> to vector<2x16x16xf32>
    "tpu.trace_start"() <{level = 10 : i32, message = "bqd,bkd->bqk"}> : () -> ()
    %cst_48 = arith.constant dense<0.000000e+00> : vector<2x16x16xf32>
    %112 = tpu.matmul %107, %109, %cst_48 {dimension_numbers = #tpu.dot_dimension_numbers<[2], [2], [1], [1], [0, 0, 0, 1, 1, 1], [0], [0]>} : vector<2x16x16xf32>, vector<2x16x16xf32>, vector<2x16x16xf32> -> vector<2x16x16xf32>
    "tpu.trace_stop"() : () -> ()
    %cst_49 = arith.constant 2.500000e-01 : f32
    %113 = vector.broadcast %cst_49 : f32 to vector<2x16x16xf32>
    %114 = arith.mulf %112, %113 : vector<2x16x16xf32>
    %115 = vector.broadcast %6 : vector<2x1x16xf32> to vector<2x16x16xf32>
    %116 = arith.addf %114, %115 : vector<2x16x16xf32>
    %cst_50 = arith.constant dense<0xFF800000> : vector<2x16xf32>
    %117 = vector.multi_reduction <maximumf>, %116, %cst_50 [2] : vector<2x16x16xf32> to vector<2x16xf32>
    %118 = vector.shape_cast %117 : vector<2x16xf32> to vector<2x16x1xf32>
    %119 = vector.broadcast %118 : vector<2x16x1xf32> to vector<2x16x16xf32>
    %120 = arith.subf %116, %119 : vector<2x16x16xf32>
    %121 = math.exp %120 : vector<2x16x16xf32>
    %cst_51 = arith.constant dense<0.000000e+00> : vector<2x16xf32>
    %122 = vector.multi_reduction <add>, %121, %cst_51 [2] : vector<2x16x16xf32> to vector<2x16xf32>
    %123 = vector.shape_cast %122 : vector<2x16xf32> to vector<2x16x1xf32>
    %124 = tpu.reciprocal %123 {approx = true} : vector<2x16x1xf32> -> vector<2x16x1xf32>
    %125 = vector.broadcast %124 : vector<2x16x1xf32> to vector<2x16x16xf32>
    %126 = arith.mulf %121, %125 : vector<2x16x16xf32>
    "tpu.trace_start"() <{level = 10 : i32, message = "bqk,bkd->bqd"}> : () -> ()
    %cst_52 = arith.constant dense<0.000000e+00> : vector<2x16x16xf32>
    %127 = tpu.matmul %126, %111, %cst_52 {dimension_numbers = #tpu.dot_dimension_numbers<[2], [1], [1], [2], [0, 0, 0, 1, 1, 2], [0], [0]>} : vector<2x16x16xf32>, vector<2x16x16xf32>, vector<2x16x16xf32> -> vector<2x16x16xf32>
    "tpu.trace_stop"() : () -> ()
    %128 = vector.shape_cast %127 : vector<2x16x16xf32> to vector<32x16xf32>
    %129 = vector.extract_strided_slice %10 {offsets = [48, 0], sizes = [16, 64], strides = [1, 1]} : vector<64x64xf32> to vector<16x64xf32>
    %cst_53 = arith.constant dense<0.000000e+00> : vector<32x64xf32>
    %130 = tpu.matmul %128, %129, %cst_53 {dimension_numbers = #tpu.dot_dimension_numbers<[1], [0], [0], [1], [0, 0, 1, 1], [], []>} : vector<32x16xf32>, vector<16x64xf32>, vector<32x64xf32> -> vector<32x64xf32>
    %131 = arith.addf %105, %130 : vector<32x64xf32>
    %132 = vector.broadcast %24 : vector<1x64xf32> to vector<32x64xf32>
    %133 = arith.addf %131, %132 : vector<32x64xf32>
    %134 = vector.broadcast %4 : vector<32x1xf32> to vector<32x64xf32>
    %135 = arith.mulf %133, %134 : vector<32x64xf32>
    %136 = arith.addf %2, %135 : vector<32x64xf32>
    %cst_54 = arith.constant dense<0.000000e+00> : vector<32xf32>
    %137 = vector.multi_reduction <add>, %136, %cst_54 [1] : vector<32x64xf32> to vector<32xf32>
    %138 = vector.shape_cast %137 : vector<32xf32> to vector<32x1xf32>
    %cst_55 = arith.constant 6.400000e+01 : f32
    %139 = vector.broadcast %cst_55 : f32 to vector<32x1xf32>
    %140 = arith.divf %138, %139 : vector<32x1xf32>
    %141 = vector.broadcast %140 : vector<32x1xf32> to vector<32x64xf32>
    %142 = arith.subf %136, %141 : vector<32x64xf32>
    %143 = arith.mulf %142, %142 : vector<32x64xf32>
    %cst_56 = arith.constant dense<0.000000e+00> : vector<32xf32>
    %144 = vector.multi_reduction <add>, %143, %cst_56 [1] : vector<32x64xf32> to vector<32xf32>
    %145 = vector.shape_cast %144 : vector<32xf32> to vector<32x1xf32>
    %cst_57 = arith.constant 6.400000e+01 : f32
    %146 = vector.broadcast %cst_57 : f32 to vector<32x1xf32>
    %147 = arith.divf %145, %146 : vector<32x1xf32>
    %cst_58 = arith.constant 9.99999974E-6 : f32
    %148 = vector.broadcast %cst_58 : f32 to vector<32x1xf32>
    %149 = arith.addf %147, %148 : vector<32x1xf32>
    %150 = math.rsqrt %149 : vector<32x1xf32>
    %151 = vector.broadcast %150 : vector<32x1xf32> to vector<32x64xf32>
    %152 = arith.mulf %142, %151 : vector<32x64xf32>
    %153 = vector.broadcast %25 : vector<1x64xf32> to vector<32x64xf32>
    %154 = arith.mulf %152, %153 : vector<32x64xf32>
    %155 = vector.broadcast %26 : vector<1x64xf32> to vector<32x64xf32>
    %156 = arith.addf %154, %155 : vector<32x64xf32>
    %157 = vector.broadcast %4 : vector<32x1xf32> to vector<32x64xf32>
    %158 = arith.mulf %156, %157 : vector<32x64xf32>
    %cst_59 = arith.constant dense<0.000000e+00> : vector<32x128xf32>
    %159 = tpu.matmul %158, %12, %cst_59 {dimension_numbers = #tpu.dot_dimension_numbers<[1], [0], [0], [1], [0, 0, 1, 1], [], []>} : vector<32x64xf32>, vector<64x128xf32>, vector<32x128xf32> -> vector<32x128xf32>
    %cst_60 = arith.constant 5.000000e-01 : f32
    %160 = vector.broadcast %cst_60 : f32 to vector<32x128xf32>
    %161 = arith.mulf %160, %159 : vector<32x128xf32>
    %cst_61 = arith.constant 0.707106769 : f32
    %162 = vector.broadcast %cst_61 : f32 to vector<32x128xf32>
    %163 = arith.mulf %159, %162 : vector<32x128xf32>
    %164 = math.erf %163 : vector<32x128xf32>
    %cst_62 = arith.constant 1.000000e+00 : f32
    %165 = vector.broadcast %cst_62 : f32 to vector<32x128xf32>
    %166 = arith.addf %165, %164 : vector<32x128xf32>
    %167 = arith.mulf %161, %166 : vector<32x128xf32>
    %cst_63 = arith.constant dense<0.000000e+00> : vector<32x64xf32>
    %168 = tpu.matmul %167, %14, %cst_63 {dimension_numbers = #tpu.dot_dimension_numbers<[1], [0], [0], [1], [0, 0, 1, 1], [], []>} : vector<32x128xf32>, vector<128x64xf32>, vector<32x64xf32> -> vector<32x64xf32>
    %169 = arith.addf %158, %168 : vector<32x64xf32>
    %cst_64 = arith.constant dense<0.000000e+00> : vector<32xf32>
    %170 = vector.multi_reduction <add>, %169, %cst_64 [1] : vector<32x64xf32> to vector<32xf32>
    %171 = vector.shape_cast %170 : vector<32xf32> to vector<32x1xf32>
    %cst_65 = arith.constant 6.400000e+01 : f32
    %172 = vector.broadcast %cst_65 : f32 to vector<32x1xf32>
    %173 = arith.divf %171, %172 : vector<32x1xf32>
    %174 = vector.broadcast %173 : vector<32x1xf32> to vector<32x64xf32>
    %175 = arith.subf %169, %174 : vector<32x64xf32>
    %176 = arith.mulf %175, %175 : vector<32x64xf32>
    %cst_66 = arith.constant dense<0.000000e+00> : vector<32xf32>
    %177 = vector.multi_reduction <add>, %176, %cst_66 [1] : vector<32x64xf32> to vector<32xf32>
    %178 = vector.shape_cast %177 : vector<32xf32> to vector<32x1xf32>
    %cst_67 = arith.constant 6.400000e+01 : f32
    %179 = vector.broadcast %cst_67 : f32 to vector<32x1xf32>
    %180 = arith.divf %178, %179 : vector<32x1xf32>
    %cst_68 = arith.constant 9.99999974E-6 : f32
    %181 = vector.broadcast %cst_68 : f32 to vector<32x1xf32>
    %182 = arith.addf %180, %181 : vector<32x1xf32>
    %183 = math.rsqrt %182 : vector<32x1xf32>
    %184 = vector.broadcast %183 : vector<32x1xf32> to vector<32x64xf32>
    %185 = arith.mulf %175, %184 : vector<32x64xf32>
    %186 = vector.broadcast %27 : vector<1x64xf32> to vector<32x64xf32>
    %187 = arith.mulf %185, %186 : vector<32x64xf32>
    %188 = vector.broadcast %28 : vector<1x64xf32> to vector<32x64xf32>
    %189 = arith.addf %187, %188 : vector<32x64xf32>
    %c0_69 = arith.constant 0 : index
    %c1 = arith.constant 1 : index
    %c0_70 = arith.constant 0 : index
    %c0_71 = arith.constant 0 : index
    %190 = vector.load %arg4[%c0_69, %c1, %c0_70, %c0_71] : memref<1x3x64x192xf32, #tpu.memory_space<vmem>>, vector<1x1x64x192xf32>
    %191 = vector.shape_cast %190 : vector<1x1x64x192xf32> to vector<64x192xf32>
    %c0_72 = arith.constant 0 : index
    %c1_73 = arith.constant 1 : index
    %c0_74 = arith.constant 0 : index
    %c0_75 = arith.constant 0 : index
    %192 = vector.load %arg5[%c0_72, %c1_73, %c0_74, %c0_75] : memref<1x3x64x64xf32, #tpu.memory_space<vmem>>, vector<1x1x64x64xf32>
    %193 = vector.shape_cast %192 : vector<1x1x64x64xf32> to vector<64x64xf32>
    %c0_76 = arith.constant 0 : index
    %c1_77 = arith.constant 1 : index
    %c0_78 = arith.constant 0 : index
    %c0_79 = arith.constant 0 : index
    %194 = vector.load %arg6[%c0_76, %c1_77, %c0_78, %c0_79] : memref<1x3x64x128xf32, #tpu.memory_space<vmem>>, vector<1x1x64x128xf32>
    %195 = vector.shape_cast %194 : vector<1x1x64x128xf32> to vector<64x128xf32>
    %c0_80 = arith.constant 0 : index
    %c1_81 = arith.constant 1 : index
    %c0_82 = arith.constant 0 : index
    %c0_83 = arith.constant 0 : index
    %196 = vector.load %arg7[%c0_80, %c1_81, %c0_82, %c0_83] : memref<1x3x128x64xf32, #tpu.memory_space<vmem>>, vector<1x1x128x64xf32>
    %197 = vector.shape_cast %196 : vector<1x1x128x64xf32> to vector<128x64xf32>
    %c0_84 = arith.constant 0 : index
    %c1_85 = arith.constant 1 : index
    %c0_86 = arith.constant 0 : index
    %c0_87 = arith.constant 0 : index
    %198 = vector.load %arg8[%c0_84, %c1_85, %c0_86, %c0_87] : memref<1x3x8x192xf32, #tpu.memory_space<vmem>>, vector<1x1x8x192xf32>
    %199 = vector.shape_cast %198 : vector<1x1x8x192xf32> to vector<8x192xf32>
    %cst_88 = arith.constant dense<0.000000e+00> : vector<32x192xf32>
    %200 = tpu.matmul %189, %191, %cst_88 {dimension_numbers = #tpu.dot_dimension_numbers<[1], [0], [0], [1], [0, 0, 1, 1], [], []>} : vector<32x64xf32>, vector<64x192xf32>, vector<32x192xf32> -> vector<32x192xf32>
    %201 = vector.extract_strided_slice %199 {offsets = [0, 0], sizes = [1, 192], strides = [1, 1]} : vector<8x192xf32> to vector<1x192xf32>
    %202 = vector.broadcast %201 : vector<1x192xf32> to vector<32x192xf32>
    %203 = arith.addf %200, %202 : vector<32x192xf32>
    %204 = vector.extract_strided_slice %203 {offsets = [0, 0], sizes = [32, 64], strides = [1, 1]} : vector<32x192xf32> to vector<32x64xf32>
    %205 = vector.extract_strided_slice %203 {offsets = [0, 64], sizes = [32, 64], strides = [1, 1]} : vector<32x192xf32> to vector<32x64xf32>
    %206 = vector.extract_strided_slice %203 {offsets = [0, 128], sizes = [32, 64], strides = [1, 1]} : vector<32x192xf32> to vector<32x64xf32>
    %207 = vector.extract_strided_slice %199 {offsets = [1, 0], sizes = [1, 64], strides = [1, 1]} : vector<8x192xf32> to vector<1x64xf32>
    %208 = vector.extract_strided_slice %199 {offsets = [2, 0], sizes = [1, 64], strides = [1, 1]} : vector<8x192xf32> to vector<1x64xf32>
    %209 = vector.extract_strided_slice %199 {offsets = [3, 0], sizes = [1, 64], strides = [1, 1]} : vector<8x192xf32> to vector<1x64xf32>
    %210 = vector.extract_strided_slice %199 {offsets = [4, 0], sizes = [1, 64], strides = [1, 1]} : vector<8x192xf32> to vector<1x64xf32>
    %211 = vector.extract_strided_slice %199 {offsets = [5, 0], sizes = [1, 64], strides = [1, 1]} : vector<8x192xf32> to vector<1x64xf32>
    %212 = vector.extract_strided_slice %204 {offsets = [0, 0], sizes = [32, 16], strides = [1, 1]} : vector<32x64xf32> to vector<32x16xf32>
    %213 = vector.shape_cast %212 : vector<32x16xf32> to vector<2x16x16xf32>
    %214 = vector.extract_strided_slice %205 {offsets = [0, 0], sizes = [32, 16], strides = [1, 1]} : vector<32x64xf32> to vector<32x16xf32>
    %215 = vector.shape_cast %214 : vector<32x16xf32> to vector<2x16x16xf32>
    %216 = vector.extract_strided_slice %206 {offsets = [0, 0], sizes = [32, 16], strides = [1, 1]} : vector<32x64xf32> to vector<32x16xf32>
    %217 = vector.shape_cast %216 : vector<32x16xf32> to vector<2x16x16xf32>
    "tpu.trace_start"() <{level = 10 : i32, message = "bqd,bkd->bqk"}> : () -> ()
    %cst_89 = arith.constant dense<0.000000e+00> : vector<2x16x16xf32>
    %218 = tpu.matmul %213, %215, %cst_89 {dimension_numbers = #tpu.dot_dimension_numbers<[2], [2], [1], [1], [0, 0, 0, 1, 1, 1], [0], [0]>} : vector<2x16x16xf32>, vector<2x16x16xf32>, vector<2x16x16xf32> -> vector<2x16x16xf32>
    "tpu.trace_stop"() : () -> ()
    %cst_90 = arith.constant 2.500000e-01 : f32
    %219 = vector.broadcast %cst_90 : f32 to vector<2x16x16xf32>
    %220 = arith.mulf %218, %219 : vector<2x16x16xf32>
    %221 = vector.broadcast %6 : vector<2x1x16xf32> to vector<2x16x16xf32>
    %222 = arith.addf %220, %221 : vector<2x16x16xf32>
    %cst_91 = arith.constant dense<0xFF800000> : vector<2x16xf32>
    %223 = vector.multi_reduction <maximumf>, %222, %cst_91 [2] : vector<2x16x16xf32> to vector<2x16xf32>
    %224 = vector.shape_cast %223 : vector<2x16xf32> to vector<2x16x1xf32>
    %225 = vector.broadcast %224 : vector<2x16x1xf32> to vector<2x16x16xf32>
    %226 = arith.subf %222, %225 : vector<2x16x16xf32>
    %227 = math.exp %226 : vector<2x16x16xf32>
    %cst_92 = arith.constant dense<0.000000e+00> : vector<2x16xf32>
    %228 = vector.multi_reduction <add>, %227, %cst_92 [2] : vector<2x16x16xf32> to vector<2x16xf32>
    %229 = vector.shape_cast %228 : vector<2x16xf32> to vector<2x16x1xf32>
    %230 = tpu.reciprocal %229 {approx = true} : vector<2x16x1xf32> -> vector<2x16x1xf32>
    %231 = vector.broadcast %230 : vector<2x16x1xf32> to vector<2x16x16xf32>
    %232 = arith.mulf %227, %231 : vector<2x16x16xf32>
    "tpu.trace_start"() <{level = 10 : i32, message = "bqk,bkd->bqd"}> : () -> ()
    %cst_93 = arith.constant dense<0.000000e+00> : vector<2x16x16xf32>
    %233 = tpu.matmul %232, %217, %cst_93 {dimension_numbers = #tpu.dot_dimension_numbers<[2], [1], [1], [2], [0, 0, 0, 1, 1, 2], [0], [0]>} : vector<2x16x16xf32>, vector<2x16x16xf32>, vector<2x16x16xf32> -> vector<2x16x16xf32>
    "tpu.trace_stop"() : () -> ()
    %234 = vector.shape_cast %233 : vector<2x16x16xf32> to vector<32x16xf32>
    %235 = vector.extract_strided_slice %193 {offsets = [0, 0], sizes = [16, 64], strides = [1, 1]} : vector<64x64xf32> to vector<16x64xf32>
    %cst_94 = arith.constant dense<0.000000e+00> : vector<32x64xf32>
    %236 = tpu.matmul %234, %235, %cst_94 {dimension_numbers = #tpu.dot_dimension_numbers<[1], [0], [0], [1], [0, 0, 1, 1], [], []>} : vector<32x16xf32>, vector<16x64xf32>, vector<32x64xf32> -> vector<32x64xf32>
    %237 = vector.extract_strided_slice %204 {offsets = [0, 16], sizes = [32, 16], strides = [1, 1]} : vector<32x64xf32> to vector<32x16xf32>
    %238 = vector.shape_cast %237 : vector<32x16xf32> to vector<2x16x16xf32>
    %239 = vector.extract_strided_slice %205 {offsets = [0, 16], sizes = [32, 16], strides = [1, 1]} : vector<32x64xf32> to vector<32x16xf32>
    %240 = vector.shape_cast %239 : vector<32x16xf32> to vector<2x16x16xf32>
    %241 = vector.extract_strided_slice %206 {offsets = [0, 16], sizes = [32, 16], strides = [1, 1]} : vector<32x64xf32> to vector<32x16xf32>
    %242 = vector.shape_cast %241 : vector<32x16xf32> to vector<2x16x16xf32>
    "tpu.trace_start"() <{level = 10 : i32, message = "bqd,bkd->bqk"}> : () -> ()
    %cst_95 = arith.constant dense<0.000000e+00> : vector<2x16x16xf32>
    %243 = tpu.matmul %238, %240, %cst_95 {dimension_numbers = #tpu.dot_dimension_numbers<[2], [2], [1], [1], [0, 0, 0, 1, 1, 1], [0], [0]>} : vector<2x16x16xf32>, vector<2x16x16xf32>, vector<2x16x16xf32> -> vector<2x16x16xf32>
    "tpu.trace_stop"() : () -> ()
    %cst_96 = arith.constant 2.500000e-01 : f32
    %244 = vector.broadcast %cst_96 : f32 to vector<2x16x16xf32>
    %245 = arith.mulf %243, %244 : vector<2x16x16xf32>
    %246 = vector.broadcast %6 : vector<2x1x16xf32> to vector<2x16x16xf32>
    %247 = arith.addf %245, %246 : vector<2x16x16xf32>
    %cst_97 = arith.constant dense<0xFF800000> : vector<2x16xf32>
    %248 = vector.multi_reduction <maximumf>, %247, %cst_97 [2] : vector<2x16x16xf32> to vector<2x16xf32>
    %249 = vector.shape_cast %248 : vector<2x16xf32> to vector<2x16x1xf32>
    %250 = vector.broadcast %249 : vector<2x16x1xf32> to vector<2x16x16xf32>
    %251 = arith.subf %247, %250 : vector<2x16x16xf32>
    %252 = math.exp %251 : vector<2x16x16xf32>
    %cst_98 = arith.constant dense<0.000000e+00> : vector<2x16xf32>
    %253 = vector.multi_reduction <add>, %252, %cst_98 [2] : vector<2x16x16xf32> to vector<2x16xf32>
    %254 = vector.shape_cast %253 : vector<2x16xf32> to vector<2x16x1xf32>
    %255 = tpu.reciprocal %254 {approx = true} : vector<2x16x1xf32> -> vector<2x16x1xf32>
    %256 = vector.broadcast %255 : vector<2x16x1xf32> to vector<2x16x16xf32>
    %257 = arith.mulf %252, %256 : vector<2x16x16xf32>
    "tpu.trace_start"() <{level = 10 : i32, message = "bqk,bkd->bqd"}> : () -> ()
    %cst_99 = arith.constant dense<0.000000e+00> : vector<2x16x16xf32>
    %258 = tpu.matmul %257, %242, %cst_99 {dimension_numbers = #tpu.dot_dimension_numbers<[2], [1], [1], [2], [0, 0, 0, 1, 1, 2], [0], [0]>} : vector<2x16x16xf32>, vector<2x16x16xf32>, vector<2x16x16xf32> -> vector<2x16x16xf32>
    "tpu.trace_stop"() : () -> ()
    %259 = vector.shape_cast %258 : vector<2x16x16xf32> to vector<32x16xf32>
    %260 = vector.extract_strided_slice %193 {offsets = [16, 0], sizes = [16, 64], strides = [1, 1]} : vector<64x64xf32> to vector<16x64xf32>
    %cst_100 = arith.constant dense<0.000000e+00> : vector<32x64xf32>
    %261 = tpu.matmul %259, %260, %cst_100 {dimension_numbers = #tpu.dot_dimension_numbers<[1], [0], [0], [1], [0, 0, 1, 1], [], []>} : vector<32x16xf32>, vector<16x64xf32>, vector<32x64xf32> -> vector<32x64xf32>
    %262 = arith.addf %236, %261 : vector<32x64xf32>
    %263 = vector.extract_strided_slice %204 {offsets = [0, 32], sizes = [32, 16], strides = [1, 1]} : vector<32x64xf32> to vector<32x16xf32>
    %264 = vector.shape_cast %263 : vector<32x16xf32> to vector<2x16x16xf32>
    %265 = vector.extract_strided_slice %205 {offsets = [0, 32], sizes = [32, 16], strides = [1, 1]} : vector<32x64xf32> to vector<32x16xf32>
    %266 = vector.shape_cast %265 : vector<32x16xf32> to vector<2x16x16xf32>
    %267 = vector.extract_strided_slice %206 {offsets = [0, 32], sizes = [32, 16], strides = [1, 1]} : vector<32x64xf32> to vector<32x16xf32>
    %268 = vector.shape_cast %267 : vector<32x16xf32> to vector<2x16x16xf32>
    "tpu.trace_start"() <{level = 10 : i32, message = "bqd,bkd->bqk"}> : () -> ()
    %cst_101 = arith.constant dense<0.000000e+00> : vector<2x16x16xf32>
    %269 = tpu.matmul %264, %266, %cst_101 {dimension_numbers = #tpu.dot_dimension_numbers<[2], [2], [1], [1], [0, 0, 0, 1, 1, 1], [0], [0]>} : vector<2x16x16xf32>, vector<2x16x16xf32>, vector<2x16x16xf32> -> vector<2x16x16xf32>
    "tpu.trace_stop"() : () -> ()
    %cst_102 = arith.constant 2.500000e-01 : f32
    %270 = vector.broadcast %cst_102 : f32 to vector<2x16x16xf32>
    %271 = arith.mulf %269, %270 : vector<2x16x16xf32>
    %272 = vector.broadcast %6 : vector<2x1x16xf32> to vector<2x16x16xf32>
    %273 = arith.addf %271, %272 : vector<2x16x16xf32>
    %cst_103 = arith.constant dense<0xFF800000> : vector<2x16xf32>
    %274 = vector.multi_reduction <maximumf>, %273, %cst_103 [2] : vector<2x16x16xf32> to vector<2x16xf32>
    %275 = vector.shape_cast %274 : vector<2x16xf32> to vector<2x16x1xf32>
    %276 = vector.broadcast %275 : vector<2x16x1xf32> to vector<2x16x16xf32>
    %277 = arith.subf %273, %276 : vector<2x16x16xf32>
    %278 = math.exp %277 : vector<2x16x16xf32>
    %cst_104 = arith.constant dense<0.000000e+00> : vector<2x16xf32>
    %279 = vector.multi_reduction <add>, %278, %cst_104 [2] : vector<2x16x16xf32> to vector<2x16xf32>
    %280 = vector.shape_cast %279 : vector<2x16xf32> to vector<2x16x1xf32>
    %281 = tpu.reciprocal %280 {approx = true} : vector<2x16x1xf32> -> vector<2x16x1xf32>
    %282 = vector.broadcast %281 : vector<2x16x1xf32> to vector<2x16x16xf32>
    %283 = arith.mulf %278, %282 : vector<2x16x16xf32>
    "tpu.trace_start"() <{level = 10 : i32, message = "bqk,bkd->bqd"}> : () -> ()
    %cst_105 = arith.constant dense<0.000000e+00> : vector<2x16x16xf32>
    %284 = tpu.matmul %283, %268, %cst_105 {dimension_numbers = #tpu.dot_dimension_numbers<[2], [1], [1], [2], [0, 0, 0, 1, 1, 2], [0], [0]>} : vector<2x16x16xf32>, vector<2x16x16xf32>, vector<2x16x16xf32> -> vector<2x16x16xf32>
    "tpu.trace_stop"() : () -> ()
    %285 = vector.shape_cast %284 : vector<2x16x16xf32> to vector<32x16xf32>
    %286 = vector.extract_strided_slice %193 {offsets = [32, 0], sizes = [16, 64], strides = [1, 1]} : vector<64x64xf32> to vector<16x64xf32>
    %cst_106 = arith.constant dense<0.000000e+00> : vector<32x64xf32>
    %287 = tpu.matmul %285, %286, %cst_106 {dimension_numbers = #tpu.dot_dimension_numbers<[1], [0], [0], [1], [0, 0, 1, 1], [], []>} : vector<32x16xf32>, vector<16x64xf32>, vector<32x64xf32> -> vector<32x64xf32>
    %288 = arith.addf %262, %287 : vector<32x64xf32>
    %289 = vector.extract_strided_slice %204 {offsets = [0, 48], sizes = [32, 16], strides = [1, 1]} : vector<32x64xf32> to vector<32x16xf32>
    %290 = vector.shape_cast %289 : vector<32x16xf32> to vector<2x16x16xf32>
    %291 = vector.extract_strided_slice %205 {offsets = [0, 48], sizes = [32, 16], strides = [1, 1]} : vector<32x64xf32> to vector<32x16xf32>
    %292 = vector.shape_cast %291 : vector<32x16xf32> to vector<2x16x16xf32>
    %293 = vector.extract_strided_slice %206 {offsets = [0, 48], sizes = [32, 16], strides = [1, 1]} : vector<32x64xf32> to vector<32x16xf32>
    %294 = vector.shape_cast %293 : vector<32x16xf32> to vector<2x16x16xf32>
    "tpu.trace_start"() <{level = 10 : i32, message = "bqd,bkd->bqk"}> : () -> ()
    %cst_107 = arith.constant dense<0.000000e+00> : vector<2x16x16xf32>
    %295 = tpu.matmul %290, %292, %cst_107 {dimension_numbers = #tpu.dot_dimension_numbers<[2], [2], [1], [1], [0, 0, 0, 1, 1, 1], [0], [0]>} : vector<2x16x16xf32>, vector<2x16x16xf32>, vector<2x16x16xf32> -> vector<2x16x16xf32>
    "tpu.trace_stop"() : () -> ()
    %cst_108 = arith.constant 2.500000e-01 : f32
    %296 = vector.broadcast %cst_108 : f32 to vector<2x16x16xf32>
    %297 = arith.mulf %295, %296 : vector<2x16x16xf32>
    %298 = vector.broadcast %6 : vector<2x1x16xf32> to vector<2x16x16xf32>
    %299 = arith.addf %297, %298 : vector<2x16x16xf32>
    %cst_109 = arith.constant dense<0xFF800000> : vector<2x16xf32>
    %300 = vector.multi_reduction <maximumf>, %299, %cst_109 [2] : vector<2x16x16xf32> to vector<2x16xf32>
    %301 = vector.shape_cast %300 : vector<2x16xf32> to vector<2x16x1xf32>
    %302 = vector.broadcast %301 : vector<2x16x1xf32> to vector<2x16x16xf32>
    %303 = arith.subf %299, %302 : vector<2x16x16xf32>
    %304 = math.exp %303 : vector<2x16x16xf32>
    %cst_110 = arith.constant dense<0.000000e+00> : vector<2x16xf32>
    %305 = vector.multi_reduction <add>, %304, %cst_110 [2] : vector<2x16x16xf32> to vector<2x16xf32>
    %306 = vector.shape_cast %305 : vector<2x16xf32> to vector<2x16x1xf32>
    %307 = tpu.reciprocal %306 {approx = true} : vector<2x16x1xf32> -> vector<2x16x1xf32>
    %308 = vector.broadcast %307 : vector<2x16x1xf32> to vector<2x16x16xf32>
    %309 = arith.mulf %304, %308 : vector<2x16x16xf32>
    "tpu.trace_start"() <{level = 10 : i32, message = "bqk,bkd->bqd"}> : () -> ()
    %cst_111 = arith.constant dense<0.000000e+00> : vector<2x16x16xf32>
    %310 = tpu.matmul %309, %294, %cst_111 {dimension_numbers = #tpu.dot_dimension_numbers<[2], [1], [1], [2], [0, 0, 0, 1, 1, 2], [0], [0]>} : vector<2x16x16xf32>, vector<2x16x16xf32>, vector<2x16x16xf32> -> vector<2x16x16xf32>
    "tpu.trace_stop"() : () -> ()
    %311 = vector.shape_cast %310 : vector<2x16x16xf32> to vector<32x16xf32>
    %312 = vector.extract_strided_slice %193 {offsets = [48, 0], sizes = [16, 64], strides = [1, 1]} : vector<64x64xf32> to vector<16x64xf32>
    %cst_112 = arith.constant dense<0.000000e+00> : vector<32x64xf32>
    %313 = tpu.matmul %311, %312, %cst_112 {dimension_numbers = #tpu.dot_dimension_numbers<[1], [0], [0], [1], [0, 0, 1, 1], [], []>} : vector<32x16xf32>, vector<16x64xf32>, vector<32x64xf32> -> vector<32x64xf32>
    %314 = arith.addf %288, %313 : vector<32x64xf32>
    %315 = vector.broadcast %207 : vector<1x64xf32> to vector<32x64xf32>
    %316 = arith.addf %314, %315 : vector<32x64xf32>
    %317 = vector.broadcast %4 : vector<32x1xf32> to vector<32x64xf32>
    %318 = arith.mulf %316, %317 : vector<32x64xf32>
    %319 = arith.addf %189, %318 : vector<32x64xf32>
    %cst_113 = arith.constant dense<0.000000e+00> : vector<32xf32>
    %320 = vector.multi_reduction <add>, %319, %cst_113 [1] : vector<32x64xf32> to vector<32xf32>
    %321 = vector.shape_cast %320 : vector<32xf32> to vector<32x1xf32>
    %cst_114 = arith.constant 6.400000e+01 : f32
    %322 = vector.broadcast %cst_114 : f32 to vector<32x1xf32>
    %323 = arith.divf %321, %322 : vector<32x1xf32>
    %324 = vector.broadcast %323 : vector<32x1xf32> to vector<32x64xf32>
    %325 = arith.subf %319, %324 : vector<32x64xf32>
    %326 = arith.mulf %325, %325 : vector<32x64xf32>
    %cst_115 = arith.constant dense<0.000000e+00> : vector<32xf32>
    %327 = vector.multi_reduction <add>, %326, %cst_115 [1] : vector<32x64xf32> to vector<32xf32>
    %328 = vector.shape_cast %327 : vector<32xf32> to vector<32x1xf32>
    %cst_116 = arith.constant 6.400000e+01 : f32
    %329 = vector.broadcast %cst_116 : f32 to vector<32x1xf32>
    %330 = arith.divf %328, %329 : vector<32x1xf32>
    %cst_117 = arith.constant 9.99999974E-6 : f32
    %331 = vector.broadcast %cst_117 : f32 to vector<32x1xf32>
    %332 = arith.addf %330, %331 : vector<32x1xf32>
    %333 = math.rsqrt %332 : vector<32x1xf32>
    %334 = vector.broadcast %333 : vector<32x1xf32> to vector<32x64xf32>
    %335 = arith.mulf %325, %334 : vector<32x64xf32>
    %336 = vector.broadcast %208 : vector<1x64xf32> to vector<32x64xf32>
    %337 = arith.mulf %335, %336 : vector<32x64xf32>
    %338 = vector.broadcast %209 : vector<1x64xf32> to vector<32x64xf32>
    %339 = arith.addf %337, %338 : vector<32x64xf32>
    %340 = vector.broadcast %4 : vector<32x1xf32> to vector<32x64xf32>
    %341 = arith.mulf %339, %340 : vector<32x64xf32>
    %cst_118 = arith.constant dense<0.000000e+00> : vector<32x128xf32>
    %342 = tpu.matmul %341, %195, %cst_118 {dimension_numbers = #tpu.dot_dimension_numbers<[1], [0], [0], [1], [0, 0, 1, 1], [], []>} : vector<32x64xf32>, vector<64x128xf32>, vector<32x128xf32> -> vector<32x128xf32>
    %cst_119 = arith.constant 5.000000e-01 : f32
    %343 = vector.broadcast %cst_119 : f32 to vector<32x128xf32>
    %344 = arith.mulf %343, %342 : vector<32x128xf32>
    %cst_120 = arith.constant 0.707106769 : f32
    %345 = vector.broadcast %cst_120 : f32 to vector<32x128xf32>
    %346 = arith.mulf %342, %345 : vector<32x128xf32>
    %347 = math.erf %346 : vector<32x128xf32>
    %cst_121 = arith.constant 1.000000e+00 : f32
    %348 = vector.broadcast %cst_121 : f32 to vector<32x128xf32>
    %349 = arith.addf %348, %347 : vector<32x128xf32>
    %350 = arith.mulf %344, %349 : vector<32x128xf32>
    %cst_122 = arith.constant dense<0.000000e+00> : vector<32x64xf32>
    %351 = tpu.matmul %350, %197, %cst_122 {dimension_numbers = #tpu.dot_dimension_numbers<[1], [0], [0], [1], [0, 0, 1, 1], [], []>} : vector<32x128xf32>, vector<128x64xf32>, vector<32x64xf32> -> vector<32x64xf32>
    %352 = arith.addf %341, %351 : vector<32x64xf32>
    %cst_123 = arith.constant dense<0.000000e+00> : vector<32xf32>
    %353 = vector.multi_reduction <add>, %352, %cst_123 [1] : vector<32x64xf32> to vector<32xf32>
    %354 = vector.shape_cast %353 : vector<32xf32> to vector<32x1xf32>
    %cst_124 = arith.constant 6.400000e+01 : f32
    %355 = vector.broadcast %cst_124 : f32 to vector<32x1xf32>
    %356 = arith.divf %354, %355 : vector<32x1xf32>
    %357 = vector.broadcast %356 : vector<32x1xf32> to vector<32x64xf32>
    %358 = arith.subf %352, %357 : vector<32x64xf32>
    %359 = arith.mulf %358, %358 : vector<32x64xf32>
    %cst_125 = arith.constant dense<0.000000e+00> : vector<32xf32>
    %360 = vector.multi_reduction <add>, %359, %cst_125 [1] : vector<32x64xf32> to vector<32xf32>
    %361 = vector.shape_cast %360 : vector<32xf32> to vector<32x1xf32>
    %cst_126 = arith.constant 6.400000e+01 : f32
    %362 = vector.broadcast %cst_126 : f32 to vector<32x1xf32>
    %363 = arith.divf %361, %362 : vector<32x1xf32>
    %cst_127 = arith.constant 9.99999974E-6 : f32
    %364 = vector.broadcast %cst_127 : f32 to vector<32x1xf32>
    %365 = arith.addf %363, %364 : vector<32x1xf32>
    %366 = math.rsqrt %365 : vector<32x1xf32>
    %367 = vector.broadcast %366 : vector<32x1xf32> to vector<32x64xf32>
    %368 = arith.mulf %358, %367 : vector<32x64xf32>
    %369 = vector.broadcast %210 : vector<1x64xf32> to vector<32x64xf32>
    %370 = arith.mulf %368, %369 : vector<32x64xf32>
    %371 = vector.broadcast %211 : vector<1x64xf32> to vector<32x64xf32>
    %372 = arith.addf %370, %371 : vector<32x64xf32>
    %c0_128 = arith.constant 0 : index
    %c2 = arith.constant 2 : index
    %c0_129 = arith.constant 0 : index
    %c0_130 = arith.constant 0 : index
    %373 = vector.load %arg4[%c0_128, %c2, %c0_129, %c0_130] : memref<1x3x64x192xf32, #tpu.memory_space<vmem>>, vector<1x1x64x192xf32>
    %374 = vector.shape_cast %373 : vector<1x1x64x192xf32> to vector<64x192xf32>
    %c0_131 = arith.constant 0 : index
    %c2_132 = arith.constant 2 : index
    %c0_133 = arith.constant 0 : index
    %c0_134 = arith.constant 0 : index
    %375 = vector.load %arg5[%c0_131, %c2_132, %c0_133, %c0_134] : memref<1x3x64x64xf32, #tpu.memory_space<vmem>>, vector<1x1x64x64xf32>
    %376 = vector.shape_cast %375 : vector<1x1x64x64xf32> to vector<64x64xf32>
    %c0_135 = arith.constant 0 : index
    %c2_136 = arith.constant 2 : index
    %c0_137 = arith.constant 0 : index
    %c0_138 = arith.constant 0 : index
    %377 = vector.load %arg6[%c0_135, %c2_136, %c0_137, %c0_138] : memref<1x3x64x128xf32, #tpu.memory_space<vmem>>, vector<1x1x64x128xf32>
    %378 = vector.shape_cast %377 : vector<1x1x64x128xf32> to vector<64x128xf32>
    %c0_139 = arith.constant 0 : index
    %c2_140 = arith.constant 2 : index
    %c0_141 = arith.constant 0 : index
    %c0_142 = arith.constant 0 : index
    %379 = vector.load %arg7[%c0_139, %c2_140, %c0_141, %c0_142] : memref<1x3x128x64xf32, #tpu.memory_space<vmem>>, vector<1x1x128x64xf32>
    %380 = vector.shape_cast %379 : vector<1x1x128x64xf32> to vector<128x64xf32>
    %c0_143 = arith.constant 0 : index
    %c2_144 = arith.constant 2 : index
    %c0_145 = arith.constant 0 : index
    %c0_146 = arith.constant 0 : index
    %381 = vector.load %arg8[%c0_143, %c2_144, %c0_145, %c0_146] : memref<1x3x8x192xf32, #tpu.memory_space<vmem>>, vector<1x1x8x192xf32>
    %382 = vector.shape_cast %381 : vector<1x1x8x192xf32> to vector<8x192xf32>
    %cst_147 = arith.constant dense<0.000000e+00> : vector<32x192xf32>
    %383 = tpu.matmul %372, %374, %cst_147 {dimension_numbers = #tpu.dot_dimension_numbers<[1], [0], [0], [1], [0, 0, 1, 1], [], []>} : vector<32x64xf32>, vector<64x192xf32>, vector<32x192xf32> -> vector<32x192xf32>
    %384 = vector.extract_strided_slice %382 {offsets = [0, 0], sizes = [1, 192], strides = [1, 1]} : vector<8x192xf32> to vector<1x192xf32>
    %385 = vector.broadcast %384 : vector<1x192xf32> to vector<32x192xf32>
    %386 = arith.addf %383, %385 : vector<32x192xf32>
    %387 = vector.extract_strided_slice %386 {offsets = [0, 0], sizes = [32, 64], strides = [1, 1]} : vector<32x192xf32> to vector<32x64xf32>
    %388 = vector.extract_strided_slice %386 {offsets = [0, 64], sizes = [32, 64], strides = [1, 1]} : vector<32x192xf32> to vector<32x64xf32>
    %389 = vector.extract_strided_slice %386 {offsets = [0, 128], sizes = [32, 64], strides = [1, 1]} : vector<32x192xf32> to vector<32x64xf32>
    %390 = vector.extract_strided_slice %382 {offsets = [1, 0], sizes = [1, 64], strides = [1, 1]} : vector<8x192xf32> to vector<1x64xf32>
    %391 = vector.extract_strided_slice %382 {offsets = [2, 0], sizes = [1, 64], strides = [1, 1]} : vector<8x192xf32> to vector<1x64xf32>
    %392 = vector.extract_strided_slice %382 {offsets = [3, 0], sizes = [1, 64], strides = [1, 1]} : vector<8x192xf32> to vector<1x64xf32>
    %393 = vector.extract_strided_slice %382 {offsets = [4, 0], sizes = [1, 64], strides = [1, 1]} : vector<8x192xf32> to vector<1x64xf32>
    %394 = vector.extract_strided_slice %382 {offsets = [5, 0], sizes = [1, 64], strides = [1, 1]} : vector<8x192xf32> to vector<1x64xf32>
    %395 = vector.extract_strided_slice %387 {offsets = [0, 0], sizes = [32, 16], strides = [1, 1]} : vector<32x64xf32> to vector<32x16xf32>
    %396 = vector.shape_cast %395 : vector<32x16xf32> to vector<2x16x16xf32>
    %397 = vector.extract_strided_slice %388 {offsets = [0, 0], sizes = [32, 16], strides = [1, 1]} : vector<32x64xf32> to vector<32x16xf32>
    %398 = vector.shape_cast %397 : vector<32x16xf32> to vector<2x16x16xf32>
    %399 = vector.extract_strided_slice %389 {offsets = [0, 0], sizes = [32, 16], strides = [1, 1]} : vector<32x64xf32> to vector<32x16xf32>
    %400 = vector.shape_cast %399 : vector<32x16xf32> to vector<2x16x16xf32>
    "tpu.trace_start"() <{level = 10 : i32, message = "bqd,bkd->bqk"}> : () -> ()
    %cst_148 = arith.constant dense<0.000000e+00> : vector<2x16x16xf32>
    %401 = tpu.matmul %396, %398, %cst_148 {dimension_numbers = #tpu.dot_dimension_numbers<[2], [2], [1], [1], [0, 0, 0, 1, 1, 1], [0], [0]>} : vector<2x16x16xf32>, vector<2x16x16xf32>, vector<2x16x16xf32> -> vector<2x16x16xf32>
    "tpu.trace_stop"() : () -> ()
    %cst_149 = arith.constant 2.500000e-01 : f32
    %402 = vector.broadcast %cst_149 : f32 to vector<2x16x16xf32>
    %403 = arith.mulf %401, %402 : vector<2x16x16xf32>
    %404 = vector.broadcast %6 : vector<2x1x16xf32> to vector<2x16x16xf32>
    %405 = arith.addf %403, %404 : vector<2x16x16xf32>
    %cst_150 = arith.constant dense<0xFF800000> : vector<2x16xf32>
    %406 = vector.multi_reduction <maximumf>, %405, %cst_150 [2] : vector<2x16x16xf32> to vector<2x16xf32>
    %407 = vector.shape_cast %406 : vector<2x16xf32> to vector<2x16x1xf32>
    %408 = vector.broadcast %407 : vector<2x16x1xf32> to vector<2x16x16xf32>
    %409 = arith.subf %405, %408 : vector<2x16x16xf32>
    %410 = math.exp %409 : vector<2x16x16xf32>
    %cst_151 = arith.constant dense<0.000000e+00> : vector<2x16xf32>
    %411 = vector.multi_reduction <add>, %410, %cst_151 [2] : vector<2x16x16xf32> to vector<2x16xf32>
    %412 = vector.shape_cast %411 : vector<2x16xf32> to vector<2x16x1xf32>
    %413 = tpu.reciprocal %412 {approx = true} : vector<2x16x1xf32> -> vector<2x16x1xf32>
    %414 = vector.broadcast %413 : vector<2x16x1xf32> to vector<2x16x16xf32>
    %415 = arith.mulf %410, %414 : vector<2x16x16xf32>
    "tpu.trace_start"() <{level = 10 : i32, message = "bqk,bkd->bqd"}> : () -> ()
    %cst_152 = arith.constant dense<0.000000e+00> : vector<2x16x16xf32>
    %416 = tpu.matmul %415, %400, %cst_152 {dimension_numbers = #tpu.dot_dimension_numbers<[2], [1], [1], [2], [0, 0, 0, 1, 1, 2], [0], [0]>} : vector<2x16x16xf32>, vector<2x16x16xf32>, vector<2x16x16xf32> -> vector<2x16x16xf32>
    "tpu.trace_stop"() : () -> ()
    %417 = vector.shape_cast %416 : vector<2x16x16xf32> to vector<32x16xf32>
    %418 = vector.extract_strided_slice %376 {offsets = [0, 0], sizes = [16, 64], strides = [1, 1]} : vector<64x64xf32> to vector<16x64xf32>
    %cst_153 = arith.constant dense<0.000000e+00> : vector<32x64xf32>
    %419 = tpu.matmul %417, %418, %cst_153 {dimension_numbers = #tpu.dot_dimension_numbers<[1], [0], [0], [1], [0, 0, 1, 1], [], []>} : vector<32x16xf32>, vector<16x64xf32>, vector<32x64xf32> -> vector<32x64xf32>
    %420 = vector.extract_strided_slice %387 {offsets = [0, 16], sizes = [32, 16], strides = [1, 1]} : vector<32x64xf32> to vector<32x16xf32>
    %421 = vector.shape_cast %420 : vector<32x16xf32> to vector<2x16x16xf32>
    %422 = vector.extract_strided_slice %388 {offsets = [0, 16], sizes = [32, 16], strides = [1, 1]} : vector<32x64xf32> to vector<32x16xf32>
    %423 = vector.shape_cast %422 : vector<32x16xf32> to vector<2x16x16xf32>
    %424 = vector.extract_strided_slice %389 {offsets = [0, 16], sizes = [32, 16], strides = [1, 1]} : vector<32x64xf32> to vector<32x16xf32>
    %425 = vector.shape_cast %424 : vector<32x16xf32> to vector<2x16x16xf32>
    "tpu.trace_start"() <{level = 10 : i32, message = "bqd,bkd->bqk"}> : () -> ()
    %cst_154 = arith.constant dense<0.000000e+00> : vector<2x16x16xf32>
    %426 = tpu.matmul %421, %423, %cst_154 {dimension_numbers = #tpu.dot_dimension_numbers<[2], [2], [1], [1], [0, 0, 0, 1, 1, 1], [0], [0]>} : vector<2x16x16xf32>, vector<2x16x16xf32>, vector<2x16x16xf32> -> vector<2x16x16xf32>
    "tpu.trace_stop"() : () -> ()
    %cst_155 = arith.constant 2.500000e-01 : f32
    %427 = vector.broadcast %cst_155 : f32 to vector<2x16x16xf32>
    %428 = arith.mulf %426, %427 : vector<2x16x16xf32>
    %429 = vector.broadcast %6 : vector<2x1x16xf32> to vector<2x16x16xf32>
    %430 = arith.addf %428, %429 : vector<2x16x16xf32>
    %cst_156 = arith.constant dense<0xFF800000> : vector<2x16xf32>
    %431 = vector.multi_reduction <maximumf>, %430, %cst_156 [2] : vector<2x16x16xf32> to vector<2x16xf32>
    %432 = vector.shape_cast %431 : vector<2x16xf32> to vector<2x16x1xf32>
    %433 = vector.broadcast %432 : vector<2x16x1xf32> to vector<2x16x16xf32>
    %434 = arith.subf %430, %433 : vector<2x16x16xf32>
    %435 = math.exp %434 : vector<2x16x16xf32>
    %cst_157 = arith.constant dense<0.000000e+00> : vector<2x16xf32>
    %436 = vector.multi_reduction <add>, %435, %cst_157 [2] : vector<2x16x16xf32> to vector<2x16xf32>
    %437 = vector.shape_cast %436 : vector<2x16xf32> to vector<2x16x1xf32>
    %438 = tpu.reciprocal %437 {approx = true} : vector<2x16x1xf32> -> vector<2x16x1xf32>
    %439 = vector.broadcast %438 : vector<2x16x1xf32> to vector<2x16x16xf32>
    %440 = arith.mulf %435, %439 : vector<2x16x16xf32>
    "tpu.trace_start"() <{level = 10 : i32, message = "bqk,bkd->bqd"}> : () -> ()
    %cst_158 = arith.constant dense<0.000000e+00> : vector<2x16x16xf32>
    %441 = tpu.matmul %440, %425, %cst_158 {dimension_numbers = #tpu.dot_dimension_numbers<[2], [1], [1], [2], [0, 0, 0, 1, 1, 2], [0], [0]>} : vector<2x16x16xf32>, vector<2x16x16xf32>, vector<2x16x16xf32> -> vector<2x16x16xf32>
    "tpu.trace_stop"() : () -> ()
    %442 = vector.shape_cast %441 : vector<2x16x16xf32> to vector<32x16xf32>
    %443 = vector.extract_strided_slice %376 {offsets = [16, 0], sizes = [16, 64], strides = [1, 1]} : vector<64x64xf32> to vector<16x64xf32>
    %cst_159 = arith.constant dense<0.000000e+00> : vector<32x64xf32>
    %444 = tpu.matmul %442, %443, %cst_159 {dimension_numbers = #tpu.dot_dimension_numbers<[1], [0], [0], [1], [0, 0, 1, 1], [], []>} : vector<32x16xf32>, vector<16x64xf32>, vector<32x64xf32> -> vector<32x64xf32>
    %445 = arith.addf %419, %444 : vector<32x64xf32>
    %446 = vector.extract_strided_slice %387 {offsets = [0, 32], sizes = [32, 16], strides = [1, 1]} : vector<32x64xf32> to vector<32x16xf32>
    %447 = vector.shape_cast %446 : vector<32x16xf32> to vector<2x16x16xf32>
    %448 = vector.extract_strided_slice %388 {offsets = [0, 32], sizes = [32, 16], strides = [1, 1]} : vector<32x64xf32> to vector<32x16xf32>
    %449 = vector.shape_cast %448 : vector<32x16xf32> to vector<2x16x16xf32>
    %450 = vector.extract_strided_slice %389 {offsets = [0, 32], sizes = [32, 16], strides = [1, 1]} : vector<32x64xf32> to vector<32x16xf32>
    %451 = vector.shape_cast %450 : vector<32x16xf32> to vector<2x16x16xf32>
    "tpu.trace_start"() <{level = 10 : i32, message = "bqd,bkd->bqk"}> : () -> ()
    %cst_160 = arith.constant dense<0.000000e+00> : vector<2x16x16xf32>
    %452 = tpu.matmul %447, %449, %cst_160 {dimension_numbers = #tpu.dot_dimension_numbers<[2], [2], [1], [1], [0, 0, 0, 1, 1, 1], [0], [0]>} : vector<2x16x16xf32>, vector<2x16x16xf32>, vector<2x16x16xf32> -> vector<2x16x16xf32>
    "tpu.trace_stop"() : () -> ()
    %cst_161 = arith.constant 2.500000e-01 : f32
    %453 = vector.broadcast %cst_161 : f32 to vector<2x16x16xf32>
    %454 = arith.mulf %452, %453 : vector<2x16x16xf32>
    %455 = vector.broadcast %6 : vector<2x1x16xf32> to vector<2x16x16xf32>
    %456 = arith.addf %454, %455 : vector<2x16x16xf32>
    %cst_162 = arith.constant dense<0xFF800000> : vector<2x16xf32>
    %457 = vector.multi_reduction <maximumf>, %456, %cst_162 [2] : vector<2x16x16xf32> to vector<2x16xf32>
    %458 = vector.shape_cast %457 : vector<2x16xf32> to vector<2x16x1xf32>
    %459 = vector.broadcast %458 : vector<2x16x1xf32> to vector<2x16x16xf32>
    %460 = arith.subf %456, %459 : vector<2x16x16xf32>
    %461 = math.exp %460 : vector<2x16x16xf32>
    %cst_163 = arith.constant dense<0.000000e+00> : vector<2x16xf32>
    %462 = vector.multi_reduction <add>, %461, %cst_163 [2] : vector<2x16x16xf32> to vector<2x16xf32>
    %463 = vector.shape_cast %462 : vector<2x16xf32> to vector<2x16x1xf32>
    %464 = tpu.reciprocal %463 {approx = true} : vector<2x16x1xf32> -> vector<2x16x1xf32>
    %465 = vector.broadcast %464 : vector<2x16x1xf32> to vector<2x16x16xf32>
    %466 = arith.mulf %461, %465 : vector<2x16x16xf32>
    "tpu.trace_start"() <{level = 10 : i32, message = "bqk,bkd->bqd"}> : () -> ()
    %cst_164 = arith.constant dense<0.000000e+00> : vector<2x16x16xf32>
    %467 = tpu.matmul %466, %451, %cst_164 {dimension_numbers = #tpu.dot_dimension_numbers<[2], [1], [1], [2], [0, 0, 0, 1, 1, 2], [0], [0]>} : vector<2x16x16xf32>, vector<2x16x16xf32>, vector<2x16x16xf32> -> vector<2x16x16xf32>
    "tpu.trace_stop"() : () -> ()
    %468 = vector.shape_cast %467 : vector<2x16x16xf32> to vector<32x16xf32>
    %469 = vector.extract_strided_slice %376 {offsets = [32, 0], sizes = [16, 64], strides = [1, 1]} : vector<64x64xf32> to vector<16x64xf32>
    %cst_165 = arith.constant dense<0.000000e+00> : vector<32x64xf32>
    %470 = tpu.matmul %468, %469, %cst_165 {dimension_numbers = #tpu.dot_dimension_numbers<[1], [0], [0], [1], [0, 0, 1, 1], [], []>} : vector<32x16xf32>, vector<16x64xf32>, vector<32x64xf32> -> vector<32x64xf32>
    %471 = arith.addf %445, %470 : vector<32x64xf32>
    %472 = vector.extract_strided_slice %387 {offsets = [0, 48], sizes = [32, 16], strides = [1, 1]} : vector<32x64xf32> to vector<32x16xf32>
    %473 = vector.shape_cast %472 : vector<32x16xf32> to vector<2x16x16xf32>
    %474 = vector.extract_strided_slice %388 {offsets = [0, 48], sizes = [32, 16], strides = [1, 1]} : vector<32x64xf32> to vector<32x16xf32>
    %475 = vector.shape_cast %474 : vector<32x16xf32> to vector<2x16x16xf32>
    %476 = vector.extract_strided_slice %389 {offsets = [0, 48], sizes = [32, 16], strides = [1, 1]} : vector<32x64xf32> to vector<32x16xf32>
    %477 = vector.shape_cast %476 : vector<32x16xf32> to vector<2x16x16xf32>
    "tpu.trace_start"() <{level = 10 : i32, message = "bqd,bkd->bqk"}> : () -> ()
    %cst_166 = arith.constant dense<0.000000e+00> : vector<2x16x16xf32>
    %478 = tpu.matmul %473, %475, %cst_166 {dimension_numbers = #tpu.dot_dimension_numbers<[2], [2], [1], [1], [0, 0, 0, 1, 1, 1], [0], [0]>} : vector<2x16x16xf32>, vector<2x16x16xf32>, vector<2x16x16xf32> -> vector<2x16x16xf32>
    "tpu.trace_stop"() : () -> ()
    %cst_167 = arith.constant 2.500000e-01 : f32
    %479 = vector.broadcast %cst_167 : f32 to vector<2x16x16xf32>
    %480 = arith.mulf %478, %479 : vector<2x16x16xf32>
    %481 = vector.broadcast %6 : vector<2x1x16xf32> to vector<2x16x16xf32>
    %482 = arith.addf %480, %481 : vector<2x16x16xf32>
    %cst_168 = arith.constant dense<0xFF800000> : vector<2x16xf32>
    %483 = vector.multi_reduction <maximumf>, %482, %cst_168 [2] : vector<2x16x16xf32> to vector<2x16xf32>
    %484 = vector.shape_cast %483 : vector<2x16xf32> to vector<2x16x1xf32>
    %485 = vector.broadcast %484 : vector<2x16x1xf32> to vector<2x16x16xf32>
    %486 = arith.subf %482, %485 : vector<2x16x16xf32>
    %487 = math.exp %486 : vector<2x16x16xf32>
    %cst_169 = arith.constant dense<0.000000e+00> : vector<2x16xf32>
    %488 = vector.multi_reduction <add>, %487, %cst_169 [2] : vector<2x16x16xf32> to vector<2x16xf32>
    %489 = vector.shape_cast %488 : vector<2x16xf32> to vector<2x16x1xf32>
    %490 = tpu.reciprocal %489 {approx = true} : vector<2x16x1xf32> -> vector<2x16x1xf32>
    %491 = vector.broadcast %490 : vector<2x16x1xf32> to vector<2x16x16xf32>
    %492 = arith.mulf %487, %491 : vector<2x16x16xf32>
    "tpu.trace_start"() <{level = 10 : i32, message = "bqk,bkd->bqd"}> : () -> ()
    %cst_170 = arith.constant dense<0.000000e+00> : vector<2x16x16xf32>
    %493 = tpu.matmul %492, %477, %cst_170 {dimension_numbers = #tpu.dot_dimension_numbers<[2], [1], [1], [2], [0, 0, 0, 1, 1, 2], [0], [0]>} : vector<2x16x16xf32>, vector<2x16x16xf32>, vector<2x16x16xf32> -> vector<2x16x16xf32>
    "tpu.trace_stop"() : () -> ()
    %494 = vector.shape_cast %493 : vector<2x16x16xf32> to vector<32x16xf32>
    %495 = vector.extract_strided_slice %376 {offsets = [48, 0], sizes = [16, 64], strides = [1, 1]} : vector<64x64xf32> to vector<16x64xf32>
    %cst_171 = arith.constant dense<0.000000e+00> : vector<32x64xf32>
    %496 = tpu.matmul %494, %495, %cst_171 {dimension_numbers = #tpu.dot_dimension_numbers<[1], [0], [0], [1], [0, 0, 1, 1], [], []>} : vector<32x16xf32>, vector<16x64xf32>, vector<32x64xf32> -> vector<32x64xf32>
    %497 = arith.addf %471, %496 : vector<32x64xf32>
    %498 = vector.broadcast %390 : vector<1x64xf32> to vector<32x64xf32>
    %499 = arith.addf %497, %498 : vector<32x64xf32>
    %500 = vector.broadcast %4 : vector<32x1xf32> to vector<32x64xf32>
    %501 = arith.mulf %499, %500 : vector<32x64xf32>
    %502 = arith.addf %372, %501 : vector<32x64xf32>
    %cst_172 = arith.constant dense<0.000000e+00> : vector<32xf32>
    %503 = vector.multi_reduction <add>, %502, %cst_172 [1] : vector<32x64xf32> to vector<32xf32>
    %504 = vector.shape_cast %503 : vector<32xf32> to vector<32x1xf32>
    %cst_173 = arith.constant 6.400000e+01 : f32
    %505 = vector.broadcast %cst_173 : f32 to vector<32x1xf32>
    %506 = arith.divf %504, %505 : vector<32x1xf32>
    %507 = vector.broadcast %506 : vector<32x1xf32> to vector<32x64xf32>
    %508 = arith.subf %502, %507 : vector<32x64xf32>
    %509 = arith.mulf %508, %508 : vector<32x64xf32>
    %cst_174 = arith.constant dense<0.000000e+00> : vector<32xf32>
    %510 = vector.multi_reduction <add>, %509, %cst_174 [1] : vector<32x64xf32> to vector<32xf32>
    %511 = vector.shape_cast %510 : vector<32xf32> to vector<32x1xf32>
    %cst_175 = arith.constant 6.400000e+01 : f32
    %512 = vector.broadcast %cst_175 : f32 to vector<32x1xf32>
    %513 = arith.divf %511, %512 : vector<32x1xf32>
    %cst_176 = arith.constant 9.99999974E-6 : f32
    %514 = vector.broadcast %cst_176 : f32 to vector<32x1xf32>
    %515 = arith.addf %513, %514 : vector<32x1xf32>
    %516 = math.rsqrt %515 : vector<32x1xf32>
    %517 = vector.broadcast %516 : vector<32x1xf32> to vector<32x64xf32>
    %518 = arith.mulf %508, %517 : vector<32x64xf32>
    %519 = vector.broadcast %391 : vector<1x64xf32> to vector<32x64xf32>
    %520 = arith.mulf %518, %519 : vector<32x64xf32>
    %521 = vector.broadcast %392 : vector<1x64xf32> to vector<32x64xf32>
    %522 = arith.addf %520, %521 : vector<32x64xf32>
    %523 = vector.broadcast %4 : vector<32x1xf32> to vector<32x64xf32>
    %524 = arith.mulf %522, %523 : vector<32x64xf32>
    %cst_177 = arith.constant dense<0.000000e+00> : vector<32x128xf32>
    %525 = tpu.matmul %524, %378, %cst_177 {dimension_numbers = #tpu.dot_dimension_numbers<[1], [0], [0], [1], [0, 0, 1, 1], [], []>} : vector<32x64xf32>, vector<64x128xf32>, vector<32x128xf32> -> vector<32x128xf32>
    %cst_178 = arith.constant 5.000000e-01 : f32
    %526 = vector.broadcast %cst_178 : f32 to vector<32x128xf32>
    %527 = arith.mulf %526, %525 : vector<32x128xf32>
    %cst_179 = arith.constant 0.707106769 : f32
    %528 = vector.broadcast %cst_179 : f32 to vector<32x128xf32>
    %529 = arith.mulf %525, %528 : vector<32x128xf32>
    %530 = math.erf %529 : vector<32x128xf32>
    %cst_180 = arith.constant 1.000000e+00 : f32
    %531 = vector.broadcast %cst_180 : f32 to vector<32x128xf32>
    %532 = arith.addf %531, %530 : vector<32x128xf32>
    %533 = arith.mulf %527, %532 : vector<32x128xf32>
    %cst_181 = arith.constant dense<0.000000e+00> : vector<32x64xf32>
    %534 = tpu.matmul %533, %380, %cst_181 {dimension_numbers = #tpu.dot_dimension_numbers<[1], [0], [0], [1], [0, 0, 1, 1], [], []>} : vector<32x128xf32>, vector<128x64xf32>, vector<32x64xf32> -> vector<32x64xf32>
    %535 = arith.addf %524, %534 : vector<32x64xf32>
    %cst_182 = arith.constant dense<0.000000e+00> : vector<32xf32>
    %536 = vector.multi_reduction <add>, %535, %cst_182 [1] : vector<32x64xf32> to vector<32xf32>
    %537 = vector.shape_cast %536 : vector<32xf32> to vector<32x1xf32>
    %cst_183 = arith.constant 6.400000e+01 : f32
    %538 = vector.broadcast %cst_183 : f32 to vector<32x1xf32>
    %539 = arith.divf %537, %538 : vector<32x1xf32>
    %540 = vector.broadcast %539 : vector<32x1xf32> to vector<32x64xf32>
    %541 = arith.subf %535, %540 : vector<32x64xf32>
    %542 = arith.mulf %541, %541 : vector<32x64xf32>
    %cst_184 = arith.constant dense<0.000000e+00> : vector<32xf32>
    %543 = vector.multi_reduction <add>, %542, %cst_184 [1] : vector<32x64xf32> to vector<32xf32>
    %544 = vector.shape_cast %543 : vector<32xf32> to vector<32x1xf32>
    %cst_185 = arith.constant 6.400000e+01 : f32
    %545 = vector.broadcast %cst_185 : f32 to vector<32x1xf32>
    %546 = arith.divf %544, %545 : vector<32x1xf32>
    %cst_186 = arith.constant 9.99999974E-6 : f32
    %547 = vector.broadcast %cst_186 : f32 to vector<32x1xf32>
    %548 = arith.addf %546, %547 : vector<32x1xf32>
    %549 = math.rsqrt %548 : vector<32x1xf32>
    %550 = vector.broadcast %549 : vector<32x1xf32> to vector<32x64xf32>
    %551 = arith.mulf %541, %550 : vector<32x64xf32>
    %552 = vector.broadcast %393 : vector<1x64xf32> to vector<32x64xf32>
    %553 = arith.mulf %551, %552 : vector<32x64xf32>
    %554 = vector.broadcast %394 : vector<1x64xf32> to vector<32x64xf32>
    %555 = arith.addf %553, %554 : vector<32x64xf32>
    %556 = vector.shape_cast %555 : vector<32x64xf32> to vector<2x16x64xf32>
    %c0_187 = arith.constant 0 : index
    %c0_188 = arith.constant 0 : index
    %c0_189 = arith.constant 0 : index
    %c0_190 = arith.constant 0 : index
    %557 = vector.load %arg9[%c0_187, %c0_188, %c0_189, %c0_190] : memref<1x2x16x64xf32, #tpu.memory_space<vmem>>, vector<1x2x16x64xf32>
    %558 = vector.shape_cast %557 : vector<1x2x16x64xf32> to vector<2x16x64xf32>
    %559 = vector.shape_cast %556 : vector<2x16x64xf32> to vector<1x2x16x64xf32>
    tpu.vector_store %arg9[%c0_187, %c0_188, %c0_189, %c0_190], %559 {strides = array<i32>} : memref<1x2x16x64xf32, #tpu.memory_space<vmem>>, vector<1x2x16x64xf32>,
    return
  }
  func.func @transform_0(%arg0: i32) -> (i32, i32, i32, i32) {
    %c0_i32 = arith.constant 0 : i32
    %c0_i32_0 = arith.constant 0 : i32
    %c0_i32_1 = arith.constant 0 : i32
    %c0_i32_2 = arith.constant 0 : i32
    return %arg0, %c0_i32, %c0_i32_0, %c0_i32_1 : i32, i32, i32, i32
  }
  func.func @transform_1(%arg0: i32) -> (i32, i32, i32) {
    %c0_i32 = arith.constant 0 : i32
    %c0_i32_0 = arith.constant 0 : i32
    %c0_i32_1 = arith.constant 0 : i32
    return %arg0, %c0_i32, %c0_i32_0 : i32, i32, i32
  }
  func.func @transform_2(%arg0: i32) -> (i32, i32, i32, i32) {
    %c0_i32 = arith.constant 0 : i32
    %c0_i32_0 = arith.constant 0 : i32
    %c0_i32_1 = arith.constant 0 : i32
    %c0_i32_2 = arith.constant 0 : i32
    return %arg0, %c0_i32, %c0_i32_0, %c0_i32_1 : i32, i32, i32, i32
  }
  func.func @transform_3(%arg0: i32) -> (i32, i32, i32, i32) {
    %c0_i32 = arith.constant 0 : i32
    %c0_i32_0 = arith.constant 0 : i32
    %c0_i32_1 = arith.constant 0 : i32
    %c0_i32_2 = arith.constant 0 : i32
    return %arg0, %c0_i32, %c0_i32_0, %c0_i32_1 : i32, i32, i32, i32
  }
  func.func @transform_4(%arg0: i32) -> (i32, i32, i32, i32) {
    %c0_i32 = arith.constant 0 : i32
    %c0_i32_0 = arith.constant 0 : i32
    %c0_i32_1 = arith.constant 0 : i32
    %c0_i32_2 = arith.constant 0 : i32
    return %arg0, %c0_i32, %c0_i32_0, %c0_i32_1 : i32, i32, i32, i32
  }
  func.func @transform_5(%arg0: i32) -> (i32, i32, i32, i32) {
    %c0_i32 = arith.constant 0 : i32
    %c0_i32_0 = arith.constant 0 : i32
    %c0_i32_1 = arith.constant 0 : i32
    %c0_i32_2 = arith.constant 0 : i32
    return %arg0, %c0_i32, %c0_i32_0, %c0_i32_1 : i32, i32, i32, i32
  }
  func.func @transform_6(%arg0: i32) -> (i32, i32, i32, i32) {
    %c0_i32 = arith.constant 0 : i32
    %c0_i32_0 = arith.constant 0 : i32
    %c0_i32_1 = arith.constant 0 : i32
    %c0_i32_2 = arith.constant 0 : i32
    return %arg0, %c0_i32, %c0_i32_0, %c0_i32_1 : i32, i32, i32, i32
  }
  func.func @transform_7(%arg0: i32) -> (i32, i32, i32, i32) {
    %c0_i32 = arith.constant 0 : i32
    %c0_i32_0 = arith.constant 0 : i32
    %c0_i32_1 = arith.constant 0 : i32
    %c0_i32_2 = arith.constant 0 : i32
    return %arg0, %c0_i32, %c0_i32_0, %c0_i32_1 : i32, i32, i32, i32
  }
  func.func @transform_8(%arg0: i32) -> (i32, i32, i32, i32) {
    %c0_i32 = arith.constant 0 : i32
    %c0_i32_0 = arith.constant 0 : i32
    %c0_i32_1 = arith.constant 0 : i32
    %c0_i32_2 = arith.constant 0 : i32
    return %arg0, %c0_i32, %c0_i32_0, %c0_i32_1 : i32, i32, i32, i32
  }
}

</mosaic_0001>

<bundles_post_ra>
// kernel: tpu_custom_call.1
= control target key start
LH: loop header
LB: loop body
LE: loop exit
PB: predicated region body
PF: predicated region fallthrough
CT: control target
= control target key end

     0   :  { %s7937_s0 = inlined_call_operand.vmem [shape: f32[2,2,16,64], index: 0, kind: input, shape index: {}]   ;;  %s7938_s1 = inlined_call_operand.vmem [shape: f32[2,32,1], index: 1, kind: input, shape index: {}]   ;;  %s7939_s2 = inlined_call_operand.vmem [shape: f32[2,2,1,16], index: 2, kind: input, shape index: {}]   ;;  %s7940_s3 = inlined_call_operand.vmem [shape: f32[2,3,64,192], index: 3, kind: input, shape index: {}]   ;;  %s7941_s4 = inlined_call_operand.vmem [shape: f32[2,3,64,64], index: 4, kind: input, shape index: {}]   ;;  %s7942_s5 = inlined_call_operand.hbm [shape: f32[2,3,64,128], index: 5, kind: input, shape index: {}]   ;;  %s7943_s6 = inlined_call_operand.vmem [shape: f32[2,3,128,64], index: 6, kind: input, shape index: {}]   ;;  %s7944_s7 = inlined_call_operand.hbm [shape: f32[2,3,8,192], index: 7, kind: input, shape index: {}]   ;;  %s7945_s8 = inlined_call_operand.hbm [shape: f32[2,2,16,64], index: 8, kind: output, shape index: {}]  }
   0x1   :  { %7954 = sst [smem:[#allocation15_spill]] %s7942_s5 }
   0x2   :  { %13 = vsyncpa [#allocation3], 0 }
   0x3   :  { %15 = vsyncpa [#allocation3 + $0x1], 0 }
   0x4   :  { %16 = vsyncpa [#allocation6], 0 }
   0x5   :  { %18 = vsyncpa [#allocation6 + $0x1], 0 }
   0x6   :  { %19 = vsyncpa [#allocation4], 0 }
   0x7   :  { %21 = vsyncpa [#allocation4 + $0x1], 0  ;;  %s6366_s27 = smov 0   ;;  %s6368_s28 = smov 0  }
   0x8   :  { %s6370_s29 = smov 0   ;;  %s6372_s30 = smov 0  }
   0x9 LB: > { %7955 = sst [smem:[#allocation11_spill]] %s6300_s29  ;;  %s6387_s9 = sadd.s32 4294967295, %s6304_s30   ;;  %s6304_s30 = sphi %s6372_s30, %s7968_s30   ;;  %s6300_s29 = sphi %s6370_s29, %s7970_s29   ;;  %s6296_s28 = sphi %s6368_s28, %s7972_s28   ;;  %s6292_s27 = sphi %s6366_s27, %s7971_s27  }
   0xa   : > { %s5363_s10 = sadd.s32 4294967294, %s6304_s30   ;;  %s6391_s11 = sadd.s32 1, %s6304_s30  }
   0xb   : > { %7956 = sst [smem:[#allocation12_spill]] %s6391_s11  ;;  %s164_s12 = sadd.s32 1, %s6300_s29 }
   0xc   : > { %s161_s13 = ssub.s32 %s6304_s30, %s6391_s11  ;;  %p171_p0 = scmp.ne.s32.totalorder %s6300_s29, %s6296_s28 }
   0xd   : > { %p162_p1 = scmp.eq.s32.totalorder %s161_s13, 0  ;;  %p172_p2 = scmp.eq.s32.totalorder %s6304_s30, 0 }
   0xe   : > { %p177_p3 = scmp.ne.s32.totalorder %s6296_s28, %s6292_s27  ;;  %p178_p4 = scmp.eq.s32.totalorder %s6387_s9, 0 }
   0xf   : > { %s6403_s14 = scalar_select %p162_p1, %s6300_s29, %s164_s12  }
  0x10   : > { %p173_p5 = por %p172_p2, %p171_p0  ;;  %p6405_p6 = por %p178_p4, %p177_p3 }
  0x11   : > { %7957 = sst [smem:[#allocation13_spill]] %s6403_s14  ;;  %p253_p7 = scmp.eq.s32.totalorder %s6387_s9, 1 }
  0x12   : > { %p259_p8 = scmp.eq.s32.totalorder %s5363_s10, 1  ;;  %p5365_p9 = scmp.ge.s32.totalorder %s6304_s30, 2 }
  0x13   : > { %p5753_p10 = scmp.lt.s32.totalorder %s6304_s30, 2  ;;  %p6412_p11 = por %p253_p7, %p171_p0 }
  0x14   : > { %p6416_p12 = por %p259_p8, %p177_p3  ;;  %s6421_s18 = sand.u32 1, %s6300_s29  }
  0x15   : > { %s5729_s19 = smul.u32 192, %s6304_s30  ;;  %s7962_s5 = sld [smem:[#allocation15_spill]] }
  0x16   : > { %s7960_s17 = scalar_select %p6416_p12, 1, 0 }
  0x17   : > { %s5728_s20 = smul.u32 192, %s6421_s18  ;;  %p6428_p13 = pnand %p5753_p10, %p173_p5 }
  0x18   : > { %7961 = sst [smem:[#allocation14_spill]] %s7960_s17  ;;  %s319_s12 = scalar_lea.sflag [#allocation3], %s6421_s18 }
  0x19   : > { %s322_s26 = scalar_lea.vmem [#allocation2], %s5728_s20  ;;  %p6178_p1 = pneg %p6428_p13 }
  0x1a   : > { %s330_s10 = sshll.u32 %s322_s26, 4  ;;  %s331_s10 = int_to_ptr.vmem [resolvable:$true] %s330_s10 }
  0x1b   : > { %s327_s23 = scalar_lea.hbm %s7962_s5, %s5729_s19  ;;  %s6181_s22 = scalar_lea.hbm %s7962_s5, 384 }
  0x1c   : > { %s328_s25 = sshll.u32 %s327_s23, 4  ;;  %s329_s25 = int_to_ptr.hbm [resolvable:$true] %s328_s25 }
  0x1d   : > { %s6174_s13 = sshra.s32 %s329_s25, 4  ;;  %s6175_s13 = int_to_ptr.hbm [resolvable:$true] %s6174_s13 }
  0x1e   : > { %s6176_s14 = scalar_lea.hbm %s6175_s13, 192  ;;  %p6182_p4 = scmp.lt.s32.totalorder %s6175_s13, %s7962_s5 }
  0x1f   : > { %p6177_p0 = scmp.ne.s32.totalorder %s6175_s13, %s6176_s14  ;;  %p6183_p5 = scmp.lt.s32.totalorder %s6181_s22, %s6176_s14 }
  0x21   : > { %p6179_p2 = pnand %p6178_p1, %p6177_p0  ;;  %p6184_p7 = por %p6183_p5, %p6182_p4 }
  0x23   : > { %p6180_p3 = pneg %p6179_p2 }
  0x25   : > { %p6185_p8 = pnand %p6184_p7, %p6180_p3 }
  0x27   : > { %6188 = shalt.err (!%p6185_p8)
}
  0x28   : > { %s6306_s20 = smov 128   ;;  %s6307_s26 = smov 8  }
  0x29   : > { %5745 = dma.hbm_to_vmem [thread:$0]  (!%p6428_p13), %s329_s25, 3072, %s331_s10, %s319_s12, %s6306_s20, %s6306_s20, %s6307_s26  }
  0x2a   : > { %p5368_p10 = scmp.ge.s32.totalorder %s6304_s30, 1  ;;  %p368_p0 = scmp.lt.s32.totalorder %s6304_s30, 3 }
  0x2b   : > { %s5730_s19 = smul.u32 48, %s6421_s18  ;;  %s349_s17 = scalar_lea.sflag [#allocation6], %s6421_s18 }
  0x2c   : > { %p6449_p2 = pnand %p5368_p10, %p368_p0  ;;  %s5731_s14 = smul.u32 48, %s6304_s30 }
  0x2d   : > { %s352_s23 = scalar_lea.vmem [#allocation5], %s5730_s19  ;;  %s6211_s26 = scalar_lea.hbm %s7944_s7, 96 }
  0x2e   : > { %s357_s22 = scalar_lea.hbm %s7944_s7, %s5731_s14  ;;  %s360_s5 = sshll.u32 %s352_s23, 4  ;;  %s361_s5 = int_to_ptr.vmem [resolvable:$true] %s360_s5 }
  0x2f   : > { %s358_s11 = sshll.u32 %s357_s22, 4  ;;  %s359_s11 = int_to_ptr.hbm [resolvable:$true] %s358_s11 }
  0x30   : > { %s6204_s25 = sshra.s32 %s359_s11, 4  ;;  %s6205_s25 = int_to_ptr.hbm [resolvable:$true] %s6204_s25 }
  0x31   : > { %s6206_s10 = scalar_lea.hbm %s6205_s25, 48  ;;  %p6212_p7 = scmp.lt.s32.totalorder %s6205_s25, %s7944_s7 }
  0x32   : > { %p6207_p3 = scmp.ne.s32.totalorder %s6205_s25, %s6206_s10  ;;  %p6213_p8 = scmp.lt.s32.totalorder %s6211_s26, %s6206_s10 }
  0x34   : > { %p6209_p4 = pnand %p6207_p3, %p6178_p1  ;;  %p6214_p10 = por %p6213_p8, %p6212_p7 }
  0x36   : > { %p6210_p5 = pneg %p6209_p4 }
  0x38   : > { %p6215_p0 = pnand %p6214_p10, %p6210_p5 }
  0x3a   : > { %6218 = shalt.err (!%p6215_p0)
}
  0x3b   : > { %s6308_s18 = smov 256   ;;  %s6309_s19 = smov 16  }
  0x3c   : > { %5748 = dma.hbm_to_vmem [thread:$0]  (!%p6428_p13), %s359_s11, 768, %s361_s5, %s349_s17, %s6308_s18, %s6308_s18, %s6309_s19  }
  0x3d   : > { %372 = sbr.rel (%p6449_p2) target bundleno = 8335 (0x208f), region = 52  ;;  %s6472_s21 = sand.u32 (!%p6449_p2), 1, %s6296_s28  }
  0x3e   : > { %s5732_s22 = smul.u32 (!%p6449_p2), 192, %s6472_s21  ;;  %s375_s23 = scalar_lea.sflag (!%p6449_p2), [#allocation3], %s6472_s21 }
  0x40   : > { %s6476_s25 = scalar_lea.vmem (!%p6449_p2), [#allocation2], %s5732_s22 }
  0x42   : > { %6279 = dma.done.wait (%p6405_p6), %s375_s23, 3072  }
  0x43   : > { %6281 = vsyncadd (%p6405_p6), %s375_s23, 4294964224  ;;  %s5733_s5 = smul.u32 48, %s6472_s21  ;;  %s385_s11 = scalar_lea.sflag [#allocation6], %s6472_s21 }
  0x45   : > { %s6484_s17 = scalar_lea.vmem [#allocation5], %s5733_s5 }
  0x46   : > { %6283 = dma.done.wait (%p6405_p6), %s385_s11, 768  }
  0x47   : > { %6285 = vsyncadd (%p6405_p6), %s385_s11, 4294966528  ;;  %p456_p13 = scmp.lt.s32.totalorder %s6387_s9, 1  ;;  %vm547_vm0 = vcmask 523264   ;;  %v543_v21 = vld [vmem:[%s6484_s17] sm:$0xff]  ;;  %s6310_s18 = smov 64   ;;  %v544_v31 = vld [vmem:[%s6484_s17 + $0x8] sm:$0xff] }
  0x48   : > { %v545_v22 = vperm.slane %v543_v21, 0  ;;  %s6311_s19 = smov 48   ;;  %s6312_s22 = smov 112   ;;  %v6560_v32 = vperm.slane %v544_v31, 0  ;;  %vm624_vm1 = vcmask 130048  }
  0x49   : > { %s6492_s24 = scalar_select %p456_p13, %s6387_s9, 1 }
  0x4a   : > { %s6313_s12 = smov 32   ;;  %s6314_s26 = smov 96  }
  0x4b   : > { %s5734_s29 = smul.u32 384, %s6492_s24  ;;  %s5723_s15 = sshll.u32 %s6492_s24, 5 }
  0x4c   : > { %s6517_s14 = scalar_lea.vmem %s7937_s0, %s5723_s15  ;;  %s5374_s23 = sshll.u32 %s6492_s24, 1 }
  0x4d   : > { %s6500_s20 = scalar_lea.vmem %s7940_s3, %s5734_s29  ;;  %v485_v12 = vld [vmem:[%s6517_s14] sm:$0xff]  ;;  %v486_v17 = vld [vmem:[%s6517_s14 + $0x8] sm:$0xff]  ;;  %v487_v18 = vld [vmem:[%s6517_s14 + $0x10] sm:$0xff]  ;;  %s6581_s10 = scalar_lea.vmem %s7939_s2, %s5374_s23 }
  0x4e   : > { %v509_v0 = vld [vmem:[%s6500_s20 + $0x70] sm:$0xff]  ;;  %v507_v1 = vld [vmem:[%s6500_s20 + $0x60] sm:$0xff]  ;;  %v510_v6 = vld [vmem:[%s6500_s20 + $0x78] sm:$0xff]  ;;  %s5735_s13 = smul.u32 192, %s6492_s24  ;;  %s7952_s23 = smov 80  }
  0x4f   : > { %568 = vmatpush.msra.mxu0 %v509_v0  ;;  %v505_v2 = vld [vmem:[%s6500_s20 + $0x50] sm:$0xff]  ;;  %v503_v3 = vld [vmem:[%s6500_s20 + $0x40] sm:$0xff]  ;;  %v508_v7 = vld [vmem:[%s6500_s20 + $0x68] sm:$0xff]  ;;  %597 = vmatpush.msra.mxu1 %v510_v6  ;;  %s7965_s24 = smov 80  }
  0x50   : > { %v501_v4 = vld [vmem:[%s6500_s20 + $0x30] sm:$0xff]  ;;  %v499_v5 = vld [vmem:[%s6500_s20 + $0x20] sm:$0xff]  ;;  %v506_v9 = vld [vmem:[%s6500_s20 + $0x58] sm:$0xff]  ;;  %s6656_s11 = scalar_lea.vmem %s7941_s4, %s5735_s13  ;;  %s7950_s13 = smov 16  }
  0x51   : > { %569 = vmatpush.msra.mxu0 %v507_v1  ;;  %v497_v8 = vld [vmem:[%s6500_s20 + $0x10] sm:$0xff]  ;;  %598 = vmatpush.msra.mxu1 %v508_v7  ;;  %v495_v10 = vld [vmem:[%s6500_s20] sm:$0xff]  ;;  %v504_v11 = vld [vmem:[%s6500_s20 + $0x48] sm:$0xff] }
  0x52   : > { %v502_v13 = vld [vmem:[%s6500_s20 + $0x38] sm:$0xff]  ;;  %v500_v14 = vld [vmem:[%s6500_s20 + $0x28] sm:$0xff]  ;;  %v6590_v41 = vld [vmem:[%s6581_s10] ss:$0 sm:$0xff] }
  0x53   : > { %570 = vmatpush.msra.mxu0 %v505_v2  ;;  %599 = vmatpush.msra.mxu1 %v506_v9  ;;  %v498_v15 = vld [vmem:[%s6500_s20 + $0x18] sm:$0xff]  ;;  %v496_v16 = vld [vmem:[%s6500_s20 + $0x8] sm:$0xff]  ;;  %v6597_v50 = vld [vmem:[%s6581_s10 + $0x1] ss:$0 sm:$0xff] }
  0x54   : > { %v488_v19 = vld [vmem:[%s6517_s14 + $0x18] sm:$0xff] }
  0x55   : > { %571 = vmatpush.msra.mxu0 %v503_v3  ;;  %600 = vmatpush.msra.mxu1 %v504_v11 }
  0x57   : > { %572 = vmatpush.msra.mxu0 %v501_v4  ;;  %601 = vmatpush.msra.mxu1 %v502_v13 }
  0x59   : > { %573 = vmatpush.msra.mxu0 %v499_v5  ;;  %602 = vmatpush.msra.mxu1 %v500_v14 }
  0x5b   : > { %574 = vmatpush.msra.mxu0 %v497_v8  ;;  %603 = vmatpush.msra.mxu1 %v498_v15 }
  0x5d   : > { %575 = vmatpush.msra.mxu0 %v495_v10  ;;  %604 = vmatpush.msra.mxu1 %v496_v16 }
  0x5e   : > { %5378 = vmatmul.msk.f32.vlgmr.msra.gmra.mxu0 %vm547_vm0, %v485_v12  ;;  %5382 = vmatmul.msk.f32.vlgmr.msra.gmra.mxu1 %vm547_vm0, %v485_v12 }
  0x66   : > { %5379 = vmatmul.msk.f32.gmra.mxu0 %vm547_vm0, %v486_v17  ;;  %5383 = vmatmul.msk.f32.gmra.mxu1 %vm547_vm0, %v486_v17 }
  0x6e   : > { %5380 = vmatmul.msk.f32.gmra.mxu0 %vm547_vm0, %v487_v18  ;;  %5384 = vmatmul.msk.f32.gmra.mxu1 %vm547_vm0, %v487_v18 }
  0x76   : > { %5381 = vmatmul.msk.f32.gmra.mxu0 %vm547_vm0, %v488_v19  ;;  %5385 = vmatmul.msk.f32.gmra.mxu1 %vm547_vm0, %v488_v19 }
  0xdb   : > { %v577_v20 = vpop.f32.mrf.mxu0  ;;  %v606_v30 = vpop.f32.mrf.mxu1 }
  0xdc   : > { %v6543_v26 = vadd.f32 %v577_v20, %v545_v22  ;;  %v6563_v34 = vadd.f32 %v606_v30, %v6560_v32 }
  0xe3   : > { %v580_v23 = vpop.f32.mrf.mxu0  ;;  %v609_v33 = vpop.f32.mrf.mxu1 }
  0xe4   : > { %v6539_v24 = vadd.f32 %v580_v23, %v545_v22  ;;  %v6566_v35 = vadd.f32 %v609_v33, %v6560_v32 }
  0xe6   : > { %622 = vrot.lane.b32.xlu0 %v6539_v24, %s6310_s18  ;;  %771 = vmatpush.msra.mxu2 %v6566_v35 }
  0xe8   : > { %772 = vmatpush.msra.mxu2 %v6563_v34 }
  0xeb   : > { %v583_v25 = vpop.f32.mrf.mxu0  ;;  %v612_v11 = vpop.f32.mrf.mxu1 }
  0xec   : > { %v6551_v29 = vadd.f32 %v583_v25, %v545_v22  ;;  %v6613_v13 = vadd.f32 %v612_v11, %v6560_v32 }
  0xee   : > { %620 = vrot.lane.b32.xlu0 %v6543_v26, %s6310_s18 }
  0xf3   : > { %v586_v27 = vpop.f32.mrf.mxu0  ;;  %v615_v12 = vpop.f32.mrf.mxu1 }
  0xf4   : > { %v6547_v28 = vadd.f32 %v586_v27, %v545_v22  ;;  %v6616_v14 = vadd.f32 %v615_v12, %v6560_v32 }
  0xf6   : > { %660 = vrot.lane.b32.xlu2 %v6547_v28, %s6310_s18 }
  0xfe   : > { %658 = vrot.lane.b32.xlu2 %v6551_v29, %s6310_s18 }
 0x106   : > { %815 = vrot.lane.b32.xlu2 %v6539_v24, %s6311_s19 }
 0x10e   : > { %809 = vrot.lane.b32.xlu2 %v6543_v26, %s6312_s22 }
 0x150   : > { %v661_v36 = vpop.permute.xlu2 %660 }
 0x158   : > { %v659_v37 = vpop.permute.xlu2 %658  ;;  %v623_v38 = vpop.permute.xlu0 %622 }
 0x159   : > { %5386 = vmatpush.xpose.msk.msra.mxu3 %vm624_vm1, %v623_v38  ;;  %v6636_v38 = vpack.i.bf16 %v6563_v34, %v6566_v35 }
 0x160   : > { %v816_v39 = vpop.permute.xlu2 %815  ;;  %v621_v40 = vpop.permute.xlu0 %620 }
 0x161   : > { %5387 = vmatpush.xpose.msk.msra.mxu3 %vm624_vm1, %v621_v40  ;;  %5398 = vmatpush.xpose.msk.msrb.mxu2 %vm624_vm1, %v816_v39 }
 0x164   : > { %5388 = vmatmul.msk.f32.vlgmr.msra.gmra.mxu3 %vm624_vm1, %v6543_v26 }
 0x165   : > { %5390 = vmatpush.xpose.msk.msrb.mxu3 %vm624_vm1, %v661_v36 }
 0x168   : > { %v810_v1 = vpop.permute.xlu2 %809 }
 0x169   : > { %5391 = vmatpush.xpose.msk.msrb.mxu3 %vm624_vm1, %v659_v37 }
 0x16c   : > { %5389 = vmatmul.msk.f32.gmra.mxu3 %vm624_vm1, %v6539_v24 }
 0x16d   : > { %800 = vmatpush.msra.mxu3 %v6616_v14 }
 0x16f   : > { %801 = vmatpush.msra.mxu3 %v6613_v13 }
 0x174   : > { %5392 = vmatmul.msk.f32.vlgmr.msrb.gmra.mxu3 %vm624_vm1, %v6551_v29 }
 0x17c   : > { %5393 = vmatmul.msk.f32.gmra.mxu3 %vm624_vm1, %v6547_v28 }
 0x1e7   : > { %v650_v42 = vpop.f32.mrf.mxu3 }
 0x1e8   : > { %v693_v43 = vmul.f32 0.25, %v650_v42 }
 0x1ea   : > { %v703_v44 = vadd.f32 %v6590_v41, %v693_v43 }
 0x1ec   : > { %v707_v45 = vsel %vm624_vm1, %v703_v44, -inf }
 0x1ed   : > { %708 = vmax.xlane.f32.xlu1 %v707_v45 }
 0x1ef   : > { %v653_v46 = vpop.f32.mrf.mxu3 }
 0x1f0   : > { %v694_v47 = vmul.f32 0.25, %v653_v46 }
 0x1f2   : > { %v704_v48 = vadd.f32 %v6590_v41, %v694_v47 }
 0x1f4   : > { %v710_v49 = vsel %vm624_vm1, %v704_v48, -inf }
 0x1f5   : > { %711 = vmax.xlane.f32.xlu1 %v710_v49 }
 0x1f7   : > { %v687_v51 = vpop.f32.mrf.mxu3 }
 0x1f8   : > { %v695_v52 = vmul.f32 0.25, %v687_v51 }
 0x1fa   : > { %v705_v53 = vadd.f32 %v6597_v50, %v695_v52 }
 0x1fc   : > { %v713_v54 = vsel %vm624_vm1, %v705_v53, -inf }
 0x1fd   : > { %714 = vmax.xlane.f32.xlu2 %v713_v54  ;;  %v512_v54 = vld [vmem:[%s6656_s11 + $0x8] sm:$0xff] }
 0x1ff   : > { %v690_v7 = vpop.f32.mrf.mxu3 }
 0x200   : > { %v696_v8 = vmul.f32 0.25, %v690_v7 }
 0x202   : > { %v706_v9 = vadd.f32 %v6597_v50, %v696_v8 }
 0x204   : > { %v716_v10 = vsel %vm624_vm1, %v706_v9, -inf }
 0x215   : > { %852 = vrot.lane.b32.xlu2 %v6551_v29, %s6311_s19 }
 0x260   : > { %v709_v55 = vpop.xlane.xlu1 %708 }
 0x261   : > { %v719_v56 = vsub.f32 %v703_v44, %v709_v55  ;;  %v511_v55 = vld [vmem:[%s6656_s11] sm:$0xff] }
 0x263   : > { %v723_v57 = vmul.f32 1.442695, %v719_v56 }
 0x265   : > { %5897 = vpow2.f32 %v723_v57 }
 0x268   : > { %v712_v58 = vpop.xlane.xlu1 %711 }
 0x269   : > { %v720_v59 = vsub.f32 %v704_v48, %v712_v58 }
 0x26b   : > { %v5898_v60 = vpop.eup %5897  ;;  %v725_v61 = vmul.f32 1.442695, %v720_v59 }
 0x26c   : > { %v731_v62 = vsel %vm624_vm1, %v5898_v60, 0.0 }
 0x26d   : > { %5899 = vpow2.f32 %v725_v61  ;;  %732 = vadd.xlane.f32.xlu0 %v731_v62 }
 0x270   : > { %v715_v2 = vpop.xlane.xlu2 %714 }
 0x271   : > { %v721_v3 = vsub.f32 %v705_v53, %v715_v2 }
 0x273   : > { %v5900_v63 = vpop.eup %5899  ;;  %v727_v4 = vmul.f32 1.442695, %v721_v3 }
 0x274   : > { %v734_v0 = vsel %vm624_vm1, %v5900_v63, 0.0 }
 0x275   : > { %735 = vadd.xlane.f32.xlu1 %v734_v0  ;;  %5901 = vpow2.f32 %v727_v4 }
 0x278   : > { %v853_v22 = vpop.permute.xlu2 %852 }
 0x27b   : > { %v5902_v5 = vpop.eup %5901 }
 0x27c   : > { %v737_v6 = vsel %vm624_vm1, %v5902_v5, 0.0 }
 0x281   : > { %854 = vrot.lane.b32.xlu0 %v6547_v28, %s6311_s19 }
 0x28e   : > { %813 = vrot.lane.b32.xlu1 %v6543_v26, %s6311_s19 }
 0x2ab   : > { %738 = vadd.xlane.f32.xlu0 %v737_v6 }
 0x2b8   : > { %717 = vmax.xlane.f32.xlu1 %v716_v10 }
 0x2d1   : > { %848 = vrot.lane.b32.xlu1 %v6551_v29, %s6312_s22 }
 0x2d9   : > { %1099 = vrot.lane.b32.xlu1 %v6543_v26, %s6313_s12 }
 0x2e0   : > { %v733_v15 = vpop.xlane.xlu0 %732 }
 0x2e1   : > { %5903 = vrcp.f32 %v733_v15  ;;  %1097 = vrot.lane.b32.xlu1 %v6539_v24, %s6314_s26 }
 0x2e7   : > { %v5904_v16 = vpop.eup %5903 }
 0x2e8   : > { %v736_v17 = vpop.xlane.xlu1 %735  ;;  %v747_v18 = vmul.f32 %v5904_v16, %v5898_v60  ;;  %v6682_v16 = vpack.i.bf16 %v6613_v13, %v6616_v14 }
 0x2e9   : > { %5905 = vrcp.f32 %v736_v17 }
 0x2ea   : > { %5394 = vmatmul.msk.f32.vlgmr.msra.gmra.mxu2 %vm624_vm1, %v747_v18 }
 0x2ef   : > { %v5906_v19 = vpop.eup %5905 }
 0x2f0   : > { %v748_v20 = vmul.f32 %v5906_v19, %v5900_v63 }
 0x2f2   : > { %5395 = vmatmul.msk.f32.gmra.mxu2 %vm624_vm1, %v748_v20 }
 0x2f3   : > { %v855_v21 = vpop.permute.xlu0 %854 }
 0x2f4   : > { %5402 = vmatpush.xpose.msk.msrb.mxu3 %vm624_vm1, %v855_v21 }
 0x2f8   : > { %5403 = vmatpush.xpose.msk.msrb.mxu3 %vm624_vm1, %v853_v22 }
 0x300   : > { %v814_v23 = vpop.permute.xlu1 %813 }
 0x301   : > { %5399 = vmatpush.xpose.msk.msrb.mxu2 %vm624_vm1, %v814_v23 }
 0x304   : > { %5400 = vmatmul.msk.f32.vlgmr.msrb.gmra.mxu2 %vm624_vm1, %v810_v1 }
 0x31e   : > { %v739_v25 = vpop.xlane.xlu0 %738 }
 0x31f   : > { %5907 = vrcp.f32 %v739_v25 }
 0x325   : > { %v5908_v27 = vpop.eup %5907 }
 0x326   : > { %v749_v30 = vmul.f32 %v5908_v27, %v5902_v5 }
 0x328   : > { %5396 = vmatmul.msk.f32.vlgmr.msra.gmra.mxu3 %vm624_vm1, %v749_v30 }
 0x329   : > { %1080 = vmatpush.msra.mxu3 %v512_v54 }
 0x32b   : > { %v718_v31 = vpop.xlane.xlu1 %717  ;;  %1081 = vmatpush.msra.mxu3 %v511_v55 }
 0x32c   : > { %v722_v32 = vsub.f32 %v706_v9, %v718_v31 }
 0x32e   : > { %v729_v33 = vmul.f32 1.442695, %v722_v32 }
 0x330   : > { %5909 = vpow2.f32 %v729_v33 }
 0x336   : > { %v5910_v36 = vpop.eup %5909 }
 0x337   : > { %v740_v37 = vsel %vm624_vm1, %v5910_v36, 0.0 }
 0x338   : > { %741 = vadd.xlane.f32.xlu2 %v740_v37 }
 0x343   : > { %v849_v49 = vpop.permute.xlu1 %848 }
 0x34b   : > { %v1100_v53 = vpop.permute.xlu1 %1099 }
 0x350   : > { %5803 = vrot.lane.b32.xlu2 %v6636_v38, %s6312_s22 }
 0x353   : > { %v1098_v11 = vpop.permute.xlu1 %1097 }
 0x358   : > { %1101 = vrot.lane.b32.xlu2 %v6539_v24, %s6313_s12 }
 0x360   : > { %1095 = vrot.lane.b32.xlu2 %v6543_v26, %s6314_s26 }
 0x36d   : > { %v774_v39 = vpop.f32.mrf.mxu2 }
 0x375   : > { %v777_v40 = vpop.f32.mrf.mxu2 }
 0x387   : > { %v842_v42 = vpop.f32.mrf.mxu2 }
 0x388   : > { %v887_v43 = vmul.f32 0.25, %v842_v42 }
 0x38a   : > { %v891_v44 = vadd.f32 %v6590_v41, %v887_v43 }
 0x38c   : > { %v895_v45 = vsel %vm624_vm1, %v891_v44, -inf }
 0x38d   : > { %896 = vmax.xlane.f32.xlu0 %v895_v45 }
 0x3a1   : > { %850 = vrot.lane.b32.xlu0 %v6547_v28, %s6312_s22 }
 0x3ab   : > { %v742_v34 = vpop.xlane.xlu2 %741  ;;  %v803_v62 = vpop.f32.mrf.mxu3 }
 0x3ac   : > { %5911 = vrcp.f32 %v742_v34 }
 0x3b2   : > { %v5912_v35 = vpop.eup %5911 }
 0x3b3   : > { %v5804_v46 = vpop.permute.xlu2 %5803  ;;  %v750_v47 = vmul.f32 %v5912_v35, %v5910_v36 }
 0x3b4   : > { %v5805_v48 = vunpack.i.l.bf16 %v5804_v46  ;;  %v5806_v51 = vunpack.i.h.bf16 %v5804_v46 }
 0x3b5   : > { %5397 = vmatmul.msk.f32.gmra.mxu3 %vm624_vm1, %v750_v47 }
 0x3b6   : > { %967 = vmatpush.msrb.mxu0 %v5805_v48  ;;  %5726 = vmatpush.msra.mxu2 %v5805_v48 }
 0x3b8   : > { %968 = vmatpush.msrb.mxu0 %v5806_v51  ;;  %5727 = vmatpush.msra.mxu2 %v5806_v51 }
 0x3bb   : > { %v1102_v52 = vpop.permute.xlu2 %1101 }
 0x3bc   : > { %5418 = vmatpush.xpose.msk.msra.mxu0 %vm624_vm1, %v1102_v52 }
 0x3bd   : > { %5404 = vmatmul.msk.f32.vlgmr.msrb.gmra.mxu3 %vm624_vm1, %v849_v49 }
 0x3c0   : > { %5419 = vmatpush.xpose.msk.msra.mxu0 %vm624_vm1, %v1100_v53 }
 0x3c3   : > { %v1096_v7 = vpop.permute.xlu2 %1095 }
 0x400   : > { %v897_v56 = vpop.xlane.xlu0 %896 }
 0x401   : > { %v907_v57 = vsub.f32 %v891_v44, %v897_v56 }
 0x403   : > { %v911_v58 = vmul.f32 1.442695, %v907_v57 }
 0x405   : > { %5913 = vpow2.f32 %v911_v58 }
 0x40b   : > { %v5914_v59 = vpop.eup %5913 }
 0x40c   : > { %v919_v60 = vsel %vm624_vm1, %v5914_v59, 0.0 }
 0x40d   : > { %920 = vadd.xlane.f32.xlu0 %v919_v60 }
 0x413   : > { %v851_v61 = vpop.permute.xlu0 %850 }
 0x414   : > { %5405 = vmatmul.msk.f32.gmra.mxu3 %vm624_vm1, %v851_v61 }
 0x41c   : > { %5414 = vmatmul.msk.f32.vlgmr.msra.gmra.mxu3 %vm624_vm1, %v774_v39 }
 0x421   : > { %811 = vrot.lane.b32.xlu0 %v6539_v24, %s6312_s22 }
 0x424   : > { %5415 = vmatmul.msk.f32.gmra.mxu3 %vm624_vm1, %v777_v40 }
 0x429   : > { %1140 = vrot.lane.b32.xlu0 %v6547_v28, %s6313_s12 }
 0x42c   : > { %5416 = vmatmul.msk.f32.gmra.mxu3 %vm624_vm1, %v803_v62 }
 0x438   : > { %v806_v63 = vpop.f32.mrf.mxu3 }
 0x439   : > { %5417 = vmatmul.msk.f32.gmra.mxu3 %vm624_vm1, %v806_v63 }
 0x440   : > { %v881_v0 = vpop.f32.mrf.mxu3 }
 0x441   : > { %v889_v1 = vmul.f32 0.25, %v881_v0 }
 0x443   : > { %v893_v2 = vadd.f32 %v6597_v50, %v889_v1 }
 0x445   : > { %v901_v3 = vsel %vm624_vm1, %v893_v2, -inf }
 0x446   : > { %902 = vmax.xlane.f32.xlu2 %v901_v3 }
 0x45e   : > { %1138 = vrot.lane.b32.xlu2 %v6551_v29, %s6313_s12 }
 0x480   : > { %v921_v4 = vpop.xlane.xlu0 %920 }
 0x481   : > { %5915 = vrcp.f32 %v921_v4 }
 0x487   : > { %v5916_v5 = vpop.eup %5915 }
 0x488   : > { %v935_v6 = vmul.f32 %v5916_v5, %v5914_v59 }
 0x48a   : > { %5406 = vmatmul.msk.f32.vlgmr.msrb.gmra.mxu0 %vm624_vm1, %v935_v6 }
 0x492   : > { %5420 = vmatmul.msk.f32.vlgmr.msra.gmra.mxu0 %vm624_vm1, %v1096_v7 }
 0x493   : > { %v812_v8 = vpop.permute.xlu0 %811 }
 0x494   : > { %5401 = vmatmul.msk.f32.gmra.mxu2 %vm624_vm1, %v812_v8 }
 0x497   : > { %v884_v9 = vpop.f32.mrf.mxu3 }
 0x498   : > { %v890_v10 = vmul.f32 0.25, %v884_v9 }
 0x49a   : > { %5421 = vmatmul.msk.f32.gmra.mxu0 %vm624_vm1, %v1098_v11  ;;  %v894_v12 = vadd.f32 %v6597_v50, %v890_v10 }
 0x49b   : > { %v1141_v44 = vpop.permute.xlu0 %1140 }
 0x49c   : > { %v904_v15 = vsel %vm624_vm1, %v894_v12, -inf }
 0x49d   : > { %905 = vmax.xlane.f32.xlu1 %v904_v15 }
 0x49f   : > { %v6730_v8 = vpop.f32.mrf.mxu3 }
 0x4a7   : > { %v6732_v9 = vpop.f32.mrf.mxu3 }
 0x4b6   : > { %5808 = vrot.lane.b32.xlu1 %v6682_v16, %s6312_s22 }
 0x4b9   : > { %v903_v17 = vpop.xlane.xlu2 %902 }
 0x4ba   : > { %v909_v18 = vsub.f32 %v893_v2, %v903_v17  ;;  %v6734_v17 = vpop.f32.mrf.mxu3 }
 0x4bc   : > { %v915_v19 = vmul.f32 1.442695, %v909_v18 }
 0x4be   : > { %5917 = vpow2.f32 %v915_v19  ;;  %1346 = vrot.lane.b32.xlu1 %v6539_v24, %s7950_s13 }
 0x4c1   : > { %v1139_v34 = vpop.permute.xlu2 %1138 }
 0x4c4   : > { %v5918_v20 = vpop.eup %5917 }
 0x4c5   : > { %v925_v21 = vsel %vm624_vm1, %v5918_v20, 0.0 }
 0x4c6   : > { %926 = vadd.xlane.f32.xlu2 %v925_v21  ;;  %5813 = vrot.lane.b32.xlu1 %v6636_v38, %s6314_s26  ;;  %v6739_v21 = vpop.f32.mrf.mxu3 }
 0x4ce   : > { %1136 = vrot.lane.b32.xlu1 %v6547_v28, %s6314_s26 }
 0x4d6   : > { %1340 = vrot.lane.b32.xlu1 %v6543_v26, %s7952_s23 }
 0x4de   : > { %1342 = vrot.lane.b32.xlu1 %v6539_v24, %s7952_s23 }
 0x4e6   : > { %1383 = vrot.lane.b32.xlu1 %v6551_v29, %s7950_s13 }
 0x4ee   : > { %1379 = vrot.lane.b32.xlu1 %v6551_v29, %s7952_s23 }
 0x4f6   : > { %1381 = vrot.lane.b32.xlu1 %v6547_v28, %s7952_s23 }
 0x507   : > { %v6703_v13 = vpop.f32.mrf.mxu0 }
 0x50f   : > { %v1128_v14 = vpop.f32.mrf.mxu0 }
 0x510   : > { %v1173_v22 = vmul.f32 0.25, %v1128_v14  ;;  %v906_v23 = vpop.xlane.xlu1 %905 }
 0x511   : > { %v910_v25 = vsub.f32 %v894_v12, %v906_v23 }
 0x512   : > { %v1177_v27 = vadd.f32 %v6590_v41, %v1173_v22 }
 0x513   : > { %v917_v30 = vmul.f32 1.442695, %v910_v25 }
 0x514   : > { %v1181_v24 = vsel %vm624_vm1, %v1177_v27, -inf }
 0x515   : > { %5919 = vpow2.f32 %v917_v30  ;;  %1182 = vmax.xlane.f32.xlu0 %v1181_v24 }
 0x517   : > { %v1131_v31 = vpop.f32.mrf.mxu0  ;;  %v845_v4 = vpop.f32.mrf.mxu2 }
 0x518   : > { %v1174_v32 = vmul.f32 0.25, %v1131_v31  ;;  %v888_v5 = vmul.f32 0.25, %v845_v4 }
 0x51a   : > { %v1178_v33 = vadd.f32 %v6590_v41, %v1174_v32  ;;  %v892_v6 = vadd.f32 %v6590_v41, %v888_v5 }
 0x51b   : > { %v5920_v36 = vpop.eup %5919 }
 0x51c   : > { %v1184_v37 = vsel %vm624_vm1, %v1178_v33, -inf  ;;  %v928_v39 = vsel %vm624_vm1, %v5920_v36, 0.0  ;;  %v898_v7 = vsel %vm624_vm1, %v892_v6, -inf }
 0x51d   : > { %1185 = vmax.xlane.f32.xlu0 %v1184_v37  ;;  %929 = vadd.xlane.f32.xlu2 %v928_v39 }
 0x528   : > { %v5809_v40 = vpop.permute.xlu1 %5808 }
 0x529   : > { %v5810_v42 = vunpack.i.l.bf16 %v5809_v40  ;;  %v5811_v43 = vunpack.i.h.bf16 %v5809_v40 }
 0x52b   : > { %1004 = vmatpush.msrb.mxu1 %v5810_v42 }
 0x52d   : > { %1005 = vmatpush.msrb.mxu1 %v5811_v43 }
 0x52f   : > { %5422 = vmatpush.xpose.msk.msra.mxu1 %vm624_vm1, %v1141_v44 }
 0x530   : > { %v1347_v45 = vpop.permute.xlu1 %1346 }
 0x531   : > { %1134 = vrot.lane.b32.xlu0 %v6551_v29, %s6314_s26  ;;  %5434 = vmatpush.xpose.msk.msrb.mxu3 %vm624_vm1, %v1347_v45 }
 0x533   : > { %5423 = vmatpush.xpose.msk.msra.mxu1 %vm624_vm1, %v1139_v34 }
 0x535   : > { %1344 = vrot.lane.b32.xlu2 %v6543_v26, %s7950_s13 }
 0x538   : > { %v5814_v35 = vpop.permute.xlu1 %5813 }
 0x539   : > { %v5815_v46 = vunpack.i.l.bf16 %v5814_v35  ;;  %v927_v47 = vpop.xlane.xlu2 %926  ;;  %v5816_v48 = vunpack.i.h.bf16 %v5814_v35 }
 0x53a   : > { %5921 = vrcp.f32 %v927_v47 }
 0x53b   : > { %1251 = vmatpush.msrb.mxu0 %v5815_v46 }
 0x53d   : > { %1252 = vmatpush.msrb.mxu0 %v5816_v48 }
 0x540   : > { %v5922_v49 = vpop.eup %5921  ;;  %v1137_v54 = vpop.permute.xlu1 %1136 }
 0x541   : > { %v937_v51 = vmul.f32 %v5922_v49, %v5918_v20 }
 0x543   : > { %5408 = vmatmul.msk.f32.vlgmr.msrb.gmra.mxu1 %vm624_vm1, %v937_v51 }
 0x548   : > { %v1341_v63 = vpop.permute.xlu1 %1340 }
 0x550   : > { %v1343_v2 = vpop.permute.xlu1 %1342 }
 0x558   : > { %v1384_v18 = vpop.permute.xlu1 %1383 }
 0x560   : > { %v1380_v23 = vpop.permute.xlu1 %1379 }
 0x588   : > { %v1183_v52 = vpop.xlane.xlu0 %1182 }
 0x589   : > { %v1193_v29 = vsub.f32 %v1177_v27, %v1183_v52 }
 0x58b   : > { %v1197_v53 = vmul.f32 1.442695, %v1193_v29 }
 0x58d   : > { %5923 = vpow2.f32 %v1197_v53 }
 0x590   : > { %v1186_v55 = vpop.xlane.xlu0 %1185  ;;  %v930_v56 = vpop.xlane.xlu2 %929 }
 0x591   : > { %v1194_v57 = vsub.f32 %v1178_v33, %v1186_v55  ;;  %5925 = vrcp.f32 %v930_v56 }
 0x593   : > { %v5924_v26 = vpop.eup %5923  ;;  %v1199_v58 = vmul.f32 1.442695, %v1194_v57 }
 0x594   : > { %v1205_v59 = vsel %vm624_vm1, %v5924_v26, 0.0 }
 0x595   : > { %5927 = vpow2.f32 %v1199_v58  ;;  %1206 = vadd.xlane.f32.xlu0 %v1205_v59 }
 0x597   : > { %v5926_v60 = vpop.eup %5925 }
 0x598   : > { %v1345_v61 = vpop.permute.xlu2 %1344  ;;  %v938_v62 = vmul.f32 %v5926_v60, %v5920_v36  ;;  %v1382_v36 = vpop.permute.xlu1 %1381 }
 0x599   : > { %5435 = vmatpush.xpose.msk.msrb.mxu3 %vm624_vm1, %v1345_v61 }
 0x59a   : > { %5409 = vmatmul.msk.f32.gmra.mxu1 %vm624_vm1, %v938_v62 }
 0x59b   : > { %v5928_v0 = vpop.eup %5927 }
 0x59c   : > { %5436 = vmatmul.msk.f32.vlgmr.msrb.gmra.mxu3 %vm624_vm1, %v1341_v63  ;;  %v1208_v1 = vsel %vm624_vm1, %v5928_v0, 0.0 }
 0x59d   : > { %1209 = vadd.xlane.f32.xlu2 %v1208_v1 }
 0x5a3   : > { %v1135_v3 = vpop.permute.xlu0 %1134 }
 0x5a4   : > { %5424 = vmatmul.msk.f32.vlgmr.msra.gmra.mxu1 %vm624_vm1, %v1135_v3  ;;  %5437 = vmatmul.msk.f32.gmra.mxu3 %vm624_vm1, %v1343_v2 }
 0x5a9   : > { %1385 = vrot.lane.b32.xlu0 %v6547_v28, %s7950_s13  ;;  %s6913_s13 = scalar_lea.vmem %s7943_s6, %s5734_s29  ;;  %s7966_s29 = smov 16  }
 0x5ac   : > { %5425 = vmatmul.msk.f32.gmra.mxu1 %vm624_vm1, %v1137_v54 }
 0x5c0   : > { %v6736_v28 = vpop.f32.mrf.mxu1 }
 0x5d3   : > { %899 = vmax.xlane.f32.xlu0 %v898_v7  ;;  %v513_v7 = vld [vmem:[%s6656_s11 + $0x10] sm:$0xff] }
 0x608   : > { %v1207_v10 = vpop.xlane.xlu0 %1206 }
 0x609   : > { %5929 = vrcp.f32 %v1207_v10 }
 0x60f   : > { %v5930_v11 = vpop.eup %5929 }
 0x610   : > { %v1221_v12 = vmul.f32 %v5930_v11, %v5924_v26  ;;  %v1210_v15 = vpop.xlane.xlu2 %1209 }
 0x611   : > { %5931 = vrcp.f32 %v1210_v15 }
 0x612   : > { %5426 = vmatmul.msk.f32.vlgmr.msrb.gmra.mxu0 %vm624_vm1, %v1221_v12 }
 0x617   : > { %v5932_v19 = vpop.eup %5931  ;;  %v6741_v14 = vpop.f32.mrf.mxu1 }
 0x618   : > { %v1222_v20 = vmul.f32 %v5932_v19, %v5928_v0 }
 0x61a   : > { %5427 = vmatmul.msk.f32.gmra.mxu0 %vm624_vm1, %v1222_v20 }
 0x61b   : > { %v1386_v22 = vpop.permute.xlu0 %1385 }
 0x61c   : > { %5438 = vmatpush.xpose.msk.msra.mxu0 %vm624_vm1, %v1386_v22 }
 0x61f   : > { %v1373_v25 = vpop.f32.mrf.mxu3 }
 0x620   : > { %5439 = vmatpush.xpose.msk.msra.mxu0 %vm624_vm1, %v1384_v18  ;;  %v1418_v31 = vmul.f32 0.25, %v1373_v25 }
 0x621   : > { %v1167_v27 = vpop.f32.mrf.mxu1 }
 0x622   : > { %v1175_v30 = vmul.f32 0.25, %v1167_v27  ;;  %v1422_v39 = vadd.f32 %v6590_v41, %v1418_v31 }
 0x623   : > { %5440 = vmatmul.msk.f32.vlgmr.msra.gmra.mxu0 %vm624_vm1, %v1380_v23 }
 0x624   : > { %v1179_v24 = vadd.f32 %v6597_v50, %v1175_v30  ;;  %v1426_v44 = vsel %vm624_vm1, %v1422_v39, -inf }
 0x626   : > { %v1187_v32 = vsel %vm624_vm1, %v1179_v24, -inf }
 0x627   : > { %1188 = vmax.xlane.f32.xlu2 %v1187_v32  ;;  %v1376_v40 = vpop.f32.mrf.mxu3 }
 0x628   : > { %v1419_v43 = vmul.f32 0.25, %v1376_v40 }
 0x629   : > { %v1170_v33 = vpop.f32.mrf.mxu1 }
 0x62a   : > { %v1176_v37 = vmul.f32 0.25, %v1170_v33  ;;  %v1423_v34 = vadd.f32 %v6590_v41, %v1419_v43 }
 0x62b   : > { %5441 = vmatmul.msk.f32.gmra.mxu0 %vm624_vm1, %v1382_v36 }
 0x62c   : > { %v1180_v42 = vadd.f32 %v6597_v50, %v1176_v37  ;;  %v1429_v35 = vsel %vm624_vm1, %v1423_v34, -inf }
 0x62e   : > { %v1190_v45 = vsel %vm624_vm1, %v1180_v42, -inf }
 0x62f   : > { %1427 = vmax.xlane.f32.xlu2 %v1426_v44  ;;  %1191 = vmax.xlane.f32.xlu1 %v1190_v45 }
 0x637   : > { %1430 = vmax.xlane.f32.xlu2 %v1429_v35 }
 0x646   : > { %v900_v46 = vpop.xlane.xlu0 %899 }
 0x647   : > { %v908_v47 = vsub.f32 %v892_v6, %v900_v46  ;;  %v514_v6 = vld [vmem:[%s6656_s11 + $0x18] sm:$0xff] }
 0x648   : > { %5818 = vrot.lane.b32.xlu1 %v6682_v16, %s6314_s26  ;;  %1039 = vmatpush.msrb.mxu2 %v514_v6 }
 0x649   : > { %v913_v48 = vmul.f32 1.442695, %v908_v47 }
 0x64a   : > { %1040 = vmatpush.msrb.mxu2 %v513_v7 }
 0x64b   : > { %5933 = vpow2.f32 %v913_v48 }
 0x650   : > { %5828 = vrot.lane.b32.xlu1 %v6682_v16, %s7952_s23 }
 0x651   : > { %v5934_v49 = vpop.eup %5933 }
 0x652   : > { %v922_v51 = vsel %vm624_vm1, %v5934_v49, 0.0 }
 0x653   : > { %923 = vadd.xlane.f32.xlu2 %v922_v51 }
 0x68f   : > { %v6761_v52 = vpop.f32.mrf.mxu0 }
 0x697   : > { %v6763_v54 = vpop.f32.mrf.mxu0 }
 0x69a   : > { %v1189_v41 = vpop.xlane.xlu2 %1188 }
 0x69b   : > { %v1195_v29 = vsub.f32 %v1179_v24, %v1189_v41 }
 0x69d   : > { %v1201_v53 = vmul.f32 1.442695, %v1195_v29 }
 0x69f   : > { %5935 = vpow2.f32 %v1201_v53 }
 0x6a0   : > { %v1412_v61 = vpop.f32.mrf.mxu0 }
 0x6a1   : > { %v1420_v4 = vmul.f32 0.25, %v1412_v61  ;;  %v518_v61 = vld [vmem:[%s6656_s11 + $0x38] sm:$0xff] }
 0x6a2   : > { %v1428_v55 = vpop.xlane.xlu2 %1427  ;;  %v1192_v56 = vpop.xlane.xlu1 %1191  ;;  %1566 = vmatpush.msrb.mxu0 %v518_v61 }
 0x6a3   : > { %v1438_v57 = vsub.f32 %v1422_v39, %v1428_v55  ;;  %v1196_v26 = vsub.f32 %v1180_v42, %v1192_v56  ;;  %v1424_v10 = vadd.f32 %v6597_v50, %v1420_v4 }
 0x6a5   : > { %v5936_v58 = vpop.eup %5935  ;;  %v1442_v59 = vmul.f32 1.442695, %v1438_v57  ;;  %v1203_v60 = vmul.f32 1.442695, %v1196_v26  ;;  %v1432_v19 = vsel %vm624_vm1, %v1424_v10, -inf }
 0x6a6   : > { %v1211_v16 = vsel %vm624_vm1, %v5936_v58, 0.0 }
 0x6a7   : > { %5937 = vpow2.f32 %v1442_v59  ;;  %1212 = vadd.xlane.f32.xlu0 %v1211_v16  ;;  %v515_v59 = vld [vmem:[%s6656_s11 + $0x20] sm:$0xff] }
 0x6a8   : > { %5939 = vpow2.f32 %v1203_v60  ;;  %v1415_v11 = vpop.f32.mrf.mxu0 }
 0x6a9   : > { %v1421_v18 = vmul.f32 0.25, %v1415_v11 }
 0x6aa   : > { %v1431_v62 = vpop.xlane.xlu2 %1430 }
 0x6ab   : > { %v1439_v63 = vsub.f32 %v1423_v34, %v1431_v62  ;;  %v1425_v23 = vadd.f32 %v6597_v50, %v1421_v18  ;;  %v517_v62 = vld [vmem:[%s6656_s11 + $0x30] sm:$0xff] }
 0x6ac   : > { %1567 = vmatpush.msrb.mxu0 %v517_v62 }
 0x6ad   : > { %v6766_v0 = vpop.eup %5937  ;;  %v1444_v1 = vmul.f32 1.442695, %v1439_v63  ;;  %v1435_v27 = vsel %vm624_vm1, %v1425_v23, -inf }
 0x6ae   : > { %v5940_v2 = vpop.eup %5939  ;;  %v1450_v3 = vsel %vm624_vm1, %v6766_v0, 0.0 }
 0x6af   : > { %5941 = vpow2.f32 %v1444_v1  ;;  %1451 = vadd.xlane.f32.xlu0 %v1450_v3  ;;  %v1214_v5 = vsel %vm624_vm1, %v5940_v2, 0.0 }
 0x6b0   : > { %1215 = vadd.xlane.f32.xlu2 %v1214_v5 }
 0x6b5   : > { %v6774_v12 = vpop.eup %5941 }
 0x6b6   : > { %v1453_v15 = vsel %vm624_vm1, %v6774_v12, 0.0 }
 0x6b7   : > { %1454 = vadd.xlane.f32.xlu0 %v1453_v15 }
 0x6b8   : > { %1433 = vmax.xlane.f32.xlu2 %v1432_v19 }
 0x6ba   : > { %v5819_v20 = vpop.permute.xlu1 %5818 }
 0x6bb   : > { %v5820_v22 = vunpack.i.l.bf16 %v5819_v20  ;;  %v5821_v25 = vunpack.i.h.bf16 %v5819_v20 }
 0x6bd   : > { %1286 = vmatpush.msrb.mxu1 %v5820_v22 }
 0x6bf   : > { %1287 = vmatpush.msrb.mxu1 %v5821_v25 }
 0x6c0   : > { %1436 = vmax.xlane.f32.xlu2 %v1435_v27  ;;  %v6821_v27 = vld [vmem:[%s6484_s17] sm:$0xff] }
 0x6c2   : > { %v5829_v30 = vpop.permute.xlu1 %5828 }
 0x6c3   : > { %v5830_v24 = vunpack.i.l.bf16 %v5829_v30  ;;  %v5831_v31 = vunpack.i.h.bf16 %v5829_v30  ;;  %v1585_v30 = vperm.slane %v6821_v27, 1 }
 0x6c5   : > { %1531 = vmatpush.msra.mxu3 %v5830_v24 }
 0x6c6   : > { %v924_v32 = vpop.xlane.xlu2 %923 }
 0x6c7   : > { %5943 = vrcp.f32 %v924_v32  ;;  %1532 = vmatpush.msra.mxu3 %v5831_v31 }
 0x6cd   : > { %v5944_v33 = vpop.eup %5943 }
 0x6ce   : > { %v936_v36 = vmul.f32 %v5944_v33, %v5934_v49 }
 0x6d0   : > { %5407 = vmatmul.msk.f32.vlgmr.msra.gmra.mxu2 %vm624_vm1, %v936_v36 }
 0x6d8   : > { %5823 = vrot.lane.b32.xlu2 %v6636_v38, %s7952_s23  ;;  %5410 = vmatmul.msk.f32.vlgmr.msrb.gmra.mxu2 %vm624_vm1, %v6703_v13  ;;  %s465_s23 = scalar_lea.vmem %s7938_s1, %s5723_s15  ;;  %s6254_s15 = scalar_lea.hbm %s7945_s8, 64 }
 0x6d9   : > { %v492_v6 = vld [vmem:[%s465_s23 + $0x18] sm:$0xff]  ;;  %v491_v18 = vld [vmem:[%s465_s23 + $0x10] sm:$0xff] }
 0x71a   : > { %v1213_v50 = vpop.xlane.xlu0 %1212 }
 0x71b   : > { %5945 = vrcp.f32 %v1213_v50 }
 0x721   : > { %v5946_v37 = vpop.eup %5945 }
 0x722   : > { %v1223_v39 = vmul.f32 %v5946_v37, %v5936_v58  ;;  %v1452_v38 = vpop.xlane.xlu0 %1451  ;;  %v516_v58 = vld [vmem:[%s6656_s11 + $0x28] sm:$0xff] }
 0x723   : > { %v1216_v40 = vpop.xlane.xlu2 %1215  ;;  %1321 = vmatpush.msra.mxu2 %v516_v58 }
 0x724   : > { %5947 = vrcp.f32 %v1216_v40  ;;  %5428 = vmatmul.msk.f32.vlgmr.msrb.gmra.mxu1 %vm624_vm1, %v1223_v39  ;;  %v6164_v40 = vld [vmem:[%s6517_s14] sm:$0xff] }
 0x725   : > { %1322 = vmatpush.msra.mxu2 %v515_v59 }
 0x72a   : > { %v5948_v42 = vpop.eup %5947  ;;  %v1455_v49 = vpop.xlane.xlu0 %1454 }
 0x72b   : > { %v1434_v43 = vpop.xlane.xlu2 %1433  ;;  %v1224_v44 = vmul.f32 %v5948_v42, %v5940_v2 }
 0x72c   : > { %v1440_v45 = vsub.f32 %v1424_v10, %v1434_v43  ;;  %v490_v10 = vld [vmem:[%s465_s23 + $0x8] sm:$0xff] }
 0x72d   : > { %5429 = vmatmul.msk.f32.gmra.mxu1 %vm624_vm1, %v1224_v44 }
 0x72e   : > { %v1446_v34 = vmul.f32 1.442695, %v1440_v45 }
 0x730   : > { %5949 = vpow2.f32 %v1446_v34 }
 0x731   : > { %5951 = vrcp.f32 %v1452_v38 }
 0x733   : > { %v1437_v35 = vpop.xlane.xlu2 %1436 }
 0x734   : > { %v1441_v46 = vsub.f32 %v1425_v23, %v1437_v35 }
 0x736   : > { %v5950_v13 = vpop.eup %5949  ;;  %v1448_v47 = vmul.f32 1.442695, %v1441_v46  ;;  %v6165_v46 = vld [vmem:[%s6517_s14 + $0x8] sm:$0xff] }
 0x737   : > { %v1456_v48 = vsel %vm624_vm1, %v5950_v13, 0.0  ;;  %v5952_v41 = vpop.eup %5951 }
 0x738   : > { %5953 = vpow2.f32 %v1448_v47  ;;  %1457 = vadd.xlane.f32.xlu0 %v1456_v48  ;;  %v1466_v56 = vmul.f32 %v5952_v41, %v6766_v0  ;;  %v6318_v47 = vmov 64.0  }
 0x739   : > { %5955 = vrcp.f32 %v1455_v49 }
 0x73b   : > { %v5824_v51 = vpop.permute.xlu2 %5823 }
 0x73c   : > { %v5825_v29 = vunpack.i.l.bf16 %v5824_v51  ;;  %v5826_v55 = vunpack.i.h.bf16 %v5824_v51 }
 0x73e   : > { %v5954_v53 = vpop.eup %5953  ;;  %1496 = vmatpush.msra.mxu1 %v5825_v29 }
 0x73f   : > { %v1459_v57 = vsel %vm624_vm1, %v5954_v53, 0.0  ;;  %v5956_v26 = vpop.eup %5955 }
 0x740   : > { %1460 = vadd.xlane.f32.xlu0 %v1459_v57  ;;  %1497 = vmatpush.msra.mxu1 %v5826_v55  ;;  %v1467_v60 = vmul.f32 %v5956_v26, %v6774_v12 }
 0x741   : > { %5442 = vmatmul.msk.f32.vlgmr.msra.gmra.mxu1 %vm624_vm1, %v1466_v56 }
 0x749   : > { %5443 = vmatmul.msk.f32.gmra.mxu1 %vm624_vm1, %v1467_v60 }
 0x753   : > { %v973_v16 = vpop.f32.mrf.mxu2 }
 0x754   : > { %5411 = vmatmul.msk.f32.gmra.mxu2 %vm624_vm1, %v973_v16 }
 0x75b   : > { %v1042_v11 = vpop.f32.mrf.mxu2 }
 0x75c   : > { %5412 = vmatmul.msk.f32.gmra.mxu2 %vm624_vm1, %v6736_v28  ;;  %v489_v28 = vld [vmem:[%s465_s23] sm:$0xff]  ;;  %v1084_v23 = vadd.f32 %v6730_v8, %v1042_v11  ;;  %v6167_v11 = vld [vmem:[%s6517_s14 + $0x18] sm:$0xff] }
 0x764   : > { %5413 = vmatmul.msk.f32.gmra.mxu2 %vm624_vm1, %v6741_v14  ;;  %v6317_v14 = vmov 0  }
 0x765   : > { %5832 = vset.pattern.permute.xlu1 %v6317_v14  ;;  %5833 = vset.pattern.permute.xlu2 %v6317_v14 }
 0x766   : > { %1592 = vperm.xlu1 %5832, %v489_v28   ;;  %5834 = vset.pattern.permute.xlu0 %v6317_v14 }
 0x767   : > { %1597 = vperm.xlu2 %5833, %v490_v10   ;;  %1602 = vperm.xlu0 %5834, %v491_v18  }
 0x76c   : > { %5430 = vmatmul.msk.f32.vlgmr.msra.gmra.mxu2 %vm624_vm1, %v6761_v52 }
 0x76e   : > { %1607 = vperm.xlu1 %5832, %v492_v6  }
 0x774   : > { %5431 = vmatmul.msk.f32.gmra.mxu2 %vm624_vm1, %v6763_v54 }
 0x7a1   : > { %v1289_v63 = vpop.f32.mrf.mxu1 }
 0x7a2   : > { %5432 = vmatmul.msk.f32.gmra.mxu2 %vm624_vm1, %v1289_v63 }
 0x7aa   : > { %v1292_v52 = vpop.f32.mrf.mxu1 }
 0x7ab   : > { %v1458_v54 = vpop.xlane.xlu0 %1457  ;;  %5433 = vmatmul.msk.f32.gmra.mxu2 %vm624_vm1, %v1292_v52 }
 0x7ac   : > { %5957 = vrcp.f32 %v1458_v54  ;;  %v6166_v54 = vld [vmem:[%s6517_s14 + $0x10] sm:$0xff] }
 0x7b2   : > { %v5958_v0 = vpop.eup %5957 }
 0x7b3   : > { %v1468_v1 = vmul.f32 %v5958_v0, %v5950_v13  ;;  %v1461_v2 = vpop.xlane.xlu0 %1460 }
 0x7b4   : > { %5959 = vrcp.f32 %v1461_v2 }
 0x7b5   : > { %5444 = vmatmul.msk.f32.vlgmr.msra.gmra.mxu3 %vm624_vm1, %v1468_v1  ;;  %5961 = vrcp.f32 %v6318_v47 }
 0x7ba   : > { %v5960_v3 = vpop.eup %5959 }
 0x7bb   : > { %v1469_v4 = vmul.f32 %v5960_v3, %v5954_v53  ;;  %v5962_v48 = vpop.eup %5961 }
 0x7bc   : > { %v1631_v49 = vmul.f32 64.0, %v5962_v48  ;;  %vm1635_vm2 = vweird.f32 %v5962_v48 }
 0x7bd   : > { %5445 = vmatmul.msk.f32.gmra.mxu3 %vm624_vm1, %v1469_v4 }
 0x7be   : > { %v1499_v5 = vpop.f32.mrf.mxu1  ;;  %v1632_v51 = vsub.f32 1.0, %v1631_v49 }
 0x7bf   : > { %5446 = vmatmul.msk.f32.vlgmr.msrb.gmra.mxu0 %vm624_vm1, %v1499_v5 }
 0x7c0   : > { %v1633_v41 = vmul.f32 %v5962_v48, %v1632_v51 }
 0x7c1   : > { %v6831_v34 = vpop.permute.xlu2 %1597 }
 0x7c2   : > { %v1634_v55 = vadd.f32 %v5962_v48, %v1633_v41 }
 0x7c4   : > { %v6837_v58 = vsel %vm1635_vm2, %v5962_v48, %v1634_v55 }
 0x7c6   : > { %v1502_v7 = vpop.f32.mrf.mxu1 }
 0x7c7   : > { %5447 = vmatmul.msk.f32.gmra.mxu0 %vm624_vm1, %v1502_v7 }
 0x7d7   : > { %v1045_v12 = vpop.f32.mrf.mxu2 }
 0x7d8   : > { %v6824_v32 = vpop.permute.xlu1 %1592  ;;  %v1087_v37 = vadd.f32 %v6732_v9, %v1045_v12 }
 0x7d9   : > { %v6839_v59 = vpop.permute.xlu0 %1602 }
 0x7df   : > { %v1048_v15 = vpop.f32.mrf.mxu2 }
 0x7e0   : > { %v1090_v53 = vadd.f32 %v6734_v17, %v1048_v15  ;;  %v6841_v60 = vpop.permute.xlu1 %1607 }
 0x7e7   : > { %v1051_v19 = vpop.f32.mrf.mxu2 }
 0x7e8   : > { %v1093_v28 = vadd.f32 %v6739_v21, %v1051_v19 }
 0x7ef   : > { %v1324_v20 = vpop.f32.mrf.mxu2 }
 0x7f0   : > { %v1336_v25 = vadd.f32 %v1324_v20, %v1084_v23  ;;  %v525_v23 = vld [vmem:[%s6476_s25 + $0x30] sm:$0xff] }
 0x7f7   : > { %v1327_v36 = vpop.f32.mrf.mxu2 }
 0x7f8   : > { %v1337_v39 = vadd.f32 %v1327_v36, %v1087_v37  ;;  %v519_v36 = vld [vmem:[%s6476_s25] sm:$0xff] }
 0x825   : > { %v1330_v29 = vpop.f32.mrf.mxu2 }
 0x826   : > { %v1338_v56 = vadd.f32 %v1330_v29, %v1090_v53 }
 0x82e   : > { %v1333_v62 = vpop.f32.mrf.mxu2 }
 0x82f   : > { %v1339_v52 = vadd.f32 %v1333_v62, %v1093_v28 }
 0x838   : > { %v1534_v22 = vpop.f32.mrf.mxu3 }
 0x839   : > { %5448 = vmatmul.msk.f32.gmra.mxu0 %vm624_vm1, %v1534_v22  ;;  %v526_v22 = vld [vmem:[%s6476_s25 + $0x38] sm:$0xff] }
 0x83a   : > { %1747 = vmatpush.msrb.mxu1 %v526_v22 }
 0x83c   : > { %v1569_v24 = vpop.f32.mrf.mxu0  ;;  %1748 = vmatpush.msrb.mxu1 %v525_v23 }
 0x83d   : > { %v1581_v31 = vadd.f32 %v1569_v24, %v1336_v25  ;;  %v524_v25 = vld [vmem:[%s6476_s25 + $0x28] sm:$0xff]  ;;  %v522_v24 = vld [vmem:[%s6476_s25 + $0x18] sm:$0xff] }
 0x83e   : > { %1749 = vmatpush.msrb.mxu1 %v524_v25 }
 0x83f   : > { %v1586_v33 = vadd.f32 %v1585_v30, %v1581_v31  ;;  %v521_v31 = vld [vmem:[%s6476_s25 + $0x10] sm:$0xff] }
 0x840   : > { %v1537_v50 = vpop.f32.mrf.mxu3 }
 0x841   : > { %5449 = vmatmul.msk.f32.gmra.mxu0 %vm624_vm1, %v1537_v50  ;;  %v1610_v8 = vmul.f32 %v6824_v32, %v1586_v33  ;;  %v520_v33 = vld [vmem:[%s6476_s25 + $0x8] sm:$0xff] }
 0x843   : > { %v1614_v42 = vadd.f32 %v6164_v40, %v1610_v8 }
 0x844   : > { %v1572_v43 = vpop.f32.mrf.mxu0 }
 0x845   : > { %v1582_v44 = vadd.f32 %v1572_v43, %v1337_v39  ;;  %v1618_v45 = vsel %vm547_vm0, %v1614_v42, 0.0 }
 0x846   : > { %1619 = vadd.xlane.f32.xlu2 %v1618_v45 }
 0x847   : > { %v1587_v38 = vadd.f32 %v1585_v30, %v1582_v44 }
 0x849   : > { %v1611_v35 = vmul.f32 %v6831_v34, %v1587_v38 }
 0x84b   : > { %v1615_v13 = vadd.f32 %v6165_v46, %v1611_v35 }
 0x84d   : > { %v1621_v9 = vsel %vm547_vm0, %v1615_v13, 0.0 }
 0x84e   : > { %1622 = vadd.xlane.f32.xlu1 %v1621_v9 }
 0x8b6   : > { %v1575_v57 = vpop.f32.mrf.mxu0 }
 0x8b7   : > { %v1583_v26 = vadd.f32 %v1575_v57, %v1338_v56  ;;  %v6885_v56 = vperm.slane %v6821_v27, 2 }
 0x8b9   : > { %v1588_v16 = vadd.f32 %v1585_v30, %v1583_v26  ;;  %v1620_v61 = vpop.xlane.xlu2 %1619 }
 0x8ba   : > { %v1637_v63 = vmul.f32 %v6837_v58, %v1620_v61 }
 0x8bb   : > { %v1612_v17 = vmul.f32 %v6839_v59, %v1588_v16  ;;  %v6889_v16 = vperm.slane %v6821_v27, 3 }
 0x8bc   : > { %v6846_v14 = vsub.f32 %v1614_v42, %v1637_v63 }
 0x8bd   : > { %v1616_v0 = vadd.f32 %v6166_v54, %v1612_v17 }
 0x8be   : > { %v1578_v1 = vpop.f32.mrf.mxu0  ;;  %v1645_v2 = vmul.f32 %v6846_v14, %v6846_v14 }
 0x8bf   : > { %v1584_v3 = vadd.f32 %v1578_v1, %v1339_v52  ;;  %v1624_v4 = vsel %vm547_vm0, %v1616_v0, 0.0 }
 0x8c0   : > { %1625 = vadd.xlane.f32.xlu0 %v1624_v4  ;;  %v1649_v5 = vsel %vm547_vm0, %v1645_v2, 0.0 }
 0x8c1   : > { %v1589_v21 = vadd.f32 %v1585_v30, %v1584_v3  ;;  %1650 = vadd.xlane.f32.xlu1 %v1649_v5  ;;  %v1623_v6 = vpop.xlane.xlu1 %1622  ;;  %v523_v30 = vld [vmem:[%s6476_s25 + $0x20] sm:$0xff] }
 0x8c2   : > { %v1638_v7 = vmul.f32 %v6837_v58, %v1623_v6  ;;  %1750 = vmatpush.msrb.mxu1 %v523_v30 }
 0x8c3   : > { %v1613_v10 = vmul.f32 %v6841_v60, %v1589_v21 }
 0x8c4   : > { %v6856_v15 = vsub.f32 %v1615_v13, %v1638_v7  ;;  %1751 = vmatpush.msrb.mxu1 %v522_v24 }
 0x8c5   : > { %v1617_v12 = vadd.f32 %v6167_v11, %v1613_v10 }
 0x8c6   : > { %v1646_v19 = vmul.f32 %v6856_v15, %v6856_v15  ;;  %1752 = vmatpush.msrb.mxu1 %v521_v31 }
 0x8c7   : > { %v1627_v18 = vsel %vm547_vm0, %v1617_v12, 0.0 }
 0x8c8   : > { %1628 = vadd.xlane.f32.xlu2 %v1627_v18  ;;  %v1652_v20 = vsel %vm547_vm0, %v1646_v19, 0.0  ;;  %1753 = vmatpush.msrb.mxu1 %v520_v33 }
 0x8ca   : > { %1754 = vmatpush.msrb.mxu1 %v519_v36  ;;  %v542_v36 = vld [vmem:[%s6913_s13 + $0x78] sm:$0xff] }
 0x8cb   : > { %1944 = vmatpush.msrb.mxu2 %v542_v36 }
 0x8d0   : > { %1653 = vadd.xlane.f32.xlu2 %v1652_v20 }
 0x933   : > { %v1626_v50 = vpop.xlane.xlu0 %1625 }
 0x934   : > { %v1639_v37 = vmul.f32 %v6837_v58, %v1626_v50  ;;  %v1651_v8 = vpop.xlane.xlu1 %1650 }
 0x935   : > { %v1661_v39 = vmul.f32 %v1651_v8, %v6837_v58  ;;  %v541_v8 = vld [vmem:[%s6913_s13 + $0x70] sm:$0xff] }
 0x936   : > { %v6872_v40 = vsub.f32 %v1616_v0, %v1639_v37  ;;  %1945 = vmatpush.msrb.mxu2 %v541_v8 }
 0x937   : > { %v1665_v42 = vadd.f32 1e-05, %v1661_v39 }
 0x938   : > { %v1647_v43 = vmul.f32 %v6872_v40, %v6872_v40 }
 0x939   : > { %5963 = vrsqrt.f32 %v1665_v42  ;;  %vm1675_vm4 = vweird.f32 %v1665_v42 }
 0x93a   : > { %v1655_v44 = vsel %vm547_vm0, %v1647_v43, 0.0  ;;  %v540_v43 = vld [vmem:[%s6913_s13 + $0x68] sm:$0xff] }
 0x93b   : > { %1656 = vadd.xlane.f32.xlu1 %v1655_v44  ;;  %v1629_v45 = vpop.xlane.xlu2 %1628  ;;  %1946 = vmatpush.msrb.mxu2 %v540_v43 }
 0x93c   : > { %v1640_v38 = vmul.f32 %v6837_v58, %v1629_v45  ;;  %v539_v45 = vld [vmem:[%s6913_s13 + $0x60] sm:$0xff] }
 0x93d   : > { %1947 = vmatpush.msrb.mxu2 %v539_v45 }
 0x93e   : > { %v6878_v35 = vsub.f32 %v1617_v12, %v1640_v38 }
 0x93f   : > { %v5964_v46 = vpop.eup %5963 }
 0x940   : > { %v1670_v13 = vmul.f32 %v5964_v46, %v1665_v42  ;;  %v1648_v9 = vmul.f32 %v6878_v35, %v6878_v35  ;;  %vm1676_vm3 = vweird.f32 %v5964_v46 }
 0x941   : > { %vm1677_vm5 = vmor %vm1675_vm4, %vm1676_vm3 }
 0x942   : > { %v1671_v47 = vmul.f32 %v5964_v46, %v1670_v13  ;;  %v1658_v48 = vsel %vm547_vm0, %v1648_v9, 0.0  ;;  %v538_v13 = vld [vmem:[%s6913_s13 + $0x58] sm:$0xff] }
 0x943   : > { %1659 = vadd.xlane.f32.xlu2 %v1658_v48  ;;  %v1654_v49 = vpop.xlane.xlu2 %1653  ;;  %1948 = vmatpush.msrb.mxu2 %v538_v13 }
 0x944   : > { %v1672_v51 = vmul.f32 0.5, %v1671_v47  ;;  %v1662_v41 = vmul.f32 %v1654_v49, %v6837_v58  ;;  %v537_v47 = vld [vmem:[%s6913_s13 + $0x50] sm:$0xff] }
 0x945   : > { %1949 = vmatpush.msrb.mxu2 %v537_v47 }
 0x946   : > { %v1673_v29 = vsub.f32 1.5, %v1672_v51  ;;  %v1666_v53 = vadd.f32 1e-05, %v1662_v41  ;;  %v536_v41 = vld [vmem:[%s6913_s13 + $0x48] sm:$0xff] }
 0x947   : > { %1950 = vmatpush.msrb.mxu2 %v536_v41 }
 0x948   : > { %v1674_v55 = vmul.f32 %v5964_v46, %v1673_v29  ;;  %5965 = vrsqrt.f32 %v1666_v53  ;;  %vm1685_vm7 = vweird.f32 %v1666_v53 }
 0x94a   : > { %v1678_v57 = vsel %vm1677_vm5, %v5964_v46, %v1674_v55 }
 0x94b   : > { %v1709_v26 = vmul.f32 %v1678_v57, %v6846_v14 }
 0x94d   : > { %v1714_v61 = vmul.f32 %v6885_v56, %v1709_v26 }
 0x94e   : > { %v5966_v62 = vpop.eup %5965 }
 0x94f   : > { %v1680_v63 = vmul.f32 %v5966_v62, %v1666_v53  ;;  %v1719_v28 = vadd.f32 %v6889_v16, %v1714_v61  ;;  %vm1686_vm6 = vweird.f32 %v5966_v62  ;;  %v535_v53 = vld [vmem:[%s6913_s13 + $0x40] sm:$0xff] }
 0x950   : > { %vm1687_vm8 = vmor %vm1685_vm7, %vm1686_vm6  ;;  %1951 = vmatpush.msrb.mxu2 %v535_v53 }
 0x951   : > { %v1681_v17 = vmul.f32 %v5966_v62, %v1680_v63  ;;  %v6894_v52 = vmul.f32 %v1719_v28, %v6824_v32  ;;  %v532_v63 = vld [vmem:[%s6913_s13 + $0x28] sm:$0xff] }
 0x953   : > { %v1682_v54 = vmul.f32 0.5, %v1681_v17  ;;  %5450 = vmatmul.msk.f32.vlgmr.msrb.gmra.mxu1 %vm547_vm0, %v6894_v52 }
 0x955   : > { %v1683_v0 = vsub.f32 1.5, %v1682_v54  ;;  %v531_v54 = vld [vmem:[%s6913_s13 + $0x20] sm:$0xff] }
 0x957   : > { %v1684_v14 = vmul.f32 %v5966_v62, %v1683_v0 }
 0x959   : > { %v1688_v1 = vsel %vm1687_vm8, %v5966_v62, %v1684_v14 }
 0x95a   : > { %v1710_v2 = vmul.f32 %v1688_v1, %v6856_v15  ;;  %v530_v1 = vld [vmem:[%s6913_s13 + $0x18] sm:$0xff] }
 0x95c   : > { %v1715_v3 = vmul.f32 %v6885_v56, %v1710_v2 }
 0x95e   : > { %v1720_v4 = vadd.f32 %v6889_v16, %v1715_v3 }
 0x960   : > { %v6902_v5 = vmul.f32 %v1720_v4, %v6831_v34  ;;  %v529_v4 = vld [vmem:[%s6913_s13 + $0x10] sm:$0xff] }
 0x962   : > { %5451 = vmatmul.msk.f32.gmra.mxu1 %vm547_vm0, %v6902_v5 }
 0x9ae   : > { %v1657_v21 = vpop.xlane.xlu1 %1656 }
 0x9af   : > { %v1663_v6 = vmul.f32 %v1657_v21, %v6837_v58 }
 0x9b1   : > { %v1667_v7 = vadd.f32 1e-05, %v1663_v6 }
 0x9b3   : > { %5967 = vrsqrt.f32 %v1667_v7  ;;  %vm1695_vm10 = vweird.f32 %v1667_v7 }
 0x9b6   : > { %v1660_v10 = vpop.xlane.xlu2 %1659 }
 0x9b7   : > { %v1664_v11 = vmul.f32 %v1660_v10, %v6837_v58  ;;  %v528_v10 = vld [vmem:[%s6913_s13 + $0x8] sm:$0xff] }
 0x9b9   : > { %v5968_v12 = vpop.eup %5967  ;;  %v1668_v15 = vadd.f32 1e-05, %v1664_v11 }
 0x9ba   : > { %v1690_v18 = vmul.f32 %v5968_v12, %v1667_v7  ;;  %vm1696_vm9 = vweird.f32 %v5968_v12 }
 0x9bb   : > { %5969 = vrsqrt.f32 %v1668_v15  ;;  %vm1697_vm11 = vmor %vm1695_vm10, %vm1696_vm9  ;;  %vm1705_vm13 = vweird.f32 %v1668_v15 }
 0x9bc   : > { %v1691_v19 = vmul.f32 %v5968_v12, %v1690_v18 }
 0x9be   : > { %v1692_v20 = vmul.f32 0.5, %v1691_v19 }
 0x9c0   : > { %v1693_v22 = vsub.f32 1.5, %v1692_v20 }
 0x9c1   : > { %v5970_v23 = vpop.eup %5969 }
 0x9c2   : > { %v1694_v25 = vmul.f32 %v5968_v12, %v1693_v22  ;;  %v1700_v30 = vmul.f32 %v5970_v23, %v1668_v15  ;;  %vm1706_vm12 = vweird.f32 %v5970_v23 }
 0x9c3   : > { %vm1707_vm14 = vmor %vm1705_vm13, %vm1706_vm12 }
 0x9c4   : > { %v1698_v24 = vsel %vm1697_vm11, %v5968_v12, %v1694_v25  ;;  %v1701_v31 = vmul.f32 %v5970_v23, %v1700_v30  ;;  %v527_v12 = vld [vmem:[%s6913_s13] sm:$0xff] }
 0x9c5   : > { %v1711_v33 = vmul.f32 %v1698_v24, %v6872_v40 }
 0x9c6   : > { %v1702_v50 = vmul.f32 0.5, %v1701_v31 }
 0x9c7   : > { %v1716_v37 = vmul.f32 %v6885_v56, %v1711_v33 }
 0x9c8   : > { %v1703_v39 = vsub.f32 1.5, %v1702_v50 }
 0x9c9   : > { %v1721_v42 = vadd.f32 %v6889_v16, %v1716_v37 }
 0x9ca   : > { %v1704_v44 = vmul.f32 %v5970_v23, %v1703_v39 }
 0x9cb   : > { %v6922_v40 = vmul.f32 %v1721_v42, %v6839_v59 }
 0x9cc   : > { %v1708_v38 = vsel %vm1707_vm14, %v5970_v23, %v1704_v44 }
 0x9cd   : > { %5452 = vmatmul.msk.f32.gmra.mxu1 %vm547_vm0, %v6922_v40  ;;  %v1712_v46 = vmul.f32 %v1708_v38, %v6878_v35 }
 0x9cf   : > { %v1717_v9 = vmul.f32 %v6885_v56, %v1712_v46  ;;  %v534_v56 = vld [vmem:[%s6913_s13 + $0x38] sm:$0xff] }
 0x9d0   : > { %v6931_v48 = vpop.f32.mrf.mxu1  ;;  %1952 = vmatpush.msrb.mxu2 %v534_v56 }
 0x9d1   : > { %v6934_v49 = vmul.f32 0.70710677, %v6931_v48  ;;  %v1722_v51 = vadd.f32 %v6889_v16, %v1717_v9  ;;  %v533_v16 = vld [vmem:[%s6913_s13 + $0x30] sm:$0xff] }
 0x9d2   : > { %1953 = vmatpush.msrb.mxu2 %v533_v16 }
 0x9d3   : > { %v1776_v35 = vmul.f32 %v6934_v49, %v6934_v49  ;;  %v6941_v29 = vmul.f32 %v1722_v51, %v6841_v60 }
 0x9d4   : > { %1954 = vmatpush.msrb.mxu2 %v532_v63 }
 0x9d5   : > { %v1777_v55 = vmin.f32 %v1776_v35, 16.0  ;;  %5453 = vmatmul.msk.f32.gmra.mxu1 %vm547_vm0, %v6941_v29 }
 0x9d6   : > { %1955 = vmatpush.msrb.mxu2 %v531_v54 }
 0x9d7   : > { %v1778_v57 = vmul.f32 2.1237322e-06, %v1777_v55  ;;  %v1789_v26 = vmul.f32 3.8918573e-05, %v1777_v55 }
 0x9d8   : > { %1956 = vmatpush.msrb.mxu2 %v530_v1  ;;  %v1768_v1 = vmul.f32 0.5, %v6931_v48 }
 0x9d9   : > { %v1779_v61 = vadd.f32 0.00028619796, %v1778_v57  ;;  %v1790_v62 = vadd.f32 0.001143296, %v1789_v26 }
 0x9da   : > { %1957 = vmatpush.msrb.mxu2 %v529_v4 }
 0x9db   : > { %v1780_v28 = vmul.f32 %v1779_v61, %v1777_v55  ;;  %v1791_v17 = vmul.f32 %v1790_v62, %v1777_v55 }
 0x9dc   : > { %1958 = vmatpush.msrb.mxu2 %v528_v10 }
 0x9dd   : > { %v1781_v0 = vadd.f32 0.0036580483, %v1780_v28  ;;  %v1792_v14 = vadd.f32 0.014752088, %v1791_v17 }
 0x9de   : > { %1959 = vmatpush.msrb.mxu2 %v527_v12 }
 0x9df   : > { %v1793_v2 = vmul.f32 %v1792_v14, %v1777_v55  ;;  %v6951_v3 = vpop.f32.mrf.mxu1  ;;  %v1782_v6 = vmul.f32 %v1781_v0, %v1777_v55 }
 0x9e0   : > { %v6955_v21 = vmul.f32 0.70710677, %v6951_v3 }
 0x9e1   : > { %v1794_v7 = vadd.f32 0.112945676, %v1793_v2  ;;  %v1783_v19 = vadd.f32 0.05243302, %v1782_v6 }
 0x9e2   : > { %v1816_v11 = vmul.f32 %v6955_v21, %v6955_v21 }
 0x9e3   : > { %v1795_v15 = vmul.f32 %v1794_v7, %v1777_v55  ;;  %v1784_v31 = vmul.f32 %v1783_v19, %v1777_v55 }
 0x9e4   : > { %v1817_v18 = vmin.f32 %v1816_v11, 16.0 }
 0x9e5   : > { %v1796_v20 = vadd.f32 0.4994258, %v1795_v15  ;;  %v1785_v8 = vadd.f32 0.18741608, %v1784_v31 }
 0x9e6   : > { %v1818_v22 = vmul.f32 2.1237322e-06, %v1817_v18  ;;  %v1829_v23 = vmul.f32 3.8918573e-05, %v1817_v18 }
 0x9e7   : > { %v1797_v25 = vmul.f32 %v1796_v20, %v1777_v55  ;;  %v1786_v45 = vmul.f32 %v1785_v8, %v1777_v55 }
 0x9e8   : > { %v1819_v30 = vadd.f32 0.00028619796, %v1818_v22  ;;  %v1830_v24 = vadd.f32 0.001143296, %v1829_v23 }
 0x9e9   : > { %v1798_v33 = vadd.f32 1.0, %v1797_v25  ;;  %v1787_v51 = vadd.f32 1.1283791, %v1786_v45 }
 0x9ea   : > { %v1820_v36 = vmul.f32 %v1819_v30, %v1817_v18  ;;  %v1831_v50 = vmul.f32 %v1830_v24, %v1817_v18  ;;  %v1769_v30 = vmul.f32 0.5, %v6951_v3 }
 0x9eb   : > { %5971 = vrcp.f32 %v1798_v33  ;;  %v1810_v41 = vand.u32 2147483648, %v1798_v33  ;;  %v1808_v56 = vand.u32 2147483647, %v1798_v33  ;;  %vm1804_vm2 = vweird.f32 %v1798_v33 }
 0x9ec   : > { %v1832_v37 = vadd.f32 0.014752088, %v1831_v50  ;;  %v1821_v39 = vadd.f32 0.0036580483, %v1820_v36  ;;  %v1788_v55 = vmul.f32 %v1787_v51, %v6934_v49 }
 0x9ed   : > { %v1811_v61 = vor.u32 1.1754944e-38, %v1810_v41  ;;  %vm1809_vm4 = vcmp.eq.f32.partialorder %v1808_v56, 8.507059e+37 }
 0x9ee   : > { %v1833_v42 = vmul.f32 %v1832_v37, %v1817_v18  ;;  %v1822_v38 = vmul.f32 %v1821_v39, %v1817_v18 }
 0x9f0   : > { %v1834_v43 = vadd.f32 0.112945676, %v1833_v42  ;;  %v1823_v35 = vadd.f32 0.05243302, %v1822_v38 }
 0x9f1   : > { %v5972_v44 = vpop.eup %5971 }
 0x9f2   : > { %v1800_v46 = vmul.f32 %v5972_v44, %v1798_v33  ;;  %v1835_v13 = vmul.f32 %v1834_v43, %v1817_v18  ;;  %vm1805_vm15 = vweird.f32 %v5972_v44  ;;  %v1824_v62 = vmul.f32 %v1823_v35, %v1817_v18 }
 0x9f3   : > { %vm1806_vm3 = vmor %vm1804_vm2, %vm1805_vm15 }
 0x9f4   : > { %v1801_v9 = vsub.f32 1.0, %v1800_v46  ;;  %v1836_v47 = vadd.f32 0.4994258, %v1835_v13  ;;  %v1825_v54 = vadd.f32 0.18741608, %v1824_v62 }
 0x9f6   : > { %v1802_v53 = vmul.f32 %v5972_v44, %v1801_v9  ;;  %v1837_v57 = vmul.f32 %v1836_v47, %v1817_v18  ;;  %v1826_v4 = vmul.f32 %v1825_v54, %v1817_v18 }
 0x9f8   : > { %v1803_v26 = vadd.f32 %v5972_v44, %v1802_v53  ;;  %v1838_v16 = vadd.f32 1.0, %v1837_v57  ;;  %v1827_v12 = vadd.f32 1.1283791, %v1826_v4 }
 0x9fa   : > { %v1807_v63 = vsel %vm1806_vm3, %v5972_v44, %v1803_v26  ;;  %5973 = vrcp.f32 %v1838_v16  ;;  %v1850_v11 = vand.u32 2147483648, %v1838_v16  ;;  %v1848_v49 = vand.u32 2147483647, %v1838_v16 }
 0x9fb   : > { %v1812_v28 = vsel %vm1809_vm4, %v1811_v61, %v1807_v63  ;;  %vm1844_vm6 = vweird.f32 %v1838_v16  ;;  %v1828_v22 = vmul.f32 %v1827_v12, %v6955_v21 }
 0x9fc   : > { %v1813_v17 = vmul.f32 %v1812_v28, %v1788_v55  ;;  %v1851_v20 = vor.u32 1.1754944e-38, %v1850_v11  ;;  %vm1849_vm8 = vcmp.eq.f32.partialorder %v1848_v49, 8.507059e+37 }
 0x9fe   : > { %v5454_v0 = vclamps-f32 %v1813_v17, 1.0 }
 0xa00   : > { %v5974_v14 = vpop.eup %5973  ;;  %v1936_v2 = vadd.f32 1.0, %v5454_v0 }
 0xa01   : > { %v1840_v6 = vmul.f32 %v5974_v14, %v1838_v16  ;;  %vm1845_vm5 = vweird.f32 %v5974_v14 }
 0xa02   : > { %v1940_v7 = vmul.f32 %v1936_v2, %v1768_v1  ;;  %vm1846_vm7 = vmor %vm1844_vm6, %vm1845_vm5 }
 0xa03   : > { %v1841_v10 = vsub.f32 1.0, %v1840_v6 }
 0xa04   : > { %1960 = vmatmul.f32.vlgmr.msrb.gmra.mxu2 %v1940_v7 }
 0xa05   : > { %v1842_v15 = vmul.f32 %v5974_v14, %v1841_v10 }
 0xa07   : > { %v1843_v19 = vadd.f32 %v5974_v14, %v1842_v15 }
 0xa09   : > { %v1847_v23 = vsel %vm1846_vm7, %v5974_v14, %v1843_v19 }
 0xa0a   : > { %v1852_v48 = vsel %vm1849_vm8, %v1851_v20, %v1847_v23 }
 0xa0b   : > { %v1853_v25 = vmul.f32 %v1852_v48, %v1828_v22 }
 0xa0d   : > { %v5455_v18 = vclamps-f32 %v1853_v25, 1.0 }
 0xa0f   : > { %v1937_v24 = vadd.f32 1.0, %v5455_v18 }
 0xa11   : > { %v1941_v31 = vmul.f32 %v1937_v24, %v1769_v30 }
 0xa13   : > { %1963 = vmatmul.f32.gmra.mxu2 %v1941_v31 }
 0xa4a   : > { %v6965_v33 = vpop.f32.mrf.mxu1 }
 0xa4b   : > { %v1774_v36 = vmul.f32 0.70710677, %v6965_v33 }
 0xa4d   : > { %v1856_v50 = vmul.f32 %v1774_v36, %v1774_v36 }
 0xa4f   : > { %v1857_v37 = vmin.f32 %v1856_v50, 16.0 }
 0xa51   : > { %v1858_v8 = vmul.f32 2.1237322e-06, %v1857_v37  ;;  %v1869_v39 = vmul.f32 3.8918573e-05, %v1857_v37 }
 0xa52   : > { %v6968_v42 = vpop.f32.mrf.mxu1 }
 0xa53   : > { %v1859_v21 = vadd.f32 0.00028619796, %v1858_v8  ;;  %v6971_v43 = vmul.f32 0.70710677, %v6968_v42  ;;  %v1870_v44 = vadd.f32 0.001143296, %v1869_v39 }
 0xa55   : > { %v1860_v45 = vmul.f32 %v1859_v21, %v1857_v37  ;;  %v1896_v3 = vmul.f32 %v6971_v43, %v6971_v43  ;;  %v1871_v38 = vmul.f32 %v1870_v44, %v1857_v37 }
 0xa57   : > { %v1897_v46 = vmin.f32 %v1896_v3, 16.0  ;;  %v1872_v13 = vadd.f32 0.014752088, %v1871_v38  ;;  %v1861_v9 = vadd.f32 0.0036580483, %v1860_v45 }
 0xa59   : > { %v1898_v47 = vmul.f32 2.1237322e-06, %v1897_v46  ;;  %v1873_v51 = vmul.f32 %v1872_v13, %v1857_v37  ;;  %v1909_v41 = vmul.f32 3.8918573e-05, %v1897_v46  ;;  %v1862_v56 = vmul.f32 %v1861_v9, %v1857_v37 }
 0xa5b   : > { %v1899_v35 = vadd.f32 0.00028619796, %v1898_v47  ;;  %v1874_v53 = vadd.f32 0.112945676, %v1873_v51  ;;  %v1910_v57 = vadd.f32 0.001143296, %v1909_v41 }
 0xa5c   : > { %v1863_v55 = vadd.f32 0.05243302, %v1862_v56  ;;  %v1770_v41 = vmul.f32 0.5, %v6965_v33 }
 0xa5d   : > { %v1900_v26 = vmul.f32 %v1899_v35, %v1897_v46  ;;  %v1875_v16 = vmul.f32 %v1874_v53, %v1857_v37  ;;  %v1911_v61 = vmul.f32 %v1910_v57, %v1897_v46 }
 0xa5e   : > { %v1864_v14 = vmul.f32 %v1863_v55, %v1857_v37 }
 0xa5f   : > { %v1876_v62 = vadd.f32 0.4994258, %v1875_v16  ;;  %v1912_v63 = vadd.f32 0.014752088, %v1911_v61  ;;  %v1901_v28 = vadd.f32 0.0036580483, %v1900_v26 }
 0xa60   : > { %v1865_v6 = vadd.f32 0.18741608, %v1864_v14 }
 0xa61   : > { %v1877_v17 = vmul.f32 %v1876_v62, %v1857_v37  ;;  %v1913_v54 = vmul.f32 %v1912_v63, %v1897_v46  ;;  %v1902_v2 = vmul.f32 %v1901_v28, %v1897_v46  ;;  %v1771_v62 = vmul.f32 0.5, %v6968_v42 }
 0xa62   : > { %v1866_v15 = vmul.f32 %v1865_v6, %v1857_v37 }
 0xa63   : > { %v1878_v0 = vadd.f32 1.0, %v1877_v17  ;;  %v1914_v1 = vadd.f32 0.112945676, %v1913_v54  ;;  %v1903_v10 = vadd.f32 0.05243302, %v1902_v2 }
 0xa64   : > { %v1867_v48 = vadd.f32 1.1283791, %v1866_v15 }
 0xa65   : > { %5975 = vrcp.f32 %v1878_v0  ;;  %v1915_v4 = vmul.f32 %v1914_v1, %v1897_v46  ;;  %v1904_v20 = vmul.f32 %v1903_v10, %v1897_v46  ;;  %v1890_v23 = vand.u32 2147483648, %v1878_v0 }
 0xa66   : > { %v1888_v18 = vand.u32 2147483647, %v1878_v0  ;;  %vm1884_vm10 = vweird.f32 %v1878_v0  ;;  %v1868_v8 = vmul.f32 %v1867_v48, %v1774_v36  ;;  %v5468_v48 = vld [vmem:[%s6500_s20 + $0xd0] sm:$0xff] }
 0xa67   : > { %v1916_v7 = vadd.f32 0.4994258, %v1915_v4  ;;  %v1905_v30 = vadd.f32 0.18741608, %v1904_v20  ;;  %v1891_v31 = vor.u32 1.1754944e-38, %v1890_v23  ;;  %v5472_v20 = vld [vmem:[%s6500_s20 + $0xf0] sm:$0xff] }
 0xa68   : > { %vm1889_vm12 = vcmp.eq.f32.partialorder %v1888_v18, 8.507059e+37  ;;  %2152 = vmatpush.msrb.mxu3 %v5472_v20  ;;  %v5471_v23 = vld [vmem:[%s6500_s20 + $0xe8] sm:$0xff]  ;;  %v5466_v18 = vld [vmem:[%s6500_s20 + $0xc0] sm:$0xff] }
 0xa69   : > { %v1917_v11 = vmul.f32 %v1916_v7, %v1897_v46  ;;  %v1906_v37 = vmul.f32 %v1905_v30, %v1897_v46  ;;  %v5467_v30 = vld [vmem:[%s6500_s20 + $0xc8] sm:$0xff] }
 0xa6b   : > { %v5976_v12 = vpop.eup %5975  ;;  %v1918_v19 = vadd.f32 1.0, %v1917_v11  ;;  %v1907_v9 = vadd.f32 1.1283791, %v1906_v37  ;;  %v5461_v37 = vld [vmem:[%s6500_s20 + $0x98] sm:$0xff] }
 0xa6c   : > { %v1880_v49 = vmul.f32 %v5976_v12, %v1878_v0  ;;  %vm1885_vm9 = vweird.f32 %v5976_v12 }
 0xa6d   : > { %5977 = vrcp.f32 %v1918_v19  ;;  %vm1886_vm11 = vmor %vm1884_vm10, %vm1885_vm9  ;;  %v1930_v13 = vand.u32 2147483648, %v1918_v19  ;;  %v1928_v51 = vand.u32 2147483647, %v1918_v19  ;;  %vm1924_vm14 = vweird.f32 %v1918_v19 }
 0xa6e   : > { %v1881_v22 = vsub.f32 1.0, %v1880_v49  ;;  %v1908_v46 = vmul.f32 %v1907_v9, %v6971_v43 }
 0xa6f   : > { %v1931_v36 = vor.u32 1.1754944e-38, %v1930_v13  ;;  %vm1929_vm2 = vcmp.eq.f32.partialorder %v1928_v51, 8.507059e+37 }
 0xa70   : > { %v1882_v25 = vmul.f32 %v5976_v12, %v1881_v22  ;;  %v5470_v22 = vld [vmem:[%s6500_s20 + $0xe0] sm:$0xff] }
 0xa71   : > { %2153 = vmatpush.msrb.mxu3 %v5470_v22 }
 0xa72   : > { %v1883_v24 = vadd.f32 %v5976_v12, %v1882_v25  ;;  %v5469_v25 = vld [vmem:[%s6500_s20 + $0xd8] sm:$0xff] }
 0xa73   : > { %v5978_v50 = vpop.eup %5977  ;;  %2154 = vmatpush.msrb.mxu3 %v5468_v48 }
 0xa74   : > { %v1887_v39 = vsel %vm1886_vm11, %v5976_v12, %v1883_v24  ;;  %v1920_v44 = vmul.f32 %v5978_v50, %v1918_v19  ;;  %vm1925_vm13 = vweird.f32 %v5978_v50  ;;  %v5464_v24 = vld [vmem:[%s6500_s20 + $0xb0] sm:$0xff] }
 0xa75   : > { %v1892_v21 = vsel %vm1889_vm12, %v1891_v31, %v1887_v39  ;;  %vm1926_vm15 = vmor %vm1924_vm14, %vm1925_vm13  ;;  %2155 = vmatpush.msrb.mxu3 %v5466_v18  ;;  %v5465_v31 = vld [vmem:[%s6500_s20 + $0xb8] sm:$0xff]  ;;  %v5460_v39 = vld [vmem:[%s6500_s20 + $0x90] sm:$0xff] }
 0xa76   : > { %v1893_v45 = vmul.f32 %v1892_v21, %v1868_v8  ;;  %v1921_v3 = vsub.f32 1.0, %v1920_v44  ;;  %v5463_v8 = vld [vmem:[%s6500_s20 + $0xa8] sm:$0xff]  ;;  %v5458_v21 = vld [vmem:[%s6500_s20 + $0x80] sm:$0xff] }
 0xa77   : > { %2156 = vmatpush.msrb.mxu3 %v5464_v24  ;;  %v5459_v44 = vld [vmem:[%s6500_s20 + $0x88] sm:$0xff] }
 0xa78   : > { %v5456_v38 = vclamps-f32 %v1893_v45, 1.0  ;;  %v1922_v47 = vmul.f32 %v5978_v50, %v1921_v3 }
 0xa7a   : > { %v1938_v35 = vadd.f32 1.0, %v5456_v38  ;;  %v1923_v53 = vadd.f32 %v5978_v50, %v1922_v47 }
 0xa7c   : > { %v1942_v56 = vmul.f32 %v1938_v35, %v1770_v41  ;;  %v1927_v57 = vsel %vm1926_vm15, %v5978_v50, %v1923_v53  ;;  %v5462_v50 = vld [vmem:[%s6500_s20 + $0xa0] sm:$0xff] }
 0xa7d   : > { %v1932_v26 = vsel %vm1929_vm2, %v1931_v36, %v1927_v57  ;;  %2157 = vmatpush.msrb.mxu3 %v5462_v50 }
 0xa7e   : > { %1966 = vmatmul.f32.gmra.mxu2 %v1942_v56  ;;  %v1933_v16 = vmul.f32 %v1932_v26, %v1908_v46 }
 0xa7f   : > { %2158 = vmatpush.msrb.mxu3 %v5460_v39 }
 0xa80   : > { %v5457_v61 = vclamps-f32 %v1933_v16, 1.0 }
 0xa81   : > { %2159 = vmatpush.msrb.mxu3 %v5458_v21 }
 0xa82   : > { %v1939_v55 = vadd.f32 1.0, %v5457_v61 }
 0xa84   : > { %v1943_v63 = vmul.f32 %v1939_v55, %v1771_v62 }
 0xa86   : > { %1969 = vmatmul.f32.gmra.mxu2 %v1943_v63 }
 0xa87   : > { %v1961_v33 = vpop.f32.mrf.mxu2 }
 0xa88   : > { %v1973_v28 = vadd.f32 %v1961_v33, %v6894_v52 }
 0xa8a   : > { %v1977_v17 = vsel %vm547_vm0, %v1973_v28, 0.0 }
 0xa8b   : > { %1978 = vadd.xlane.f32.xlu1 %v1977_v17  ;;  %v2065_v17 = vperm.slane %v6821_v27, 4 }
 0xa96   : > { %v1964_v54 = vpop.f32.mrf.mxu2 }
 0xa97   : > { %v1974_v43 = vadd.f32 %v1964_v54, %v6902_v5 }
 0xa99   : > { %v1980_v0 = vsel %vm547_vm0, %v1974_v43, 0.0 }
 0xa9a   : > { %1981 = vadd.xlane.f32.xlu2 %v1980_v0  ;;  %v2070_v0 = vperm.slane %v6821_v27, 5 }
 0xafe   : > { %v1979_v14 = vpop.xlane.xlu1 %1978 }
 0xaff   : > { %v1989_v1 = vmul.f32 %v1979_v14, %v6837_v58 }
 0xb01   : > { %v6983_v2 = vsub.f32 %v1973_v28, %v1989_v1  ;;  %v1967_v42 = vpop.f32.mrf.mxu2 }
 0xb02   : > { %v1975_v4 = vadd.f32 %v1967_v42, %v6922_v40 }
 0xb03   : > { %v1997_v52 = vmul.f32 %v6983_v2, %v6983_v2 }
 0xb04   : > { %v1983_v6 = vsel %vm547_vm0, %v1975_v4, 0.0 }
 0xb05   : > { %1984 = vadd.xlane.f32.xlu1 %v1983_v6  ;;  %v2001_v5 = vsel %vm547_vm0, %v1997_v52, 0.0 }
 0xb06   : > { %2002 = vadd.xlane.f32.xlu0 %v2001_v5 }
 0xb09   : > { %v1970_v7 = vpop.f32.mrf.mxu2 }
 0xb0a   : > { %v1976_v10 = vadd.f32 %v1970_v7, %v6941_v29  ;;  %v5473_v29 = vld [vmem:[%s6500_s20 + $0xf8] sm:$0xff] }
 0xb0b   : > { %2181 = vmatpush.msra.mxu0 %v5473_v29 }
 0xb0c   : > { %v1986_v11 = vsel %vm547_vm0, %v1976_v10, 0.0 }
 0xb0d   : > { %v1982_v40 = vpop.xlane.xlu2 %1981  ;;  %1987 = vadd.xlane.f32.xlu2 %v1986_v11  ;;  %2182 = vmatpush.msra.mxu0 %v5471_v23 }
 0xb0e   : > { %v1990_v12 = vmul.f32 %v1982_v40, %v6837_v58 }
 0xb0f   : > { %2183 = vmatpush.msra.mxu0 %v5469_v25 }
 0xb10   : > { %v6993_v15 = vsub.f32 %v1974_v43, %v1990_v12 }
 0xb11   : > { %2184 = vmatpush.msra.mxu0 %v5467_v30 }
 0xb12   : > { %v1998_v49 = vmul.f32 %v6993_v15, %v6993_v15 }
 0xb13   : > { %2185 = vmatpush.msra.mxu0 %v5465_v31 }
 0xb14   : > { %v2004_v19 = vsel %vm547_vm0, %v1998_v49, 0.0 }
 0xb15   : > { %2005 = vadd.xlane.f32.xlu1 %v2004_v19  ;;  %2186 = vmatpush.msra.mxu0 %v5463_v8 }
 0xb17   : > { %2187 = vmatpush.msra.mxu0 %v5461_v37 }
 0xb19   : > { %2188 = vmatpush.msra.mxu0 %v5459_v44 }
 0xb78   : > { %v1985_v45 = vpop.xlane.xlu1 %1984 }
 0xb79   : > { %v1991_v3 = vmul.f32 %v1985_v45, %v6837_v58  ;;  %v2003_v38 = vpop.xlane.xlu0 %2002 }
 0xb7a   : > { %v2013_v13 = vmul.f32 %v2003_v38, %v6837_v58 }
 0xb7b   : > { %v7016_v9 = vsub.f32 %v1975_v4, %v1991_v3 }
 0xb7c   : > { %v2017_v47 = vadd.f32 1e-05, %v2013_v13  ;;  %v7055_v13 = vld [vmem:[%s6484_s17 + $0x10] sm:$0xff] }
 0xb7d   : > { %v1999_v51 = vmul.f32 %v7016_v9, %v7016_v9 }
 0xb7e   : > { %5979 = vrsqrt.f32 %v2017_v47  ;;  %vm2027_vm4 = vweird.f32 %v2017_v47 }
 0xb7f   : > { %v2007_v41 = vsel %vm547_vm0, %v1999_v51, 0.0 }
 0xb80   : > { %2008 = vadd.xlane.f32.xlu2 %v2007_v41  ;;  %v1988_v35 = vpop.xlane.xlu2 %1987 }
 0xb81   : > { %v1992_v53 = vmul.f32 %v1988_v35, %v6837_v58 }
 0xb83   : > { %v7022_v36 = vsub.f32 %v1976_v10, %v1992_v53 }
 0xb84   : > { %v5980_v56 = vpop.eup %5979 }
 0xb85   : > { %v2022_v46 = vmul.f32 %v5980_v56, %v2017_v47  ;;  %v2000_v57 = vmul.f32 %v7022_v36, %v7022_v36  ;;  %vm2028_vm3 = vweird.f32 %v5980_v56  ;;  %v2130_v47 = vperm.slane %v7055_v13, 0 }
 0xb86   : > { %vm2029_vm5 = vmor %vm2027_vm4, %vm2028_vm3 }
 0xb87   : > { %v2023_v26 = vmul.f32 %v5980_v56, %v2022_v46  ;;  %v2010_v61 = vsel %vm547_vm0, %v2000_v57, 0.0 }
 0xb88   : > { %v2006_v16 = vpop.xlane.xlu1 %2005  ;;  %2011 = vadd.xlane.f32.xlu0 %v2010_v61 }
 0xb89   : > { %v2024_v62 = vmul.f32 0.5, %v2023_v26  ;;  %v2014_v55 = vmul.f32 %v2006_v16, %v6837_v58 }
 0xb8b   : > { %v2025_v63 = vsub.f32 1.5, %v2024_v62  ;;  %v2018_v33 = vadd.f32 1e-05, %v2014_v55 }
 0xb8d   : > { %v2026_v28 = vmul.f32 %v5980_v56, %v2025_v63  ;;  %5981 = vrsqrt.f32 %v2018_v33  ;;  %vm2037_vm7 = vweird.f32 %v2018_v33 }
 0xb8f   : > { %v2030_v54 = vsel %vm2029_vm5, %v5980_v56, %v2026_v28  ;;  %v5507_v56 = vld [vmem:[%s6484_s17 + $0x18] sm:$0xff] }
 0xb90   : > { %v2061_v43 = vmul.f32 %v2030_v54, %v6983_v2 }
 0xb92   : > { %v2066_v14 = vmul.f32 %v2065_v17, %v2061_v43 }
 0xb93   : > { %v5982_v1 = vpop.eup %5981 }
 0xb94   : > { %v2032_v42 = vmul.f32 %v5982_v1, %v2018_v33  ;;  %v7031_v4 = vadd.f32 %v2070_v0, %v2066_v14  ;;  %vm2038_vm6 = vweird.f32 %v5982_v1 }
 0xb95   : > { %vm2039_vm8 = vmor %vm2037_vm7, %vm2038_vm6 }
 0xb96   : > { %v2033_v52 = vmul.f32 %v5982_v1, %v2032_v42  ;;  %5508 = vmatmul.msk.f32.vlgmr.msrb.gmra.mxu3 %vm547_vm0, %v7031_v4  ;;  %5512 = vmatmul.msk.f32.vlgmr.msra.gmra.mxu0 %vm547_vm0, %v7031_v4 }
 0xb98   : > { %v2034_v6 = vmul.f32 0.5, %v2033_v52 }
 0xb9a   : > { %v2035_v5 = vsub.f32 1.5, %v2034_v6 }
 0xb9c   : > { %v2036_v7 = vmul.f32 %v5982_v1, %v2035_v5 }
 0xb9e   : > { %v2040_v2 = vsel %vm2039_vm8, %v5982_v1, %v2036_v7 }
 0xb9f   : > { %v2062_v27 = vmul.f32 %v2040_v2, %v6993_v15 }
 0xba1   : > { %v2067_v10 = vmul.f32 %v2065_v17, %v2062_v27 }
 0xba3   : > { %v7038_v11 = vadd.f32 %v2070_v0, %v2067_v10  ;;  %v7108_v10 = vld [vmem:[%s6581_s10] ss:$0 sm:$0xff] }
 0xba5   : > { %5509 = vmatmul.msk.f32.gmra.mxu3 %vm547_vm0, %v7038_v11  ;;  %5513 = vmatmul.msk.f32.gmra.mxu0 %vm547_vm0, %v7038_v11 }
 0xbf3   : > { %v2009_v40 = vpop.xlane.xlu2 %2008 }
 0xbf4   : > { %v2015_v12 = vmul.f32 %v2009_v40, %v6837_v58 }
 0xbf6   : > { %v2019_v49 = vadd.f32 1e-05, %v2015_v12 }
 0xbf8   : > { %5983 = vrsqrt.f32 %v2019_v49  ;;  %vm2047_vm10 = vweird.f32 %v2019_v49 }
 0xbfb   : > { %v2012_v19 = vpop.xlane.xlu0 %2011 }
 0xbfc   : > { %v2016_v20 = vmul.f32 %v2012_v19, %v6837_v58 }
 0xbfe   : > { %v5984_v29 = vpop.eup %5983  ;;  %v2020_v15 = vadd.f32 1e-05, %v2016_v20 }
 0xbff   : > { %v2042_v22 = vmul.f32 %v5984_v29, %v2019_v49  ;;  %vm2048_vm9 = vweird.f32 %v5984_v29 }
 0xc00   : > { %5985 = vrsqrt.f32 %v2020_v15  ;;  %vm2049_vm11 = vmor %vm2047_vm10, %vm2048_vm9  ;;  %vm2057_vm13 = vweird.f32 %v2020_v15 }
 0xc01   : > { %v2043_v23 = vmul.f32 %v5984_v29, %v2042_v22 }
 0xc03   : > { %v2044_v48 = vmul.f32 0.5, %v2043_v23 }
 0xc05   : > { %v2045_v25 = vsub.f32 1.5, %v2044_v48 }
 0xc06   : > { %v5986_v18 = vpop.eup %5985 }
 0xc07   : > { %v2046_v30 = vmul.f32 %v5984_v29, %v2045_v25  ;;  %v2052_v24 = vmul.f32 %v5986_v18, %v2020_v15  ;;  %vm2058_vm12 = vweird.f32 %v5986_v18 }
 0xc08   : > { %vm2059_vm14 = vmor %vm2057_vm13, %vm2058_vm12 }
 0xc09   : > { %v2050_v31 = vsel %vm2049_vm11, %v5984_v29, %v2046_v30  ;;  %v2053_v50 = vmul.f32 %v5986_v18, %v2052_v24 }
 0xc0a   : > { %v2063_v8 = vmul.f32 %v2050_v31, %v7016_v9 }
 0xc0b   : > { %v2054_v39 = vmul.f32 0.5, %v2053_v50 }
 0xc0c   : > { %v2068_v37 = vmul.f32 %v2065_v17, %v2063_v8 }
 0xc0d   : > { %v2055_v21 = vsub.f32 1.5, %v2054_v39 }
 0xc0e   : > { %v7047_v44 = vadd.f32 %v2070_v0, %v2068_v37 }
 0xc0f   : > { %v2056_v45 = vmul.f32 %v5986_v18, %v2055_v21 }
 0xc10   : > { %5510 = vmatmul.msk.f32.gmra.mxu3 %vm547_vm0, %v7047_v44  ;;  %5514 = vmatmul.msk.f32.gmra.mxu0 %vm547_vm0, %v7047_v44 }
 0xc11   : > { %v2060_v3 = vsel %vm2059_vm14, %v5986_v18, %v2056_v45 }
 0xc12   : > { %v2064_v38 = vmul.f32 %v2060_v3, %v7022_v36  ;;  %v2131_v36 = vperm.slane %v5507_v56, 0 }
 0xc13   : > { %v2190_v35 = vpop.f32.mrf.mxu0 }
 0xc14   : > { %v2069_v9 = vmul.f32 %v2065_v17, %v2064_v38  ;;  %v2191_v57 = vadd.f32 %v2190_v35, %v2131_v36 }
 0xc16   : > { %v7058_v51 = vadd.f32 %v2070_v0, %v2069_v9 }
 0xc18   : > { %5511 = vmatmul.msk.f32.gmra.mxu3 %vm547_vm0, %v7058_v51  ;;  %5515 = vmatmul.msk.f32.gmra.mxu0 %vm547_vm0, %v7058_v51 }
 0xc19   : > { %v2161_v41 = vpop.f32.mrf.mxu3 }
 0xc1a   : > { %v7064_v53 = vadd.f32 %v2161_v41, %v2130_v47 }
 0xc1c   : > { %2204 = vrot.lane.b32.xlu2 %v7064_v53, %s6310_s18 }
 0xc22   : > { %v2193_v46 = vpop.f32.mrf.mxu0 }
 0xc23   : > { %v2194_v26 = vadd.f32 %v2193_v46, %v2131_v36 }
 0xc25   : > { %2348 = vmatpush.msra.mxu3 %v2194_v26  ;;  %v7069_v16 = vpack.i.bf16 %v2191_v57, %v2194_v26 }
 0xc27   : > { %2349 = vmatpush.msra.mxu3 %v2191_v57 }
 0xc28   : > { %v2164_v61 = vpop.f32.mrf.mxu3 }
 0xc29   : > { %v7071_v62 = vadd.f32 %v2164_v61, %v2130_v47  ;;  %v7142_v61 = vld [vmem:[%s6581_s10 + $0x1] ss:$0 sm:$0xff] }
 0xc2b   : > { %2392 = vrot.lane.b32.xlu2 %v7071_v62, %s6311_s19  ;;  %2206 = vrot.lane.b32.xlu1 %v7071_v62, %s6310_s18 }
 0xc33   : > { %2388 = vrot.lane.b32.xlu2 %v7071_v62, %s6312_s22  ;;  %2390 = vrot.lane.b32.xlu1 %v7064_v53, %s6311_s19 }
 0xc76   : > { %v2205_v1 = vpop.permute.xlu2 %2204 }
 0xc85   : > { %v2393_v5 = vpop.permute.xlu2 %2392 }
 0xc8d   : > { %v2196_v55 = vpop.f32.mrf.mxu0  ;;  %v2389_v15 = vpop.permute.xlu2 %2388 }
 0xc8e   : > { %v2197_v28 = vadd.f32 %v2196_v55, %v2131_v36 }
 0xc93   : > { %v2167_v63 = vpop.f32.mrf.mxu3 }
 0xc94   : > { %v7089_v42 = vadd.f32 %v2167_v63, %v2130_v47 }
 0xc95   : > { %v2199_v33 = vpop.f32.mrf.mxu0 }
 0xc96   : > { %v2200_v17 = vadd.f32 %v2199_v33, %v2131_v36 }
 0xc98   : > { %v7081_v54 = vpack.i.bf16 %v2197_v28, %v2200_v17 }
 0xc9b   : > { %v2170_v43 = vpop.f32.mrf.mxu3 }
 0xc9c   : > { %v7083_v0 = vadd.f32 %v2170_v43, %v2130_v47 }
 0xc9d   : > { %v2207_v14 = vpop.permute.xlu1 %2206 }
 0xc9e   : > { %5516 = vmatpush.xpose.msk.msra.mxu1 %vm624_vm1, %v2207_v14  ;;  %2243 = vrot.lane.b32.xlu0 %v7083_v0, %s6310_s18 }
 0xca2   : > { %5517 = vmatpush.xpose.msk.msra.mxu1 %vm624_vm1, %v2205_v1 }
 0xca5   : > { %5518 = vmatmul.msk.f32.vlgmr.msra.gmra.mxu1 %vm624_vm1, %v7064_v53  ;;  %v2391_v7 = vpop.permute.xlu1 %2390 }
 0xca6   : > { %2377 = vmatpush.msrb.mxu1 %v2200_v17  ;;  %2241 = vrot.lane.b32.xlu0 %v7089_v42, %s6310_s18 }
 0xca8   : > { %2378 = vmatpush.msrb.mxu1 %v2197_v28 }
 0xcad   : > { %5519 = vmatmul.msk.f32.gmra.mxu1 %vm624_vm1, %v7071_v62 }
 0xcae   : > { %2386 = vrot.lane.b32.xlu0 %v7064_v53, %s6312_s22 }
 0xd10   : > { %v2244_v52 = vpop.permute.xlu0 %2243 }
 0xd11   : > { %5520 = vmatpush.xpose.msk.msra.mxu2 %vm624_vm1, %v2244_v52 }
 0xd18   : > { %v2242_v6 = vpop.permute.xlu0 %2241 }
 0xd19   : > { %5521 = vmatpush.xpose.msk.msra.mxu2 %vm624_vm1, %v2242_v6 }
 0xd1c   : > { %5522 = vmatmul.msk.f32.vlgmr.msra.gmra.mxu2 %vm624_vm1, %v7089_v42 }
 0xd1d   : > { %5528 = vmatpush.xpose.msk.msrb.mxu2 %vm624_vm1, %v2393_v5 }
 0xd20   : > { %v2387_v20 = vpop.permute.xlu0 %2386 }
 0xd21   : > { %5529 = vmatpush.xpose.msk.msrb.mxu2 %vm624_vm1, %v2391_v7 }
 0xd22   : > { %v2233_v2 = vpop.f32.mrf.mxu1 }
 0xd23   : > { %v2276_v27 = vmul.f32 0.25, %v2233_v2 }
 0xd24   : > { %5523 = vmatmul.msk.f32.gmra.mxu2 %vm624_vm1, %v7083_v0 }
 0xd25   : > { %v2280_v40 = vadd.f32 %v7108_v10, %v2276_v27 }
 0xd27   : > { %v2284_v12 = vsel %vm624_vm1, %v2280_v40, -inf }
 0xd28   : > { %2285 = vmax.xlane.f32.xlu1 %v2284_v12 }
 0xd2a   : > { %v2236_v49 = vpop.f32.mrf.mxu1 }
 0xd2b   : > { %v2277_v19 = vmul.f32 0.25, %v2236_v49 }
 0xd2c   : > { %5530 = vmatmul.msk.f32.vlgmr.msrb.gmra.mxu2 %vm624_vm1, %v2387_v20 }
 0xd2d   : > { %v2281_v29 = vadd.f32 %v7108_v10, %v2277_v19 }
 0xd2f   : > { %v2287_v22 = vsel %vm624_vm1, %v2281_v29, -inf }
 0xd30   : > { %2288 = vmax.xlane.f32.xlu0 %v2287_v22 }
 0xd34   : > { %5531 = vmatmul.msk.f32.gmra.mxu2 %vm624_vm1, %v2389_v15 }
 0xd41   : > { %2431 = vrot.lane.b32.xlu1 %v7083_v0, %s6311_s19 }
 0xd9b   : > { %v2286_v23 = vpop.xlane.xlu1 %2285 }
 0xd9c   : > { %v2296_v48 = vsub.f32 %v2280_v40, %v2286_v23 }
 0xd9e   : > { %v2300_v25 = vmul.f32 1.442695, %v2296_v48 }
 0xd9f   : > { %v2270_v18 = vpop.f32.mrf.mxu2 }
 0xda0   : > { %5987 = vpow2.f32 %v2300_v25  ;;  %v2278_v2 = vmul.f32 0.25, %v2270_v18 }
 0xda2   : > { %v2282_v19 = vadd.f32 %v7142_v61, %v2278_v2 }
 0xda3   : > { %v2289_v50 = vpop.xlane.xlu0 %2288 }
 0xda4   : > { %v2297_v8 = vsub.f32 %v2281_v29, %v2289_v50  ;;  %v2290_v22 = vsel %vm624_vm1, %v2282_v19, -inf  ;;  %v5474_v50 = vld [vmem:[%s6656_s11 + $0x40] sm:$0xff] }
 0xda6   : > { %v5988_v30 = vpop.eup %5987  ;;  %v2302_v39 = vmul.f32 1.442695, %v2297_v8 }
 0xda7   : > { %v2308_v24 = vsel %vm624_vm1, %v5988_v30, 0.0  ;;  %v2273_v31 = vpop.f32.mrf.mxu2 }
 0xda8   : > { %2309 = vadd.xlane.f32.xlu0 %v2308_v24  ;;  %5989 = vpow2.f32 %v2302_v39  ;;  %v2279_v57 = vmul.f32 0.25, %v2273_v31  ;;  %v5475_v24 = vld [vmem:[%s6656_s11 + $0x48] sm:$0xff] }
 0xdaa   : > { %v2283_v55 = vadd.f32 %v7142_v61, %v2279_v57 }
 0xdac   : > { %v2293_v33 = vsel %vm624_vm1, %v2283_v55, -inf }
 0xdae   : > { %v5990_v41 = vpop.eup %5989 }
 0xdaf   : > { %v2419_v37 = vpop.f32.mrf.mxu2  ;;  %v2311_v56 = vsel %vm624_vm1, %v5990_v41, 0.0 }
 0xdb0   : > { %v2464_v21 = vmul.f32 0.25, %v2419_v37 }
 0xdb2   : > { %v2468_v3 = vadd.f32 %v7108_v10, %v2464_v21 }
 0xdb3   : > { %v2432_v45 = vpop.permute.xlu1 %2431 }
 0xdb4   : > { %5532 = vmatpush.xpose.msk.msrb.mxu3 %vm624_vm1, %v2432_v45  ;;  %v2472_v38 = vsel %vm624_vm1, %v2468_v3, -inf }
 0xdb5   : > { %2473 = vmax.xlane.f32.xlu2 %v2472_v38 }
 0xdb7   : > { %v2422_v9 = vpop.f32.mrf.mxu2 }
 0xdb8   : > { %v2465_v47 = vmul.f32 0.25, %v2422_v9 }
 0xdba   : > { %v2469_v35 = vadd.f32 %v7108_v10, %v2465_v47 }
 0xdbc   : > { %2429 = vrot.lane.b32.xlu0 %v7089_v42, %s6311_s19  ;;  %v2475_v36 = vsel %vm624_vm1, %v2469_v35, -inf }
 0xdbd   : > { %2312 = vadd.xlane.f32.xlu2 %v2311_v56  ;;  %2476 = vmax.xlane.f32.xlu1 %v2475_v36 }
 0xdd5   : > { %2425 = vrot.lane.b32.xlu2 %v7089_v42, %s6312_s22 }
 0xdd6   : > { %2427 = vrot.lane.b32.xlu1 %v7083_v0, %s6312_s22 }
 0xddd   : > { %5836 = vrot.lane.b32.xlu2 %v7069_v16, %s6312_s22 }
 0xde5   : > { %2678 = vrot.lane.b32.xlu2 %v7071_v62, %s6313_s12 }
 0xded   : > { %2676 = vrot.lane.b32.xlu2 %v7064_v53, %s6313_s12 }
 0xdf5   : > { %2672 = vrot.lane.b32.xlu2 %v7064_v53, %s6314_s26 }
 0xdfd   : > { %2674 = vrot.lane.b32.xlu2 %v7071_v62, %s6314_s26 }
 0xe1b   : > { %v2310_v46 = vpop.xlane.xlu0 %2309 }
 0xe1c   : > { %5991 = vrcp.f32 %v2310_v46 }
 0xe22   : > { %v5992_v26 = vpop.eup %5991 }
 0xe23   : > { %v2324_v63 = vmul.f32 %v5992_v26, %v5988_v30 }
 0xe25   : > { %5524 = vmatmul.msk.f32.vlgmr.msra.gmra.mxu3 %vm624_vm1, %v2324_v63 }
 0xe26   : > { %2294 = vmax.xlane.f32.xlu2 %v2293_v33 }
 0xe28   : > { %v2474_v28 = vpop.xlane.xlu2 %2473 }
 0xe29   : > { %v2484_v17 = vsub.f32 %v2468_v3, %v2474_v28 }
 0xe2b   : > { %v2488_v43 = vmul.f32 1.442695, %v2484_v17 }
 0xe2d   : > { %5993 = vpow2.f32 %v2488_v43 }
 0xe2e   : > { %v2430_v14 = vpop.permute.xlu0 %2429 }
 0xe2f   : > { %5533 = vmatpush.xpose.msk.msrb.mxu3 %vm624_vm1, %v2430_v14 }
 0xe30   : > { %v2477_v1 = vpop.xlane.xlu1 %2476  ;;  %v2313_v52 = vpop.xlane.xlu2 %2312 }
 0xe31   : > { %v2485_v6 = vsub.f32 %v2469_v35, %v2477_v1  ;;  %5995 = vrcp.f32 %v2313_v52 }
 0xe33   : > { %v5994_v5 = vpop.eup %5993  ;;  %v2490_v7 = vmul.f32 1.442695, %v2485_v6  ;;  %2657 = vmatpush.msra.mxu3 %v5475_v24 }
 0xe34   : > { %v2496_v27 = vsel %vm624_vm1, %v5994_v5, 0.0 }
 0xe35   : > { %5997 = vpow2.f32 %v2490_v7  ;;  %2497 = vadd.xlane.f32.xlu0 %v2496_v27  ;;  %2658 = vmatpush.msra.mxu3 %v5474_v50 }
 0xe37   : > { %v5996_v40 = vpop.eup %5995 }
 0xe38   : > { %v2426_v12 = vpop.permute.xlu2 %2425  ;;  %v2325_v49 = vmul.f32 %v5996_v40, %v5990_v41 }
 0xe3a   : > { %5525 = vmatmul.msk.f32.gmra.mxu3 %vm624_vm1, %v2325_v49 }
 0xe3b   : > { %v5998_v20 = vpop.eup %5997 }
 0xe3c   : > { %v2499_v29 = vsel %vm624_vm1, %v5998_v20, 0.0 }
 0xe3d   : > { %2500 = vadd.xlane.f32.xlu1 %v2499_v29  ;;  %2291 = vmax.xlane.f32.xlu0 %v2290_v22  ;;  %v5476_v29 = vld [vmem:[%s6656_s11 + $0x50] sm:$0xff] }
 0xe3e   : > { %2717 = vrot.lane.b32.xlu2 %v7083_v0, %s6313_s12 }
 0xe40   : > { %v5837_v15 = vpop.permute.xlu2 %5836 }
 0xe41   : > { %v5838_v23 = vunpack.i.l.bf16 %v5837_v15  ;;  %v5839_v48 = vunpack.i.h.bf16 %v5837_v15 }
 0xe42   : > { %5534 = vmatmul.msk.f32.vlgmr.msrb.gmra.mxu3 %vm624_vm1, %v2426_v12 }
 0xe43   : > { %2544 = vmatpush.msrb.mxu0 %v5838_v23 }
 0xe45   : > { %2545 = vmatpush.msrb.mxu0 %v5839_v48 }
 0xe46   : > { %5846 = vrot.lane.b32.xlu2 %v7069_v16, %s6314_s26 }
 0xe48   : > { %v2428_v25 = vpop.permute.xlu1 %2427  ;;  %v2679_v18 = vpop.permute.xlu2 %2678 }
 0xe49   : > { %5548 = vmatpush.xpose.msk.msra.mxu0 %vm624_vm1, %v2679_v18 }
 0xe4a   : > { %5535 = vmatmul.msk.f32.gmra.mxu3 %vm624_vm1, %v2428_v25 }
 0xe4e   : > { %2713 = vrot.lane.b32.xlu2 %v7083_v0, %s6314_s26 }
 0xe50   : > { %v2677_v30 = vpop.permute.xlu2 %2676 }
 0xe51   : > { %5549 = vmatpush.xpose.msk.msra.mxu0 %vm624_vm1, %v2677_v30 }
 0xe56   : > { %2917 = vrot.lane.b32.xlu2 %v7064_v53, %s7965_s24 }
 0xe58   : > { %v2673_v31 = vpop.permute.xlu2 %2672 }
 0xe5e   : > { %2919 = vrot.lane.b32.xlu2 %v7071_v62, %s7965_s24 }
 0xe60   : > { %v2675_v8 = vpop.permute.xlu2 %2674 }
 0xe66   : > { %2962 = vrot.lane.b32.xlu2 %v7083_v0, %s7966_s29 }
 0xe6e   : > { %2956 = vrot.lane.b32.xlu2 %v7089_v42, %s7965_s24 }
 0xe76   : > { %2958 = vrot.lane.b32.xlu2 %v7083_v0, %s7965_s24 }
 0xe99   : > { %v2295_v39 = vpop.xlane.xlu2 %2294 }
 0xe9a   : > { %v2299_v37 = vsub.f32 %v2283_v55, %v2295_v39 }
 0xe9c   : > { %v2306_v21 = vmul.f32 1.442695, %v2299_v37 }
 0xe9e   : > { %5999 = vpow2.f32 %v2306_v21 }
 0xea1   : > { %v7175_v45 = vpop.permute.xlu2 %2717 }
 0xea4   : > { %v7177_v3 = vpop.eup %5999 }
 0xea5   : > { %v2317_v38 = vsel %vm624_vm1, %v7177_v3, 0.0 }
 0xea6   : > { %2318 = vadd.xlane.f32.xlu1 %v2317_v38 }
 0xea8   : > { %v2351_v9 = vpop.f32.mrf.mxu3  ;;  %v2498_v0 = vpop.xlane.xlu0 %2497 }
 0xea9   : > { %5544 = vmatmul.msk.f32.vlgmr.msra.gmra.mxu3 %vm624_vm1, %v2351_v9  ;;  %6001 = vrcp.f32 %v2498_v0  ;;  %v5847_v47 = vpop.permute.xlu2 %5846 }
 0xeaa   : > { %v5848_v46 = vunpack.i.l.bf16 %v5847_v47  ;;  %v5849_v55 = vunpack.i.h.bf16 %v5847_v47 }
 0xeaf   : > { %v6002_v41 = vpop.eup %6001 }
 0xeb0   : > { %v2512_v35 = vmul.f32 %v6002_v41, %v5994_v5  ;;  %v2501_v56 = vpop.xlane.xlu1 %2500  ;;  %v2292_v36 = vpop.xlane.xlu0 %2291 }
 0xeb1   : > { %6003 = vrcp.f32 %v2501_v56  ;;  %v2298_v57 = vsub.f32 %v2282_v19, %v2292_v36  ;;  %v7182_v26 = vpop.permute.xlu2 %2713 }
 0xeb2   : > { %5536 = vmatmul.msk.f32.vlgmr.msrb.gmra.mxu0 %vm624_vm1, %v2512_v35 }
 0xeb3   : > { %v2304_v63 = vmul.f32 1.442695, %v2298_v57  ;;  %2828 = vmatpush.msrb.mxu0 %v5848_v46 }
 0xeb5   : > { %6005 = vpow2.f32 %v2304_v63  ;;  %2829 = vmatpush.msrb.mxu0 %v5849_v55 }
 0xeb7   : > { %v6004_v33 = vpop.eup %6003 }
 0xeb8   : > { %v2513_v28 = vmul.f32 %v6004_v33, %v5998_v20  ;;  %v5477_v20 = vld [vmem:[%s6656_s11 + $0x58] sm:$0xff] }
 0xeb9   : > { %v7185_v17 = vpop.permute.xlu2 %2917  ;;  %2616 = vmatpush.msra.mxu2 %v5477_v20 }
 0xeba   : > { %5537 = vmatmul.msk.f32.gmra.mxu0 %vm624_vm1, %v2513_v28 }
 0xebb   : > { %v6006_v43 = vpop.eup %6005  ;;  %2617 = vmatpush.msra.mxu2 %v5476_v29 }
 0xebc   : > { %v2314_v14 = vsel %vm624_vm1, %v6006_v43, 0.0 }
 0xebd   : > { %2315 = vadd.xlane.f32.xlu0 %v2314_v14  ;;  %v2354_v1 = vpop.f32.mrf.mxu3 }
 0xebe   : > { %5545 = vmatmul.msk.f32.gmra.mxu3 %vm624_vm1, %v2354_v1 }
 0xec1   : > { %v7190_v52 = vpop.permute.xlu2 %2919 }
 0xec2   : > { %5550 = vmatmul.msk.f32.vlgmr.msra.gmra.mxu0 %vm624_vm1, %v2673_v31 }
 0xec5   : > { %v2458_v6 = vpop.f32.mrf.mxu3 }
 0xec6   : > { %v2466_v5 = vmul.f32 0.25, %v2458_v6 }
 0xec8   : > { %v2470_v7 = vadd.f32 %v7142_v61, %v2466_v5 }
 0xec9   : > { %v2963_v2 = vpop.permute.xlu2 %2962 }
 0xeca   : > { %5551 = vmatmul.msk.f32.gmra.mxu0 %vm624_vm1, %v2675_v8  ;;  %v2478_v27 = vsel %vm624_vm1, %v2470_v7, -inf }
 0xecb   : > { %5568 = vmatpush.xpose.msk.msra.mxu0 %vm624_vm1, %v2963_v2  ;;  %2479 = vmax.xlane.f32.xlu0 %v2478_v27 }
 0xecd   : > { %v2461_v40 = vpop.f32.mrf.mxu3 }
 0xece   : > { %v2467_v12 = vmul.f32 0.25, %v2461_v40 }
 0xed0   : > { %v2471_v49 = vadd.f32 %v7142_v61, %v2467_v12 }
 0xed2   : > { %v2481_v19 = vsel %vm624_vm1, %v2471_v49, -inf }
 0xed3   : > { %2482 = vmax.xlane.f32.xlu1 %v2481_v19 }
 0xedf   : > { %2715 = vrot.lane.b32.xlu0 %v7089_v42, %s6313_s12 }
 0xeec   : > { %5841 = vrot.lane.b32.xlu1 %v7081_v54, %s6312_s22 }
 0xf19   : > { %v2319_v23 = vpop.xlane.xlu1 %2318 }
 0xf2f   : > { %v2547_v22 = vpop.f32.mrf.mxu0 }
 0xf30   : > { %v2316_v15 = vpop.xlane.xlu0 %2315  ;;  %5540 = vmatmul.msk.f32.vlgmr.msra.gmra.mxu2 %vm624_vm1, %v2547_v22 }
 0xf31   : > { %6007 = vrcp.f32 %v2316_v15 }
 0xf32   : > { %6009 = vrcp.f32 %v2319_v23 }
 0xf37   : > { %v6008_v48 = vpop.eup %6007  ;;  %v2550_v25 = vpop.f32.mrf.mxu0 }
 0xf38   : > { %v2326_v18 = vmul.f32 %v6008_v48, %v6006_v43  ;;  %5541 = vmatmul.msk.f32.gmra.mxu2 %vm624_vm1, %v2550_v25  ;;  %v6010_v30 = vpop.eup %6009 }
 0xf39   : > { %v2327_v8 = vmul.f32 %v6010_v30, %v7177_v3 }
 0xf3a   : > { %5526 = vmatmul.msk.f32.vlgmr.msrb.gmra.mxu1 %vm624_vm1, %v2326_v18 }
 0xf3e   : > { %v2480_v24 = vpop.xlane.xlu0 %2479 }
 0xf3f   : > { %v2486_v31 = vsub.f32 %v2470_v7, %v2480_v24  ;;  %v2705_v50 = vpop.f32.mrf.mxu0  ;;  %v7243_v24 = vpop.f32.mrf.mxu3 }
 0xf40   : > { %v2750_v36 = vmul.f32 0.25, %v2705_v50 }
 0xf41   : > { %v2492_v39 = vmul.f32 1.442695, %v2486_v31 }
 0xf42   : > { %5527 = vmatmul.msk.f32.gmra.mxu1 %vm624_vm1, %v2327_v8  ;;  %v2754_v57 = vadd.f32 %v7108_v10, %v2750_v36 }
 0xf43   : > { %6011 = vpow2.f32 %v2492_v39 }
 0xf44   : > { %v2758_v55 = vsel %vm624_vm1, %v2754_v57, -inf }
 0xf46   : > { %v2483_v37 = vpop.xlane.xlu1 %2482 }
 0xf47   : > { %v2487_v21 = vsub.f32 %v2471_v49, %v2483_v37  ;;  %v2708_v38 = vpop.f32.mrf.mxu0 }
 0xf48   : > { %v2751_v9 = vmul.f32 0.25, %v2708_v38 }
 0xf49   : > { %v6012_v0 = vpop.eup %6011  ;;  %v2494_v47 = vmul.f32 1.442695, %v2487_v21 }
 0xf4a   : > { %v2502_v41 = vsel %vm624_vm1, %v6012_v0, 0.0  ;;  %v2755_v35 = vadd.f32 %v7108_v10, %v2751_v9 }
 0xf4b   : > { %6013 = vpow2.f32 %v2494_v47  ;;  %2503 = vadd.xlane.f32.xlu0 %v2502_v41 }
 0xf4c   : > { %v2761_v56 = vsel %vm624_vm1, %v2755_v35, -inf }
 0xf4d   : > { %2762 = vmax.xlane.f32.xlu1 %v2761_v56 }
 0xf51   : > { %v6014_v3 = vpop.eup %6013  ;;  %v2716_v43 = vpop.permute.xlu0 %2715 }
 0xf52   : > { %v2505_v46 = vsel %vm624_vm1, %v6014_v3, 0.0 }
 0xf53   : > { %2506 = vadd.xlane.f32.xlu0 %v2505_v46 }
 0xf5b   : > { %2759 = vmax.xlane.f32.xlu0 %v2758_v55 }
 0xf5e   : > { %v5842_v63 = vpop.permute.xlu1 %5841 }
 0xf5f   : > { %v5843_v33 = vunpack.i.l.bf16 %v5842_v63  ;;  %v5844_v28 = vunpack.i.h.bf16 %v5842_v63 }
 0xf61   : > { %2581 = vmatpush.msra.mxu1 %v5843_v33 }
 0xf63   : > { %2582 = vmatpush.msra.mxu1 %v5844_v28 }
 0xf65   : > { %5552 = vmatpush.xpose.msk.msrb.mxu1 %vm624_vm1, %v7175_v45 }
 0xf66   : > { %2711 = vrot.lane.b32.xlu1 %v7089_v42, %s6314_s26 }
 0xf69   : > { %5553 = vmatpush.xpose.msk.msrb.mxu1 %vm624_vm1, %v2716_v43 }
 0xf6f   : > { %2923 = vrot.lane.b32.xlu0 %v7071_v62, %s7966_s29 }
 0xf77   : > { %2921 = vrot.lane.b32.xlu0 %v7064_v53, %s7966_s29 }
 0xfb7   : > { %v2380_v14 = vpop.f32.mrf.mxu1 }
 0xfb8   : > { %5546 = vmatmul.msk.f32.gmra.mxu3 %vm624_vm1, %v2380_v14 }
 0xfbe   : > { %v2504_v1 = vpop.xlane.xlu0 %2503 }
 0xfbf   : > { %6015 = vrcp.f32 %v2504_v1  ;;  %v2383_v6 = vpop.f32.mrf.mxu1 }
 0xfc0   : > { %5547 = vmatmul.msk.f32.gmra.mxu3 %vm624_vm1, %v2383_v6  ;;  %v2763_v45 = vpop.xlane.xlu1 %2762  ;;  %v5479_v6 = vld [vmem:[%s6656_s11 + $0x68] sm:$0xff] }
 0xfc1   : > { %v2771_v5 = vsub.f32 %v2755_v35, %v2763_v45  ;;  %2898 = vmatpush.msrb.mxu2 %v5479_v6  ;;  %v5478_v45 = vld [vmem:[%s6656_s11 + $0x60] sm:$0xff] }
 0xfc3   : > { %v2776_v7 = vmul.f32 1.442695, %v2771_v5  ;;  %2899 = vmatpush.msrb.mxu2 %v5478_v45 }
 0xfc5   : > { %v6016_v2 = vpop.eup %6015  ;;  %6017 = vpow2.f32 %v2776_v7 }
 0xfc6   : > { %v2514_v27 = vmul.f32 %v6016_v2, %v6012_v0  ;;  %v2507_v40 = vpop.xlane.xlu0 %2506 }
 0xfc7   : > { %6019 = vrcp.f32 %v2507_v40 }
 0xfc8   : > { %5538 = vmatmul.msk.f32.vlgmr.msra.gmra.mxu1 %vm624_vm1, %v2514_v27 }
 0xfcb   : > { %v6018_v62 = vpop.eup %6017 }
 0xfcc   : > { %v2785_v53 = vsel %vm624_vm1, %v6018_v62, 0.0 }
 0xfcd   : > { %v6020_v12 = vpop.eup %6019  ;;  %2786 = vadd.xlane.f32.xlu0 %v2785_v53 }
 0xfce   : > { %v2760_v49 = vpop.xlane.xlu0 %2759  ;;  %v2515_v19 = vmul.f32 %v6020_v12, %v6014_v3  ;;  %v2957_v3 = vpop.permute.xlu2 %2956 }
 0xfcf   : > { %v2770_v20 = vsub.f32 %v2754_v57, %v2760_v49 }
 0xfd0   : > { %5539 = vmatmul.msk.f32.gmra.mxu1 %vm624_vm1, %v2515_v19 }
 0xfd1   : > { %v2774_v29 = vmul.f32 1.442695, %v2770_v20 }
 0xfd3   : > { %6021 = vpow2.f32 %v2774_v29 }
 0xfd6   : > { %v2959_v57 = vpop.permute.xlu2 %2958 }
 0xfd8   : > { %v2712_v22 = vpop.permute.xlu1 %2711 }
 0xfd9   : > { %v6022_v15 = vpop.eup %6021  ;;  %5554 = vmatmul.msk.f32.vlgmr.msrb.gmra.mxu1 %vm624_vm1, %v2712_v22 }
 0xfda   : > { %v2782_v23 = vsel %vm624_vm1, %v6022_v15, 0.0 }
 0xfdb   : > { %2783 = vadd.xlane.f32.xlu1 %v2782_v23 }
 0xfe1   : > { %v2924_v48 = vpop.permute.xlu0 %2923  ;;  %5555 = vmatmul.msk.f32.gmra.mxu1 %vm624_vm1, %v7182_v26 }
 0xfe2   : > { %5564 = vmatpush.xpose.msk.msrb.mxu3 %vm624_vm1, %v2924_v48 }
 0xfe9   : > { %v2922_v25 = vpop.permute.xlu0 %2921 }
 0xfea   : > { %5565 = vmatpush.xpose.msk.msrb.mxu3 %vm624_vm1, %v2922_v25 }
 0xfed   : > { %5566 = vmatmul.msk.f32.vlgmr.msrb.gmra.mxu3 %vm624_vm1, %v7185_v17  ;;  %v7246_v17 = vpop.f32.mrf.mxu3 }
 0xff4   : > { %2960 = vrot.lane.b32.xlu1 %v7089_v42, %s7966_s29 }
 0xff5   : > { %5567 = vmatmul.msk.f32.gmra.mxu3 %vm624_vm1, %v7190_v52 }
0x103b   : > { %v7251_v38 = vpop.f32.mrf.mxu3 }
0x1040   : > { %v2787_v31 = vpop.xlane.xlu0 %2786 }
0x1043   : > { %v7257_v36 = vpop.f32.mrf.mxu3 }
0x1045   : > { %v2584_v18 = vpop.f32.mrf.mxu1 }
0x1046   : > { %5542 = vmatmul.msk.f32.gmra.mxu2 %vm624_vm1, %v2584_v18 }
0x104d   : > { %v2587_v30 = vpop.f32.mrf.mxu1 }
0x104e   : > { %v2784_v26 = vpop.xlane.xlu1 %2783  ;;  %5543 = vmatmul.msk.f32.gmra.mxu2 %vm624_vm1, %v2587_v30 }
0x104f   : > { %6023 = vrcp.f32 %v2784_v26 }
0x1050   : > { %6025 = vrcp.f32 %v2787_v31 }
0x1055   : > { %v6024_v50 = vpop.eup %6023 }
0x1056   : > { %v2798_v8 = vmul.f32 %v6024_v50, %v6022_v15  ;;  %v2744_v42 = vpop.f32.mrf.mxu1  ;;  %v6026_v37 = vpop.eup %6025 }
0x1057   : > { %v2752_v39 = vmul.f32 0.25, %v2744_v42  ;;  %v2799_v0 = vmul.f32 %v6026_v37, %v6018_v62 }
0x1058   : > { %5556 = vmatmul.msk.f32.vlgmr.msrb.gmra.mxu0 %vm624_vm1, %v2798_v8 }
0x1059   : > { %v2756_v52 = vadd.f32 %v7142_v61, %v2752_v39 }
0x105b   : > { %v2764_v21 = vsel %vm624_vm1, %v2756_v52, -inf }
0x105c   : > { %2765 = vmax.xlane.f32.xlu2 %v2764_v21 }
0x105e   : > { %v2747_v9 = vpop.f32.mrf.mxu1 }
0x105f   : > { %v2753_v47 = vmul.f32 0.25, %v2747_v9 }
0x1060   : > { %5557 = vmatmul.msk.f32.gmra.mxu0 %vm624_vm1, %v2799_v0 }
0x1061   : > { %v2757_v41 = vadd.f32 %v7142_v61, %v2753_v47 }
0x1063   : > { %v2767_v35 = vsel %vm624_vm1, %v2757_v41, -inf }
0x1064   : > { %2768 = vmax.xlane.f32.xlu0 %v2767_v35 }
0x1066   : > { %v2961_v56 = vpop.permute.xlu1 %2960 }
0x1067   : > { %5569 = vmatpush.xpose.msk.msra.mxu0 %vm624_vm1, %v2961_v56 }
0x106a   : > { %5570 = vmatmul.msk.f32.vlgmr.msra.gmra.mxu0 %vm624_vm1, %v2957_v3 }
0x1070   : > { %v2950_v46 = vpop.f32.mrf.mxu3 }
0x1071   : > { %v2995_v55 = vmul.f32 0.25, %v2950_v46 }
0x1072   : > { %5571 = vmatmul.msk.f32.gmra.mxu0 %vm624_vm1, %v2959_v57 }
0x1073   : > { %v2999_v63 = vadd.f32 %v7108_v10, %v2995_v55 }
0x1074   : > { %5851 = vrot.lane.b32.xlu2 %v7081_v54, %s6314_s26 }
0x1075   : > { %v3003_v33 = vsel %vm624_vm1, %v2999_v63, -inf }
0x1076   : > { %3004 = vmax.xlane.f32.xlu1 %v3003_v33 }
0x1078   : > { %v2953_v28 = vpop.f32.mrf.mxu3 }
0x1079   : > { %v2996_v43 = vmul.f32 0.25, %v2953_v28 }
0x107b   : > { %v3000_v14 = vadd.f32 %v7108_v10, %v2996_v43 }
0x107d   : > { %v3006_v1 = vsel %vm624_vm1, %v3000_v14, -inf }
0x107e   : > { %3007 = vmax.xlane.f32.xlu0 %v3006_v1 }
0x108f   : > { %5856 = vrot.lane.b32.xlu1 %v7069_v16, %s7965_s24 }
0x10cf   : > { %v2766_v5 = vpop.xlane.xlu2 %2765 }
0x10d0   : > { %v2772_v7 = vsub.f32 %v2756_v52, %v2766_v5 }
0x10d2   : > { %v2778_v2 = vmul.f32 1.442695, %v2772_v7 }
0x10d4   : > { %6027 = vpow2.f32 %v2778_v2 }
0x10d5   : > { %v2831_v27 = vpop.f32.mrf.mxu0 }
0x10d6   : > { %5560 = vmatmul.msk.f32.vlgmr.msrb.gmra.mxu2 %vm624_vm1, %v2831_v27 }
0x10d7   : > { %v5852_v40 = vpop.permute.xlu2 %5851  ;;  %v2769_v62 = vpop.xlane.xlu0 %2768 }
0x10d8   : > { %v5853_v10 = vunpack.i.l.bf16 %v5852_v40  ;;  %v2773_v53 = vsub.f32 %v2757_v41, %v2769_v62  ;;  %v5854_v49 = vunpack.i.h.bf16 %v5852_v40 }
0x10da   : > { %v6028_v12 = vpop.eup %6027  ;;  %v2780_v19 = vmul.f32 1.442695, %v2773_v53  ;;  %2863 = vmatpush.msra.mxu1 %v5853_v10 }
0x10db   : > { %v2788_v16 = vsel %vm624_vm1, %v6028_v12, 0.0 }
0x10dc   : > { %6029 = vpow2.f32 %v2780_v19  ;;  %2864 = vmatpush.msra.mxu1 %v5854_v49  ;;  %2789 = vadd.xlane.f32.xlu0 %v2788_v16  ;;  %v5481_v16 = vld [vmem:[%s6656_s11 + $0x78] sm:$0xff] }
0x10dd   : > { %v2834_v20 = vpop.f32.mrf.mxu0  ;;  %3143 = vmatpush.msrb.mxu0 %v5481_v16 }
0x10de   : > { %5561 = vmatmul.msk.f32.gmra.mxu2 %vm624_vm1, %v2834_v20 }
0x10e2   : > { %v6030_v29 = vpop.eup %6029 }
0x10e3   : > { %v2791_v22 = vsel %vm624_vm1, %v6030_v29, 0.0 }
0x10e4   : > { %2792 = vadd.xlane.f32.xlu0 %v2791_v22 }
0x10e7   : > { %v2989_v15 = vpop.f32.mrf.mxu0 }
0x10e8   : > { %v2997_v23 = vmul.f32 0.25, %v2989_v15 }
0x10e9   : > { %v3005_v48 = vpop.xlane.xlu1 %3004 }
0x10ea   : > { %v3001_v25 = vadd.f32 %v7142_v61, %v2997_v23  ;;  %v3015_v18 = vsub.f32 %v2999_v63, %v3005_v48 }
0x10ec   : > { %v3009_v30 = vsel %vm624_vm1, %v3001_v25, -inf  ;;  %v3019_v26 = vmul.f32 1.442695, %v3015_v18 }
0x10ed   : > { %3010 = vmax.xlane.f32.xlu0 %v3009_v30 }
0x10ee   : > { %6031 = vpow2.f32 %v3019_v26 }
0x10ef   : > { %v2992_v31 = vpop.f32.mrf.mxu0 }
0x10f0   : > { %v2998_v50 = vmul.f32 0.25, %v2992_v31 }
0x10f1   : > { %v3008_v8 = vpop.xlane.xlu0 %3007 }
0x10f2   : > { %v3002_v42 = vadd.f32 %v7142_v61, %v2998_v50  ;;  %v3016_v39 = vsub.f32 %v3000_v14, %v3008_v8  ;;  %v2619_v50 = vpop.f32.mrf.mxu2 }
0x10f4   : > { %v3012_v52 = vsel %vm624_vm1, %v3002_v42, -inf  ;;  %v3021_v37 = vmul.f32 1.442695, %v3016_v39  ;;  %v6032_v21 = vpop.eup %6031 }
0x10f5   : > { %3013 = vmax.xlane.f32.xlu0 %v3012_v52  ;;  %v3027_v9 = vsel %vm624_vm1, %v6032_v21, 0.0 }
0x10f6   : > { %6033 = vpow2.f32 %v3021_v37 }
0x10fa   : > { %v2622_v8 = vpop.f32.mrf.mxu2 }
0x10fc   : > { %v6034_v0 = vpop.eup %6033 }
0x10fd   : > { %3028 = vadd.xlane.f32.xlu0 %v3027_v9  ;;  %v3030_v56 = vsel %vm624_vm1, %v6034_v0, 0.0 }
0x1101   : > { %v5857_v47 = vpop.permute.xlu1 %5856 }
0x1102   : > { %v5858_v41 = vunpack.i.l.bf16 %v5857_v47  ;;  %v5859_v35 = vunpack.i.h.bf16 %v5857_v47 }
0x1104   : > { %3073 = vmatpush.msrb.mxu1 %v5858_v41 }
0x1105   : > { %3031 = vadd.xlane.f32.xlu0 %v3030_v56 }
0x1106   : > { %3074 = vmatpush.msrb.mxu1 %v5859_v35 }
0x1119   : > { %5861 = vrot.lane.b32.xlu0 %v7081_v54, %s7965_s24 }
0x114f   : > { %v2790_v61 = vpop.xlane.xlu0 %2789 }
0x1150   : > { %6035 = vrcp.f32 %v2790_v61 }
0x1156   : > { %v6036_v3 = vpop.eup %6035 }
0x1157   : > { %v2800_v46 = vmul.f32 %v6036_v3, %v6028_v12  ;;  %v2793_v57 = vpop.xlane.xlu0 %2792  ;;  %v2664_v3 = vadd.f32 %v7246_v17, %v2622_v8  ;;  %v5484_v8 = vld [vmem:[%s6476_s25 + $0x50] sm:$0xff] }
0x1158   : > { %6037 = vrcp.f32 %v2793_v57 }
0x1159   : > { %5558 = vmatmul.msk.f32.vlgmr.msra.gmra.mxu1 %vm624_vm1, %v2800_v46 }
0x115e   : > { %v6038_v55 = vpop.eup %6037 }
0x115f   : > { %v2801_v63 = vmul.f32 %v6038_v55, %v6030_v29  ;;  %v5480_v29 = vld [vmem:[%s6656_s11 + $0x70] sm:$0xff] }
0x1160   : > { %v3011_v33 = vpop.xlane.xlu0 %3010  ;;  %3144 = vmatpush.msrb.mxu0 %v5480_v29 }
0x1161   : > { %v3017_v28 = vsub.f32 %v3001_v25, %v3011_v33  ;;  %5559 = vmatmul.msk.f32.gmra.mxu1 %vm624_vm1, %v2801_v63 }
0x1163   : > { %v3023_v43 = vmul.f32 1.442695, %v3017_v28 }
0x1165   : > { %6039 = vpow2.f32 %v3023_v43 }
0x1168   : > { %v3014_v14 = vpop.xlane.xlu0 %3013 }
0x1169   : > { %v3018_v1 = vsub.f32 %v3002_v42, %v3014_v14  ;;  %v2625_v42 = vpop.f32.mrf.mxu2 }
0x116a   : > { %v2667_v17 = vadd.f32 %v7251_v38, %v2625_v42 }
0x116b   : > { %v6040_v6 = vpop.eup %6039  ;;  %v3025_v54 = vmul.f32 1.442695, %v3018_v1 }
0x116c   : > { %v3033_v45 = vsel %vm624_vm1, %v6040_v6, 0.0 }
0x116d   : > { %6041 = vpow2.f32 %v3025_v54  ;;  %3034 = vadd.xlane.f32.xlu2 %v3033_v45 }
0x1170   : > { %v3029_v5 = vpop.xlane.xlu0 %3028 }
0x1171   : > { %6043 = vrcp.f32 %v3029_v5  ;;  %v2628_v39 = vpop.f32.mrf.mxu2 }
0x1173   : > { %v6042_v7 = vpop.eup %6041 }
0x1174   : > { %v3036_v2 = vsel %vm624_vm1, %v6042_v7, 0.0 }
0x1175   : > { %3037 = vadd.xlane.f32.xlu1 %v3036_v2 }
0x1177   : > { %v6044_v27 = vpop.eup %6043 }
0x1178   : > { %v3043_v40 = vmul.f32 %v6044_v27, %v6032_v21  ;;  %v3032_v62 = vpop.xlane.xlu0 %3031  ;;  %v2661_v21 = vadd.f32 %v7243_v24, %v2619_v50 }
0x1179   : > { %6045 = vrcp.f32 %v3032_v62  ;;  %v2901_v37 = vpop.f32.mrf.mxu2 }
0x117a   : > { %5572 = vmatmul.msk.f32.vlgmr.msrb.gmra.mxu1 %vm624_vm1, %v3043_v40  ;;  %v2913_v9 = vadd.f32 %v2901_v37, %v2661_v21  ;;  %v5482_v37 = vld [vmem:[%s6476_s25 + $0x40] sm:$0xff] }
0x117f   : > { %v6046_v10 = vpop.eup %6045 }
0x1180   : > { %v3044_v53 = vmul.f32 %v6046_v10, %v6034_v0  ;;  %v3162_v0 = vperm.slane %v7055_v13, 1 }
0x1181   : > { %v2904_v61 = vpop.f32.mrf.mxu2 }
0x1182   : > { %5573 = vmatmul.msk.f32.gmra.mxu1 %vm624_vm1, %v3044_v53  ;;  %v2914_v57 = vadd.f32 %v2904_v61, %v2664_v3 }
0x118b   : > { %v5862_v12 = vpop.permute.xlu0 %5861 }
0x118c   : > { %v5863_v49 = vunpack.i.l.bf16 %v5862_v12  ;;  %v5864_v19 = vunpack.i.h.bf16 %v5862_v12 }
0x118e   : > { %3108 = vmatpush.msra.mxu3 %v5863_v49 }
0x1190   : > { %3109 = vmatpush.msra.mxu3 %v5864_v19 }
0x11d6   : > { %v2866_v20 = vpop.f32.mrf.mxu1 }
0x11d7   : > { %5562 = vmatmul.msk.f32.gmra.mxu2 %vm624_vm1, %v2866_v20 }
0x11de   : > { %v2869_v22 = vpop.f32.mrf.mxu1 }
0x11df   : > { %5563 = vmatmul.msk.f32.gmra.mxu2 %vm624_vm1, %v2869_v22 }
0x11e0   : > { %v3035_v15 = vpop.xlane.xlu2 %3034 }
0x11e1   : > { %6047 = vrcp.f32 %v3035_v15 }
0x11e7   : > { %v6048_v23 = vpop.eup %6047 }
0x11e8   : > { %v3045_v48 = vmul.f32 %v6048_v23, %v6040_v6  ;;  %v3038_v25 = vpop.xlane.xlu1 %3037 }
0x11e9   : > { %6049 = vrcp.f32 %v3038_v25  ;;  %v5488_v25 = vld [vmem:[%s6476_s25 + $0x70] sm:$0xff] }
0x11ea   : > { %5574 = vmatmul.msk.f32.vlgmr.msra.gmra.mxu3 %vm624_vm1, %v3045_v48 }
0x11ef   : > { %v6050_v18 = vpop.eup %6049 }
0x11f0   : > { %v3046_v30 = vmul.f32 %v6050_v18, %v6042_v7  ;;  %v2670_v7 = vadd.f32 %v7257_v36, %v2628_v39  ;;  %v5487_v18 = vld [vmem:[%s6476_s25 + $0x68] sm:$0xff] }
0x11f1   : > { %v5483_v39 = vld [vmem:[%s6476_s25 + $0x48] sm:$0xff] }
0x11f2   : > { %5575 = vmatmul.msk.f32.gmra.mxu3 %vm624_vm1, %v3046_v30  ;;  %v5486_v30 = vld [vmem:[%s6476_s25 + $0x60] sm:$0xff] }
0x11f7   : > { %v3076_v26 = vpop.f32.mrf.mxu1 }
0x11f8   : > { %5576 = vmatmul.msk.f32.vlgmr.msrb.gmra.mxu0 %vm624_vm1, %v3076_v26 }
0x11ff   : > { %v3079_v31 = vpop.f32.mrf.mxu1 }
0x1200   : > { %5577 = vmatmul.msk.f32.gmra.mxu0 %vm624_vm1, %v3079_v31  ;;  %v5485_v31 = vld [vmem:[%s6476_s25 + $0x58] sm:$0xff] }
0x125a   : > { %v2907_v1 = vpop.f32.mrf.mxu2 }
0x125b   : > { %v2915_v6 = vadd.f32 %v2907_v1, %v2667_v17  ;;  %v7351_v17 = vld [vmem:[%s6484_s17 + $0x10] sm:$0xff] }
0x1262   : > { %v2910_v5 = vpop.f32.mrf.mxu2 }
0x1263   : > { %v2916_v27 = vadd.f32 %v2910_v5, %v2670_v7 }
0x126d   : > { %v3111_v52 = vpop.f32.mrf.mxu3 }
0x126e   : > { %5578 = vmatmul.msk.f32.gmra.mxu0 %vm624_vm1, %v3111_v52 }
0x1275   : > { %v3114_v47 = vpop.f32.mrf.mxu3  ;;  %v3146_v41 = vpop.f32.mrf.mxu0 }
0x1276   : > { %v3158_v35 = vadd.f32 %v3146_v41, %v2913_v9  ;;  %5579 = vmatmul.msk.f32.gmra.mxu0 %vm624_vm1, %v3114_v47 }
0x1278   : > { %v3163_v56 = vadd.f32 %v3162_v0, %v3158_v35 }
0x127a   : > { %v3167_v46 = vmul.f32 %v3163_v56, %v6824_v32 }
0x127c   : > { %v3171_v55 = vadd.f32 %v3167_v46, %v7031_v4 }
0x127d   : > { %v3149_v63 = vpop.f32.mrf.mxu0 }
0x127e   : > { %v3159_v33 = vadd.f32 %v3149_v63, %v2914_v57  ;;  %v3175_v24 = vsel %vm547_vm0, %v3171_v55, 0.0 }
0x127f   : > { %3176 = vadd.xlane.f32.xlu0 %v3175_v24 }
0x1280   : > { %v3164_v13 = vadd.f32 %v3162_v0, %v3159_v33 }
0x1282   : > { %v3168_v28 = vmul.f32 %v3164_v13, %v6831_v34 }
0x1284   : > { %v3172_v43 = vadd.f32 %v3168_v28, %v7038_v11 }
0x1286   : > { %v3178_v14 = vsel %vm547_vm0, %v3172_v43, 0.0 }
0x1287   : > { %3179 = vadd.xlane.f32.xlu2 %v3178_v14 }
0x12eb   : > { %v3152_v54 = vpop.f32.mrf.mxu0 }
0x12ec   : > { %v3160_v45 = vadd.f32 %v3152_v54, %v2915_v6  ;;  %v3263_v6 = vperm.slane %v7351_v17, 2 }
0x12ee   : > { %v3165_v4 = vadd.f32 %v3162_v0, %v3160_v45 }
0x12f0   : > { %v3169_v2 = vmul.f32 %v3165_v4, %v6839_v59  ;;  %v3268_v4 = vperm.slane %v7351_v17, 3 }
0x12f2   : > { %v3177_v40 = vpop.xlane.xlu0 %3176  ;;  %v3173_v62 = vadd.f32 %v3169_v2, %v7047_v44 }
0x12f3   : > { %v3187_v11 = vmul.f32 %v3177_v40, %v6837_v58  ;;  %v3155_v10 = vpop.f32.mrf.mxu0 }
0x12f4   : > { %v3161_v53 = vadd.f32 %v3155_v10, %v2916_v27  ;;  %v3181_v12 = vsel %vm547_vm0, %v3173_v62, 0.0 }
0x12f5   : > { %v7314_v38 = vsub.f32 %v3171_v55, %v3187_v11  ;;  %3182 = vadd.xlane.f32.xlu2 %v3181_v12 }
0x12f6   : > { %v3166_v49 = vadd.f32 %v3162_v0, %v3161_v53 }
0x12f7   : > { %v3195_v36 = vmul.f32 %v7314_v38, %v7314_v38 }
0x12f8   : > { %v3170_v19 = vmul.f32 %v3166_v49, %v6841_v60 }
0x12f9   : > { %v3199_v29 = vsel %vm547_vm0, %v3195_v36, 0.0 }
0x12fa   : > { %v3180_v16 = vpop.xlane.xlu2 %3179  ;;  %v3174_v44 = vadd.f32 %v3170_v19, %v7058_v51  ;;  %v5489_v51 = vld [vmem:[%s6476_s25 + $0x78] sm:$0xff] }
0x12fb   : > { %v3188_v20 = vmul.f32 %v3180_v16, %v6837_v58  ;;  %3297 = vmatpush.msra.mxu1 %v5489_v51 }
0x12fc   : > { %v3184_v22 = vsel %vm547_vm0, %v3174_v44, 0.0 }
0x12fd   : > { %v7323_v15 = vsub.f32 %v3172_v43, %v3188_v20  ;;  %3200 = vadd.xlane.f32.xlu2 %v3199_v29  ;;  %3185 = vadd.xlane.f32.xlu1 %v3184_v22 }
0x12fe   : > { %3298 = vmatpush.msra.mxu1 %v5488_v25 }
0x12ff   : > { %v3196_v23 = vmul.f32 %v7323_v15, %v7323_v15 }
0x1300   : > { %3299 = vmatpush.msra.mxu1 %v5487_v18 }
0x1301   : > { %v3202_v48 = vsel %vm547_vm0, %v3196_v23, 0.0 }
0x1302   : > { %3300 = vmatpush.msra.mxu1 %v5486_v30 }
0x1304   : > { %3301 = vmatpush.msra.mxu1 %v5485_v31 }
0x1305   : > { %3203 = vadd.xlane.f32.xlu1 %v3202_v48 }
0x1306   : > { %3302 = vmatpush.msra.mxu1 %v5484_v8 }
0x1308   : > { %3303 = vmatpush.msra.mxu1 %v5483_v39 }
0x130a   : > { %3304 = vmatpush.msra.mxu1 %v5482_v37 }
0x1368   : > { %v3183_v26 = vpop.xlane.xlu2 %3182 }
0x1369   : > { %v3189_v50 = vmul.f32 %v3183_v26, %v6837_v58 }
0x136b   : > { %v7335_v42 = vsub.f32 %v3173_v62, %v3189_v50 }
0x136d   : > { %v3197_v52 = vmul.f32 %v7335_v42, %v7335_v42 }
0x136f   : > { %v3205_v21 = vsel %vm547_vm0, %v3197_v52, 0.0 }
0x1370   : > { %3206 = vadd.xlane.f32.xlu0 %v3205_v21  ;;  %v3201_v9 = vpop.xlane.xlu2 %3200  ;;  %v3186_v0 = vpop.xlane.xlu1 %3185 }
0x1371   : > { %v3211_v47 = vmul.f32 %v3201_v9, %v6837_v58  ;;  %v3190_v41 = vmul.f32 %v3186_v0, %v6837_v58 }
0x1373   : > { %v3215_v35 = vadd.f32 1e-05, %v3211_v47  ;;  %v7344_v56 = vsub.f32 %v3174_v44, %v3190_v41 }
0x1375   : > { %6051 = vrsqrt.f32 %v3215_v35  ;;  %v3198_v61 = vmul.f32 %v7344_v56, %v7344_v56  ;;  %vm3225_vm2 = vweird.f32 %v3215_v35 }
0x1377   : > { %v3208_v3 = vsel %vm547_vm0, %v3198_v61, 0.0 }
0x1378   : > { %3209 = vadd.xlane.f32.xlu2 %v3208_v3  ;;  %v3204_v46 = vpop.xlane.xlu1 %3203  ;;  %v5503_v3 = vld [vmem:[%s6913_s13 + $0xe8] sm:$0xff] }
0x1379   : > { %v3212_v57 = vmul.f32 %v3204_v46, %v6837_v58 }
0x137b   : > { %v6052_v55 = vpop.eup %6051  ;;  %v3216_v63 = vadd.f32 1e-05, %v3212_v57  ;;  %v5502_v57 = vld [vmem:[%s6913_s13 + $0xe0] sm:$0xff] }
0x137c   : > { %v3220_v33 = vmul.f32 %v6052_v55, %v3215_v35  ;;  %vm3226_vm15 = vweird.f32 %v6052_v55  ;;  %v5504_v35 = vld [vmem:[%s6913_s13 + $0xf0] sm:$0xff] }
0x137d   : > { %6053 = vrsqrt.f32 %v3216_v63  ;;  %vm3227_vm3 = vmor %vm3225_vm2, %vm3226_vm15  ;;  %vm3235_vm5 = vweird.f32 %v3216_v63 }
0x137e   : > { %v3221_v24 = vmul.f32 %v6052_v55, %v3220_v33 }
0x1380   : > { %v3222_v13 = vmul.f32 0.5, %v3221_v24  ;;  %v5499_v24 = vld [vmem:[%s6913_s13 + $0xc8] sm:$0xff] }
0x1382   : > { %v3223_v28 = vsub.f32 1.5, %v3222_v13 }
0x1383   : > { %v6054_v43 = vpop.eup %6053 }
0x1384   : > { %v3224_v14 = vmul.f32 %v6052_v55, %v3223_v28  ;;  %v3230_v1 = vmul.f32 %v6054_v43, %v3216_v63  ;;  %vm3236_vm4 = vweird.f32 %v6054_v43  ;;  %v5500_v63 = vld [vmem:[%s6913_s13 + $0xd0] sm:$0xff]  ;;  %v5498_v28 = vld [vmem:[%s6913_s13 + $0xc0] sm:$0xff] }
0x1385   : > { %vm3237_vm6 = vmor %vm3235_vm5, %vm3236_vm4 }
0x1386   : > { %v3228_v54 = vsel %vm3227_vm3, %v6052_v55, %v3224_v14  ;;  %v3231_v45 = vmul.f32 %v6054_v43, %v3230_v1  ;;  %v5497_v14 = vld [vmem:[%s6913_s13 + $0xb8] sm:$0xff] }
0x1387   : > { %v3259_v5 = vmul.f32 %v3228_v54, %v7314_v38 }
0x1388   : > { %v3232_v7 = vmul.f32 0.5, %v3231_v45  ;;  %v5496_v45 = vld [vmem:[%s6913_s13 + $0xb0] sm:$0xff] }
0x1389   : > { %v3264_v2 = vmul.f32 %v3263_v6, %v3259_v5 }
0x138a   : > { %v3233_v27 = vsub.f32 1.5, %v3232_v7 }
0x138b   : > { %v3269_v40 = vadd.f32 %v3268_v4, %v3264_v2  ;;  %v5495_v2 = vld [vmem:[%s6913_s13 + $0xa8] sm:$0xff] }
0x138c   : > { %v3234_v62 = vmul.f32 %v6054_v43, %v3233_v27 }
0x138d   : > { %v7357_v11 = vmul.f32 %v3269_v40, %v6824_v32 }
0x138e   : > { %v3238_v10 = vsel %vm3237_vm6, %v6054_v43, %v3234_v62 }
0x138f   : > { %v3260_v53 = vmul.f32 %v3238_v10, %v7323_v15  ;;  %5580 = vmatmul.msk.f32.vlgmr.msra.gmra.mxu1 %vm547_vm0, %v7357_v11  ;;  %v5494_v10 = vld [vmem:[%s6913_s13 + $0xa0] sm:$0xff] }
0x1391   : > { %v3265_v12 = vmul.f32 %v3263_v6, %v3260_v53 }
0x1393   : > { %v3270_v49 = vadd.f32 %v3268_v4, %v3265_v12 }
0x1395   : > { %v7363_v38 = vmul.f32 %v3270_v49, %v6831_v34 }
0x1397   : > { %5581 = vmatmul.msk.f32.gmra.mxu1 %vm547_vm0, %v7363_v38 }
0x13e3   : > { %v3207_v36 = vpop.xlane.xlu0 %3206 }
0x13e4   : > { %v3213_v19 = vmul.f32 %v3207_v36, %v6837_v58  ;;  %v5493_v36 = vld [vmem:[%s6913_s13 + $0x98] sm:$0xff] }
0x13e6   : > { %v3217_v16 = vadd.f32 1e-05, %v3213_v19 }
0x13e8   : > { %6055 = vrsqrt.f32 %v3217_v16  ;;  %vm3245_vm8 = vweird.f32 %v3217_v16 }
0x13eb   : > { %v3210_v44 = vpop.xlane.xlu2 %3209 }
0x13ec   : > { %v3214_v20 = vmul.f32 %v3210_v44, %v6837_v58 }
0x13ee   : > { %v6056_v29 = vpop.eup %6055  ;;  %v3218_v22 = vadd.f32 1e-05, %v3214_v20  ;;  %v5492_v20 = vld [vmem:[%s6913_s13 + $0x90] sm:$0xff] }
0x13ef   : > { %v3240_v15 = vmul.f32 %v6056_v29, %v3217_v16  ;;  %vm3246_vm7 = vweird.f32 %v6056_v29 }
0x13f0   : > { %6057 = vrsqrt.f32 %v3218_v22  ;;  %vm3247_vm9 = vmor %vm3245_vm8, %vm3246_vm7  ;;  %vm3255_vm11 = vweird.f32 %v3218_v22 }
0x13f1   : > { %v3241_v23 = vmul.f32 %v6056_v29, %v3240_v15 }
0x13f3   : > { %v3242_v48 = vmul.f32 0.5, %v3241_v23 }
0x13f5   : > { %v3243_v51 = vsub.f32 1.5, %v3242_v48  ;;  %v5491_v48 = vld [vmem:[%s6913_s13 + $0x88] sm:$0xff] }
0x13f6   : > { %v6058_v25 = vpop.eup %6057 }
0x13f7   : > { %v3244_v18 = vmul.f32 %v6056_v29, %v3243_v51  ;;  %v3250_v30 = vmul.f32 %v6058_v25, %v3218_v22  ;;  %vm3256_vm10 = vweird.f32 %v6058_v25 }
0x13f8   : > { %vm3257_vm12 = vmor %vm3255_vm11, %vm3256_vm10 }
0x13f9   : > { %v3248_v26 = vsel %vm3247_vm9, %v6056_v29, %v3244_v18  ;;  %v3251_v31 = vmul.f32 %v6058_v25, %v3250_v30  ;;  %v5490_v30 = vld [vmem:[%s6913_s13 + $0x80] sm:$0xff] }
0x13fa   : > { %v3261_v50 = vmul.f32 %v3248_v26, %v7335_v42  ;;  %v5505_v42 = vld [vmem:[%s6913_s13 + $0xf8] sm:$0xff] }
0x13fb   : > { %v3252_v8 = vmul.f32 0.5, %v3251_v31  ;;  %3494 = vmatpush.msra.mxu2 %v5505_v42 }
0x13fc   : > { %v3266_v39 = vmul.f32 %v3263_v6, %v3261_v50 }
0x13fd   : > { %v3253_v52 = vsub.f32 1.5, %v3252_v8  ;;  %3495 = vmatpush.msra.mxu2 %v5504_v35 }
0x13fe   : > { %v3271_v37 = vadd.f32 %v3268_v4, %v3266_v39 }
0x13ff   : > { %v3254_v21 = vmul.f32 %v6058_v25, %v3253_v52  ;;  %3496 = vmatpush.msra.mxu2 %v5503_v3 }
0x1400   : > { %v7371_v9 = vmul.f32 %v3271_v37, %v6839_v59 }
0x1401   : > { %v3258_v0 = vsel %vm3257_vm12, %v6058_v25, %v3254_v21  ;;  %3497 = vmatpush.msra.mxu2 %v5502_v57 }
0x1402   : > { %v3262_v47 = vmul.f32 %v3258_v0, %v7344_v56  ;;  %5582 = vmatmul.msk.f32.gmra.mxu1 %vm547_vm0, %v7371_v9  ;;  %v5501_v56 = vld [vmem:[%s6913_s13 + $0xd8] sm:$0xff] }
0x1403   : > { %3498 = vmatpush.msra.mxu2 %v5501_v56 }
0x1404   : > { %v3267_v41 = vmul.f32 %v3263_v6, %v3262_v47 }
0x1405   : > { %3499 = vmatpush.msra.mxu2 %v5500_v63 }
0x1406   : > { %v3272_v61 = vadd.f32 %v3268_v4, %v3267_v41 }
0x1407   : > { %3500 = vmatpush.msra.mxu2 %v5499_v24 }
0x1408   : > { %v7380_v46 = vmul.f32 %v3272_v61, %v6841_v60 }
0x1409   : > { %3501 = vmatpush.msra.mxu2 %v5498_v28 }
0x140a   : > { %5583 = vmatmul.msk.f32.gmra.mxu1 %vm547_vm0, %v7380_v46 }
0x140b   : > { %3502 = vmatpush.msra.mxu2 %v5497_v14 }
0x140c   : > { %v7386_v55 = vpop.f32.mrf.mxu1 }
0x140d   : > { %v7390_v33 = vmul.f32 0.70710677, %v7386_v55  ;;  %3503 = vmatpush.msra.mxu2 %v5496_v45 }
0x140f   : > { %v3326_v13 = vmul.f32 %v7390_v33, %v7390_v33  ;;  %3504 = vmatpush.msra.mxu2 %v5495_v2 }
0x1411   : > { %v3327_v43 = vmin.f32 %v3326_v13, 16.0  ;;  %3505 = vmatpush.msra.mxu2 %v5494_v10 }
0x1413   : > { %v3328_v1 = vmul.f32 2.1237322e-06, %v3327_v43  ;;  %v3339_v6 = vmul.f32 3.8918573e-05, %v3327_v43  ;;  %3506 = vmatpush.msra.mxu2 %v5493_v36 }
0x1414   : > { %v7397_v54 = vpop.f32.mrf.mxu1 }
0x1415   : > { %v3329_v4 = vadd.f32 0.00028619796, %v3328_v1  ;;  %v3340_v5 = vadd.f32 0.001143296, %v3339_v6  ;;  %v7401_v7 = vmul.f32 0.70710677, %v7397_v54  ;;  %3507 = vmatpush.msra.mxu2 %v5492_v20 }
0x1417   : > { %v3330_v27 = vmul.f32 %v3329_v4, %v3327_v43  ;;  %v3341_v40 = vmul.f32 %v3340_v5, %v3327_v43  ;;  %v3366_v62 = vmul.f32 %v7401_v7, %v7401_v7  ;;  %3508 = vmatpush.msra.mxu2 %v5491_v48 }
0x1419   : > { %v3342_v53 = vadd.f32 0.014752088, %v3341_v40  ;;  %v3331_v12 = vadd.f32 0.0036580483, %v3330_v27  ;;  %v3367_v49 = vmin.f32 %v3366_v62, 16.0  ;;  %3509 = vmatpush.msra.mxu2 %v5490_v30 }
0x141b   : > { %v3343_v19 = vmul.f32 %v3342_v53, %v3327_v43  ;;  %v3368_v16 = vmul.f32 2.1237322e-06, %v3367_v49  ;;  %v3379_v44 = vmul.f32 3.8918573e-05, %v3367_v49  ;;  %v3332_v22 = vmul.f32 %v3331_v12, %v3327_v43 }
0x141d   : > { %v3344_v29 = vadd.f32 0.112945676, %v3343_v19  ;;  %v3369_v15 = vadd.f32 0.00028619796, %v3368_v16  ;;  %v3380_v23 = vadd.f32 0.001143296, %v3379_v44 }
0x141e   : > { %v3333_v31 = vadd.f32 0.05243302, %v3332_v22  ;;  %v3318_v22 = vmul.f32 0.5, %v7386_v55 }
0x141f   : > { %v3345_v51 = vmul.f32 %v3344_v29, %v3327_v43  ;;  %v3370_v25 = vmul.f32 %v3369_v15, %v3367_v49  ;;  %v3381_v18 = vmul.f32 %v3380_v23, %v3367_v49 }
0x1420   : > { %v3334_v21 = vmul.f32 %v3333_v31, %v3327_v43 }
0x1421   : > { %v3346_v26 = vadd.f32 0.4994258, %v3345_v51  ;;  %v3382_v50 = vadd.f32 0.014752088, %v3381_v18  ;;  %v3371_v39 = vadd.f32 0.0036580483, %v3370_v25 }
0x1422   : > { %v3335_v41 = vadd.f32 0.18741608, %v3334_v21 }
0x1423   : > { %v3347_v8 = vmul.f32 %v3346_v26, %v3327_v43  ;;  %v3383_v52 = vmul.f32 %v3382_v50, %v3367_v49  ;;  %v3372_v47 = vmul.f32 %v3371_v39, %v3367_v49  ;;  %v3319_v26 = vmul.f32 0.5, %v7397_v54 }
0x1424   : > { %v3336_v56 = vmul.f32 %v3335_v41, %v3327_v43 }
0x1425   : > { %v3348_v37 = vadd.f32 1.0, %v3347_v8  ;;  %v3384_v0 = vadd.f32 0.112945676, %v3383_v52  ;;  %v3373_v61 = vadd.f32 0.05243302, %v3372_v47 }
0x1426   : > { %v3337_v1 = vadd.f32 1.1283791, %v3336_v56 }
0x1427   : > { %6059 = vrcp.f32 %v3348_v37  ;;  %v3385_v42 = vmul.f32 %v3384_v0, %v3367_v49  ;;  %v3374_v13 = vmul.f32 %v3373_v61, %v3367_v49  ;;  %v3360_v14 = vand.u32 2147483648, %v3348_v37 }
0x1428   : > { %v3358_v45 = vand.u32 2147483647, %v3348_v37  ;;  %vm3354_vm14 = vweird.f32 %v3348_v37  ;;  %v3338_v40 = vmul.f32 %v3337_v1, %v7390_v33 }
0x1429   : > { %v3386_v35 = vadd.f32 0.4994258, %v3385_v42  ;;  %v3375_v4 = vadd.f32 0.18741608, %v3374_v13  ;;  %v3361_v2 = vor.u32 1.1754944e-38, %v3360_v14 }
0x142a   : > { %vm3359_vm2 = vcmp.eq.f32.partialorder %v3358_v45, 8.507059e+37 }
0x142b   : > { %v3387_v3 = vmul.f32 %v3386_v35, %v3367_v49  ;;  %v3376_v10 = vmul.f32 %v3375_v4, %v3367_v49 }
0x142d   : > { %v6060_v57 = vpop.eup %6059  ;;  %v3388_v24 = vadd.f32 1.0, %v3387_v3  ;;  %v3377_v44 = vadd.f32 1.1283791, %v3376_v10 }
0x142e   : > { %v3350_v63 = vmul.f32 %v6060_v57, %v3348_v37  ;;  %vm3355_vm13 = vweird.f32 %v6060_v57 }
0x142f   : > { %6061 = vrcp.f32 %v3388_v24  ;;  %vm3356_vm15 = vmor %vm3354_vm14, %vm3355_vm13  ;;  %v3400_v16 = vand.u32 2147483648, %v3388_v24  ;;  %v3398_v29 = vand.u32 2147483647, %v3388_v24  ;;  %vm3394_vm4 = vweird.f32 %v3388_v24 }
0x1430   : > { %v3351_v28 = vsub.f32 1.0, %v3350_v63  ;;  %v3378_v51 = vmul.f32 %v3377_v44, %v7401_v7 }
0x1431   : > { %v3401_v33 = vor.u32 1.1754944e-38, %v3400_v16  ;;  %vm3399_vm6 = vcmp.eq.f32.partialorder %v3398_v29, 8.507059e+37 }
0x1432   : > { %v3352_v6 = vmul.f32 %v6060_v57, %v3351_v28 }
0x1434   : > { %v3353_v5 = vadd.f32 %v6060_v57, %v3352_v6 }
0x1435   : > { %v6062_v27 = vpop.eup %6061 }
0x1436   : > { %v3357_v62 = vsel %vm3356_vm15, %v6060_v57, %v3353_v5  ;;  %v3390_v53 = vmul.f32 %v6062_v27, %v3388_v24  ;;  %vm3395_vm3 = vweird.f32 %v6062_v27 }
0x1437   : > { %v3362_v43 = vsel %vm3359_vm2, %v3361_v2, %v3357_v62  ;;  %vm3396_vm5 = vmor %vm3394_vm4, %vm3395_vm3 }
0x1438   : > { %v3363_v12 = vmul.f32 %v3362_v43, %v3338_v40  ;;  %v3391_v36 = vsub.f32 1.0, %v3390_v53 }
0x143a   : > { %v5584_v19 = vclamps-f32 %v3363_v12, 1.0  ;;  %v3392_v20 = vmul.f32 %v6062_v27, %v3391_v36 }
0x143c   : > { %v3486_v15 = vadd.f32 1.0, %v5584_v19  ;;  %v3393_v23 = vadd.f32 %v6062_v27, %v3392_v20 }
0x143e   : > { %v3490_v48 = vmul.f32 %v3486_v15, %v3318_v22  ;;  %v3397_v49 = vsel %vm3396_vm5, %v6062_v27, %v3393_v23 }
0x143f   : > { %v3402_v25 = vsel %vm3399_vm6, %v3401_v33, %v3397_v49 }
0x1440   : > { %3510 = vmatmul.f32.vlgmr.msra.gmra.mxu2 %v3490_v48  ;;  %v3403_v18 = vmul.f32 %v3402_v25, %v3378_v51 }
0x1442   : > { %v5585_v30 = vclamps-f32 %v3403_v18, 1.0 }
0x1444   : > { %v3487_v31 = vadd.f32 1.0, %v5585_v30 }
0x1446   : > { %v3491_v50 = vmul.f32 %v3487_v31, %v3319_v26 }
0x1448   : > { %3513 = vmatmul.f32.gmra.mxu2 %v3491_v50 }
0x147f   : > { %v7415_v55 = vpop.f32.mrf.mxu1 }
0x1480   : > { %v3324_v8 = vmul.f32 0.70710677, %v7415_v55 }
0x1482   : > { %v3406_v39 = vmul.f32 %v3324_v8, %v3324_v8 }
0x1484   : > { %v3407_v52 = vmin.f32 %v3406_v39, 16.0 }
0x1486   : > { %v3408_v37 = vmul.f32 2.1237322e-06, %v3407_v52  ;;  %v3419_v21 = vmul.f32 3.8918573e-05, %v3407_v52 }
0x1487   : > { %v7418_v7 = vpop.f32.mrf.mxu1 }
0x1488   : > { %v3409_v0 = vadd.f32 0.00028619796, %v3408_v37  ;;  %v3420_v47 = vadd.f32 0.001143296, %v3419_v21  ;;  %v7421_v42 = vmul.f32 0.70710677, %v7418_v7 }
0x148a   : > { %v3410_v41 = vmul.f32 %v3409_v0, %v3407_v52  ;;  %v3421_v54 = vmul.f32 %v3420_v47, %v3407_v52  ;;  %v3446_v35 = vmul.f32 %v7421_v42, %v7421_v42 }
0x148c   : > { %v3422_v61 = vadd.f32 0.014752088, %v3421_v54  ;;  %v3411_v3 = vadd.f32 0.0036580483, %v3410_v41  ;;  %v3447_v57 = vmin.f32 %v3446_v35, 16.0 }
0x148e   : > { %v3423_v56 = vmul.f32 %v3422_v61, %v3407_v52  ;;  %v3448_v63 = vmul.f32 2.1237322e-06, %v3447_v57  ;;  %v3459_v24 = vmul.f32 3.8918573e-05, %v3447_v57  ;;  %v3412_v28 = vmul.f32 %v3411_v3, %v3407_v52 }
0x1490   : > { %v3424_v13 = vadd.f32 0.112945676, %v3423_v56  ;;  %v3449_v14 = vadd.f32 0.00028619796, %v3448_v63  ;;  %v3460_v1 = vadd.f32 0.001143296, %v3459_v24 }
0x1491   : > { %v3413_v2 = vadd.f32 0.05243302, %v3412_v28  ;;  %v3320_v24 = vmul.f32 0.5, %v7415_v55 }
0x1492   : > { %v3425_v6 = vmul.f32 %v3424_v13, %v3407_v52  ;;  %v3450_v45 = vmul.f32 %v3449_v14, %v3447_v57  ;;  %v3461_v4 = vmul.f32 %v3460_v1, %v3447_v57 }
0x1493   : > { %v3414_v53 = vmul.f32 %v3413_v2, %v3407_v52 }
0x1494   : > { %v3426_v5 = vadd.f32 0.4994258, %v3425_v6  ;;  %v3462_v27 = vadd.f32 0.014752088, %v3461_v4  ;;  %v3451_v62 = vadd.f32 0.0036580483, %v3450_v45 }
0x1495   : > { %v3415_v16 = vadd.f32 0.18741608, %v3414_v53 }
0x1496   : > { %v3427_v40 = vmul.f32 %v3426_v5, %v3407_v52  ;;  %v3463_v43 = vmul.f32 %v3462_v27, %v3447_v57  ;;  %v3452_v36 = vmul.f32 %v3451_v62, %v3447_v57  ;;  %v3321_v5 = vmul.f32 0.5, %v7418_v7 }
0x1497   : > { %v3416_v15 = vmul.f32 %v3415_v16, %v3407_v52 }
0x1498   : > { %v3428_v10 = vadd.f32 1.0, %v3427_v40  ;;  %v3464_v12 = vadd.f32 0.112945676, %v3463_v43  ;;  %v3453_v20 = vadd.f32 0.05243302, %v3452_v36 }
0x1499   : > { %v3417_v25 = vadd.f32 1.1283791, %v3416_v15 }
0x149a   : > { %6063 = vrcp.f32 %v3428_v10  ;;  %v3465_v19 = vmul.f32 %v3464_v12, %v3447_v57  ;;  %v3454_v33 = vmul.f32 %v3453_v20, %v3447_v57  ;;  %v3440_v49 = vand.u32 2147483648, %v3428_v10 }
0x149b   : > { %v3438_v30 = vand.u32 2147483647, %v3428_v10  ;;  %vm3434_vm8 = vweird.f32 %v3428_v10  ;;  %v3418_v37 = vmul.f32 %v3417_v25, %v3324_v8  ;;  %v5598_v25 = vld [vmem:[%s6500_s20 + $0x150] sm:$0xff] }
0x149c   : > { %v3466_v44 = vadd.f32 0.4994258, %v3465_v19  ;;  %v3455_v26 = vadd.f32 0.18741608, %v3454_v33  ;;  %v3441_v50 = vor.u32 1.1754944e-38, %v3440_v49  ;;  %v5603_v33 = vld [vmem:[%s6500_s20 + $0x178] sm:$0xff] }
0x149d   : > { %vm3439_vm10 = vcmp.eq.f32.partialorder %v3438_v30, 8.507059e+37  ;;  %3731 = vmatpush.msra.mxu0 %v5603_v33  ;;  %v5601_v49 = vld [vmem:[%s6500_s20 + $0x168] sm:$0xff]  ;;  %v5596_v30 = vld [vmem:[%s6500_s20 + $0x140] sm:$0xff] }
0x149e   : > { %v3467_v29 = vmul.f32 %v3466_v44, %v3447_v57  ;;  %v3456_v0 = vmul.f32 %v3455_v26, %v3447_v57  ;;  %v5597_v26 = vld [vmem:[%s6500_s20 + $0x148] sm:$0xff] }
0x149f   : > { %3732 = vmatpush.msra.mxu0 %v5601_v49 }
0x14a0   : > { %v6064_v22 = vpop.eup %6063  ;;  %v3468_v48 = vadd.f32 1.0, %v3467_v29  ;;  %v3457_v3 = vadd.f32 1.1283791, %v3456_v0 }
0x14a1   : > { %v3430_v23 = vmul.f32 %v6064_v22, %v3428_v10  ;;  %vm3435_vm7 = vweird.f32 %v6064_v22 }
0x14a2   : > { %6065 = vrcp.f32 %v3468_v48  ;;  %vm3436_vm9 = vmor %vm3434_vm8, %vm3435_vm7  ;;  %v3480_v61 = vand.u32 2147483648, %v3468_v48  ;;  %v3478_v63 = vand.u32 2147483647, %v3468_v48  ;;  %vm3474_vm12 = vweird.f32 %v3468_v48 }
0x14a3   : > { %v3431_v51 = vsub.f32 1.0, %v3430_v23  ;;  %v3458_v1 = vmul.f32 %v3457_v3, %v7421_v42 }
0x14a4   : > { %v3481_v8 = vor.u32 1.1754944e-38, %v3480_v61  ;;  %vm3479_vm14 = vcmp.eq.f32.partialorder %v3478_v63, 8.507059e+37  ;;  %v5589_v61 = vld [vmem:[%s6500_s20 + $0x108] sm:$0xff] }
0x14a5   : > { %v3432_v18 = vmul.f32 %v6064_v22, %v3431_v51  ;;  %v5600_v51 = vld [vmem:[%s6500_s20 + $0x160] sm:$0xff] }
0x14a7   : > { %v3433_v31 = vadd.f32 %v6064_v22, %v3432_v18  ;;  %v5599_v18 = vld [vmem:[%s6500_s20 + $0x158] sm:$0xff] }
0x14a8   : > { %v6066_v39 = vpop.eup %6065  ;;  %3733 = vmatpush.msra.mxu0 %v5599_v18 }
0x14a9   : > { %v3437_v21 = vsel %vm3436_vm9, %v6064_v22, %v3433_v31  ;;  %v3470_v47 = vmul.f32 %v6066_v39, %v3468_v48  ;;  %vm3475_vm11 = vweird.f32 %v6066_v39  ;;  %v5602_v48 = vld [vmem:[%s6500_s20 + $0x170] sm:$0xff] }
0x14aa   : > { %v3442_v52 = vsel %vm3439_vm10, %v3441_v50, %v3437_v21  ;;  %vm3476_vm13 = vmor %vm3474_vm12, %vm3475_vm11  ;;  %3702 = vmatpush.msrb.mxu3 %v5602_v48  ;;  %3734 = vmatpush.msra.mxu0 %v5597_v26  ;;  %v5594_v31 = vld [vmem:[%s6500_s20 + $0x130] sm:$0xff]  ;;  %v5595_v50 = vld [vmem:[%s6500_s20 + $0x138] sm:$0xff] }
0x14ab   : > { %v3443_v41 = vmul.f32 %v3442_v52, %v3418_v37  ;;  %v3471_v54 = vsub.f32 1.0, %v3470_v47  ;;  %v5592_v21 = vld [vmem:[%s6500_s20 + $0x120] sm:$0xff]  ;;  %v5593_v52 = vld [vmem:[%s6500_s20 + $0x128] sm:$0xff]  ;;  %v5590_v47 = vld [vmem:[%s6500_s20 + $0x110] sm:$0xff] }
0x14ac   : > { %3703 = vmatpush.msrb.mxu3 %v5600_v51  ;;  %3735 = vmatpush.msra.mxu0 %v5595_v50 }
0x14ad   : > { %v5586_v35 = vclamps-f32 %v3443_v41, 1.0  ;;  %v3472_v56 = vmul.f32 %v6066_v39, %v3471_v54  ;;  %v5591_v41 = vld [vmem:[%s6500_s20 + $0x118] sm:$0xff] }
0x14ae   : > { %3704 = vmatpush.msrb.mxu3 %v5598_v25  ;;  %3736 = vmatpush.msra.mxu0 %v5593_v52 }
0x14af   : > { %v3488_v13 = vadd.f32 1.0, %v5586_v35  ;;  %v3473_v28 = vadd.f32 %v6066_v39, %v3472_v56  ;;  %v5588_v35 = vld [vmem:[%s6500_s20 + $0x100] sm:$0xff]  ;;  %s5725_s20 = sshll.u32 %s6387_s9, 5 }
0x14b0   : > { %3705 = vmatpush.msrb.mxu3 %v5596_v30  ;;  %3737 = vmatpush.msra.mxu0 %v5591_v41 }
0x14b1   : > { %v3492_v14 = vmul.f32 %v3488_v13, %v3320_v24  ;;  %v3477_v57 = vsel %vm3476_vm13, %v6066_v39, %v3473_v28 }
0x14b2   : > { %v3482_v6 = vsel %vm3479_vm14, %v3481_v8, %v3477_v57  ;;  %3706 = vmatpush.msrb.mxu3 %v5594_v31  ;;  %3738 = vmatpush.msra.mxu0 %v5589_v61 }
0x14b3   : > { %3516 = vmatmul.f32.gmra.mxu2 %v3492_v14  ;;  %v3483_v45 = vmul.f32 %v3482_v6, %v3458_v1 }
0x14b4   : > { %3707 = vmatpush.msrb.mxu3 %v5592_v21 }
0x14b5   : > { %v5587_v4 = vclamps-f32 %v3483_v45, 1.0 }
0x14b6   : > { %3708 = vmatpush.msrb.mxu3 %v5590_v47 }
0x14b7   : > { %v3489_v2 = vadd.f32 1.0, %v5587_v4 }
0x14b8   : > { %3709 = vmatpush.msrb.mxu3 %v5588_v35 }
0x14b9   : > { %v3493_v27 = vmul.f32 %v3489_v2, %v3321_v5 }
0x14bb   : > { %3519 = vmatmul.f32.gmra.mxu2 %v3493_v27 }
0x14c3   : > { %v3511_v55 = vpop.f32.mrf.mxu2 }
0x14c4   : > { %v3523_v40 = vadd.f32 %v3511_v55, %v7357_v11 }
0x14c6   : > { %v3527_v62 = vsel %vm547_vm0, %v3523_v40, 0.0 }
0x14c7   : > { %3528 = vadd.xlane.f32.xlu1 %v3527_v62 }
0x14cb   : > { %v3514_v43 = vpop.f32.mrf.mxu2 }
0x14cc   : > { %v3524_v42 = vadd.f32 %v3514_v43, %v7363_v38  ;;  %v3615_v43 = vperm.slane %v7351_v17, 4 }
0x14ce   : > { %v3530_v10 = vsel %vm547_vm0, %v3524_v42, 0.0 }
0x14cf   : > { %3531 = vadd.xlane.f32.xlu0 %v3530_v10 }
0x1536   : > { %v3517_v53 = vpop.f32.mrf.mxu2 }
0x1537   : > { %v3525_v12 = vadd.f32 %v3517_v53, %v7371_v9  ;;  %v3620_v53 = vperm.slane %v7351_v17, 5 }
0x1539   : > { %v3533_v7 = vsel %vm547_vm0, %v3525_v12, 0.0 }
0x153a   : > { %3534 = vadd.xlane.f32.xlu2 %v3533_v7  ;;  %v3529_v36 = vpop.xlane.xlu1 %3528 }
0x153b   : > { %v3539_v19 = vmul.f32 %v3529_v36, %v6837_v58 }
0x153d   : > { %v7435_v11 = vsub.f32 %v3523_v40, %v3539_v19 }
0x153e   : > { %v3520_v16 = vpop.f32.mrf.mxu2 }
0x153f   : > { %v3547_v38 = vmul.f32 %v7435_v11, %v7435_v11  ;;  %v3526_v44 = vadd.f32 %v3520_v16, %v7380_v46 }
0x1541   : > { %v3551_v9 = vsel %vm547_vm0, %v3547_v38, 0.0  ;;  %v3536_v20 = vsel %vm547_vm0, %v3526_v44, 0.0 }
0x1542   : > { %3552 = vadd.xlane.f32.xlu0 %v3551_v9  ;;  %v3532_v29 = vpop.xlane.xlu0 %3531  ;;  %3537 = vadd.xlane.f32.xlu1 %v3536_v20 }
0x1543   : > { %v3540_v22 = vmul.f32 %v3532_v29, %v6837_v58 }
0x1545   : > { %v7443_v15 = vsub.f32 %v3524_v42, %v3540_v22 }
0x1547   : > { %v3548_v23 = vmul.f32 %v7443_v15, %v7443_v15 }
0x1549   : > { %v3554_v46 = vsel %vm547_vm0, %v3548_v23, 0.0 }
0x154a   : > { %3555 = vadd.xlane.f32.xlu2 %v3554_v46 }
0x15ad   : > { %v3535_v39 = vpop.xlane.xlu2 %3534 }
0x15ae   : > { %v3541_v37 = vmul.f32 %v3535_v39, %v6837_v58 }
0x15b0   : > { %v7461_v0 = vsub.f32 %v3525_v12, %v3541_v37 }
0x15b2   : > { %v3549_v54 = vmul.f32 %v7461_v0, %v7461_v0 }
0x15b4   : > { %v3557_v3 = vsel %vm547_vm0, %v3549_v54, 0.0 }
0x15b5   : > { %3558 = vadd.xlane.f32.xlu1 %v3557_v3  ;;  %v3553_v56 = vpop.xlane.xlu0 %3552  ;;  %v3538_v24 = vpop.xlane.xlu1 %3537 }
0x15b6   : > { %v3563_v63 = vmul.f32 %v3553_v56, %v6837_v58  ;;  %v3542_v13 = vmul.f32 %v3538_v24, %v6837_v58  ;;  %v5637_v24 = vld [vmem:[%s6484_s17 + $0x28] sm:$0xff] }
0x15b8   : > { %v3567_v28 = vadd.f32 1e-05, %v3563_v63  ;;  %v7472_v14 = vsub.f32 %v3526_v44, %v3542_v13  ;;  %v7511_v63 = vld [vmem:[%s6484_s17 + $0x20] sm:$0xff] }
0x15b9   : > { %v3680_v13 = vperm.slane %v7511_v63, 0 }
0x15ba   : > { %6067 = vrsqrt.f32 %v3567_v28  ;;  %v3550_v8 = vmul.f32 %v7472_v14, %v7472_v14  ;;  %vm3577_vm2 = vweird.f32 %v3567_v28 }
0x15bc   : > { %v3560_v1 = vsel %vm547_vm0, %v3550_v8, 0.0 }
0x15bd   : > { %v3556_v57 = vpop.xlane.xlu2 %3555  ;;  %3561 = vadd.xlane.f32.xlu0 %v3560_v1 }
0x15be   : > { %v3564_v6 = vmul.f32 %v3556_v57, %v6837_v58 }
0x15c0   : > { %v6068_v45 = vpop.eup %6067  ;;  %v3568_v5 = vadd.f32 1e-05, %v3564_v6 }
0x15c1   : > { %v3572_v4 = vmul.f32 %v6068_v45, %v3567_v28  ;;  %vm3578_vm15 = vweird.f32 %v6068_v45  ;;  %v3681_v28 = vperm.slane %v5637_v24, 0 }
0x15c2   : > { %6069 = vrsqrt.f32 %v3568_v5  ;;  %vm3579_vm3 = vmor %vm3577_vm2, %vm3578_vm15  ;;  %vm3587_vm5 = vweird.f32 %v3568_v5 }
0x15c3   : > { %v3573_v2 = vmul.f32 %v6068_v45, %v3572_v4 }
0x15c5   : > { %v3574_v27 = vmul.f32 0.5, %v3573_v2 }
0x15c7   : > { %v3575_v55 = vsub.f32 1.5, %v3574_v27 }
0x15c8   : > { %v6070_v40 = vpop.eup %6069 }
0x15c9   : > { %v3576_v62 = vmul.f32 %v6068_v45, %v3575_v55  ;;  %v3582_v42 = vmul.f32 %v6070_v40, %v3568_v5  ;;  %vm3588_vm4 = vweird.f32 %v6070_v40 }
0x15ca   : > { %vm3589_vm6 = vmor %vm3587_vm5, %vm3588_vm4 }
0x15cb   : > { %v3580_v10 = vsel %vm3579_vm3, %v6068_v45, %v3576_v62  ;;  %v3583_v7 = vmul.f32 %v6070_v40, %v3582_v42 }
0x15cc   : > { %v3611_v12 = vmul.f32 %v3580_v10, %v7435_v11 }
0x15cd   : > { %v3584_v19 = vmul.f32 0.5, %v3583_v7 }
0x15ce   : > { %v3616_v36 = vmul.f32 %v3615_v43, %v3611_v12 }
0x15cf   : > { %v3585_v38 = vsub.f32 1.5, %v3584_v19 }
0x15d0   : > { %v7481_v16 = vadd.f32 %v3620_v53, %v3616_v36 }
0x15d1   : > { %v3586_v44 = vmul.f32 %v6070_v40, %v3585_v38 }
0x15d2   : > { %5638 = vmatmul.msk.f32.vlgmr.msrb.gmra.mxu3 %vm547_vm0, %v7481_v16  ;;  %5642 = vmatmul.msk.f32.vlgmr.msra.gmra.mxu0 %vm547_vm0, %v7481_v16 }
0x15d3   : > { %v3590_v9 = vsel %vm3589_vm6, %v6070_v40, %v3586_v44 }
0x15d4   : > { %v3612_v17 = vmul.f32 %v3590_v9, %v7443_v15 }
0x15d6   : > { %v3617_v11 = vmul.f32 %v3615_v43, %v3612_v17  ;;  %v7554_v17 = vld [vmem:[%s6581_s10] ss:$0 sm:$0xff] }
0x15d8   : > { %v7488_v20 = vadd.f32 %v3620_v53, %v3617_v11 }
0x15da   : > { %5639 = vmatmul.msk.f32.gmra.mxu3 %vm547_vm0, %v7488_v20  ;;  %5643 = vmatmul.msk.f32.gmra.mxu0 %vm547_vm0, %v7488_v20 }
0x1628   : > { %v3559_v29 = vpop.xlane.xlu1 %3558 }
0x1629   : > { %v3565_v22 = vmul.f32 %v3559_v29, %v6837_v58 }
0x162b   : > { %v3569_v23 = vadd.f32 1e-05, %v3565_v22 }
0x162d   : > { %6071 = vrsqrt.f32 %v3569_v23  ;;  %vm3597_vm8 = vweird.f32 %v3569_v23 }
0x1630   : > { %v3562_v46 = vpop.xlane.xlu0 %3561 }
0x1631   : > { %v3566_v48 = vmul.f32 %v3562_v46, %v6837_v58 }
0x1633   : > { %v6072_v33 = vpop.eup %6071  ;;  %v3570_v15 = vadd.f32 1e-05, %v3566_v48 }
0x1634   : > { %v3592_v51 = vmul.f32 %v6072_v33, %v3569_v23  ;;  %vm3598_vm7 = vweird.f32 %v6072_v33 }
0x1635   : > { %6073 = vrsqrt.f32 %v3570_v15  ;;  %vm3599_vm9 = vmor %vm3597_vm8, %vm3598_vm7  ;;  %vm3607_vm11 = vweird.f32 %v3570_v15 }
0x1636   : > { %v3593_v49 = vmul.f32 %v6072_v33, %v3592_v51 }
0x1638   : > { %v3594_v25 = vmul.f32 0.5, %v3593_v49 }
0x163a   : > { %v3595_v18 = vsub.f32 1.5, %v3594_v25 }
0x163b   : > { %v6074_v30 = vpop.eup %6073 }
0x163c   : > { %v3596_v26 = vmul.f32 %v6072_v33, %v3595_v18  ;;  %v3602_v31 = vmul.f32 %v6074_v30, %v3570_v15  ;;  %vm3608_vm10 = vweird.f32 %v6074_v30 }
0x163d   : > { %vm3609_vm12 = vmor %vm3607_vm11, %vm3608_vm10 }
0x163e   : > { %v3600_v50 = vsel %vm3599_vm9, %v6072_v33, %v3596_v26  ;;  %v3603_v37 = vmul.f32 %v6074_v30, %v3602_v31 }
0x163f   : > { %v3613_v39 = vmul.f32 %v3600_v50, %v7461_v0 }
0x1640   : > { %v3604_v21 = vmul.f32 0.5, %v3603_v37 }
0x1641   : > { %v3618_v52 = vmul.f32 %v3615_v43, %v3613_v39 }
0x1642   : > { %v3605_v47 = vsub.f32 1.5, %v3604_v21 }
0x1643   : > { %v7497_v41 = vadd.f32 %v3620_v53, %v3618_v52 }
0x1644   : > { %v3606_v54 = vmul.f32 %v6074_v30, %v3605_v47 }
0x1645   : > { %5640 = vmatmul.msk.f32.gmra.mxu3 %vm547_vm0, %v7497_v41  ;;  %5644 = vmatmul.msk.f32.gmra.mxu0 %vm547_vm0, %v7497_v41 }
0x1646   : > { %v3610_v35 = vsel %vm3609_vm12, %v6074_v30, %v3606_v54 }
0x1647   : > { %v3614_v0 = vmul.f32 %v3610_v35, %v7472_v14 }
0x1649   : > { %v3619_v61 = vmul.f32 %v3615_v43, %v3614_v0 }
0x164b   : > { %v7504_v3 = vadd.f32 %v3620_v53, %v3619_v61 }
0x164d   : > { %5641 = vmatmul.msk.f32.gmra.mxu3 %vm547_vm0, %v7504_v3  ;;  %5645 = vmatmul.msk.f32.gmra.mxu0 %vm547_vm0, %v7504_v3 }
0x164f   : > { %v3740_v56 = vpop.f32.mrf.mxu0 }
0x1650   : > { %v3741_v57 = vadd.f32 %v3740_v56, %v3681_v28 }
0x1655   : > { %v3711_v8 = vpop.f32.mrf.mxu3 }
0x1656   : > { %v7515_v1 = vadd.f32 %v3711_v8, %v3680_v13 }
0x1657   : > { %v3743_v14 = vpop.f32.mrf.mxu0 }
0x1658   : > { %3754 = vrot.lane.b32.xlu1 %v7515_v1, %s6310_s18  ;;  %v3744_v6 = vadd.f32 %v3743_v14, %v3681_v28  ;;  %v7591_v14 = vld [vmem:[%s6581_s10 + $0x1] ss:$0 sm:$0xff] }
0x165a   : > { %3898 = vmatpush.msra.mxu3 %v3744_v6  ;;  %v7519_v45 = vpack.i.bf16 %v3741_v57, %v3744_v6 }
0x165c   : > { %3899 = vmatpush.msra.mxu3 %v3741_v57 }
0x165d   : > { %v3714_v4 = vpop.f32.mrf.mxu3 }
0x165e   : > { %v7521_v5 = vadd.f32 %v3714_v4, %v3680_v13 }
0x1660   : > { %3940 = vrot.lane.b32.xlu1 %v7515_v1, %s6311_s19  ;;  %3756 = vrot.lane.b32.xlu2 %v7521_v5, %s6310_s18 }
0x16ba   : > { %v3757_v2 = vpop.permute.xlu2 %3756 }
0x16bb   : > { %5646 = vmatpush.xpose.msk.msrb.mxu1 %vm624_vm1, %v3757_v2 }
0x16c2   : > { %v3746_v27 = vpop.f32.mrf.mxu0 }
0x16c3   : > { %v3747_v42 = vadd.f32 %v3746_v27, %v3681_v28 }
0x16c8   : > { %v3717_v55 = vpop.f32.mrf.mxu3 }
0x16c9   : > { %v7528_v40 = vadd.f32 %v3717_v55, %v3680_v13 }
0x16ca   : > { %v3755_v62 = vpop.permute.xlu1 %3754  ;;  %v3749_v43 = vpop.f32.mrf.mxu0 }
0x16cb   : > { %3791 = vrot.lane.b32.xlu2 %v7528_v40, %s6310_s18  ;;  %5647 = vmatpush.xpose.msk.msrb.mxu1 %vm624_vm1, %v3755_v62  ;;  %v3750_v10 = vadd.f32 %v3749_v43, %v3681_v28 }
0x16cd   : > { %v7533_v53 = vpack.i.bf16 %v3747_v42, %v3750_v10 }
0x16ce   : > { %5648 = vmatmul.msk.f32.vlgmr.msrb.gmra.mxu1 %vm624_vm1, %v7515_v1 }
0x16cf   : > { %3927 = vmatpush.msra.mxu1 %v3750_v10 }
0x16d0   : > { %v3720_v12 = vpop.f32.mrf.mxu3 }
0x16d1   : > { %3928 = vmatpush.msra.mxu1 %v3747_v42  ;;  %v7537_v7 = vadd.f32 %v3720_v12, %v3680_v13 }
0x16d2   : > { %v3941_v22 = vpop.permute.xlu1 %3940 }
0x16d3   : > { %3936 = vrot.lane.b32.xlu2 %v7515_v1, %s6312_s22  ;;  %3793 = vrot.lane.b32.xlu0 %v7537_v7, %s6310_s18 }
0x16d6   : > { %5649 = vmatmul.msk.f32.gmra.mxu1 %vm624_vm1, %v7521_v5 }
0x16db   : > { %3942 = vrot.lane.b32.xlu0 %v7521_v5, %s6311_s19 }
0x16e3   : > { %3938 = vrot.lane.b32.xlu0 %v7521_v5, %s6312_s22 }
0x1725   : > { %v3792_v19 = vpop.permute.xlu2 %3791 }
0x172d   : > { %v3937_v51 = vpop.permute.xlu2 %3936 }
0x1745   : > { %v3794_v36 = vpop.permute.xlu0 %3793 }
0x1746   : > { %5650 = vmatpush.xpose.msk.msrb.mxu2 %vm624_vm1, %v3794_v36 }
0x174a   : > { %5651 = vmatpush.xpose.msk.msrb.mxu2 %vm624_vm1, %v3792_v19 }
0x174b   : > { %v3783_v38 = vpop.f32.mrf.mxu1 }
0x174c   : > { %v3826_v44 = vmul.f32 0.25, %v3783_v38 }
0x174d   : > { %v3943_v9 = vpop.permute.xlu0 %3942  ;;  %5652 = vmatmul.msk.f32.vlgmr.msrb.gmra.mxu2 %vm624_vm1, %v7528_v40 }
0x174e   : > { %v3830_v11 = vadd.f32 %v7554_v17, %v3826_v44  ;;  %5658 = vmatpush.xpose.msk.msra.mxu2 %vm624_vm1, %v3943_v9 }
0x1750   : > { %v3834_v29 = vsel %vm624_vm1, %v3830_v11, -inf }
0x1751   : > { %3835 = vmax.xlane.f32.xlu1 %v3834_v29 }
0x1752   : > { %5659 = vmatpush.xpose.msk.msra.mxu2 %vm624_vm1, %v3941_v22 }
0x1753   : > { %v3786_v23 = vpop.f32.mrf.mxu1 }
0x1754   : > { %v3827_v46 = vmul.f32 0.25, %v3786_v23 }
0x1755   : > { %5653 = vmatmul.msk.f32.gmra.mxu2 %vm624_vm1, %v7537_v7  ;;  %v3939_v15 = vpop.permute.xlu0 %3938 }
0x1756   : > { %v3831_v48 = vadd.f32 %v7554_v17, %v3827_v46 }
0x1758   : > { %v3837_v33 = vsel %vm624_vm1, %v3831_v48, -inf }
0x1759   : > { %3838 = vmax.xlane.f32.xlu2 %v3837_v33 }
0x175d   : > { %5660 = vmatmul.msk.f32.vlgmr.msra.gmra.mxu2 %vm624_vm1, %v3937_v51 }
0x1765   : > { %5661 = vmatmul.msk.f32.gmra.mxu2 %vm624_vm1, %v3939_v15 }
0x17c4   : > { %v3836_v49 = vpop.xlane.xlu1 %3835 }
0x17c5   : > { %v3846_v25 = vsub.f32 %v3830_v11, %v3836_v49 }
0x17c7   : > { %v3850_v18 = vmul.f32 1.442695, %v3846_v25 }
0x17c9   : > { %6075 = vpow2.f32 %v3850_v18 }
0x17cc   : > { %v3839_v30 = vpop.xlane.xlu2 %3838 }
0x17cd   : > { %v3847_v26 = vsub.f32 %v3831_v48, %v3839_v30 }
0x17cf   : > { %v6076_v31 = vpop.eup %6075  ;;  %v3852_v50 = vmul.f32 1.442695, %v3847_v26 }
0x17d0   : > { %v3820_v39 = vpop.f32.mrf.mxu2  ;;  %v3858_v37 = vsel %vm624_vm1, %v6076_v31, 0.0 }
0x17d1   : > { %6077 = vpow2.f32 %v3852_v50  ;;  %3859 = vadd.xlane.f32.xlu2 %v3858_v37  ;;  %v3828_v48 = vmul.f32 0.25, %v3820_v39  ;;  %v5604_v39 = vld [vmem:[%s6656_s11 + $0x80] sm:$0xff] }
0x17d3   : > { %v3832_v51 = vadd.f32 %v7591_v14, %v3828_v48 }
0x17d5   : > { %v3840_v49 = vsel %vm624_vm1, %v3832_v51, -inf }
0x17d7   : > { %v6078_v21 = vpop.eup %6077 }
0x17d8   : > { %v3823_v52 = vpop.f32.mrf.mxu2  ;;  %v3861_v47 = vsel %vm624_vm1, %v6078_v21, 0.0 }
0x17d9   : > { %3862 = vadd.xlane.f32.xlu0 %v3861_v47  ;;  %v3829_v8 = vmul.f32 0.25, %v3823_v52 }
0x17db   : > { %v3833_v57 = vadd.f32 %v7591_v14, %v3829_v8 }
0x17dd   : > { %v3843_v6 = vsel %vm624_vm1, %v3833_v57, -inf }
0x17e0   : > { %v3969_v54 = vpop.f32.mrf.mxu2 }
0x17e1   : > { %v4014_v35 = vmul.f32 0.25, %v3969_v54 }
0x17e3   : > { %v4018_v0 = vadd.f32 %v7554_v17, %v4014_v35 }
0x17e5   : > { %v4022_v61 = vsel %vm624_vm1, %v4018_v0, -inf }
0x17e6   : > { %4023 = vmax.xlane.f32.xlu0 %v4022_v61 }
0x17e8   : > { %v3972_v56 = vpop.f32.mrf.mxu2 }
0x17e9   : > { %v4015_v24 = vmul.f32 0.25, %v3972_v56  ;;  %3979 = vrot.lane.b32.xlu2 %v7528_v40, %s6311_s19 }
0x17eb   : > { %v4019_v13 = vadd.f32 %v7554_v17, %v4015_v24 }
0x17ed   : > { %v4025_v28 = vsel %vm624_vm1, %v4019_v13, -inf }
0x17ee   : > { %4026 = vmax.xlane.f32.xlu1 %v4025_v28 }
0x17f1   : > { %5866 = vrot.lane.b32.xlu2 %v7519_v45, %s6312_s22 }
0x17f9   : > { %4228 = vrot.lane.b32.xlu2 %v7521_v5, %s6313_s12 }
0x17fa   : > { %3975 = vrot.lane.b32.xlu0 %v7528_v40, %s6312_s22 }
0x1801   : > { %4226 = vrot.lane.b32.xlu2 %v7515_v1, %s6313_s12 }
0x1802   : > { %3977 = vrot.lane.b32.xlu0 %v7537_v7, %s6312_s22 }
0x1807   : > { %3981 = vrot.lane.b32.xlu1 %v7537_v7, %s6311_s19 }
0x1809   : > { %4222 = vrot.lane.b32.xlu2 %v7515_v1, %s6314_s26 }
0x1811   : > { %4224 = vrot.lane.b32.xlu2 %v7521_v5, %s6314_s26 }
0x183a   : > { %3844 = vmax.xlane.f32.xlu2 %v3843_v6 }
0x1844   : > { %v3860_v4 = vpop.xlane.xlu2 %3859 }
0x1845   : > { %6079 = vrcp.f32 %v3860_v4 }
0x184b   : > { %v6080_v2 = vpop.eup %6079 }
0x184c   : > { %v3874_v27 = vmul.f32 %v6080_v2, %v6076_v31  ;;  %v3863_v55 = vpop.xlane.xlu0 %3862  ;;  %v3980_v62 = vpop.permute.xlu2 %3979  ;;  %v5605_v31 = vld [vmem:[%s6656_s11 + $0x88] sm:$0xff] }
0x184d   : > { %6081 = vrcp.f32 %v3863_v55 }
0x184e   : > { %5654 = vmatmul.msk.f32.vlgmr.msra.gmra.mxu3 %vm624_vm1, %v3874_v27 }
0x1852   : > { %4267 = vrot.lane.b32.xlu2 %v7537_v7, %s6313_s12 }
0x1853   : > { %v6082_v43 = vpop.eup %6081 }
0x1854   : > { %v5867_v42 = vpop.permute.xlu2 %5866  ;;  %v3875_v10 = vmul.f32 %v6082_v43, %v6078_v21 }
0x1855   : > { %v5868_v12 = vunpack.i.l.bf16 %v5867_v42  ;;  %v5869_v36 = vunpack.i.h.bf16 %v5867_v42 }
0x1856   : > { %5655 = vmatmul.msk.f32.gmra.mxu3 %vm624_vm1, %v3875_v10 }
0x1857   : > { %4094 = vmatpush.msrb.mxu0 %v5868_v12 }
0x1859   : > { %v4024_v19 = vpop.xlane.xlu0 %4023  ;;  %4095 = vmatpush.msrb.mxu0 %v5869_v36 }
0x185a   : > { %v4034_v38 = vsub.f32 %v4018_v0, %v4024_v19  ;;  %4473 = vrot.lane.b32.xlu2 %v7521_v5, %s7966_s29 }
0x185c   : > { %v4038_v44 = vmul.f32 1.442695, %v4034_v38  ;;  %v4229_v9 = vpop.permute.xlu2 %4228 }
0x185d   : > { %5678 = vmatpush.xpose.msk.msra.mxu0 %vm624_vm1, %v4229_v9 }
0x185e   : > { %6083 = vpow2.f32 %v4038_v44 }
0x1861   : > { %v4027_v11 = vpop.xlane.xlu1 %4026 }
0x1862   : > { %v4035_v29 = vsub.f32 %v4019_v13, %v4027_v11  ;;  %4471 = vrot.lane.b32.xlu2 %v7515_v1, %s7966_s29 }
0x1864   : > { %v6084_v22 = vpop.eup %6083  ;;  %v4040_v23 = vmul.f32 1.442695, %v4035_v29  ;;  %v4227_v46 = vpop.permute.xlu2 %4226  ;;  %v5607_v29 = vld [vmem:[%s6656_s11 + $0x98] sm:$0xff] }
0x1865   : > { %5679 = vmatpush.xpose.msk.msra.mxu0 %vm624_vm1, %v4227_v46  ;;  %v4046_v33 = vsel %vm624_vm1, %v6084_v22, 0.0  ;;  %4166 = vmatpush.msrb.mxu2 %v5607_v29 }
0x1866   : > { %6085 = vpow2.f32 %v4040_v23  ;;  %4047 = vadd.xlane.f32.xlu1 %v4046_v33 }
0x186c   : > { %v6086_v15 = vpop.eup %6085  ;;  %v3976_v30 = vpop.permute.xlu0 %3975 }
0x186d   : > { %v4049_v25 = vsel %vm624_vm1, %v6086_v15, 0.0  ;;  %v4223_v50 = vpop.permute.xlu2 %4222 }
0x186e   : > { %3841 = vmax.xlane.f32.xlu1 %v3840_v49  ;;  %4050 = vadd.xlane.f32.xlu0 %v4049_v25 }
0x1874   : > { %v3978_v26 = vpop.permute.xlu0 %3977 }
0x1875   : > { %v4225_v37 = vpop.permute.xlu2 %4224 }
0x1879   : > { %v3982_v18 = vpop.permute.xlu1 %3981 }
0x187a   : > { %5662 = vmatpush.xpose.msk.msrb.mxu3 %vm624_vm1, %v3982_v18 }
0x187e   : > { %5663 = vmatpush.xpose.msk.msrb.mxu3 %vm624_vm1, %v3980_v62 }
0x1881   : > { %5664 = vmatmul.msk.f32.vlgmr.msrb.gmra.mxu3 %vm624_vm1, %v3976_v30 }
0x1882   : > { %4207 = vmatpush.msra.mxu3 %v5605_v31 }
0x1884   : > { %4208 = vmatpush.msra.mxu3 %v5604_v39 }
0x1889   : > { %5665 = vmatmul.msk.f32.gmra.mxu3 %vm624_vm1, %v3978_v26 }
0x18ad   : > { %v3845_v21 = vpop.xlane.xlu2 %3844 }
0x18ae   : > { %v3849_v52 = vsub.f32 %v3833_v57, %v3845_v21 }
0x18b0   : > { %v3856_v47 = vmul.f32 1.442695, %v3849_v52 }
0x18b2   : > { %6087 = vpow2.f32 %v3856_v47 }
0x18b5   : > { %v7615_v54 = vpop.permute.xlu2 %4267 }
0x18b8   : > { %v6088_v35 = vpop.eup %6087 }
0x18b9   : > { %v3867_v0 = vsel %vm624_vm1, %v6088_v35, 0.0 }
0x18ba   : > { %3868 = vadd.xlane.f32.xlu0 %v3867_v0 }
0x18bd   : > { %v4474_v61 = vpop.permute.xlu2 %4473 }
0x18be   : > { %5694 = vmatpush.xpose.msk.msrb.mxu3 %vm624_vm1, %v4474_v61 }
0x18c5   : > { %v4472_v56 = vpop.permute.xlu2 %4471 }
0x18c6   : > { %5695 = vmatpush.xpose.msk.msrb.mxu3 %vm624_vm1, %v4472_v56 }
0x18d1   : > { %v3901_v24 = vpop.f32.mrf.mxu3 }
0x18d2   : > { %5674 = vmatmul.msk.f32.vlgmr.msra.gmra.mxu3 %vm624_vm1, %v3901_v24 }
0x18d9   : > { %v3904_v13 = vpop.f32.mrf.mxu3  ;;  %v4048_v28 = vpop.xlane.xlu1 %4047 }
0x18da   : > { %6089 = vrcp.f32 %v4048_v28  ;;  %5675 = vmatmul.msk.f32.gmra.mxu3 %vm624_vm1, %v3904_v13 }
0x18e0   : > { %v6090_v8 = vpop.eup %6089 }
0x18e1   : > { %v4062_v57 = vmul.f32 %v6090_v8, %v6084_v22  ;;  %v4051_v6 = vpop.xlane.xlu0 %4050  ;;  %v3842_v4 = vpop.xlane.xlu1 %3841  ;;  %v5606_v22 = vld [vmem:[%s6656_s11 + $0x90] sm:$0xff] }
0x18e2   : > { %6091 = vrcp.f32 %v4051_v6  ;;  %v3848_v2 = vsub.f32 %v3832_v51, %v3842_v4  ;;  %4167 = vmatpush.msrb.mxu2 %v5606_v22 }
0x18e3   : > { %5666 = vmatmul.msk.f32.vlgmr.msrb.gmra.mxu0 %vm624_vm1, %v4062_v57 }
0x18e4   : > { %v3854_v27 = vmul.f32 1.442695, %v3848_v2 }
0x18e6   : > { %6093 = vpow2.f32 %v3854_v27 }
0x18e8   : > { %v6092_v55 = vpop.eup %6091 }
0x18e9   : > { %v4063_v62 = vmul.f32 %v6092_v55, %v6086_v15 }
0x18eb   : > { %5667 = vmatmul.msk.f32.gmra.mxu0 %vm624_vm1, %v4063_v62 }
0x18ec   : > { %v6094_v43 = vpop.eup %6093 }
0x18ed   : > { %v3864_v42 = vsel %vm624_vm1, %v6094_v43, 0.0 }
0x18ee   : > { %3865 = vadd.xlane.f32.xlu1 %v3864_v42 }
0x18f3   : > { %5680 = vmatmul.msk.f32.vlgmr.msra.gmra.mxu0 %vm624_vm1, %v4223_v50 }
0x18fb   : > { %5681 = vmatmul.msk.f32.gmra.mxu0 %vm624_vm1, %v4225_v37 }
0x1904   : > { %v4008_v10 = vpop.f32.mrf.mxu3 }
0x1905   : > { %v4016_v12 = vmul.f32 0.25, %v4008_v10 }
0x1907   : > { %v4020_v36 = vadd.f32 %v7591_v14, %v4016_v12 }
0x1909   : > { %v4028_v19 = vsel %vm624_vm1, %v4020_v36, -inf }
0x190a   : > { %4029 = vmax.xlane.f32.xlu1 %v4028_v19 }
0x190c   : > { %v4011_v38 = vpop.f32.mrf.mxu3 }
0x190d   : > { %v4017_v44 = vmul.f32 0.25, %v4011_v38 }
0x190f   : > { %v4021_v9 = vadd.f32 %v7591_v14, %v4017_v44 }
0x1911   : > { %v4031_v11 = vsel %vm624_vm1, %v4021_v9, -inf }
0x1912   : > { %4032 = vmax.xlane.f32.xlu0 %v4031_v11 }
0x1923   : > { %4265 = vrot.lane.b32.xlu1 %v7528_v40, %s6313_s12  ;;  %s5180_s12 = scalar_lea.sflag [#allocation4], %s6472_s21 }
0x1926   : > { %5871 = vrot.lane.b32.xlu0 %v7533_v53, %s6312_s22  ;;  %s5191_s22 = scalar_lea.hbm %s7945_s8, %s5725_s20 }
0x1927   : > { %s5194_s9 = sshll.u32 %s5191_s22, 4  ;;  %s5195_s9 = int_to_ptr.hbm [resolvable:$true] %s5194_s9 }
0x192d   : > { %v3869_v48 = vpop.xlane.xlu0 %3868 }
0x1960   : > { %v4097_v23 = vpop.f32.mrf.mxu0 }
0x1961   : > { %5670 = vmatmul.msk.f32.vlgmr.msrb.gmra.mxu2 %vm624_vm1, %v4097_v23  ;;  %v3866_v46 = vpop.xlane.xlu1 %3865 }
0x1962   : > { %6095 = vrcp.f32 %v3866_v46 }
0x1963   : > { %6097 = vrcp.f32 %v3869_v48 }
0x1968   : > { %v6096_v33 = vpop.eup %6095  ;;  %v4100_v51 = vpop.f32.mrf.mxu0 }
0x1969   : > { %v3876_v15 = vmul.f32 %v6096_v33, %v6094_v43  ;;  %5671 = vmatmul.msk.f32.gmra.mxu2 %vm624_vm1, %v4100_v51  ;;  %v6098_v49 = vpop.eup %6097 }
0x196a   : > { %v3877_v18 = vmul.f32 %v6098_v49, %v6088_v35 }
0x196b   : > { %5656 = vmatmul.msk.f32.vlgmr.msra.gmra.mxu1 %vm624_vm1, %v3876_v15 }
0x1970   : > { %v4255_v25 = vpop.f32.mrf.mxu0 }
0x1971   : > { %v4300_v24 = vmul.f32 0.25, %v4255_v25 }
0x1973   : > { %5657 = vmatmul.msk.f32.gmra.mxu1 %vm624_vm1, %v3877_v18  ;;  %v4304_v28 = vadd.f32 %v7554_v17, %v4300_v24 }
0x1975   : > { %v4308_v6 = vsel %vm624_vm1, %v4304_v28, -inf }
0x1978   : > { %v4258_v30 = vpop.f32.mrf.mxu0 }
0x1979   : > { %v4301_v26 = vmul.f32 0.25, %v4258_v30 }
0x197b   : > { %v4305_v31 = vadd.f32 %v7554_v17, %v4301_v26 }
0x197d   : > { %v4030_v50 = vpop.xlane.xlu1 %4029  ;;  %v4311_v39 = vsel %vm624_vm1, %v4305_v31, -inf }
0x197e   : > { %v4036_v37 = vsub.f32 %v4020_v36, %v4030_v50  ;;  %4312 = vmax.xlane.f32.xlu0 %v4311_v39 }
0x1980   : > { %v4042_v21 = vmul.f32 1.442695, %v4036_v37 }
0x1982   : > { %6099 = vpow2.f32 %v4042_v21 }
0x1985   : > { %v4033_v52 = vpop.xlane.xlu0 %4032 }
0x1986   : > { %v4037_v47 = vsub.f32 %v4021_v9, %v4033_v52 }
0x1988   : > { %v6100_v0 = vpop.eup %6099  ;;  %v4044_v61 = vmul.f32 1.442695, %v4037_v47 }
0x1989   : > { %v4052_v56 = vsel %vm624_vm1, %v6100_v0, 0.0 }
0x198a   : > { %6101 = vpow2.f32 %v4044_v61  ;;  %4053 = vadd.xlane.f32.xlu1 %v4052_v56 }
0x1990   : > { %v6102_v35 = vpop.eup %6101 }
0x1991   : > { %v4055_v13 = vsel %vm624_vm1, %v6102_v35, 0.0 }
0x1992   : > { %4261 = vrot.lane.b32.xlu0 %v7528_v40, %s6314_s26  ;;  %4056 = vadd.xlane.f32.xlu1 %v4055_v13 }
0x1995   : > { %v4266_v2 = vpop.permute.xlu1 %4265 }
0x1998   : > { %v5872_v8 = vpop.permute.xlu0 %5871 }
0x1999   : > { %v5873_v57 = vunpack.i.l.bf16 %v5872_v8  ;;  %v5874_v4 = vunpack.i.h.bf16 %v5872_v8 }
0x199a   : > { %4309 = vmax.xlane.f32.xlu1 %v4308_v6 }
0x199b   : > { %4131 = vmatpush.msrb.mxu1 %v5873_v57 }
0x199d   : > { %4132 = vmatpush.msrb.mxu1 %v5874_v4 }
0x199f   : > { %5682 = vmatpush.xpose.msk.msra.mxu1 %vm624_vm1, %v7615_v54 }
0x19a3   : > { %5683 = vmatpush.xpose.msk.msra.mxu1 %vm624_vm1, %v4266_v2 }
0x19b3   : > { %5876 = vrot.lane.b32.xlu1 %v7519_v45, %s6314_s26 }
0x19bb   : > { %4263 = vrot.lane.b32.xlu1 %v7537_v7, %s6314_s26 }
0x19c3   : > { %4467 = vrot.lane.b32.xlu1 %v7515_v1, %s7965_s24 }
0x19cb   : > { %4469 = vrot.lane.b32.xlu1 %v7521_v5, %s7965_s24 }
0x19d3   : > { %4510 = vrot.lane.b32.xlu1 %v7528_v40, %s7966_s29 }
0x19db   : > { %4506 = vrot.lane.b32.xlu1 %v7528_v40, %s7965_s24 }
0x19e3   : > { %4508 = vrot.lane.b32.xlu1 %v7537_v7, %s7965_s24 }
0x19e8   : > { %v3930_v54 = vpop.f32.mrf.mxu1 }
0x19e9   : > { %5676 = vmatmul.msk.f32.gmra.mxu3 %vm624_vm1, %v3930_v54 }
0x19f0   : > { %v3933_v27 = vpop.f32.mrf.mxu1 }
0x19f1   : > { %v4313_v55 = vpop.xlane.xlu0 %4312  ;;  %5677 = vmatmul.msk.f32.gmra.mxu3 %vm624_vm1, %v3933_v27 }
0x19f2   : > { %v4321_v1 = vsub.f32 %v4305_v31, %v4313_v55  ;;  %v7680_v31 = vpop.f32.mrf.mxu3 }
0x19f4   : > { %v4326_v62 = vmul.f32 1.442695, %v4321_v1 }
0x19f6   : > { %6103 = vpow2.f32 %v4326_v62 }
0x19fa   : > { %v7685_v61 = vpop.f32.mrf.mxu3 }
0x19fc   : > { %v6104_v5 = vpop.eup %6103 }
0x19fd   : > { %v4054_v43 = vpop.xlane.xlu1 %4053  ;;  %v4335_v42 = vsel %vm624_vm1, %v6104_v5, 0.0 }
0x19fe   : > { %6105 = vrcp.f32 %v4054_v43  ;;  %4336 = vadd.xlane.f32.xlu2 %v4335_v42  ;;  %v5609_v42 = vld [vmem:[%s6656_s11 + $0xa8] sm:$0xff] }
0x19ff   : > { %4448 = vmatpush.msra.mxu2 %v5609_v42 }
0x1a04   : > { %v6106_v40 = vpop.eup %6105  ;;  %v4262_v11 = vpop.permute.xlu0 %4261 }
0x1a05   : > { %v4064_v10 = vmul.f32 %v6106_v40, %v6100_v0  ;;  %v4057_v12 = vpop.xlane.xlu1 %4056  ;;  %v5608_v40 = vld [vmem:[%s6656_s11 + $0xa0] sm:$0xff] }
0x1a06   : > { %6107 = vrcp.f32 %v4057_v12  ;;  %4449 = vmatpush.msra.mxu2 %v5608_v40 }
0x1a07   : > { %5668 = vmatmul.msk.f32.vlgmr.msrb.gmra.mxu1 %vm624_vm1, %v4064_v10 }
0x1a0c   : > { %v6108_v36 = vpop.eup %6107 }
0x1a0d   : > { %v4310_v19 = vpop.xlane.xlu1 %4309  ;;  %v4065_v38 = vmul.f32 %v6108_v36, %v6102_v35 }
0x1a0e   : > { %v4320_v44 = vsub.f32 %v4304_v28, %v4310_v19 }
0x1a0f   : > { %5669 = vmatmul.msk.f32.gmra.mxu1 %vm624_vm1, %v4065_v38 }
0x1a10   : > { %v4324_v9 = vmul.f32 1.442695, %v4320_v44 }
0x1a12   : > { %6109 = vpow2.f32 %v4324_v9 }
0x1a17   : > { %5684 = vmatmul.msk.f32.vlgmr.msra.gmra.mxu1 %vm624_vm1, %v4262_v11 }
0x1a18   : > { %v6110_v29 = vpop.eup %6109 }
0x1a19   : > { %v4332_v22 = vsel %vm624_vm1, %v6110_v29, 0.0 }
0x1a1a   : > { %4333 = vadd.xlane.f32.xlu0 %v4332_v22 }
0x1a25   : > { %v5877_v23 = vpop.permute.xlu1 %5876 }
0x1a26   : > { %v5878_v46 = vunpack.i.l.bf16 %v5877_v23  ;;  %v5879_v48 = vunpack.i.h.bf16 %v5877_v23 }
0x1a28   : > { %4378 = vmatpush.msrb.mxu0 %v5878_v46 }
0x1a2a   : > { %4379 = vmatpush.msrb.mxu0 %v5879_v48 }
0x1a2d   : > { %v4264_v33 = vpop.permute.xlu1 %4263 }
0x1a2e   : > { %4512 = vrot.lane.b32.xlu0 %v7537_v7, %s7966_s29  ;;  %5685 = vmatmul.msk.f32.gmra.mxu1 %vm624_vm1, %v4264_v33 }
0x1a35   : > { %v4468_v51 = vpop.permute.xlu1 %4467 }
0x1a36   : > { %5696 = vmatmul.msk.f32.vlgmr.msrb.gmra.mxu3 %vm624_vm1, %v4468_v51 }
0x1a3d   : > { %v4470_v15 = vpop.permute.xlu1 %4469 }
0x1a3e   : > { %5697 = vmatmul.msk.f32.gmra.mxu3 %vm624_vm1, %v4470_v15 }
0x1a45   : > { %v4511_v47 = vpop.permute.xlu1 %4510 }
0x1a4d   : > { %v4507_v35 = vpop.permute.xlu1 %4506 }
0x1a55   : > { %v4509_v57 = vpop.permute.xlu1 %4508 }
0x1a6c   : > { %v7690_v24 = vpop.f32.mrf.mxu3 }
0x1a71   : > { %v4337_v30 = vpop.xlane.xlu2 %4336 }
0x1a74   : > { %v7696_v4 = vpop.f32.mrf.mxu3 }
0x1a84   : > { %v4134_v49 = vpop.f32.mrf.mxu1 }
0x1a85   : > { %5672 = vmatmul.msk.f32.gmra.mxu2 %vm624_vm1, %v4134_v49 }
0x1a8c   : > { %v4137_v25 = vpop.f32.mrf.mxu1 }
0x1a8d   : > { %5673 = vmatmul.msk.f32.gmra.mxu2 %vm624_vm1, %v4137_v25  ;;  %v4334_v18 = vpop.xlane.xlu0 %4333 }
0x1a8e   : > { %6111 = vrcp.f32 %v4334_v18 }
0x1a8f   : > { %6113 = vrcp.f32 %v4337_v30 }
0x1a94   : > { %v6112_v26 = vpop.eup %6111  ;;  %v4294_v7 = vpop.f32.mrf.mxu1 }
0x1a95   : > { %v4348_v50 = vmul.f32 %v6112_v26, %v6110_v29  ;;  %v4302_v39 = vmul.f32 0.25, %v4294_v7  ;;  %v6114_v52 = vpop.eup %6113 }
0x1a96   : > { %v4349_v0 = vmul.f32 %v6114_v52, %v6104_v5 }
0x1a97   : > { %v4306_v37 = vadd.f32 %v7591_v14, %v4302_v39  ;;  %5686 = vmatmul.msk.f32.vlgmr.msrb.gmra.mxu0 %vm624_vm1, %v4348_v50 }
0x1a99   : > { %v4314_v21 = vsel %vm624_vm1, %v4306_v37, -inf }
0x1a9a   : > { %4315 = vmax.xlane.f32.xlu2 %v4314_v21 }
0x1a9f   : > { %5687 = vmatmul.msk.f32.gmra.mxu0 %vm624_vm1, %v4349_v0 }
0x1aa0   : > { %v4513_v56 = vpop.permute.xlu0 %4512 }
0x1aa1   : > { %5698 = vmatpush.xpose.msk.msra.mxu0 %vm624_vm1, %v4513_v56 }
0x1aa5   : > { %5699 = vmatpush.xpose.msk.msra.mxu0 %vm624_vm1, %v4511_v47 }
0x1aa8   : > { %5700 = vmatmul.msk.f32.vlgmr.msra.gmra.mxu0 %vm624_vm1, %v4507_v35 }
0x1aab   : > { %v4297_v13 = vpop.f32.mrf.mxu1 }
0x1aac   : > { %v4303_v28 = vmul.f32 0.25, %v4297_v13 }
0x1aae   : > { %v4307_v8 = vadd.f32 %v7591_v14, %v4303_v28 }
0x1ab0   : > { %5701 = vmatmul.msk.f32.gmra.mxu0 %vm624_vm1, %v4509_v57  ;;  %v4317_v6 = vsel %vm624_vm1, %v4307_v8, -inf }
0x1ab1   : > { %4318 = vmax.xlane.f32.xlu0 %v4317_v6 }
0x1ab9   : > { %v4500_v2 = vpop.f32.mrf.mxu3 }
0x1aba   : > { %v4545_v54 = vmul.f32 0.25, %v4500_v2 }
0x1abc   : > { %v4549_v27 = vadd.f32 %v7554_v17, %v4545_v54 }
0x1abe   : > { %v4553_v55 = vsel %vm624_vm1, %v4549_v27, -inf }
0x1abf   : > { %4554 = vmax.xlane.f32.xlu1 %v4553_v55 }
0x1ac1   : > { %v4503_v1 = vpop.f32.mrf.mxu3 }
0x1ac2   : > { %v4546_v62 = vmul.f32 0.25, %v4503_v1 }
0x1ac4   : > { %v4550_v5 = vadd.f32 %v7554_v17, %v4546_v62 }
0x1ac6   : > { %v4556_v43 = vsel %vm624_vm1, %v4550_v5, -inf }
0x1ac7   : > { %4557 = vmax.xlane.f32.xlu2 %v4556_v43 }
0x1b0d   : > { %v4316_v10 = vpop.xlane.xlu2 %4315 }
0x1b0e   : > { %v4322_v12 = vsub.f32 %v4306_v37, %v4316_v10 }
0x1b10   : > { %v4328_v36 = vmul.f32 1.442695, %v4322_v12 }
0x1b12   : > { %6115 = vpow2.f32 %v4328_v36 }
0x1b14   : > { %v4381_v19 = vpop.f32.mrf.mxu0 }
0x1b15   : > { %5690 = vmatmul.msk.f32.vlgmr.msra.gmra.mxu2 %vm624_vm1, %v4381_v19 }
0x1b18   : > { %v6116_v38 = vpop.eup %6115 }
0x1b19   : > { %v4338_v44 = vsel %vm624_vm1, %v6116_v38, 0.0 }
0x1b1a   : > { %4339 = vadd.xlane.f32.xlu2 %v4338_v44 }
0x1b1c   : > { %v4384_v9 = vpop.f32.mrf.mxu0 }
0x1b1d   : > { %5691 = vmatmul.msk.f32.gmra.mxu2 %vm624_vm1, %v4384_v9 }
0x1b24   : > { %v4319_v17 = vpop.xlane.xlu0 %4318 }
0x1b25   : > { %v4323_v11 = vsub.f32 %v4307_v8, %v4319_v17  ;;  %v4539_v29 = vpop.f32.mrf.mxu0 }
0x1b26   : > { %v4547_v22 = vmul.f32 0.25, %v4539_v29 }
0x1b27   : > { %v4330_v23 = vmul.f32 1.442695, %v4323_v11 }
0x1b28   : > { %v4551_v46 = vadd.f32 %v7591_v14, %v4547_v22 }
0x1b29   : > { %6117 = vpow2.f32 %v4330_v23  ;;  %v5611_v23 = vld [vmem:[%s6656_s11 + $0xb8] sm:$0xff] }
0x1b2a   : > { %v4559_v48 = vsel %vm624_vm1, %v4551_v46, -inf  ;;  %4693 = vmatpush.msrb.mxu0 %v5611_v23 }
0x1b2b   : > { %4560 = vmax.xlane.f32.xlu2 %v4559_v48  ;;  %v5610_v48 = vld [vmem:[%s6656_s11 + $0xb0] sm:$0xff] }
0x1b2c   : > { %4694 = vmatpush.msrb.mxu0 %v5610_v48 }
0x1b2d   : > { %v4542_v33 = vpop.f32.mrf.mxu0 }
0x1b2e   : > { %v4548_v51 = vmul.f32 0.25, %v4542_v33 }
0x1b2f   : > { %v6118_v15 = vpop.eup %6117 }
0x1b30   : > { %v4552_v49 = vadd.f32 %v7591_v14, %v4548_v51  ;;  %v4341_v25 = vsel %vm624_vm1, %v6118_v15, 0.0 }
0x1b31   : > { %4342 = vadd.xlane.f32.xlu0 %v4341_v25 }
0x1b32   : > { %v4555_v18 = vpop.xlane.xlu1 %4554  ;;  %v4562_v30 = vsel %vm624_vm1, %v4552_v49, -inf }
0x1b33   : > { %v4565_v26 = vsub.f32 %v4549_v27, %v4555_v18  ;;  %4563 = vmax.xlane.f32.xlu2 %v4562_v30 }
0x1b35   : > { %v4569_v7 = vmul.f32 1.442695, %v4565_v26 }
0x1b37   : > { %6119 = vpow2.f32 %v4569_v7 }
0x1b3a   : > { %v4558_v50 = vpop.xlane.xlu2 %4557 }
0x1b3b   : > { %v4566_v39 = vsub.f32 %v4550_v5, %v4558_v50  ;;  %v4169_v50 = vpop.f32.mrf.mxu2 }
0x1b3d   : > { %v6120_v37 = vpop.eup %6119  ;;  %v4571_v21 = vmul.f32 1.442695, %v4566_v39 }
0x1b3e   : > { %v4577_v52 = vsel %vm624_vm1, %v6120_v37, 0.0 }
0x1b3f   : > { %6121 = vpow2.f32 %v4571_v21  ;;  %4578 = vadd.xlane.f32.xlu1 %v4577_v52 }
0x1b43   : > { %v4172_v39 = vpop.f32.mrf.mxu2 }
0x1b45   : > { %v6122_v47 = vpop.eup %6121  ;;  %5886 = vrot.lane.b32.xlu0 %v7519_v45, %s7965_s24 }
0x1b46   : > { %v4580_v14 = vsel %vm624_vm1, %v6122_v47, 0.0 }
0x1b47   : > { %4581 = vadd.xlane.f32.xlu1 %v4580_v14 }
0x1b4b   : > { %5881 = vrot.lane.b32.xlu2 %v7533_v53, %s6314_s26  ;;  %s6248_s26 = sshra.s32 %s5195_s9, 4  ;;  %s6249_s26 = int_to_ptr.hbm [resolvable:$true] %s6248_s26 }
0x1b4c   : > { %s6250_s11 = scalar_lea.hbm %s6249_s26, 32  ;;  %p6255_p3 = scmp.lt.s32.totalorder %s6249_s26, %s7945_s8 }
0x1b4d   : > { %p6251_p6 = scmp.ne.s32.totalorder %s6249_s26, %s6250_s11  ;;  %p6256_p4 = scmp.lt.s32.totalorder %s6254_s15, %s6250_s11 }
0x1b4f   : > { %p6252_p1 = pnand %p6251_p6, %p6412_p11  ;;  %p6257_p5 = por %p6256_p4, %p6255_p3 }
0x1b51   : > { %p6253_p2 = pneg %p6252_p1 }
0x1b53   : > { %p6258_p7 = pnand %p6257_p5, %p6253_p2 }
0x1b60   : > { %5891 = vrot.lane.b32.xlu1 %v7533_v53, %s7965_s24 }
0x1b8d   : > { %v4340_v0 = vpop.xlane.xlu2 %4339 }
0x1b9e   : > { %v4561_v56 = vpop.xlane.xlu2 %4560 }
0x1b9f   : > { %v4567_v35 = vsub.f32 %v4551_v46, %v4561_v56 }
0x1ba1   : > { %v4573_v13 = vmul.f32 1.442695, %v4567_v35  ;;  %v4712_v35 = vperm.slane %v7511_v63, 1 }
0x1ba3   : > { %6123 = vpow2.f32 %v4573_v13 }
0x1ba4   : > { %6125 = vrcp.f32 %v4340_v0  ;;  %v4343_v2 = vpop.xlane.xlu0 %4342  ;;  %v4211_v0 = vadd.f32 %v7680_v31, %v4169_v50  ;;  %v5617_v50 = vld [vmem:[%s6476_s25 + $0xa8] sm:$0xff] }
0x1ba6   : > { %v4564_v28 = vpop.xlane.xlu2 %4563 }
0x1ba7   : > { %v4568_v8 = vsub.f32 %v4552_v49, %v4564_v28 }
0x1ba9   : > { %v6124_v57 = vpop.eup %6123  ;;  %v4575_v6 = vmul.f32 1.442695, %v4568_v8 }
0x1baa   : > { %v4583_v45 = vsel %vm624_vm1, %v6124_v57, 0.0  ;;  %v6126_v27 = vpop.eup %6125 }
0x1bab   : > { %6127 = vpow2.f32 %v4575_v6  ;;  %4584 = vadd.xlane.f32.xlu2 %v4583_v45  ;;  %v4350_v62 = vmul.f32 %v6126_v27, %v6116_v38  ;;  %v4214_v6 = vadd.f32 %v7685_v61, %v4172_v39 }
0x1bac   : > { %6129 = vrcp.f32 %v4343_v2 }
0x1bae   : > { %v5882_v54 = vpop.permute.xlu2 %5881 }
0x1baf   : > { %v5883_v55 = vunpack.i.l.bf16 %v5882_v54  ;;  %v5884_v53 = vunpack.i.h.bf16 %v5882_v54 }
0x1bb1   : > { %v6128_v1 = vpop.eup %6127  ;;  %4413 = vmatpush.msrb.mxu1 %v5883_v55 }
0x1bb2   : > { %v4586_v5 = vsel %vm624_vm1, %v6128_v1, 0.0  ;;  %v4579_v43 = vpop.xlane.xlu1 %4578  ;;  %v6130_v42 = vpop.eup %6129 }
0x1bb3   : > { %4587 = vadd.xlane.f32.xlu0 %v4586_v5  ;;  %4414 = vmatpush.msrb.mxu1 %v5884_v53  ;;  %6131 = vrcp.f32 %v4579_v43  ;;  %v4351_v12 = vmul.f32 %v6130_v42, %v6118_v15 }
0x1bb4   : > { %5688 = vmatmul.msk.f32.vlgmr.msrb.gmra.mxu1 %vm624_vm1, %v4350_v62 }
0x1bb7   : > { %v5887_v40 = vpop.permute.xlu0 %5886 }
0x1bb8   : > { %v5888_v10 = vunpack.i.l.bf16 %v5887_v40  ;;  %v5889_v36 = vunpack.i.h.bf16 %v5887_v40 }
0x1bb9   : > { %v6132_v38 = vpop.eup %6131 }
0x1bba   : > { %4623 = vmatpush.msra.mxu1 %v5888_v10  ;;  %v4582_v19 = vpop.xlane.xlu1 %4581  ;;  %v4593_v44 = vmul.f32 %v6132_v38, %v6120_v37  ;;  %v4175_v37 = vpop.f32.mrf.mxu2 }
0x1bbb   : > { %6133 = vrcp.f32 %v4582_v19  ;;  %v4217_v61 = vadd.f32 %v7690_v24, %v4175_v37  ;;  %v5616_v37 = vld [vmem:[%s6476_s25 + $0xa0] sm:$0xff] }
0x1bbc   : > { %5689 = vmatmul.msk.f32.gmra.mxu1 %vm624_vm1, %v4351_v12 }
0x1bbd   : > { %4624 = vmatpush.msra.mxu1 %v5889_v36 }
0x1bc1   : > { %v6134_v9 = vpop.eup %6133 }
0x1bc2   : > { %v4594_v17 = vmul.f32 %v6134_v9, %v6122_v47  ;;  %v4178_v52 = vpop.f32.mrf.mxu2 }
0x1bc3   : > { %v4220_v12 = vadd.f32 %v7696_v4, %v4178_v52 }
0x1bc4   : > { %5702 = vmatmul.msk.f32.vlgmr.msra.gmra.mxu1 %vm624_vm1, %v4593_v44 }
0x1bca   : > { %v4451_v14 = vpop.f32.mrf.mxu2 }
0x1bcb   : > { %v4463_v56 = vadd.f32 %v4451_v14, %v4211_v0  ;;  %v5614_v0 = vld [vmem:[%s6476_s25 + $0x90] sm:$0xff] }
0x1bcc   : > { %5703 = vmatmul.msk.f32.gmra.mxu1 %vm624_vm1, %v4594_v17 }
0x1bd2   : > { %v5892_v11 = vpop.permute.xlu1 %5891 }
0x1bd3   : > { %v5893_v29 = vunpack.i.l.bf16 %v5892_v11  ;;  %v5894_v22 = vunpack.i.h.bf16 %v5892_v11 }
0x1bd5   : > { %4658 = vmatpush.msra.mxu3 %v5893_v29 }
0x1bd7   : > { %4659 = vmatpush.msra.mxu3 %v5894_v22 }
0x1c1e   : > { %v4585_v46 = vpop.xlane.xlu2 %4584 }
0x1c1f   : > { %6135 = vrcp.f32 %v4585_v46 }
0x1c25   : > { %v6136_v33 = vpop.eup %6135 }
0x1c26   : > { %v4595_v51 = vmul.f32 %v6136_v33, %v6124_v57  ;;  %v4588_v15 = vpop.xlane.xlu0 %4587  ;;  %v4454_v57 = vpop.f32.mrf.mxu2 }
0x1c27   : > { %6137 = vrcp.f32 %v4588_v15  ;;  %v4464_v2 = vadd.f32 %v4454_v57, %v4214_v6 }
0x1c28   : > { %5704 = vmatmul.msk.f32.vlgmr.msra.gmra.mxu3 %vm624_vm1, %v4595_v51 }
0x1c2d   : > { %v6138_v49 = vpop.eup %6137 }
0x1c2e   : > { %v4596_v25 = vmul.f32 %v6138_v49, %v6128_v1 }
0x1c30   : > { %5705 = vmatmul.msk.f32.gmra.mxu3 %vm624_vm1, %v4596_v25 }
0x1c31   : > { %v4416_v18 = vpop.f32.mrf.mxu1 }
0x1c32   : > { %5692 = vmatmul.msk.f32.gmra.mxu2 %vm624_vm1, %v4416_v18  ;;  %v5619_v18 = vld [vmem:[%s6476_s25 + $0xb8] sm:$0xff] }
0x1c33   : > { %4847 = vmatpush.msrb.mxu1 %v5619_v18 }
0x1c39   : > { %v4419_v30 = vpop.f32.mrf.mxu1 }
0x1c3a   : > { %5693 = vmatmul.msk.f32.gmra.mxu2 %vm624_vm1, %v4419_v30 }
0x1c41   : > { %v4626_v26 = vpop.f32.mrf.mxu1 }
0x1c42   : > { %5706 = vmatmul.msk.f32.vlgmr.msrb.gmra.mxu0 %vm624_vm1, %v4626_v26  ;;  %v5618_v26 = vld [vmem:[%s6476_s25 + $0xb0] sm:$0xff] }
0x1c43   : > { %4848 = vmatpush.msrb.mxu1 %v5618_v26 }
0x1c45   : > { %4849 = vmatpush.msrb.mxu1 %v5617_v50 }
0x1c47   : > { %4850 = vmatpush.msrb.mxu1 %v5616_v37 }
0x1c49   : > { %v4629_v7 = vpop.f32.mrf.mxu1 }
0x1c4a   : > { %5707 = vmatmul.msk.f32.gmra.mxu0 %vm624_vm1, %v4629_v7 }
0x1cab   : > { %v4661_v21 = vpop.f32.mrf.mxu3 }
0x1cac   : > { %5708 = vmatmul.msk.f32.gmra.mxu0 %vm624_vm1, %v4661_v21 }
0x1cb3   : > { %v4664_v47 = vpop.f32.mrf.mxu3 }
0x1cb4   : > { %5709 = vmatmul.msk.f32.gmra.mxu0 %vm624_vm1, %v4664_v47  ;;  %v5615_v47 = vld [vmem:[%s6476_s25 + $0x98] sm:$0xff] }
0x1cb5   : > { %v4457_v5 = vpop.f32.mrf.mxu2  ;;  %4851 = vmatpush.msrb.mxu1 %v5615_v47 }
0x1cb6   : > { %v4465_v43 = vadd.f32 %v4457_v5, %v4217_v61  ;;  %v7784_v61 = vld [vmem:[%s6484_s17 + $0x20] sm:$0xff] }
0x1cb7   : > { %4852 = vmatpush.msrb.mxu1 %v5614_v0 }
0x1cbd   : > { %v4460_v10 = vpop.f32.mrf.mxu2 }
0x1cbe   : > { %v4466_v19 = vadd.f32 %v4460_v10, %v4220_v12 }
0x1cbf   : > { %v4696_v13 = vpop.f32.mrf.mxu0 }
0x1cc0   : > { %v4708_v28 = vadd.f32 %v4696_v13, %v4463_v56 }
0x1cc2   : > { %v4713_v8 = vadd.f32 %v4712_v35, %v4708_v28  ;;  %v5612_v28 = vld [vmem:[%s6476_s25 + $0x80] sm:$0xff] }
0x1cc4   : > { %v4717_v45 = vmul.f32 %v4713_v8, %v6824_v32 }
0x1cc6   : > { %v4721_v54 = vadd.f32 %v4717_v45, %v7481_v16 }
0x1cc7   : > { %v4699_v27 = vpop.f32.mrf.mxu0 }
0x1cc8   : > { %v4709_v55 = vadd.f32 %v4699_v27, %v4464_v2  ;;  %v4725_v1 = vsel %vm547_vm0, %v4721_v54, 0.0 }
0x1cc9   : > { %4726 = vadd.xlane.f32.xlu1 %v4725_v1 }
0x1cca   : > { %v4714_v31 = vadd.f32 %v4712_v35, %v4709_v55 }
0x1ccc   : > { %v4718_v53 = vmul.f32 %v4714_v31, %v6831_v34 }
0x1cce   : > { %v4722_v63 = vadd.f32 %v4718_v53, %v7488_v20 }
0x1cd0   : > { %v4728_v62 = vsel %vm547_vm0, %v4722_v63, 0.0 }
0x1cd1   : > { %4729 = vadd.xlane.f32.xlu2 %v4728_v62 }
0x1d29   : > { %v4702_v42 = vpop.f32.mrf.mxu0 }
0x1d2a   : > { %v4710_v40 = vadd.f32 %v4702_v42, %v4465_v43  ;;  %v4813_v43 = vperm.slane %v7784_v61, 2 }
0x1d2c   : > { %v4715_v16 = vadd.f32 %v4712_v35, %v4710_v40 }
0x1d2e   : > { %v4719_v36 = vmul.f32 %v4715_v16, %v6839_v59  ;;  %v4818_v16 = vperm.slane %v7784_v61, 3 }
0x1d30   : > { %v4723_v38 = vadd.f32 %v4719_v36, %v7497_v41 }
0x1d31   : > { %v4705_v44 = vpop.f32.mrf.mxu0 }
0x1d32   : > { %v4711_v20 = vadd.f32 %v4705_v44, %v4466_v19  ;;  %v4731_v9 = vsel %vm547_vm0, %v4723_v38, 0.0 }
0x1d33   : > { %4732 = vadd.xlane.f32.xlu0 %v4731_v9 }
0x1d34   : > { %v4716_v17 = vadd.f32 %v4712_v35, %v4711_v20  ;;  %v5613_v35 = vld [vmem:[%s6476_s25 + $0x88] sm:$0xff]  ;;  %s5369_s25 = sshll.u32 %s6472_s21, 5 }
0x1d35   : > { %4853 = vmatpush.msrb.mxu1 %v5613_v35  ;;  %s7889_s17 = scalar_lea.vmem [#allocation7], %s5369_s25 }
0x1d36   : > { %v4720_v24 = vmul.f32 %v4716_v17, %v6841_v60  ;;  %s5192_s10 = sshll.u32 %s7889_s17, 4  ;;  %s5193_s10 = int_to_ptr.vmem [resolvable:$true] %s5192_s10 }
0x1d37   : > { %4854 = vmatpush.msrb.mxu1 %v5612_v28  ;;  %v5635_v28 = vld [vmem:[%s6913_s13 + $0x178] sm:$0xff] }
0x1d38   : > { %v4724_v11 = vadd.f32 %v4720_v24, %v7504_v3  ;;  %5044 = vmatpush.msrb.mxu2 %v5635_v28 }
0x1d3a   : > { %v4734_v29 = vsel %vm547_vm0, %v4724_v11, 0.0 }
0x1d3b   : > { %4735 = vadd.xlane.f32.xlu2 %v4734_v29 }
0x1d3c   : > { %v4727_v4 = vpop.xlane.xlu1 %4726 }
0x1d3d   : > { %v4737_v22 = vmul.f32 %v4727_v4, %v6837_v58 }
0x1d3f   : > { %v4741_v23 = vsub.f32 %v4721_v54, %v4737_v22 }
0x1d41   : > { %v4745_v41 = vmul.f32 %v4741_v23, %v4741_v23 }
0x1d43   : > { %v4749_v46 = vsel %vm547_vm0, %v4745_v41, 0.0 }
0x1d44   : > { %v4730_v48 = vpop.xlane.xlu2 %4729  ;;  %4750 = vadd.xlane.f32.xlu0 %v4749_v46 }
0x1d45   : > { %v4738_v33 = vmul.f32 %v4730_v48, %v6837_v58 }
0x1d47   : > { %v7756_v51 = vsub.f32 %v4722_v63, %v4738_v33 }
0x1d49   : > { %v4746_v3 = vmul.f32 %v7756_v51, %v7756_v51 }
0x1d4b   : > { %v4752_v15 = vsel %vm547_vm0, %v4746_v3, 0.0 }
0x1d4c   : > { %4753 = vadd.xlane.f32.xlu2 %v4752_v15 }
0x1da6   : > { %v4733_v49 = vpop.xlane.xlu0 %4732 }
0x1da7   : > { %v4739_v25 = vmul.f32 %v4733_v49, %v6837_v58 }
0x1da9   : > { %v7763_v30 = vsub.f32 %v4723_v38, %v4739_v25 }
0x1dab   : > { %v4747_v7 = vmul.f32 %v7763_v30, %v7763_v30 }
0x1dad   : > { %v4755_v39 = vsel %vm547_vm0, %v4747_v7, 0.0 }
0x1dae   : > { %4756 = vadd.xlane.f32.xlu0 %v4755_v39  ;;  %v4736_v21 = vpop.xlane.xlu2 %4735 }
0x1daf   : > { %v4740_v52 = vmul.f32 %v4736_v21, %v6837_v58 }
0x1db1   : > { %v7773_v14 = vsub.f32 %v4724_v11, %v4740_v52 }
0x1db3   : > { %v4748_v56 = vmul.f32 %v7773_v14, %v7773_v14 }
0x1db5   : > { %v4758_v13 = vsel %vm547_vm0, %v4748_v56, 0.0 }
0x1db6   : > { %4759 = vadd.xlane.f32.xlu2 %v4758_v13 }
0x1db7   : > { %v4751_v8 = vpop.xlane.xlu0 %4750 }
0x1db8   : > { %v4761_v57 = vmul.f32 %v4751_v8, %v6837_v58  ;;  %v5633_v8 = vld [vmem:[%s6913_s13 + $0x168] sm:$0xff] }
0x1dba   : > { %v4765_v6 = vadd.f32 1e-05, %v4761_v57  ;;  %v5631_v57 = vld [vmem:[%s6913_s13 + $0x158] sm:$0xff] }
0x1dbc   : > { %6139 = vrsqrt.f32 %v4765_v6  ;;  %vm4775_vm13 = vweird.f32 %v4765_v6 }
0x1dbf   : > { %v4754_v45 = vpop.xlane.xlu2 %4753 }
0x1dc0   : > { %v4762_v2 = vmul.f32 %v4754_v45, %v6837_v58 }
0x1dc2   : > { %v6140_v54 = vpop.eup %6139  ;;  %v4766_v27 = vadd.f32 1e-05, %v4762_v2  ;;  %v5629_v2 = vld [vmem:[%s6913_s13 + $0x148] sm:$0xff] }
0x1dc3   : > { %v4770_v55 = vmul.f32 %v6140_v54, %v4765_v6  ;;  %vm4776_vm1 = vweird.f32 %v6140_v54 }
0x1dc4   : > { %6141 = vrsqrt.f32 %v4766_v27  ;;  %vm4777_vm14 = vmor %vm4775_vm13, %vm4776_vm1  ;;  %vm4785_vm2 = vweird.f32 %v4766_v27 }
0x1dc5   : > { %v4771_v1 = vmul.f32 %v6140_v54, %v4770_v55 }
0x1dc7   : > { %v4772_v31 = vmul.f32 0.5, %v4771_v1  ;;  %v5627_v1 = vld [vmem:[%s6913_s13 + $0x138] sm:$0xff] }
0x1dc9   : > { %v4773_v53 = vsub.f32 1.5, %v4772_v31 }
0x1dca   : > { %v6142_v63 = vpop.eup %6141 }
0x1dcb   : > { %v4774_v62 = vmul.f32 %v6140_v54, %v4773_v53  ;;  %v4780_v5 = vmul.f32 %v6142_v63, %v4766_v27  ;;  %vm4786_vm15 = vweird.f32 %v6142_v63  ;;  %v5628_v27 = vld [vmem:[%s6913_s13 + $0x140] sm:$0xff] }
0x1dcc   : > { %vm4787_vm3 = vmor %vm4785_vm2, %vm4786_vm15 }
0x1dcd   : > { %v4778_v42 = vsel %vm4777_vm14, %v6140_v54, %v4774_v62  ;;  %v4781_v40 = vmul.f32 %v6142_v63, %v4780_v5  ;;  %v5626_v62 = vld [vmem:[%s6913_s13 + $0x130] sm:$0xff] }
0x1dce   : > { %v4809_v10 = vmul.f32 %v4778_v42, %v4741_v23 }
0x1dcf   : > { %v4782_v12 = vmul.f32 0.5, %v4781_v40  ;;  %v5625_v40 = vld [vmem:[%s6913_s13 + $0x128] sm:$0xff] }
0x1dd0   : > { %v4814_v36 = vmul.f32 %v4813_v43, %v4809_v10 }
0x1dd1   : > { %v4783_v19 = vsub.f32 1.5, %v4782_v12 }
0x1dd2   : > { %v4819_v38 = vadd.f32 %v4818_v16, %v4814_v36  ;;  %v5624_v36 = vld [vmem:[%s6913_s13 + $0x120] sm:$0xff] }
0x1dd3   : > { %v4784_v44 = vmul.f32 %v6142_v63, %v4783_v19 }
0x1dd4   : > { %v7789_v20 = vmul.f32 %v4819_v38, %v6824_v32 }
0x1dd5   : > { %v4788_v9 = vsel %vm4787_vm3, %v6142_v63, %v4784_v44 }
0x1dd6   : > { %v4810_v17 = vmul.f32 %v4788_v9, %v7756_v51  ;;  %5710 = vmatmul.msk.f32.vlgmr.msrb.gmra.mxu1 %vm547_vm0, %v7789_v20  ;;  %v5623_v9 = vld [vmem:[%s6913_s13 + $0x118] sm:$0xff] }
0x1dd8   : > { %v4815_v24 = vmul.f32 %v4813_v43, %v4810_v17 }
0x1dda   : > { %v4820_v11 = vadd.f32 %v4818_v16, %v4815_v24 }
0x1ddc   : > { %v7795_v29 = vmul.f32 %v4820_v11, %v6831_v34 }
0x1dde   : > { %5711 = vmatmul.msk.f32.gmra.mxu1 %vm547_vm0, %v7795_v29 }
0x1e21   : > { %v4757_v4 = vpop.xlane.xlu0 %4756 }
0x1e22   : > { %v4763_v22 = vmul.f32 %v4757_v4, %v6837_v58  ;;  %v5622_v4 = vld [vmem:[%s6913_s13 + $0x110] sm:$0xff] }
0x1e24   : > { %v4767_v32 = vadd.f32 1e-05, %v4763_v22 }
0x1e26   : > { %6143 = vrsqrt.f32 %v4767_v32  ;;  %vm4795_vm5 = vweird.f32 %v4767_v32 }
0x1e29   : > { %v4760_v23 = vpop.xlane.xlu2 %4759 }
0x1e2a   : > { %v4764_v41 = vmul.f32 %v4760_v23, %v6837_v58 }
0x1e2c   : > { %v6144_v46 = vpop.eup %6143  ;;  %v4768_v48 = vadd.f32 1e-05, %v4764_v41 }
0x1e2d   : > { %v4790_v33 = vmul.f32 %v6144_v46, %v4767_v32  ;;  %vm4796_vm4 = vweird.f32 %v6144_v46 }
0x1e2e   : > { %6145 = vrsqrt.f32 %v4768_v48  ;;  %vm4797_vm6 = vmor %vm4795_vm5, %vm4796_vm4  ;;  %vm4805_vm8 = vweird.f32 %v4768_v48 }
0x1e2f   : > { %v4791_v51 = vmul.f32 %v6144_v46, %v4790_v33 }
0x1e31   : > { %v4792_v3 = vmul.f32 0.5, %v4791_v51 }
0x1e33   : > { %v4793_v15 = vsub.f32 1.5, %v4792_v3  ;;  %v5620_v3 = vld [vmem:[%s6913_s13 + $0x100] sm:$0xff] }
0x1e34   : > { %v6146_v34 = vpop.eup %6145 }
0x1e35   : > { %v4794_v49 = vmul.f32 %v6144_v46, %v4793_v15  ;;  %v4800_v25 = vmul.f32 %v6146_v34, %v4768_v48  ;;  %vm4806_vm7 = vweird.f32 %v6146_v34 }
0x1e36   : > { %vm4807_vm9 = vmor %vm4805_vm8, %vm4806_vm7 }
0x1e37   : > { %v4798_v18 = vsel %vm4797_vm6, %v6144_v46, %v4794_v49  ;;  %v4801_v26 = vmul.f32 %v6146_v34, %v4800_v25  ;;  %v5621_v46 = vld [vmem:[%s6913_s13 + $0x108] sm:$0xff] }
0x1e38   : > { %v4811_v7 = vmul.f32 %v4798_v18, %v7763_v30 }
0x1e39   : > { %v4802_v50 = vmul.f32 0.5, %v4801_v26 }
0x1e3a   : > { %v4816_v39 = vmul.f32 %v4813_v43, %v4811_v7 }
0x1e3b   : > { %v4803_v37 = vsub.f32 1.5, %v4802_v50 }
0x1e3c   : > { %v4821_v21 = vadd.f32 %v4818_v16, %v4816_v39 }
0x1e3d   : > { %v4804_v52 = vmul.f32 %v6146_v34, %v4803_v37 }
0x1e3e   : > { %v7803_v47 = vmul.f32 %v4821_v21, %v6839_v59  ;;  %v5634_v59 = vld [vmem:[%s6913_s13 + $0x170] sm:$0xff] }
0x1e3f   : > { %v4808_v0 = vsel %vm4807_vm9, %v6146_v34, %v4804_v52  ;;  %5045 = vmatpush.msrb.mxu2 %v5634_v59 }
0x1e40   : > { %v4812_v56 = vmul.f32 %v4808_v0, %v7773_v14  ;;  %5712 = vmatmul.msk.f32.gmra.mxu1 %vm547_vm0, %v7803_v47  ;;  %v5632_v14 = vld [vmem:[%s6913_s13 + $0x160] sm:$0xff] }
0x1e41   : > { %5046 = vmatpush.msrb.mxu2 %v5633_v8 }
0x1e42   : > { %v4817_v30 = vmul.f32 %v4813_v43, %v4812_v56 }
0x1e43   : > { %5047 = vmatpush.msrb.mxu2 %v5632_v14 }
0x1e44   : > { %v4822_v35 = vadd.f32 %v4818_v16, %v4817_v30 }
0x1e45   : > { %5048 = vmatpush.msrb.mxu2 %v5631_v57 }
0x1e46   : > { %v7809_v13 = vmul.f32 %v4822_v35, %v6841_v60  ;;  %v5630_v60 = vld [vmem:[%s6913_s13 + $0x150] sm:$0xff] }
0x1e47   : > { %5049 = vmatpush.msrb.mxu2 %v5630_v60 }
0x1e48   : > { %5713 = vmatmul.msk.f32.gmra.mxu1 %vm547_vm0, %v7809_v13 }
0x1e49   : > { %5050 = vmatpush.msrb.mxu2 %v5629_v2 }
0x1e4b   : > { %5051 = vmatpush.msrb.mxu2 %v5628_v27 }
0x1e4d   : > { %5052 = vmatpush.msrb.mxu2 %v5627_v1 }
0x1e4f   : > { %5053 = vmatpush.msrb.mxu2 %v5626_v62 }
0x1e51   : > { %5054 = vmatpush.msrb.mxu2 %v5625_v40 }
0x1e53   : > { %v7818_v6 = vpop.f32.mrf.mxu1  ;;  %5055 = vmatpush.msrb.mxu2 %v5624_v36 }
0x1e54   : > { %v7822_v45 = vmul.f32 0.70710677, %v7818_v6 }
0x1e55   : > { %5056 = vmatpush.msrb.mxu2 %v5623_v9 }
0x1e56   : > { %v4876_v54 = vmul.f32 %v7822_v45, %v7822_v45 }
0x1e57   : > { %5057 = vmatpush.msrb.mxu2 %v5622_v4 }
0x1e58   : > { %v4877_v55 = vmin.f32 %v4876_v54, 16.0 }
0x1e59   : > { %5058 = vmatpush.msrb.mxu2 %v5621_v46 }
0x1e5a   : > { %v4878_v31 = vmul.f32 2.1237322e-06, %v4877_v55  ;;  %v4889_v53 = vmul.f32 3.8918573e-05, %v4877_v55 }
0x1e5b   : > { %v7829_v63 = vpop.f32.mrf.mxu1  ;;  %5059 = vmatpush.msrb.mxu2 %v5620_v3 }
0x1e5c   : > { %v4879_v5 = vadd.f32 0.00028619796, %v4878_v31  ;;  %v4890_v43 = vadd.f32 0.001143296, %v4889_v53  ;;  %v7833_v42 = vmul.f32 0.70710677, %v7829_v63 }
0x1e5e   : > { %v4880_v16 = vmul.f32 %v4879_v5, %v4877_v55  ;;  %v4891_v10 = vmul.f32 %v4890_v43, %v4877_v55  ;;  %v4916_v12 = vmul.f32 %v7833_v42, %v7833_v42 }
0x1e60   : > { %v4892_v19 = vadd.f32 0.014752088, %v4891_v10  ;;  %v4881_v38 = vadd.f32 0.0036580483, %v4880_v16  ;;  %v4917_v44 = vmin.f32 %v4916_v12, 16.0 }
0x1e62   : > { %v4893_v17 = vmul.f32 %v4892_v19, %v4877_v55  ;;  %v4918_v24 = vmul.f32 2.1237322e-06, %v4917_v44  ;;  %v4929_v11 = vmul.f32 3.8918573e-05, %v4917_v44  ;;  %v4882_v32 = vmul.f32 %v4881_v38, %v4877_v55 }
0x1e64   : > { %v4894_v22 = vadd.f32 0.112945676, %v4893_v17  ;;  %v4919_v23 = vadd.f32 0.00028619796, %v4918_v24  ;;  %v4930_v41 = vadd.f32 0.001143296, %v4929_v11 }
0x1e65   : > { %v4883_v34 = vadd.f32 0.05243302, %v4882_v32  ;;  %v4868_v24 = vmul.f32 0.5, %v7818_v6 }
0x1e66   : > { %v4895_v48 = vmul.f32 %v4894_v22, %v4877_v55  ;;  %v4920_v33 = vmul.f32 %v4919_v23, %v4917_v44  ;;  %v4931_v51 = vmul.f32 %v4930_v41, %v4917_v44 }
0x1e67   : > { %v4884_v50 = vmul.f32 %v4883_v34, %v4877_v55 }
0x1e68   : > { %v4896_v15 = vadd.f32 0.4994258, %v4895_v48  ;;  %v4932_v49 = vadd.f32 0.014752088, %v4931_v51  ;;  %v4921_v18 = vadd.f32 0.0036580483, %v4920_v33 }
0x1e69   : > { %v4885_v52 = vadd.f32 0.18741608, %v4884_v50  ;;  %v4869_v48 = vmul.f32 0.5, %v7829_v63 }
0x1e6a   : > { %v4897_v25 = vmul.f32 %v4896_v15, %v4877_v55  ;;  %v4933_v26 = vmul.f32 %v4932_v49, %v4917_v44  ;;  %v4922_v37 = vmul.f32 %v4921_v18, %v4917_v44 }
0x1e6b   : > { %v4886_v28 = vmul.f32 %v4885_v52, %v4877_v55 }
0x1e6c   : > { %v4898_v7 = vadd.f32 1.0, %v4897_v25  ;;  %v4934_v39 = vadd.f32 0.112945676, %v4933_v26  ;;  %v4923_v56 = vadd.f32 0.05243302, %v4922_v37 }
0x1e6d   : > { %v4887_v2 = vadd.f32 1.1283791, %v4886_v28 }
0x1e6e   : > { %6147 = vrcp.f32 %v4898_v7  ;;  %v4935_v21 = vmul.f32 %v4934_v39, %v4917_v44  ;;  %v4924_v14 = vmul.f32 %v4923_v56, %v4917_v44  ;;  %v4910_v60 = vand.u32 2147483648, %v4898_v7 }
0x1e6f   : > { %v4908_v27 = vand.u32 2147483647, %v4898_v7  ;;  %vm4904_vm11 = vweird.f32 %v4898_v7  ;;  %v4888_v5 = vmul.f32 %v4887_v2, %v7822_v45 }
0x1e70   : > { %v4936_v0 = vadd.f32 0.4994258, %v4935_v21  ;;  %v4925_v1 = vadd.f32 0.18741608, %v4924_v14  ;;  %v4911_v53 = vor.u32 1.1754944e-38, %v4910_v60 }
0x1e71   : > { %vm4909_vm1 = vcmp.eq.f32.partialorder %v4908_v27, 8.507059e+37 }
0x1e72   : > { %v4937_v30 = vmul.f32 %v4936_v0, %v4917_v44  ;;  %v4926_v40 = vmul.f32 %v4925_v1, %v4917_v44 }
0x1e74   : > { %v6148_v35 = vpop.eup %6147  ;;  %v4938_v8 = vadd.f32 1.0, %v4937_v30  ;;  %v4927_v38 = vadd.f32 1.1283791, %v4926_v40 }
0x1e75   : > { %v4900_v59 = vmul.f32 %v6148_v35, %v4898_v7  ;;  %vm4905_vm10 = vweird.f32 %v6148_v35 }
0x1e76   : > { %6149 = vrcp.f32 %v4938_v8  ;;  %vm4906_vm12 = vmor %vm4904_vm11, %vm4905_vm10  ;;  %v4950_v19 = vand.u32 2147483648, %v4938_v8  ;;  %v4948_v17 = vand.u32 2147483647, %v4938_v8  ;;  %vm4944_vm14 = vweird.f32 %v4938_v8 }
0x1e77   : > { %v4901_v57 = vsub.f32 1.0, %v4900_v59  ;;  %v4928_v32 = vmul.f32 %v4927_v38, %v7833_v42 }
0x1e78   : > { %v4951_v45 = vor.u32 1.1754944e-38, %v4950_v19  ;;  %vm4949_vm2 = vcmp.eq.f32.partialorder %v4948_v17, 8.507059e+37 }
0x1e79   : > { %v4902_v54 = vmul.f32 %v6148_v35, %v4901_v57 }
0x1e7b   : > { %v4903_v31 = vadd.f32 %v6148_v35, %v4902_v54 }
0x1e7c   : > { %v6150_v62 = vpop.eup %6149 }
0x1e7d   : > { %v4907_v43 = vsel %vm4906_vm12, %v6148_v35, %v4903_v31  ;;  %v4940_v16 = vmul.f32 %v6150_v62, %v4938_v8  ;;  %vm4945_vm13 = vweird.f32 %v6150_v62 }
0x1e7e   : > { %v4912_v55 = vsel %vm4909_vm1, %v4911_v53, %v4907_v43  ;;  %vm4946_vm15 = vmor %vm4944_vm14, %vm4945_vm13 }
0x1e7f   : > { %v4913_v10 = vmul.f32 %v4912_v55, %v4888_v5  ;;  %v4941_v12 = vsub.f32 1.0, %v4940_v16 }
0x1e81   : > { %v5714_v36 = vclamps-f32 %v4913_v10, 1.0  ;;  %v4942_v9 = vmul.f32 %v6150_v62, %v4941_v12 }
0x1e83   : > { %v5036_v11 = vadd.f32 1.0, %v5714_v36  ;;  %v4943_v4 = vadd.f32 %v6150_v62, %v4942_v9 }
0x1e85   : > { %v5040_v22 = vmul.f32 %v5036_v11, %v4868_v24  ;;  %v4947_v44 = vsel %vm4946_vm15, %v6150_v62, %v4943_v4 }
0x1e86   : > { %v4952_v23 = vsel %vm4949_vm2, %v4951_v45, %v4947_v44 }
0x1e87   : > { %5060 = vmatmul.f32.vlgmr.msrb.gmra.mxu2 %v5040_v22  ;;  %v4953_v41 = vmul.f32 %v4952_v23, %v4928_v32 }
0x1e89   : > { %v5715_v46 = vclamps-f32 %v4953_v41, 1.0 }
0x1e8b   : > { %v5037_v33 = vadd.f32 1.0, %v5715_v46 }
0x1e8d   : > { %v5041_v51 = vmul.f32 %v5037_v33, %v4869_v48 }
0x1e8f   : > { %5063 = vmatmul.f32.gmra.mxu2 %v5041_v51 }
0x1ebd   : > { %v7847_v6 = vpop.f32.mrf.mxu1 }
0x1ebe   : > { %v4874_v3 = vmul.f32 0.70710677, %v7847_v6 }
0x1ec0   : > { %v4956_v15 = vmul.f32 %v4874_v3, %v4874_v3 }
0x1ec2   : > { %v4957_v34 = vmin.f32 %v4956_v15, 16.0 }
0x1ec4   : > { %v4958_v49 = vmul.f32 2.1237322e-06, %v4957_v34  ;;  %v4969_v25 = vmul.f32 3.8918573e-05, %v4957_v34 }
0x1ec5   : > { %v7850_v42 = vpop.f32.mrf.mxu1 }
0x1ec6   : > { %v4959_v18 = vadd.f32 0.00028619796, %v4958_v49  ;;  %v4970_v26 = vadd.f32 0.001143296, %v4969_v25  ;;  %v7853_v7 = vmul.f32 0.70710677, %v7850_v42 }
0x1ec8   : > { %v4960_v50 = vmul.f32 %v4959_v18, %v4957_v34  ;;  %v4971_v63 = vmul.f32 %v4970_v26, %v4957_v34  ;;  %v4996_v39 = vmul.f32 %v7853_v7, %v7853_v7 }
0x1eca   : > { %v4972_v37 = vadd.f32 0.014752088, %v4971_v63  ;;  %v4961_v21 = vadd.f32 0.0036580483, %v4960_v50  ;;  %v4997_v52 = vmin.f32 %v4996_v39, 16.0 }
0x1ecc   : > { %v4973_v0 = vmul.f32 %v4972_v37, %v4957_v34  ;;  %v4998_v56 = vmul.f32 2.1237322e-06, %v4997_v52  ;;  %v5009_v30 = vmul.f32 3.8918573e-05, %v4997_v52  ;;  %v4962_v28 = vmul.f32 %v4961_v21, %v4957_v34 }
0x1ecd   : > { %v4870_v37 = vmul.f32 0.5, %v7847_v6 }
0x1ece   : > { %v4974_v35 = vadd.f32 0.112945676, %v4973_v0  ;;  %v4999_v59 = vadd.f32 0.00028619796, %v4998_v56  ;;  %v5010_v8 = vadd.f32 0.001143296, %v5009_v30 }
0x1ecf   : > { %v4963_v54 = vadd.f32 0.05243302, %v4962_v28 }
0x1ed0   : > { %v4975_v14 = vmul.f32 %v4974_v35, %v4957_v34  ;;  %v5000_v57 = vmul.f32 %v4999_v59, %v4997_v52  ;;  %v5011_v60 = vmul.f32 %v5010_v8, %v4997_v52  ;;  %v4871_v8 = vmul.f32 0.5, %v7850_v42 }
0x1ed1   : > { %v4964_v5 = vmul.f32 %v4963_v54, %v4957_v34 }
0x1ed2   : > { %v4976_v2 = vadd.f32 0.4994258, %v4975_v14  ;;  %v5012_v27 = vadd.f32 0.014752088, %v5011_v60  ;;  %v5001_v31 = vadd.f32 0.0036580483, %v5000_v57 }
0x1ed3   : > { %v4965_v16 = vadd.f32 0.18741608, %v4964_v5 }
0x1ed4   : > { %v4977_v1 = vmul.f32 %v4976_v2, %v4957_v34  ;;  %v5013_v53 = vmul.f32 %v5012_v27, %v4997_v52  ;;  %v5002_v55 = vmul.f32 %v5001_v31, %v4997_v52 }
0x1ed5   : > { %v4966_v38 = vmul.f32 %v4965_v16, %v4957_v34 }
0x1ed6   : > { %v4978_v62 = vadd.f32 1.0, %v4977_v1  ;;  %v5014_v43 = vadd.f32 0.112945676, %v5013_v53  ;;  %v5003_v12 = vadd.f32 0.05243302, %v5002_v55 }
0x1ed7   : > { %v4967_v22 = vadd.f32 1.1283791, %v4966_v38 }
0x1ed8   : > { %6151 = vrcp.f32 %v4978_v62  ;;  %v5015_v40 = vmul.f32 %v5014_v43, %v4997_v52  ;;  %v5004_v24 = vmul.f32 %v5003_v12, %v4997_v52  ;;  %v4990_v4 = vand.u32 2147483648, %v4978_v62 }
0x1ed9   : > { %v4988_v32 = vand.u32 2147483647, %v4978_v62  ;;  %vm4984_vm4 = vweird.f32 %v4978_v62  ;;  %v4968_v48 = vmul.f32 %v4967_v22, %v4874_v3 }
0x1eda   : > { %v5016_v10 = vadd.f32 0.4994258, %v5015_v40  ;;  %v5005_v44 = vadd.f32 0.18741608, %v5004_v24  ;;  %v4991_v41 = vor.u32 1.1754944e-38, %v4990_v4 }
0x1edb   : > { %vm4989_vm6 = vcmp.eq.f32.partialorder %v4988_v32, 8.507059e+37 }
0x1edc   : > { %v5017_v36 = vmul.f32 %v5016_v10, %v4997_v52  ;;  %v5006_v15 = vmul.f32 %v5005_v44, %v4997_v52 }
0x1ede   : > { %v6152_v19 = vpop.eup %6151  ;;  %v5018_v17 = vadd.f32 1.0, %v5017_v36  ;;  %v5007_v50 = vadd.f32 1.1283791, %v5006_v15 }
0x1edf   : > { %v4980_v9 = vmul.f32 %v6152_v19, %v4978_v62  ;;  %vm4985_vm3 = vweird.f32 %v6152_v19 }
0x1ee0   : > { %6153 = vrcp.f32 %v5018_v17  ;;  %vm4986_vm5 = vmor %vm4984_vm4, %vm4985_vm3  ;;  %v5030_v26 = vand.u32 2147483648, %v5018_v17  ;;  %v5028_v39 = vand.u32 2147483647, %v5018_v17  ;;  %vm5024_vm8 = vweird.f32 %v5018_v17 }
0x1ee1   : > { %v4981_v11 = vsub.f32 1.0, %v4980_v9  ;;  %v5008_v30 = vmul.f32 %v5007_v50, %v7853_v7 }
0x1ee2   : > { %v5031_v3 = vor.u32 1.1754944e-38, %v5030_v26  ;;  %vm5029_vm10 = vcmp.eq.f32.partialorder %v5028_v39, 8.507059e+37  ;;  %v5165_v26 = vperm.slane %v7784_v61, 4  ;;  %v5170_v39 = vperm.slane %v7784_v61, 5 }
0x1ee3   : > { %v4982_v45 = vmul.f32 %v6152_v19, %v4981_v11 }
0x1ee5   : > { %v4983_v23 = vadd.f32 %v6152_v19, %v4982_v45 }
0x1ee6   : > { %v6154_v46 = vpop.eup %6153 }
0x1ee7   : > { %v4987_v33 = vsel %vm4986_vm5, %v6152_v19, %v4983_v23  ;;  %v5020_v34 = vmul.f32 %v6154_v46, %v5018_v17  ;;  %vm5025_vm7 = vweird.f32 %v6154_v46 }
0x1ee8   : > { %v4992_v51 = vsel %vm4989_vm6, %v4991_v41, %v4987_v33  ;;  %vm5026_vm9 = vmor %vm5024_vm8, %vm5025_vm7 }
0x1ee9   : > { %v4993_v49 = vmul.f32 %v4992_v51, %v4968_v48  ;;  %v5021_v25 = vsub.f32 1.0, %v5020_v34 }
0x1eeb   : > { %v5716_v18 = vclamps-f32 %v4993_v49, 1.0  ;;  %v5022_v63 = vmul.f32 %v6154_v46, %v5021_v25 }
0x1eed   : > { %v5038_v21 = vadd.f32 1.0, %v5716_v18  ;;  %v5023_v0 = vadd.f32 %v6154_v46, %v5022_v63 }
0x1eef   : > { %v5042_v56 = vmul.f32 %v5038_v21, %v4870_v37  ;;  %v5027_v52 = vsel %vm5026_vm9, %v6154_v46, %v5023_v0 }
0x1ef0   : > { %v5032_v35 = vsel %vm5029_vm10, %v5031_v3, %v5027_v52 }
0x1ef1   : > { %5066 = vmatmul.f32.gmra.mxu2 %v5042_v56  ;;  %v5033_v28 = vmul.f32 %v5032_v35, %v5008_v30 }
0x1ef3   : > { %v5717_v59 = vclamps-f32 %v5033_v28, 1.0 }
0x1ef5   : > { %v5039_v14 = vadd.f32 1.0, %v5717_v59 }
0x1ef7   : > { %v5043_v57 = vmul.f32 %v5039_v14, %v4871_v8 }
0x1ef9   : > { %5069 = vmatmul.f32.gmra.mxu2 %v5043_v57 }
0x1f0a   : > { %v5061_v6 = vpop.f32.mrf.mxu2 }
0x1f0b   : > { %v5073_v60 = vadd.f32 %v5061_v6, %v7789_v20 }
0x1f0d   : > { %v5077_v2 = vsel %vm547_vm0, %v5073_v60, 0.0 }
0x1f0e   : > { %5078 = vadd.xlane.f32.xlu1 %v5077_v2 }
0x1f12   : > { %v5064_v54 = vpop.f32.mrf.mxu2 }
0x1f13   : > { %v5074_v7 = vadd.f32 %v5064_v54, %v7795_v29 }
0x1f15   : > { %v5080_v27 = vsel %vm547_vm0, %v5074_v7, 0.0 }
0x1f16   : > { %5081 = vadd.xlane.f32.xlu0 %v5080_v27 }
0x1f74   : > { %v5067_v1 = vpop.f32.mrf.mxu2 }
0x1f75   : > { %v5075_v31 = vadd.f32 %v5067_v1, %v7803_v47 }
0x1f77   : > { %v5083_v42 = vsel %vm547_vm0, %v5075_v31, 0.0 }
0x1f78   : > { %5084 = vadd.xlane.f32.xlu2 %v5083_v42 }
0x1f7c   : > { %v5070_v53 = vpop.f32.mrf.mxu2 }
0x1f7d   : > { %v5076_v62 = vadd.f32 %v5070_v53, %v7809_v13 }
0x1f7f   : > { %v5086_v20 = vsel %vm547_vm0, %v5076_v62, 0.0 }
0x1f80   : > { %5087 = vadd.xlane.f32.xlu1 %v5086_v20 }
0x1f81   : > { %v5079_v5 = vpop.xlane.xlu1 %5078 }
0x1f82   : > { %v5089_v43 = vmul.f32 %v5079_v5, %v6837_v58 }
0x1f84   : > { %v5093_v55 = vsub.f32 %v5073_v60, %v5089_v43 }
0x1f86   : > { %v5097_v29 = vmul.f32 %v5093_v55, %v5093_v55 }
0x1f88   : > { %v5101_v40 = vsel %vm547_vm0, %v5097_v29, 0.0 }
0x1f89   : > { %5102 = vadd.xlane.f32.xlu0 %v5101_v40  ;;  %v5082_v16 = vpop.xlane.xlu0 %5081 }
0x1f8a   : > { %v5090_v47 = vmul.f32 %v5082_v16, %v6837_v58 }
0x1f8c   : > { %v5094_v10 = vsub.f32 %v5074_v7, %v5090_v47 }
0x1f8e   : > { %v5098_v12 = vmul.f32 %v5094_v10, %v5094_v10 }
0x1f90   : > { %v5104_v36 = vsel %vm547_vm0, %v5098_v12, 0.0 }
0x1f91   : > { %5105 = vadd.xlane.f32.xlu2 %v5104_v36 }
0x1feb   : > { %v5085_v13 = vpop.xlane.xlu2 %5084 }
0x1fec   : > { %v5091_v19 = vmul.f32 %v5085_v13, %v6837_v58 }
0x1fee   : > { %v7873_v38 = vsub.f32 %v5075_v31, %v5091_v19 }
0x1ff0   : > { %v5099_v9 = vmul.f32 %v7873_v38, %v7873_v38 }
0x1ff2   : > { %v5107_v17 = vsel %vm547_vm0, %v5099_v9, 0.0 }
0x1ff3   : > { %5108 = vadd.xlane.f32.xlu1 %v5107_v17  ;;  %v5088_v24 = vpop.xlane.xlu1 %5087 }
0x1ff4   : > { %v5092_v11 = vmul.f32 %v5088_v24, %v6837_v58 }
0x1ff6   : > { %v7879_v4 = vsub.f32 %v5076_v62, %v5092_v11 }
0x1ff8   : > { %v5100_v22 = vmul.f32 %v7879_v4, %v7879_v4 }
0x1ffa   : > { %v5110_v45 = vsel %vm547_vm0, %v5100_v22, 0.0 }
0x1ffb   : > { %5111 = vadd.xlane.f32.xlu0 %v5110_v45 }
0x1ffc   : > { %v5103_v32 = vpop.xlane.xlu0 %5102 }
0x1ffd   : > { %v5113_v44 = vmul.f32 %v5103_v32, %v6837_v58 }
0x1fff   : > { %v5117_v23 = vadd.f32 1e-05, %v5113_v44 }
0x2001   : > { %6155 = vrsqrt.f32 %v5117_v23  ;;  %vm5127_vm12 = vweird.f32 %v5117_v23 }
0x2004   : > { %v5106_v41 = vpop.xlane.xlu2 %5105 }
0x2005   : > { %v5114_v46 = vmul.f32 %v5106_v41, %v6837_v58 }
0x2007   : > { %v6156_v48 = vpop.eup %6155  ;;  %v5118_v51 = vadd.f32 1e-05, %v5114_v46 }
0x2008   : > { %v5122_v33 = vmul.f32 %v6156_v48, %v5117_v23  ;;  %vm5128_vm11 = vweird.f32 %v6156_v48 }
0x2009   : > { %6157 = vrsqrt.f32 %v5118_v51  ;;  %vm5129_vm1 = vmor %vm5127_vm12, %vm5128_vm11  ;;  %vm5137_vm14 = vweird.f32 %v5118_v51 }
0x200a   : > { %v5123_v15 = vmul.f32 %v6156_v48, %v5122_v33 }
0x200c   : > { %v5124_v34 = vmul.f32 0.5, %v5123_v15 }
0x200e   : > { %v5125_v49 = vsub.f32 1.5, %v5124_v34 }
0x200f   : > { %v6158_v25 = vpop.eup %6157 }
0x2010   : > { %v5126_v18 = vmul.f32 %v6156_v48, %v5125_v49  ;;  %v5132_v50 = vmul.f32 %v6158_v25, %v5118_v51  ;;  %vm5138_vm13 = vweird.f32 %v6158_v25 }
0x2011   : > { %vm5139_vm15 = vmor %vm5137_vm14, %vm5138_vm13 }
0x2012   : > { %v5130_v63 = vsel %vm5129_vm1, %v6156_v48, %v5126_v18  ;;  %v5133_v21 = vmul.f32 %v6158_v25, %v5132_v50 }
0x2013   : > { %v5161_v37 = vmul.f32 %v5130_v63, %v5093_v55 }
0x2014   : > { %v5134_v56 = vmul.f32 0.5, %v5133_v21 }
0x2015   : > { %v5166_v0 = vmul.f32 %v5165_v26, %v5161_v37 }
0x2016   : > { %v5135_v30 = vsub.f32 1.5, %v5134_v56 }
0x2017   : > { %v5171_v3 = vadd.f32 %v5170_v39, %v5166_v0 }
0x2018   : > { %v5136_v52 = vmul.f32 %v6158_v25, %v5135_v30 }
0x2019   : > { %5175 = vst.msk [vmem:[%s7889_s17] sm:$0xff] %vm547_vm0, %v5171_v3 }
0x201a   : > { %v5140_v35 = vsel %vm5139_vm15, %v6158_v25, %v5136_v52 }
0x201b   : > { %v5162_v28 = vmul.f32 %v5140_v35, %v5094_v10 }
0x201d   : > { %v5167_v59 = vmul.f32 %v5165_v26, %v5162_v28 }
0x201f   : > { %v5172_v61 = vadd.f32 %v5170_v39, %v5167_v59 }
0x2021   : > { %5176 = vst.msk [vmem:[%s7889_s17 + $0x8] sm:$0xff] %vm547_vm0, %v5172_v61 }
0x2066   : > { %v5109_v8 = vpop.xlane.xlu1 %5108 }
0x2067   : > { %v5115_v14 = vmul.f32 %v5109_v8, %v6837_v58 }
0x2069   : > { %v5119_v57 = vadd.f32 1e-05, %v5115_v14 }
0x206b   : > { %6159 = vrsqrt.f32 %v5119_v57  ;;  %vm5147_vm3 = vweird.f32 %v5119_v57 }
0x206e   : > { %v5112_v6 = vpop.xlane.xlu0 %5111 }
0x206f   : > { %v5116_v60 = vmul.f32 %v5112_v6, %v6837_v58 }
0x2071   : > { %v6160_v2 = vpop.eup %6159  ;;  %v5120_v7 = vadd.f32 1e-05, %v5116_v60 }
0x2072   : > { %v5142_v54 = vmul.f32 %v6160_v2, %v5119_v57  ;;  %vm5148_vm2 = vweird.f32 %v6160_v2 }
0x2073   : > { %6161 = vrsqrt.f32 %v5120_v7  ;;  %vm5149_vm4 = vmor %vm5147_vm3, %vm5148_vm2  ;;  %vm5157_vm6 = vweird.f32 %v5120_v7 }
0x2074   : > { %v5143_v27 = vmul.f32 %v6160_v2, %v5142_v54 }
0x2076   : > { %v5144_v1 = vmul.f32 0.5, %v5143_v27 }
0x2078   : > { %v5145_v31 = vsub.f32 1.5, %v5144_v1 }
0x2079   : > { %v6162_v42 = vpop.eup %6161 }
0x207a   : > { %v5146_v53 = vmul.f32 %v6160_v2, %v5145_v31  ;;  %v5152_v62 = vmul.f32 %v6162_v42, %v5120_v7  ;;  %vm5158_vm5 = vweird.f32 %v6162_v42 }
0x207b   : > { %vm5159_vm7 = vmor %vm5157_vm6, %vm5158_vm5 }
0x207c   : > { %v5150_v20 = vsel %vm5149_vm4, %v6160_v2, %v5146_v53  ;;  %v5153_v58 = vmul.f32 %v6162_v42, %v5152_v62 }
0x207d   : > { %v5163_v5 = vmul.f32 %v5150_v20, %v7873_v38 }
0x207e   : > { %v5154_v55 = vmul.f32 0.5, %v5153_v58 }
0x207f   : > { %v5168_v43 = vmul.f32 %v5165_v26, %v5163_v5 }
0x2080   : > { %v5155_v40 = vsub.f32 1.5, %v5154_v55 }
0x2081   : > { %v5173_v29 = vadd.f32 %v5170_v39, %v5168_v43 }
0x2082   : > { %v5156_v16 = vmul.f32 %v6162_v42, %v5155_v40 }
0x2083   : > { %5177 = vst.msk [vmem:[%s7889_s17 + $0x10] sm:$0xff] %vm547_vm0, %v5173_v29 }
0x2084   : > { %v5160_v47 = vsel %vm5159_vm7, %v6162_v42, %v5156_v16 }
0x2085   : > { %v5164_v10 = vmul.f32 %v5160_v47, %v7879_v4 }
0x2087   : > { %v5169_v12 = vmul.f32 %v5165_v26, %v5164_v10 }
0x2089   : > { %v5174_v36 = vadd.f32 %v5170_v39, %v5169_v12 }
0x208b   : > { %5178 = vst.msk [vmem:[%s7889_s17 + $0x18] sm:$0xff] %vm547_vm0, %v5174_v36 }
0x208c   : > { %6261 = shalt.err (!%p6258_p7)
}
0x208d   : > { %s6319_s21 = smov 128   ;;  %s6320_s24 = smov 8  }
0x208e   : > { %5740 = dma.vmem_to_hbm [thread:$0]  (%p6412_p11), %s5193_s10, 512, %s5195_s9, %s5180_s12, %s6319_s21, %s6319_s21, %s6320_s24  }
0x208f PF: > { %s5209_s25 = sand.u32 1, %s6292_s27   ;;  %p5750_p8 = pnand %p5365_p9, %p6416_p12 }
0x2090   : > { %s5210_s17 = scalar_lea.sflag [#allocation4], %s5209_s25 }
0x2091   : > { %p5751_p10 = pneg %p5750_p8 }
0x2093   : > { %6287 = dma.done.wait (%p5751_p10), %s5210_s17, 512  }
0x2094   : > { %6289 = vsyncadd (%p5751_p10), %s5210_s17, 4294966784  ;;  %s7968_s30 = sld [smem:[#allocation12_spill]]  ;;  %s7971_s27 = smov %s6296_s28 }
0x2095   : > { %s7969_s20 = sld [smem:[#allocation11_spill]] }
0x2096   : > { %s7970_s29 = sld [smem:[#allocation13_spill]] }
0x209a   : > { %p24_p0 = scmp.ge.s32.totalorder %s7968_s30, 4  }
0x209b   : > { %s7972_s28 = smov %s7969_s20 }
0x209c   :  { %26 = sbr.rel (!%p24_p0) target bundleno = 9 (0x9), region = 138 }
0x20a1   :  { %5216 = vsyncpa [#allocation3], 1 }
0x20a2   :  { %5218 = vsyncpa [#allocation3 + $0x1], 1 }
0x20a3   :  { %5219 = vsyncpa [#allocation6], 1 }
0x20a4   :  { %5221 = vsyncpa [#allocation6 + $0x1], 1 }
0x20a5   :  { %5222 = vsyncpa [#allocation4], 1 }
0x20a6   :  { %5224 = vsyncpa [#allocation4 + $0x1], 1 }

</bundles_post_ra>
